<compile_context>
chip_gen: v7x
topology: tpu7x:2x2x1
jax: 0.10.0
libtpu: 0.0.40
codegen_flags: <defaults>
</compile_context>

<pallas_src>
import functools

import numpy as np
import jax
import jax.numpy as jnp
from jax import lax
from jax.experimental import pallas as pl
from jax.experimental.pallas import tpu as pltpu


def _ims_kernel(x_ref, wimb_ref, bim_ref, smat_ref, wcat_ref, bconv_ref,
                gamma_ref, beta_ref, prelu_ref, gmat_ref, out_ref, pm_ref,
                *, C, HW, eps, groups):
    x = x_ref[0]                                            # (C, HW)

    # 1x1 conv + sigmoid.  The weight is broadcast to a (C, C) matrix with
    # identical rows, so the per-pixel importance value lands in every
    # channel row already aligned with x (no lane/row broadcasts later).
    logits = jnp.dot(wimb_ref[...], x,
                     preferred_element_type=jnp.float32) + bim_ref[0]
    sig = jax.nn.sigmoid(logits)                            # (C, HW)

    prod = None
    for i, th in enumerate((0.3, 0.5, 0.7)):
        m = jnp.where(sig >= th, x, 0.0)                    # masked input

        # Transposed im2col: rows [t*C:(t+1)*C] of pm hold the masked input
        # at tap t's source pixel (zero outside the image).  The 9 "shift"
        # matmuls use otherwise-idle MXU cycles instead of XLU rolls or
        # relayout-inducing offset slices; stores are aligned (offsets are
        # multiples of 32 sublanes) and 256 lanes wide.
        for t in range(9):
            pm_ref[t * C:(t + 1) * C, :] = jnp.dot(
                m, smat_ref[t], preferred_element_type=jnp.float32)

        # 3x3 conv as a single K = 9*C matmul + bias.
        acc = jnp.dot(wcat_ref[i], pm_ref[...],
                      preferred_element_type=jnp.float32) + bconv_ref[i]

        # GroupNorm(groups, C), folded into one scale+shift pass over acc.
        mu_c = jnp.mean(acc, axis=1, keepdims=True)         # (C, 1)
        ex2_c = jnp.mean(acc * acc, axis=1, keepdims=True)  # (C, 1)
        if C == groups:                                     # 1 channel/group
            mu_g, ex2_g = mu_c, ex2_c                       # gmat == identity
        else:
            mu_g = jnp.dot(gmat_ref[...], mu_c,
                           preferred_element_type=jnp.float32)
            ex2_g = jnp.dot(gmat_ref[...], ex2_c,
                            preferred_element_type=jnp.float32)
        var_g = jnp.maximum(ex2_g - mu_g * mu_g, 0.0)       # clamp: no NaNs
        scale = gamma_ref[i] * lax.rsqrt(var_g + eps)       # (C, 1)
        shift = beta_ref[i] - mu_g * scale                  # (C, 1)
        y = acc * scale + shift                             # (C, HW)

        # PReLU (single shared slope, scalar read from SMEM).
        a = prelu_ref[i]
        y = jnp.where(y >= 0.0, y, a * y)

        prod = y if prod is None else prod * y

    out_ref[0] = prod                                       # lane-dense store


def _shift_matrices(H, W):
    """S_t[q, p] = 1 iff padded-3x3 tap t of output pixel p reads pixel q."""
    HW = H * W
    p = np.arange(HW)
    h, w = p // W, p % W
    mats = []
    for dy in range(3):
        for dx in range(3):
            hh, ww = h + dy - 1, w + dx - 1
            valid = (hh >= 0) & (hh < H) & (ww >= 0) & (ww < W)
            q = hh * W + ww
            m = np.zeros((HW, HW), np.float32)
            m[q[valid], p[valid]] = 1.0
            mats.append(m)
    return jnp.asarray(np.stack(mats))                      # (9, HW, HW)


def ims_forward(x_nchw, params, eps=1e-5, groups=32):
    """Pallas forward. x_nchw: (N, C, H, W) float32, like the PyTorch module."""
    w_im, b_im, w_conv, b_conv, gamma, beta, prelu = params
    N, C, H, W = x_nchw.shape
    HW = H * W
    x_t = x_nchw.reshape(N, C, HW)                          # channel-major, free

    # Kernel-layout parameters (pure layout plumbing, done once in XLA).
    wimb = jnp.tile(w_im.reshape(1, C), (C, 1))             # (C, C), rows = w_im
    wcat = jnp.transpose(w_conv, (0, 3, 1, 2)).reshape(3, C, 9 * C)
    bconv_col = b_conv.reshape(3, C, 1)
    gamma_col = gamma.reshape(3, C, 1)
    beta_col = beta.reshape(3, C, 1)
    smat = _shift_matrices(H, W)                            # (9, HW, HW)
    cg = C // groups
    gid = jnp.arange(C) // cg
    gmat = (gid[:, None] == gid[None, :]).astype(jnp.float32) / cg  # (C, C)

    kernel = functools.partial(_ims_kernel, C=C, HW=HW, eps=eps, groups=groups)
    smem = pl.BlockSpec(memory_space=pltpu.MemorySpace.SMEM)
    out = pl.pallas_call(
        kernel,
        out_shape=jax.ShapeDtypeStruct((N, C, HW), jnp.float32),
        grid_spec=pltpu.PrefetchScalarGridSpec(
            num_scalar_prefetch=0,
            grid=(N,),
            in_specs=[
                pl.BlockSpec((1, C, HW), lambda n: (n, 0, 0)),      # x
                pl.BlockSpec((C, C), lambda n: (0, 0)),             # wimb
                smem,                                               # b_im (1,)
                pl.BlockSpec((9, HW, HW), lambda n: (0, 0, 0)),     # shift mats
                pl.BlockSpec((3, C, 9 * C), lambda n: (0, 0, 0)),   # conv w
                pl.BlockSpec((3, C, 1), lambda n: (0, 0, 0)),       # conv b
                pl.BlockSpec((3, C, 1), lambda n: (0, 0, 0)),       # GN gamma
                pl.BlockSpec((3, C, 1), lambda n: (0, 0, 0)),       # GN beta
                smem,                                               # prelu (3,)
                pl.BlockSpec((C, C), lambda n: (0, 0)),             # group avg
            ],
            out_specs=pl.BlockSpec((1, C, HW), lambda n: (n, 0, 0)),
            scratch_shapes=[pltpu.VMEM((9 * C, HW), jnp.float32)],
        ),
        compiler_params=pltpu.CompilerParams(
            dimension_semantics=("parallel",)),
    )(x_t, wimb, b_im, smat, wcat, bconv_col, gamma_col, beta_col, prelu, gmat)
    return out.reshape(N, C, H, W)                          # already NCHW


def init_params(key, C):
    groups = 32
    assert C % groups == 0, "GroupNorm(32, C) requires C % 32 == 0"
    k = jax.random.split(key, 6)
    w_im = 0.1 * jax.random.normal(k[0], (C, 1), jnp.float32)
    b_im = 0.05 * jax.random.normal(k[1], (1,), jnp.float32)
    # 3x3 conv weights, tap-major: (branch, tap=dy*3+dx, Cin, Cout)
    w_conv = (1.0 / (3.0 * float(C) ** 0.5)) * jax.random.normal(
        k[2], (3, 9, C, C), jnp.float32)
    b_conv = 0.05 * jax.random.normal(k[3], (3, C), jnp.float32)
    gamma = 1.0 + 0.1 * jax.random.normal(k[4], (3, C), jnp.float32)
    beta = 0.1 * jax.random.normal(k[5], (3, C), jnp.float32)
    prelu = jnp.full((3,), 0.25, jnp.float32)               # nn.PReLU() default
    return (w_im, b_im, w_conv, b_conv, gamma, beta, prelu)


def ims_reference(x_nchw, params, eps=1e-5, groups=32):
    """Pure-JAX reference matching the PyTorch forward."""
    w_im, b_im, w_conv, b_conv, gamma, beta, prelu = params
    N, C, H, W = x_nchw.shape
    cg = C // groups
    x = jnp.transpose(x_nchw, (0, 2, 3, 1))                 # NHWC
    im = jax.nn.sigmoid(
        jnp.einsum('nhwc,co->nhwo', x, w_im,
                   precision=lax.Precision.HIGHEST) + b_im[0])
    prod = None
    for i, th in enumerate((0.3, 0.5, 0.7)):
        sel = (im >= th).astype(jnp.float32)
        xm = x * sel
        w_hwio = w_conv[i].reshape(3, 3, C, C)
        y = lax.conv_general_dilated(
            xm, w_hwio, window_strides=(1, 1), padding='SAME',
            dimension_numbers=('NHWC', 'HWIO', 'NHWC'),
            precision=lax.Precision.HIGHEST) + b_conv[i]
        yg = y.reshape(N, H, W, groups, cg)
        mu = jnp.mean(yg, axis=(1, 2, 4), keepdims=True)
        var = jnp.mean((yg - mu) ** 2, axis=(1, 2, 4), keepdims=True)
        yn = ((yg - mu) / jnp.sqrt(var + eps)).reshape(N, H, W, C)
        yn = yn * gamma[i] + beta[i]
        y = jnp.where(yn >= 0.0, yn, prelu[i] * yn)
        prod = y if prod is None else prod * y
    return jnp.transpose(prod, (0, 3, 1, 2))                # NCHW


if __name__ == "__main__":
    key = jax.random.PRNGKey(0)
    kx, kp = jax.random.split(key)
    # GroupNorm(32, channel) requires channel % 32 == 0 -> smallest channel=32.
    N, C, H, W = 2, 32, 16, 16
    x = jax.random.normal(kx, (N, C, H, W), jnp.float32)
    params = init_params(kp, C)

    out = jax.block_until_ready(ims_forward(x, params))
    ref = jax.block_until_ready(ims_reference(x, params))

    assert out.shape == (N, C, H, W)
    assert bool(jnp.all(jnp.isfinite(out)))
    # Robust check: allow a small fraction of pixels to differ where an
    # importance-map value lands numerically on a selection threshold.
    err = jnp.abs(out - ref)
    frac_ok = float(jnp.mean((err < 1e-2).astype(jnp.float32)))
    assert frac_ok >= 0.97, f"only {frac_ok:.4f} of elements match reference"
    print("KERNEL_OK")
</pallas_src>

<mosaic_0001>
module attributes {stable_mosaic.version = 11 : i64} {
  func.func @_ims_kernel(%arg0: i32, %arg1: memref<1x32x256xf32, #tpu.memory_space<vmem>>, %arg2: memref<32x32xf32, #tpu.memory_space<vmem>>, %arg3: memref<1xf32, #tpu.memory_space<smem>>, %arg4: memref<9x256x256xf32, #tpu.memory_space<vmem>>, %arg5: memref<3x32x288xf32, #tpu.memory_space<vmem>>, %arg6: memref<3x32x1xf32, #tpu.memory_space<vmem>>, %arg7: memref<3x32x1xf32, #tpu.memory_space<vmem>>, %arg8: memref<3x32x1xf32, #tpu.memory_space<vmem>>, %arg9: memref<3xf32, #tpu.memory_space<smem>>, %arg10: memref<32x32xf32, #tpu.memory_space<vmem>>, %arg11: memref<1x32x256xf32, #tpu.memory_space<vmem>>, %arg12: memref<288x256xf32, #tpu.memory_space<vmem>>) attributes {dimension_semantics = [#tpu.dimension_semantics<parallel>], iteration_bounds = array<i64: 2>, scalar_prefetch = 0 : i64, scratch_operands = 1 : i64, tpu.core_type = #tpu.core_type<tc>, window_params = [{transform_indices = @transform_0, window_bounds = array<i64: 1, 32, 256>}, {pipeline_mode = #tpu.pipeline_mode<synchronous>, transform_indices = @transform_1, window_bounds = array<i64: 32, 32>}, {transform_indices = @transform_2, window_bounds = array<i64: 1>}, {pipeline_mode = #tpu.pipeline_mode<synchronous>, transform_indices = @transform_3, window_bounds = array<i64: 9, 256, 256>}, {pipeline_mode = #tpu.pipeline_mode<synchronous>, transform_indices = @transform_4, window_bounds = array<i64: 3, 32, 288>}, {pipeline_mode = #tpu.pipeline_mode<synchronous>, transform_indices = @transform_5, window_bounds = array<i64: 3, 32, 1>}, {pipeline_mode = #tpu.pipeline_mode<synchronous>, transform_indices = @transform_6, window_bounds = array<i64: 3, 32, 1>}, {pipeline_mode = #tpu.pipeline_mode<synchronous>, transform_indices = @transform_7, window_bounds = array<i64: 3, 32, 1>}, {transform_indices = @transform_8, window_bounds = array<i64: 3>}, {pipeline_mode = #tpu.pipeline_mode<synchronous>, transform_indices = @transform_9, window_bounds = array<i64: 32, 32>}, {transform_indices = @transform_10, window_bounds = array<i64: 1, 32, 256>}]} {
    %c0 = arith.constant 0 : index
    %c0_0 = arith.constant 0 : index
    %c0_1 = arith.constant 0 : index
    %0 = vector.load %arg1[%c0, %c0_0, %c0_1] : memref<1x32x256xf32, #tpu.memory_space<vmem>>, vector<1x32x256xf32>
    %1 = vector.shape_cast %0 : vector<1x32x256xf32> to vector<32x256xf32>
    %c0_2 = arith.constant 0 : index
    %c0_3 = arith.constant 0 : index
    %2 = vector.load %arg2[%c0_2, %c0_3] : memref<32x32xf32, #tpu.memory_space<vmem>>, vector<32x32xf32>
    %cst = arith.constant dense<0.000000e+00> : vector<32x256xf32>
    %3 = tpu.matmul %2, %1, %cst {dimension_numbers = #tpu.dot_dimension_numbers<[1], [0], [0], [1], [0, 0, 1, 1], [], []>} : vector<32x32xf32>, vector<32x256xf32>, vector<32x256xf32> -> vector<32x256xf32>
    %c0_4 = arith.constant 0 : index
    %4 = memref.load %arg3[%c0_4] : memref<1xf32, #tpu.memory_space<smem>>
    %5 = vector.broadcast %4 : f32 to vector<32x256xf32>
    %6 = arith.addf %3, %5 : vector<32x256xf32>
    %7 = arith.negf %6 : vector<32x256xf32>
    %8 = math.exp %7 : vector<32x256xf32>
    %cst_5 = arith.constant 1.000000e+00 : f32
    %9 = vector.broadcast %cst_5 : f32 to vector<32x256xf32>
    %10 = arith.addf %9, %8 : vector<32x256xf32>
    %11 = arith.divf %9, %10 : vector<32x256xf32>
    %cst_6 = arith.constant 3.000000e-01 : f32
    %12 = vector.broadcast %cst_6 : f32 to vector<32x256xf32>
    %13 = arith.cmpf oge, %11, %12 : vector<32x256xf32>
    %cst_7 = arith.constant 0.000000e+00 : f32
    %14 = vector.broadcast %cst_7 : f32 to vector<32x256xf32>
    %15 = arith.select %13, %1, %14 : vector<32x256xi1>, vector<32x256xf32>
    %c0_8 = arith.constant 0 : index
    %c0_9 = arith.constant 0 : index
    %c0_10 = arith.constant 0 : index
    %16 = vector.load %arg4[%c0_8, %c0_9, %c0_10] : memref<9x256x256xf32, #tpu.memory_space<vmem>>, vector<1x256x256xf32>
    %17 = vector.shape_cast %16 : vector<1x256x256xf32> to vector<256x256xf32>
    %cst_11 = arith.constant dense<0.000000e+00> : vector<32x256xf32>
    %18 = tpu.matmul %15, %17, %cst_11 {dimension_numbers = #tpu.dot_dimension_numbers<[1], [0], [0], [1], [0, 0, 1, 1], [], []>} : vector<32x256xf32>, vector<256x256xf32>, vector<32x256xf32> -> vector<32x256xf32>
    %c0_12 = arith.constant 0 : index
    %c0_13 = arith.constant 0 : index
    %19 = vector.load %arg12[%c0_12, %c0_13] : memref<288x256xf32, #tpu.memory_space<vmem>>, vector<32x256xf32>
    tpu.vector_store %arg12[%c0_12, %c0_13], %18 {strides = array<i32>} : memref<288x256xf32, #tpu.memory_space<vmem>>, vector<32x256xf32>,
    %c1 = arith.constant 1 : index
    %c0_14 = arith.constant 0 : index
    %c0_15 = arith.constant 0 : index
    %20 = vector.load %arg4[%c1, %c0_14, %c0_15] : memref<9x256x256xf32, #tpu.memory_space<vmem>>, vector<1x256x256xf32>
    %21 = vector.shape_cast %20 : vector<1x256x256xf32> to vector<256x256xf32>
    %cst_16 = arith.constant dense<0.000000e+00> : vector<32x256xf32>
    %22 = tpu.matmul %15, %21, %cst_16 {dimension_numbers = #tpu.dot_dimension_numbers<[1], [0], [0], [1], [0, 0, 1, 1], [], []>} : vector<32x256xf32>, vector<256x256xf32>, vector<32x256xf32> -> vector<32x256xf32>
    %c32 = arith.constant 32 : index
    %c0_17 = arith.constant 0 : index
    %23 = vector.load %arg12[%c32, %c0_17] : memref<288x256xf32, #tpu.memory_space<vmem>>, vector<32x256xf32>
    tpu.vector_store %arg12[%c32, %c0_17], %22 {strides = array<i32>} : memref<288x256xf32, #tpu.memory_space<vmem>>, vector<32x256xf32>,
    %c2 = arith.constant 2 : index
    %c0_18 = arith.constant 0 : index
    %c0_19 = arith.constant 0 : index
    %24 = vector.load %arg4[%c2, %c0_18, %c0_19] : memref<9x256x256xf32, #tpu.memory_space<vmem>>, vector<1x256x256xf32>
    %25 = vector.shape_cast %24 : vector<1x256x256xf32> to vector<256x256xf32>
    %cst_20 = arith.constant dense<0.000000e+00> : vector<32x256xf32>
    %26 = tpu.matmul %15, %25, %cst_20 {dimension_numbers = #tpu.dot_dimension_numbers<[1], [0], [0], [1], [0, 0, 1, 1], [], []>} : vector<32x256xf32>, vector<256x256xf32>, vector<32x256xf32> -> vector<32x256xf32>
    %c64 = arith.constant 64 : index
    %c0_21 = arith.constant 0 : index
    %27 = vector.load %arg12[%c64, %c0_21] : memref<288x256xf32, #tpu.memory_space<vmem>>, vector<32x256xf32>
    tpu.vector_store %arg12[%c64, %c0_21], %26 {strides = array<i32>} : memref<288x256xf32, #tpu.memory_space<vmem>>, vector<32x256xf32>,
    %c3 = arith.constant 3 : index
    %c0_22 = arith.constant 0 : index
    %c0_23 = arith.constant 0 : index
    %28 = vector.load %arg4[%c3, %c0_22, %c0_23] : memref<9x256x256xf32, #tpu.memory_space<vmem>>, vector<1x256x256xf32>
    %29 = vector.shape_cast %28 : vector<1x256x256xf32> to vector<256x256xf32>
    %cst_24 = arith.constant dense<0.000000e+00> : vector<32x256xf32>
    %30 = tpu.matmul %15, %29, %cst_24 {dimension_numbers = #tpu.dot_dimension_numbers<[1], [0], [0], [1], [0, 0, 1, 1], [], []>} : vector<32x256xf32>, vector<256x256xf32>, vector<32x256xf32> -> vector<32x256xf32>
    %c96 = arith.constant 96 : index
    %c0_25 = arith.constant 0 : index
    %31 = vector.load %arg12[%c96, %c0_25] : memref<288x256xf32, #tpu.memory_space<vmem>>, vector<32x256xf32>
    tpu.vector_store %arg12[%c96, %c0_25], %30 {strides = array<i32>} : memref<288x256xf32, #tpu.memory_space<vmem>>, vector<32x256xf32>,
    %c4 = arith.constant 4 : index
    %c0_26 = arith.constant 0 : index
    %c0_27 = arith.constant 0 : index
    %32 = vector.load %arg4[%c4, %c0_26, %c0_27] : memref<9x256x256xf32, #tpu.memory_space<vmem>>, vector<1x256x256xf32>
    %33 = vector.shape_cast %32 : vector<1x256x256xf32> to vector<256x256xf32>
    %cst_28 = arith.constant dense<0.000000e+00> : vector<32x256xf32>
    %34 = tpu.matmul %15, %33, %cst_28 {dimension_numbers = #tpu.dot_dimension_numbers<[1], [0], [0], [1], [0, 0, 1, 1], [], []>} : vector<32x256xf32>, vector<256x256xf32>, vector<32x256xf32> -> vector<32x256xf32>
    %c128 = arith.constant 128 : index
    %c0_29 = arith.constant 0 : index
    %35 = vector.load %arg12[%c128, %c0_29] : memref<288x256xf32, #tpu.memory_space<vmem>>, vector<32x256xf32>
    tpu.vector_store %arg12[%c128, %c0_29], %34 {strides = array<i32>} : memref<288x256xf32, #tpu.memory_space<vmem>>, vector<32x256xf32>,
    %c5 = arith.constant 5 : index
    %c0_30 = arith.constant 0 : index
    %c0_31 = arith.constant 0 : index
    %36 = vector.load %arg4[%c5, %c0_30, %c0_31] : memref<9x256x256xf32, #tpu.memory_space<vmem>>, vector<1x256x256xf32>
    %37 = vector.shape_cast %36 : vector<1x256x256xf32> to vector<256x256xf32>
    %cst_32 = arith.constant dense<0.000000e+00> : vector<32x256xf32>
    %38 = tpu.matmul %15, %37, %cst_32 {dimension_numbers = #tpu.dot_dimension_numbers<[1], [0], [0], [1], [0, 0, 1, 1], [], []>} : vector<32x256xf32>, vector<256x256xf32>, vector<32x256xf32> -> vector<32x256xf32>
    %c160 = arith.constant 160 : index
    %c0_33 = arith.constant 0 : index
    %39 = vector.load %arg12[%c160, %c0_33] : memref<288x256xf32, #tpu.memory_space<vmem>>, vector<32x256xf32>
    tpu.vector_store %arg12[%c160, %c0_33], %38 {strides = array<i32>} : memref<288x256xf32, #tpu.memory_space<vmem>>, vector<32x256xf32>,
    %c6 = arith.constant 6 : index
    %c0_34 = arith.constant 0 : index
    %c0_35 = arith.constant 0 : index
    %40 = vector.load %arg4[%c6, %c0_34, %c0_35] : memref<9x256x256xf32, #tpu.memory_space<vmem>>, vector<1x256x256xf32>
    %41 = vector.shape_cast %40 : vector<1x256x256xf32> to vector<256x256xf32>
    %cst_36 = arith.constant dense<0.000000e+00> : vector<32x256xf32>
    %42 = tpu.matmul %15, %41, %cst_36 {dimension_numbers = #tpu.dot_dimension_numbers<[1], [0], [0], [1], [0, 0, 1, 1], [], []>} : vector<32x256xf32>, vector<256x256xf32>, vector<32x256xf32> -> vector<32x256xf32>
    %c192 = arith.constant 192 : index
    %c0_37 = arith.constant 0 : index
    %43 = vector.load %arg12[%c192, %c0_37] : memref<288x256xf32, #tpu.memory_space<vmem>>, vector<32x256xf32>
    tpu.vector_store %arg12[%c192, %c0_37], %42 {strides = array<i32>} : memref<288x256xf32, #tpu.memory_space<vmem>>, vector<32x256xf32>,
    %c7 = arith.constant 7 : index
    %c0_38 = arith.constant 0 : index
    %c0_39 = arith.constant 0 : index
    %44 = vector.load %arg4[%c7, %c0_38, %c0_39] : memref<9x256x256xf32, #tpu.memory_space<vmem>>, vector<1x256x256xf32>
    %45 = vector.shape_cast %44 : vector<1x256x256xf32> to vector<256x256xf32>
    %cst_40 = arith.constant dense<0.000000e+00> : vector<32x256xf32>
    %46 = tpu.matmul %15, %45, %cst_40 {dimension_numbers = #tpu.dot_dimension_numbers<[1], [0], [0], [1], [0, 0, 1, 1], [], []>} : vector<32x256xf32>, vector<256x256xf32>, vector<32x256xf32> -> vector<32x256xf32>
    %c224 = arith.constant 224 : index
    %c0_41 = arith.constant 0 : index
    %47 = vector.load %arg12[%c224, %c0_41] : memref<288x256xf32, #tpu.memory_space<vmem>>, vector<32x256xf32>
    tpu.vector_store %arg12[%c224, %c0_41], %46 {strides = array<i32>} : memref<288x256xf32, #tpu.memory_space<vmem>>, vector<32x256xf32>,
    %c8 = arith.constant 8 : index
    %c0_42 = arith.constant 0 : index
    %c0_43 = arith.constant 0 : index
    %48 = vector.load %arg4[%c8, %c0_42, %c0_43] : memref<9x256x256xf32, #tpu.memory_space<vmem>>, vector<1x256x256xf32>
    %49 = vector.shape_cast %48 : vector<1x256x256xf32> to vector<256x256xf32>
    %cst_44 = arith.constant dense<0.000000e+00> : vector<32x256xf32>
    %50 = tpu.matmul %15, %49, %cst_44 {dimension_numbers = #tpu.dot_dimension_numbers<[1], [0], [0], [1], [0, 0, 1, 1], [], []>} : vector<32x256xf32>, vector<256x256xf32>, vector<32x256xf32> -> vector<32x256xf32>
    %c256 = arith.constant 256 : index
    %c0_45 = arith.constant 0 : index
    %51 = vector.load %arg12[%c256, %c0_45] : memref<288x256xf32, #tpu.memory_space<vmem>>, vector<32x256xf32>
    tpu.vector_store %arg12[%c256, %c0_45], %50 {strides = array<i32>} : memref<288x256xf32, #tpu.memory_space<vmem>>, vector<32x256xf32>,
    %c0_46 = arith.constant 0 : index
    %c0_47 = arith.constant 0 : index
    %c0_48 = arith.constant 0 : index
    %52 = vector.load %arg5[%c0_46, %c0_47, %c0_48] : memref<3x32x288xf32, #tpu.memory_space<vmem>>, vector<1x32x288xf32>
    %53 = vector.shape_cast %52 : vector<1x32x288xf32> to vector<32x288xf32>
    %c0_49 = arith.constant 0 : index
    %c0_50 = arith.constant 0 : index
    %54 = vector.load %arg12[%c0_49, %c0_50] : memref<288x256xf32, #tpu.memory_space<vmem>>, vector<288x256xf32>
    %cst_51 = arith.constant dense<0.000000e+00> : vector<32x256xf32>
    %55 = tpu.matmul %53, %54, %cst_51 {dimension_numbers = #tpu.dot_dimension_numbers<[1], [0], [0], [1], [0, 0, 1, 1], [], []>} : vector<32x288xf32>, vector<288x256xf32>, vector<32x256xf32> -> vector<32x256xf32>
    %c0_52 = arith.constant 0 : index
    %c0_53 = arith.constant 0 : index
    %c0_54 = arith.constant 0 : index
    %56 = vector.load %arg6[%c0_52, %c0_53, %c0_54] : memref<3x32x1xf32, #tpu.memory_space<vmem>>, vector<1x32x1xf32>
    %57 = vector.shape_cast %56 : vector<1x32x1xf32> to vector<32x1xf32>
    %58 = vector.broadcast %57 : vector<32x1xf32> to vector<32x256xf32>
    %59 = arith.addf %55, %58 : vector<32x256xf32>
    %cst_55 = arith.constant dense<0.000000e+00> : vector<32xf32>
    %60 = vector.multi_reduction <add>, %59, %cst_55 [1] : vector<32x256xf32> to vector<32xf32>
    %61 = vector.shape_cast %60 : vector<32xf32> to vector<32x1xf32>
    %cst_56 = arith.constant 2.560000e+02 : f32
    %62 = vector.broadcast %cst_56 : f32 to vector<32x1xf32>
    %63 = arith.divf %61, %62 : vector<32x1xf32>
    %64 = arith.mulf %59, %59 : vector<32x256xf32>
    %cst_57 = arith.constant dense<0.000000e+00> : vector<32xf32>
    %65 = vector.multi_reduction <add>, %64, %cst_57 [1] : vector<32x256xf32> to vector<32xf32>
    %66 = vector.shape_cast %65 : vector<32xf32> to vector<32x1xf32>
    %cst_58 = arith.constant 2.560000e+02 : f32
    %67 = vector.broadcast %cst_58 : f32 to vector<32x1xf32>
    %68 = arith.divf %66, %67 : vector<32x1xf32>
    %69 = arith.mulf %63, %63 : vector<32x1xf32>
    %70 = arith.subf %68, %69 : vector<32x1xf32>
    %cst_59 = arith.constant 0.000000e+00 : f32
    %71 = vector.broadcast %cst_59 : f32 to vector<32x1xf32>
    %72 = arith.maximumf %70, %71 : vector<32x1xf32>
    %c0_60 = arith.constant 0 : index
    %c0_61 = arith.constant 0 : index
    %c0_62 = arith.constant 0 : index
    %73 = vector.load %arg7[%c0_60, %c0_61, %c0_62] : memref<3x32x1xf32, #tpu.memory_space<vmem>>, vector<1x32x1xf32>
    %74 = vector.shape_cast %73 : vector<1x32x1xf32> to vector<32x1xf32>
    %cst_63 = arith.constant 9.99999974E-6 : f32
    %75 = vector.broadcast %cst_63 : f32 to vector<32x1xf32>
    %76 = arith.addf %72, %75 : vector<32x1xf32>
    %77 = math.rsqrt %76 : vector<32x1xf32>
    %78 = arith.mulf %74, %77 : vector<32x1xf32>
    %c0_64 = arith.constant 0 : index
    %c0_65 = arith.constant 0 : index
    %c0_66 = arith.constant 0 : index
    %79 = vector.load %arg8[%c0_64, %c0_65, %c0_66] : memref<3x32x1xf32, #tpu.memory_space<vmem>>, vector<1x32x1xf32>
    %80 = vector.shape_cast %79 : vector<1x32x1xf32> to vector<32x1xf32>
    %81 = arith.mulf %63, %78 : vector<32x1xf32>
    %82 = arith.subf %80, %81 : vector<32x1xf32>
    %83 = vector.broadcast %78 : vector<32x1xf32> to vector<32x256xf32>
    %84 = arith.mulf %59, %83 : vector<32x256xf32>
    %85 = vector.broadcast %82 : vector<32x1xf32> to vector<32x256xf32>
    %86 = arith.addf %84, %85 : vector<32x256xf32>
    %c0_67 = arith.constant 0 : index
    %87 = memref.load %arg9[%c0_67] : memref<3xf32, #tpu.memory_space<smem>>
    %cst_68 = arith.constant 0.000000e+00 : f32
    %88 = vector.broadcast %cst_68 : f32 to vector<32x256xf32>
    %89 = arith.cmpf oge, %86, %88 : vector<32x256xf32>
    %90 = vector.broadcast %87 : f32 to vector<32x256xf32>
    %91 = arith.mulf %90, %86 : vector<32x256xf32>
    %92 = arith.select %89, %86, %91 : vector<32x256xi1>, vector<32x256xf32>
    %cst_69 = arith.constant 5.000000e-01 : f32
    %93 = vector.broadcast %cst_69 : f32 to vector<32x256xf32>
    %94 = arith.cmpf oge, %11, %93 : vector<32x256xf32>
    %cst_70 = arith.constant 0.000000e+00 : f32
    %95 = vector.broadcast %cst_70 : f32 to vector<32x256xf32>
    %96 = arith.select %94, %1, %95 : vector<32x256xi1>, vector<32x256xf32>
    %c0_71 = arith.constant 0 : index
    %c0_72 = arith.constant 0 : index
    %c0_73 = arith.constant 0 : index
    %97 = vector.load %arg4[%c0_71, %c0_72, %c0_73] : memref<9x256x256xf32, #tpu.memory_space<vmem>>, vector<1x256x256xf32>
    %98 = vector.shape_cast %97 : vector<1x256x256xf32> to vector<256x256xf32>
    %cst_74 = arith.constant dense<0.000000e+00> : vector<32x256xf32>
    %99 = tpu.matmul %96, %98, %cst_74 {dimension_numbers = #tpu.dot_dimension_numbers<[1], [0], [0], [1], [0, 0, 1, 1], [], []>} : vector<32x256xf32>, vector<256x256xf32>, vector<32x256xf32> -> vector<32x256xf32>
    %c0_75 = arith.constant 0 : index
    %c0_76 = arith.constant 0 : index
    %100 = vector.load %arg12[%c0_75, %c0_76] : memref<288x256xf32, #tpu.memory_space<vmem>>, vector<32x256xf32>
    tpu.vector_store %arg12[%c0_75, %c0_76], %99 {strides = array<i32>} : memref<288x256xf32, #tpu.memory_space<vmem>>, vector<32x256xf32>,
    %c1_77 = arith.constant 1 : index
    %c0_78 = arith.constant 0 : index
    %c0_79 = arith.constant 0 : index
    %101 = vector.load %arg4[%c1_77, %c0_78, %c0_79] : memref<9x256x256xf32, #tpu.memory_space<vmem>>, vector<1x256x256xf32>
    %102 = vector.shape_cast %101 : vector<1x256x256xf32> to vector<256x256xf32>
    %cst_80 = arith.constant dense<0.000000e+00> : vector<32x256xf32>
    %103 = tpu.matmul %96, %102, %cst_80 {dimension_numbers = #tpu.dot_dimension_numbers<[1], [0], [0], [1], [0, 0, 1, 1], [], []>} : vector<32x256xf32>, vector<256x256xf32>, vector<32x256xf32> -> vector<32x256xf32>
    %c32_81 = arith.constant 32 : index
    %c0_82 = arith.constant 0 : index
    %104 = vector.load %arg12[%c32_81, %c0_82] : memref<288x256xf32, #tpu.memory_space<vmem>>, vector<32x256xf32>
    tpu.vector_store %arg12[%c32_81, %c0_82], %103 {strides = array<i32>} : memref<288x256xf32, #tpu.memory_space<vmem>>, vector<32x256xf32>,
    %c2_83 = arith.constant 2 : index
    %c0_84 = arith.constant 0 : index
    %c0_85 = arith.constant 0 : index
    %105 = vector.load %arg4[%c2_83, %c0_84, %c0_85] : memref<9x256x256xf32, #tpu.memory_space<vmem>>, vector<1x256x256xf32>
    %106 = vector.shape_cast %105 : vector<1x256x256xf32> to vector<256x256xf32>
    %cst_86 = arith.constant dense<0.000000e+00> : vector<32x256xf32>
    %107 = tpu.matmul %96, %106, %cst_86 {dimension_numbers = #tpu.dot_dimension_numbers<[1], [0], [0], [1], [0, 0, 1, 1], [], []>} : vector<32x256xf32>, vector<256x256xf32>, vector<32x256xf32> -> vector<32x256xf32>
    %c64_87 = arith.constant 64 : index
    %c0_88 = arith.constant 0 : index
    %108 = vector.load %arg12[%c64_87, %c0_88] : memref<288x256xf32, #tpu.memory_space<vmem>>, vector<32x256xf32>
    tpu.vector_store %arg12[%c64_87, %c0_88], %107 {strides = array<i32>} : memref<288x256xf32, #tpu.memory_space<vmem>>, vector<32x256xf32>,
    %c3_89 = arith.constant 3 : index
    %c0_90 = arith.constant 0 : index
    %c0_91 = arith.constant 0 : index
    %109 = vector.load %arg4[%c3_89, %c0_90, %c0_91] : memref<9x256x256xf32, #tpu.memory_space<vmem>>, vector<1x256x256xf32>
    %110 = vector.shape_cast %109 : vector<1x256x256xf32> to vector<256x256xf32>
    %cst_92 = arith.constant dense<0.000000e+00> : vector<32x256xf32>
    %111 = tpu.matmul %96, %110, %cst_92 {dimension_numbers = #tpu.dot_dimension_numbers<[1], [0], [0], [1], [0, 0, 1, 1], [], []>} : vector<32x256xf32>, vector<256x256xf32>, vector<32x256xf32> -> vector<32x256xf32>
    %c96_93 = arith.constant 96 : index
    %c0_94 = arith.constant 0 : index
    %112 = vector.load %arg12[%c96_93, %c0_94] : memref<288x256xf32, #tpu.memory_space<vmem>>, vector<32x256xf32>
    tpu.vector_store %arg12[%c96_93, %c0_94], %111 {strides = array<i32>} : memref<288x256xf32, #tpu.memory_space<vmem>>, vector<32x256xf32>,
    %c4_95 = arith.constant 4 : index
    %c0_96 = arith.constant 0 : index
    %c0_97 = arith.constant 0 : index
    %113 = vector.load %arg4[%c4_95, %c0_96, %c0_97] : memref<9x256x256xf32, #tpu.memory_space<vmem>>, vector<1x256x256xf32>
    %114 = vector.shape_cast %113 : vector<1x256x256xf32> to vector<256x256xf32>
    %cst_98 = arith.constant dense<0.000000e+00> : vector<32x256xf32>
    %115 = tpu.matmul %96, %114, %cst_98 {dimension_numbers = #tpu.dot_dimension_numbers<[1], [0], [0], [1], [0, 0, 1, 1], [], []>} : vector<32x256xf32>, vector<256x256xf32>, vector<32x256xf32> -> vector<32x256xf32>
    %c128_99 = arith.constant 128 : index
    %c0_100 = arith.constant 0 : index
    %116 = vector.load %arg12[%c128_99, %c0_100] : memref<288x256xf32, #tpu.memory_space<vmem>>, vector<32x256xf32>
    tpu.vector_store %arg12[%c128_99, %c0_100], %115 {strides = array<i32>} : memref<288x256xf32, #tpu.memory_space<vmem>>, vector<32x256xf32>,
    %c5_101 = arith.constant 5 : index
    %c0_102 = arith.constant 0 : index
    %c0_103 = arith.constant 0 : index
    %117 = vector.load %arg4[%c5_101, %c0_102, %c0_103] : memref<9x256x256xf32, #tpu.memory_space<vmem>>, vector<1x256x256xf32>
    %118 = vector.shape_cast %117 : vector<1x256x256xf32> to vector<256x256xf32>
    %cst_104 = arith.constant dense<0.000000e+00> : vector<32x256xf32>
    %119 = tpu.matmul %96, %118, %cst_104 {dimension_numbers = #tpu.dot_dimension_numbers<[1], [0], [0], [1], [0, 0, 1, 1], [], []>} : vector<32x256xf32>, vector<256x256xf32>, vector<32x256xf32> -> vector<32x256xf32>
    %c160_105 = arith.constant 160 : index
    %c0_106 = arith.constant 0 : index
    %120 = vector.load %arg12[%c160_105, %c0_106] : memref<288x256xf32, #tpu.memory_space<vmem>>, vector<32x256xf32>
    tpu.vector_store %arg12[%c160_105, %c0_106], %119 {strides = array<i32>} : memref<288x256xf32, #tpu.memory_space<vmem>>, vector<32x256xf32>,
    %c6_107 = arith.constant 6 : index
    %c0_108 = arith.constant 0 : index
    %c0_109 = arith.constant 0 : index
    %121 = vector.load %arg4[%c6_107, %c0_108, %c0_109] : memref<9x256x256xf32, #tpu.memory_space<vmem>>, vector<1x256x256xf32>
    %122 = vector.shape_cast %121 : vector<1x256x256xf32> to vector<256x256xf32>
    %cst_110 = arith.constant dense<0.000000e+00> : vector<32x256xf32>
    %123 = tpu.matmul %96, %122, %cst_110 {dimension_numbers = #tpu.dot_dimension_numbers<[1], [0], [0], [1], [0, 0, 1, 1], [], []>} : vector<32x256xf32>, vector<256x256xf32>, vector<32x256xf32> -> vector<32x256xf32>
    %c192_111 = arith.constant 192 : index
    %c0_112 = arith.constant 0 : index
    %124 = vector.load %arg12[%c192_111, %c0_112] : memref<288x256xf32, #tpu.memory_space<vmem>>, vector<32x256xf32>
    tpu.vector_store %arg12[%c192_111, %c0_112], %123 {strides = array<i32>} : memref<288x256xf32, #tpu.memory_space<vmem>>, vector<32x256xf32>,
    %c7_113 = arith.constant 7 : index
    %c0_114 = arith.constant 0 : index
    %c0_115 = arith.constant 0 : index
    %125 = vector.load %arg4[%c7_113, %c0_114, %c0_115] : memref<9x256x256xf32, #tpu.memory_space<vmem>>, vector<1x256x256xf32>
    %126 = vector.shape_cast %125 : vector<1x256x256xf32> to vector<256x256xf32>
    %cst_116 = arith.constant dense<0.000000e+00> : vector<32x256xf32>
    %127 = tpu.matmul %96, %126, %cst_116 {dimension_numbers = #tpu.dot_dimension_numbers<[1], [0], [0], [1], [0, 0, 1, 1], [], []>} : vector<32x256xf32>, vector<256x256xf32>, vector<32x256xf32> -> vector<32x256xf32>
    %c224_117 = arith.constant 224 : index
    %c0_118 = arith.constant 0 : index
    %128 = vector.load %arg12[%c224_117, %c0_118] : memref<288x256xf32, #tpu.memory_space<vmem>>, vector<32x256xf32>
    tpu.vector_store %arg12[%c224_117, %c0_118], %127 {strides = array<i32>} : memref<288x256xf32, #tpu.memory_space<vmem>>, vector<32x256xf32>,
    %c8_119 = arith.constant 8 : index
    %c0_120 = arith.constant 0 : index
    %c0_121 = arith.constant 0 : index
    %129 = vector.load %arg4[%c8_119, %c0_120, %c0_121] : memref<9x256x256xf32, #tpu.memory_space<vmem>>, vector<1x256x256xf32>
    %130 = vector.shape_cast %129 : vector<1x256x256xf32> to vector<256x256xf32>
    %cst_122 = arith.constant dense<0.000000e+00> : vector<32x256xf32>
    %131 = tpu.matmul %96, %130, %cst_122 {dimension_numbers = #tpu.dot_dimension_numbers<[1], [0], [0], [1], [0, 0, 1, 1], [], []>} : vector<32x256xf32>, vector<256x256xf32>, vector<32x256xf32> -> vector<32x256xf32>
    %c256_123 = arith.constant 256 : index
    %c0_124 = arith.constant 0 : index
    %132 = vector.load %arg12[%c256_123, %c0_124] : memref<288x256xf32, #tpu.memory_space<vmem>>, vector<32x256xf32>
    tpu.vector_store %arg12[%c256_123, %c0_124], %131 {strides = array<i32>} : memref<288x256xf32, #tpu.memory_space<vmem>>, vector<32x256xf32>,
    %c1_125 = arith.constant 1 : index
    %c0_126 = arith.constant 0 : index
    %c0_127 = arith.constant 0 : index
    %133 = vector.load %arg5[%c1_125, %c0_126, %c0_127] : memref<3x32x288xf32, #tpu.memory_space<vmem>>, vector<1x32x288xf32>
    %134 = vector.shape_cast %133 : vector<1x32x288xf32> to vector<32x288xf32>
    %c0_128 = arith.constant 0 : index
    %c0_129 = arith.constant 0 : index
    %135 = vector.load %arg12[%c0_128, %c0_129] : memref<288x256xf32, #tpu.memory_space<vmem>>, vector<288x256xf32>
    %cst_130 = arith.constant dense<0.000000e+00> : vector<32x256xf32>
    %136 = tpu.matmul %134, %135, %cst_130 {dimension_numbers = #tpu.dot_dimension_numbers<[1], [0], [0], [1], [0, 0, 1, 1], [], []>} : vector<32x288xf32>, vector<288x256xf32>, vector<32x256xf32> -> vector<32x256xf32>
    %c1_131 = arith.constant 1 : index
    %c0_132 = arith.constant 0 : index
    %c0_133 = arith.constant 0 : index
    %137 = vector.load %arg6[%c1_131, %c0_132, %c0_133] : memref<3x32x1xf32, #tpu.memory_space<vmem>>, vector<1x32x1xf32>
    %138 = vector.shape_cast %137 : vector<1x32x1xf32> to vector<32x1xf32>
    %139 = vector.broadcast %138 : vector<32x1xf32> to vector<32x256xf32>
    %140 = arith.addf %136, %139 : vector<32x256xf32>
    %cst_134 = arith.constant dense<0.000000e+00> : vector<32xf32>
    %141 = vector.multi_reduction <add>, %140, %cst_134 [1] : vector<32x256xf32> to vector<32xf32>
    %142 = vector.shape_cast %141 : vector<32xf32> to vector<32x1xf32>
    %cst_135 = arith.constant 2.560000e+02 : f32
    %143 = vector.broadcast %cst_135 : f32 to vector<32x1xf32>
    %144 = arith.divf %142, %143 : vector<32x1xf32>
    %145 = arith.mulf %140, %140 : vector<32x256xf32>
    %cst_136 = arith.constant dense<0.000000e+00> : vector<32xf32>
    %146 = vector.multi_reduction <add>, %145, %cst_136 [1] : vector<32x256xf32> to vector<32xf32>
    %147 = vector.shape_cast %146 : vector<32xf32> to vector<32x1xf32>
    %cst_137 = arith.constant 2.560000e+02 : f32
    %148 = vector.broadcast %cst_137 : f32 to vector<32x1xf32>
    %149 = arith.divf %147, %148 : vector<32x1xf32>
    %150 = arith.mulf %144, %144 : vector<32x1xf32>
    %151 = arith.subf %149, %150 : vector<32x1xf32>
    %cst_138 = arith.constant 0.000000e+00 : f32
    %152 = vector.broadcast %cst_138 : f32 to vector<32x1xf32>
    %153 = arith.maximumf %151, %152 : vector<32x1xf32>
    %c1_139 = arith.constant 1 : index
    %c0_140 = arith.constant 0 : index
    %c0_141 = arith.constant 0 : index
    %154 = vector.load %arg7[%c1_139, %c0_140, %c0_141] : memref<3x32x1xf32, #tpu.memory_space<vmem>>, vector<1x32x1xf32>
    %155 = vector.shape_cast %154 : vector<1x32x1xf32> to vector<32x1xf32>
    %cst_142 = arith.constant 9.99999974E-6 : f32
    %156 = vector.broadcast %cst_142 : f32 to vector<32x1xf32>
    %157 = arith.addf %153, %156 : vector<32x1xf32>
    %158 = math.rsqrt %157 : vector<32x1xf32>
    %159 = arith.mulf %155, %158 : vector<32x1xf32>
    %c1_143 = arith.constant 1 : index
    %c0_144 = arith.constant 0 : index
    %c0_145 = arith.constant 0 : index
    %160 = vector.load %arg8[%c1_143, %c0_144, %c0_145] : memref<3x32x1xf32, #tpu.memory_space<vmem>>, vector<1x32x1xf32>
    %161 = vector.shape_cast %160 : vector<1x32x1xf32> to vector<32x1xf32>
    %162 = arith.mulf %144, %159 : vector<32x1xf32>
    %163 = arith.subf %161, %162 : vector<32x1xf32>
    %164 = vector.broadcast %159 : vector<32x1xf32> to vector<32x256xf32>
    %165 = arith.mulf %140, %164 : vector<32x256xf32>
    %166 = vector.broadcast %163 : vector<32x1xf32> to vector<32x256xf32>
    %167 = arith.addf %165, %166 : vector<32x256xf32>
    %c1_146 = arith.constant 1 : index
    %168 = memref.load %arg9[%c1_146] : memref<3xf32, #tpu.memory_space<smem>>
    %cst_147 = arith.constant 0.000000e+00 : f32
    %169 = vector.broadcast %cst_147 : f32 to vector<32x256xf32>
    %170 = arith.cmpf oge, %167, %169 : vector<32x256xf32>
    %171 = vector.broadcast %168 : f32 to vector<32x256xf32>
    %172 = arith.mulf %171, %167 : vector<32x256xf32>
    %173 = arith.select %170, %167, %172 : vector<32x256xi1>, vector<32x256xf32>
    %174 = arith.mulf %92, %173 : vector<32x256xf32>
    %cst_148 = arith.constant 0.699999988 : f32
    %175 = vector.broadcast %cst_148 : f32 to vector<32x256xf32>
    %176 = arith.cmpf oge, %11, %175 : vector<32x256xf32>
    %cst_149 = arith.constant 0.000000e+00 : f32
    %177 = vector.broadcast %cst_149 : f32 to vector<32x256xf32>
    %178 = arith.select %176, %1, %177 : vector<32x256xi1>, vector<32x256xf32>
    %c0_150 = arith.constant 0 : index
    %c0_151 = arith.constant 0 : index
    %c0_152 = arith.constant 0 : index
    %179 = vector.load %arg4[%c0_150, %c0_151, %c0_152] : memref<9x256x256xf32, #tpu.memory_space<vmem>>, vector<1x256x256xf32>
    %180 = vector.shape_cast %179 : vector<1x256x256xf32> to vector<256x256xf32>
    %cst_153 = arith.constant dense<0.000000e+00> : vector<32x256xf32>
    %181 = tpu.matmul %178, %180, %cst_153 {dimension_numbers = #tpu.dot_dimension_numbers<[1], [0], [0], [1], [0, 0, 1, 1], [], []>} : vector<32x256xf32>, vector<256x256xf32>, vector<32x256xf32> -> vector<32x256xf32>
    %c0_154 = arith.constant 0 : index
    %c0_155 = arith.constant 0 : index
    %182 = vector.load %arg12[%c0_154, %c0_155] : memref<288x256xf32, #tpu.memory_space<vmem>>, vector<32x256xf32>
    tpu.vector_store %arg12[%c0_154, %c0_155], %181 {strides = array<i32>} : memref<288x256xf32, #tpu.memory_space<vmem>>, vector<32x256xf32>,
    %c1_156 = arith.constant 1 : index
    %c0_157 = arith.constant 0 : index
    %c0_158 = arith.constant 0 : index
    %183 = vector.load %arg4[%c1_156, %c0_157, %c0_158] : memref<9x256x256xf32, #tpu.memory_space<vmem>>, vector<1x256x256xf32>
    %184 = vector.shape_cast %183 : vector<1x256x256xf32> to vector<256x256xf32>
    %cst_159 = arith.constant dense<0.000000e+00> : vector<32x256xf32>
    %185 = tpu.matmul %178, %184, %cst_159 {dimension_numbers = #tpu.dot_dimension_numbers<[1], [0], [0], [1], [0, 0, 1, 1], [], []>} : vector<32x256xf32>, vector<256x256xf32>, vector<32x256xf32> -> vector<32x256xf32>
    %c32_160 = arith.constant 32 : index
    %c0_161 = arith.constant 0 : index
    %186 = vector.load %arg12[%c32_160, %c0_161] : memref<288x256xf32, #tpu.memory_space<vmem>>, vector<32x256xf32>
    tpu.vector_store %arg12[%c32_160, %c0_161], %185 {strides = array<i32>} : memref<288x256xf32, #tpu.memory_space<vmem>>, vector<32x256xf32>,
    %c2_162 = arith.constant 2 : index
    %c0_163 = arith.constant 0 : index
    %c0_164 = arith.constant 0 : index
    %187 = vector.load %arg4[%c2_162, %c0_163, %c0_164] : memref<9x256x256xf32, #tpu.memory_space<vmem>>, vector<1x256x256xf32>
    %188 = vector.shape_cast %187 : vector<1x256x256xf32> to vector<256x256xf32>
    %cst_165 = arith.constant dense<0.000000e+00> : vector<32x256xf32>
    %189 = tpu.matmul %178, %188, %cst_165 {dimension_numbers = #tpu.dot_dimension_numbers<[1], [0], [0], [1], [0, 0, 1, 1], [], []>} : vector<32x256xf32>, vector<256x256xf32>, vector<32x256xf32> -> vector<32x256xf32>
    %c64_166 = arith.constant 64 : index
    %c0_167 = arith.constant 0 : index
    %190 = vector.load %arg12[%c64_166, %c0_167] : memref<288x256xf32, #tpu.memory_space<vmem>>, vector<32x256xf32>
    tpu.vector_store %arg12[%c64_166, %c0_167], %189 {strides = array<i32>} : memref<288x256xf32, #tpu.memory_space<vmem>>, vector<32x256xf32>,
    %c3_168 = arith.constant 3 : index
    %c0_169 = arith.constant 0 : index
    %c0_170 = arith.constant 0 : index
    %191 = vector.load %arg4[%c3_168, %c0_169, %c0_170] : memref<9x256x256xf32, #tpu.memory_space<vmem>>, vector<1x256x256xf32>
    %192 = vector.shape_cast %191 : vector<1x256x256xf32> to vector<256x256xf32>
    %cst_171 = arith.constant dense<0.000000e+00> : vector<32x256xf32>
    %193 = tpu.matmul %178, %192, %cst_171 {dimension_numbers = #tpu.dot_dimension_numbers<[1], [0], [0], [1], [0, 0, 1, 1], [], []>} : vector<32x256xf32>, vector<256x256xf32>, vector<32x256xf32> -> vector<32x256xf32>
    %c96_172 = arith.constant 96 : index
    %c0_173 = arith.constant 0 : index
    %194 = vector.load %arg12[%c96_172, %c0_173] : memref<288x256xf32, #tpu.memory_space<vmem>>, vector<32x256xf32>
    tpu.vector_store %arg12[%c96_172, %c0_173], %193 {strides = array<i32>} : memref<288x256xf32, #tpu.memory_space<vmem>>, vector<32x256xf32>,
    %c4_174 = arith.constant 4 : index
    %c0_175 = arith.constant 0 : index
    %c0_176 = arith.constant 0 : index
    %195 = vector.load %arg4[%c4_174, %c0_175, %c0_176] : memref<9x256x256xf32, #tpu.memory_space<vmem>>, vector<1x256x256xf32>
    %196 = vector.shape_cast %195 : vector<1x256x256xf32> to vector<256x256xf32>
    %cst_177 = arith.constant dense<0.000000e+00> : vector<32x256xf32>
    %197 = tpu.matmul %178, %196, %cst_177 {dimension_numbers = #tpu.dot_dimension_numbers<[1], [0], [0], [1], [0, 0, 1, 1], [], []>} : vector<32x256xf32>, vector<256x256xf32>, vector<32x256xf32> -> vector<32x256xf32>
    %c128_178 = arith.constant 128 : index
    %c0_179 = arith.constant 0 : index
    %198 = vector.load %arg12[%c128_178, %c0_179] : memref<288x256xf32, #tpu.memory_space<vmem>>, vector<32x256xf32>
    tpu.vector_store %arg12[%c128_178, %c0_179], %197 {strides = array<i32>} : memref<288x256xf32, #tpu.memory_space<vmem>>, vector<32x256xf32>,
    %c5_180 = arith.constant 5 : index
    %c0_181 = arith.constant 0 : index
    %c0_182 = arith.constant 0 : index
    %199 = vector.load %arg4[%c5_180, %c0_181, %c0_182] : memref<9x256x256xf32, #tpu.memory_space<vmem>>, vector<1x256x256xf32>
    %200 = vector.shape_cast %199 : vector<1x256x256xf32> to vector<256x256xf32>
    %cst_183 = arith.constant dense<0.000000e+00> : vector<32x256xf32>
    %201 = tpu.matmul %178, %200, %cst_183 {dimension_numbers = #tpu.dot_dimension_numbers<[1], [0], [0], [1], [0, 0, 1, 1], [], []>} : vector<32x256xf32>, vector<256x256xf32>, vector<32x256xf32> -> vector<32x256xf32>
    %c160_184 = arith.constant 160 : index
    %c0_185 = arith.constant 0 : index
    %202 = vector.load %arg12[%c160_184, %c0_185] : memref<288x256xf32, #tpu.memory_space<vmem>>, vector<32x256xf32>
    tpu.vector_store %arg12[%c160_184, %c0_185], %201 {strides = array<i32>} : memref<288x256xf32, #tpu.memory_space<vmem>>, vector<32x256xf32>,
    %c6_186 = arith.constant 6 : index
    %c0_187 = arith.constant 0 : index
    %c0_188 = arith.constant 0 : index
    %203 = vector.load %arg4[%c6_186, %c0_187, %c0_188] : memref<9x256x256xf32, #tpu.memory_space<vmem>>, vector<1x256x256xf32>
    %204 = vector.shape_cast %203 : vector<1x256x256xf32> to vector<256x256xf32>
    %cst_189 = arith.constant dense<0.000000e+00> : vector<32x256xf32>
    %205 = tpu.matmul %178, %204, %cst_189 {dimension_numbers = #tpu.dot_dimension_numbers<[1], [0], [0], [1], [0, 0, 1, 1], [], []>} : vector<32x256xf32>, vector<256x256xf32>, vector<32x256xf32> -> vector<32x256xf32>
    %c192_190 = arith.constant 192 : index
    %c0_191 = arith.constant 0 : index
    %206 = vector.load %arg12[%c192_190, %c0_191] : memref<288x256xf32, #tpu.memory_space<vmem>>, vector<32x256xf32>
    tpu.vector_store %arg12[%c192_190, %c0_191], %205 {strides = array<i32>} : memref<288x256xf32, #tpu.memory_space<vmem>>, vector<32x256xf32>,
    %c7_192 = arith.constant 7 : index
    %c0_193 = arith.constant 0 : index
    %c0_194 = arith.constant 0 : index
    %207 = vector.load %arg4[%c7_192, %c0_193, %c0_194] : memref<9x256x256xf32, #tpu.memory_space<vmem>>, vector<1x256x256xf32>
    %208 = vector.shape_cast %207 : vector<1x256x256xf32> to vector<256x256xf32>
    %cst_195 = arith.constant dense<0.000000e+00> : vector<32x256xf32>
    %209 = tpu.matmul %178, %208, %cst_195 {dimension_numbers = #tpu.dot_dimension_numbers<[1], [0], [0], [1], [0, 0, 1, 1], [], []>} : vector<32x256xf32>, vector<256x256xf32>, vector<32x256xf32> -> vector<32x256xf32>
    %c224_196 = arith.constant 224 : index
    %c0_197 = arith.constant 0 : index
    %210 = vector.load %arg12[%c224_196, %c0_197] : memref<288x256xf32, #tpu.memory_space<vmem>>, vector<32x256xf32>
    tpu.vector_store %arg12[%c224_196, %c0_197], %209 {strides = array<i32>} : memref<288x256xf32, #tpu.memory_space<vmem>>, vector<32x256xf32>,
    %c8_198 = arith.constant 8 : index
    %c0_199 = arith.constant 0 : index
    %c0_200 = arith.constant 0 : index
    %211 = vector.load %arg4[%c8_198, %c0_199, %c0_200] : memref<9x256x256xf32, #tpu.memory_space<vmem>>, vector<1x256x256xf32>
    %212 = vector.shape_cast %211 : vector<1x256x256xf32> to vector<256x256xf32>
    %cst_201 = arith.constant dense<0.000000e+00> : vector<32x256xf32>
    %213 = tpu.matmul %178, %212, %cst_201 {dimension_numbers = #tpu.dot_dimension_numbers<[1], [0], [0], [1], [0, 0, 1, 1], [], []>} : vector<32x256xf32>, vector<256x256xf32>, vector<32x256xf32> -> vector<32x256xf32>
    %c256_202 = arith.constant 256 : index
    %c0_203 = arith.constant 0 : index
    %214 = vector.load %arg12[%c256_202, %c0_203] : memref<288x256xf32, #tpu.memory_space<vmem>>, vector<32x256xf32>
    tpu.vector_store %arg12[%c256_202, %c0_203], %213 {strides = array<i32>} : memref<288x256xf32, #tpu.memory_space<vmem>>, vector<32x256xf32>,
    %c2_204 = arith.constant 2 : index
    %c0_205 = arith.constant 0 : index
    %c0_206 = arith.constant 0 : index
    %215 = vector.load %arg5[%c2_204, %c0_205, %c0_206] : memref<3x32x288xf32, #tpu.memory_space<vmem>>, vector<1x32x288xf32>
    %216 = vector.shape_cast %215 : vector<1x32x288xf32> to vector<32x288xf32>
    %c0_207 = arith.constant 0 : index
    %c0_208 = arith.constant 0 : index
    %217 = vector.load %arg12[%c0_207, %c0_208] : memref<288x256xf32, #tpu.memory_space<vmem>>, vector<288x256xf32>
    %cst_209 = arith.constant dense<0.000000e+00> : vector<32x256xf32>
    %218 = tpu.matmul %216, %217, %cst_209 {dimension_numbers = #tpu.dot_dimension_numbers<[1], [0], [0], [1], [0, 0, 1, 1], [], []>} : vector<32x288xf32>, vector<288x256xf32>, vector<32x256xf32> -> vector<32x256xf32>
    %c2_210 = arith.constant 2 : index
    %c0_211 = arith.constant 0 : index
    %c0_212 = arith.constant 0 : index
    %219 = vector.load %arg6[%c2_210, %c0_211, %c0_212] : memref<3x32x1xf32, #tpu.memory_space<vmem>>, vector<1x32x1xf32>
    %220 = vector.shape_cast %219 : vector<1x32x1xf32> to vector<32x1xf32>
    %221 = vector.broadcast %220 : vector<32x1xf32> to vector<32x256xf32>
    %222 = arith.addf %218, %221 : vector<32x256xf32>
    %cst_213 = arith.constant dense<0.000000e+00> : vector<32xf32>
    %223 = vector.multi_reduction <add>, %222, %cst_213 [1] : vector<32x256xf32> to vector<32xf32>
    %224 = vector.shape_cast %223 : vector<32xf32> to vector<32x1xf32>
    %cst_214 = arith.constant 2.560000e+02 : f32
    %225 = vector.broadcast %cst_214 : f32 to vector<32x1xf32>
    %226 = arith.divf %224, %225 : vector<32x1xf32>
    %227 = arith.mulf %222, %222 : vector<32x256xf32>
    %cst_215 = arith.constant dense<0.000000e+00> : vector<32xf32>
    %228 = vector.multi_reduction <add>, %227, %cst_215 [1] : vector<32x256xf32> to vector<32xf32>
    %229 = vector.shape_cast %228 : vector<32xf32> to vector<32x1xf32>
    %cst_216 = arith.constant 2.560000e+02 : f32
    %230 = vector.broadcast %cst_216 : f32 to vector<32x1xf32>
    %231 = arith.divf %229, %230 : vector<32x1xf32>
    %232 = arith.mulf %226, %226 : vector<32x1xf32>
    %233 = arith.subf %231, %232 : vector<32x1xf32>
    %cst_217 = arith.constant 0.000000e+00 : f32
    %234 = vector.broadcast %cst_217 : f32 to vector<32x1xf32>
    %235 = arith.maximumf %233, %234 : vector<32x1xf32>
    %c2_218 = arith.constant 2 : index
    %c0_219 = arith.constant 0 : index
    %c0_220 = arith.constant 0 : index
    %236 = vector.load %arg7[%c2_218, %c0_219, %c0_220] : memref<3x32x1xf32, #tpu.memory_space<vmem>>, vector<1x32x1xf32>
    %237 = vector.shape_cast %236 : vector<1x32x1xf32> to vector<32x1xf32>
    %cst_221 = arith.constant 9.99999974E-6 : f32
    %238 = vector.broadcast %cst_221 : f32 to vector<32x1xf32>
    %239 = arith.addf %235, %238 : vector<32x1xf32>
    %240 = math.rsqrt %239 : vector<32x1xf32>
    %241 = arith.mulf %237, %240 : vector<32x1xf32>
    %c2_222 = arith.constant 2 : index
    %c0_223 = arith.constant 0 : index
    %c0_224 = arith.constant 0 : index
    %242 = vector.load %arg8[%c2_222, %c0_223, %c0_224] : memref<3x32x1xf32, #tpu.memory_space<vmem>>, vector<1x32x1xf32>
    %243 = vector.shape_cast %242 : vector<1x32x1xf32> to vector<32x1xf32>
    %244 = arith.mulf %226, %241 : vector<32x1xf32>
    %245 = arith.subf %243, %244 : vector<32x1xf32>
    %246 = vector.broadcast %241 : vector<32x1xf32> to vector<32x256xf32>
    %247 = arith.mulf %222, %246 : vector<32x256xf32>
    %248 = vector.broadcast %245 : vector<32x1xf32> to vector<32x256xf32>
    %249 = arith.addf %247, %248 : vector<32x256xf32>
    %c2_225 = arith.constant 2 : index
    %250 = memref.load %arg9[%c2_225] : memref<3xf32, #tpu.memory_space<smem>>
    %cst_226 = arith.constant 0.000000e+00 : f32
    %251 = vector.broadcast %cst_226 : f32 to vector<32x256xf32>
    %252 = arith.cmpf oge, %249, %251 : vector<32x256xf32>
    %253 = vector.broadcast %250 : f32 to vector<32x256xf32>
    %254 = arith.mulf %253, %249 : vector<32x256xf32>
    %255 = arith.select %252, %249, %254 : vector<32x256xi1>, vector<32x256xf32>
    %256 = arith.mulf %174, %255 : vector<32x256xf32>
    %c0_227 = arith.constant 0 : index
    %c0_228 = arith.constant 0 : index
    %c0_229 = arith.constant 0 : index
    %257 = vector.load %arg11[%c0_227, %c0_228, %c0_229] : memref<1x32x256xf32, #tpu.memory_space<vmem>>, vector<1x32x256xf32>
    %258 = vector.shape_cast %257 : vector<1x32x256xf32> to vector<32x256xf32>
    %259 = vector.shape_cast %256 : vector<32x256xf32> to vector<1x32x256xf32>
    tpu.vector_store %arg11[%c0_227, %c0_228, %c0_229], %259 {strides = array<i32>} : memref<1x32x256xf32, #tpu.memory_space<vmem>>, vector<1x32x256xf32>,
    return
  }
  func.func @transform_0(%arg0: i32) -> (i32, i32, i32) {
    %c0_i32 = arith.constant 0 : i32
    %c0_i32_0 = arith.constant 0 : i32
    %c0_i32_1 = arith.constant 0 : i32
    return %arg0, %c0_i32, %c0_i32_0 : i32, i32, i32
  }
  func.func @transform_1(%arg0: i32) -> (i32, i32) {
    %c0_i32 = arith.constant 0 : i32
    %c0_i32_0 = arith.constant 0 : i32
    %c0_i32_1 = arith.constant 0 : i32
    return %c0_i32, %c0_i32_0 : i32, i32
  }
  func.func @transform_2(%arg0: i32) -> i32 {
    %c0_i32 = arith.constant 0 : i32
    %c0_i32_0 = arith.constant 0 : i32
    return %c0_i32 : i32
  }
  func.func @transform_3(%arg0: i32) -> (i32, i32, i32) {
    %c0_i32 = arith.constant 0 : i32
    %c0_i32_0 = arith.constant 0 : i32
    %c0_i32_1 = arith.constant 0 : i32
    %c0_i32_2 = arith.constant 0 : i32
    return %c0_i32, %c0_i32_0, %c0_i32_1 : i32, i32, i32
  }
  func.func @transform_4(%arg0: i32) -> (i32, i32, i32) {
    %c0_i32 = arith.constant 0 : i32
    %c0_i32_0 = arith.constant 0 : i32
    %c0_i32_1 = arith.constant 0 : i32
    %c0_i32_2 = arith.constant 0 : i32
    return %c0_i32, %c0_i32_0, %c0_i32_1 : i32, i32, i32
  }
  func.func @transform_5(%arg0: i32) -> (i32, i32, i32) {
    %c0_i32 = arith.constant 0 : i32
    %c0_i32_0 = arith.constant 0 : i32
    %c0_i32_1 = arith.constant 0 : i32
    %c0_i32_2 = arith.constant 0 : i32
    return %c0_i32, %c0_i32_0, %c0_i32_1 : i32, i32, i32
  }
  func.func @transform_6(%arg0: i32) -> (i32, i32, i32) {
    %c0_i32 = arith.constant 0 : i32
    %c0_i32_0 = arith.constant 0 : i32
    %c0_i32_1 = arith.constant 0 : i32
    %c0_i32_2 = arith.constant 0 : i32
    return %c0_i32, %c0_i32_0, %c0_i32_1 : i32, i32, i32
  }
  func.func @transform_7(%arg0: i32) -> (i32, i32, i32) {
    %c0_i32 = arith.constant 0 : i32
    %c0_i32_0 = arith.constant 0 : i32
    %c0_i32_1 = arith.constant 0 : i32
    %c0_i32_2 = arith.constant 0 : i32
    return %c0_i32, %c0_i32_0, %c0_i32_1 : i32, i32, i32
  }
  func.func @transform_8(%arg0: i32) -> i32 {
    %c0_i32 = arith.constant 0 : i32
    %c0_i32_0 = arith.constant 0 : i32
    return %c0_i32 : i32
  }
  func.func @transform_9(%arg0: i32) -> (i32, i32) {
    %c0_i32 = arith.constant 0 : i32
    %c0_i32_0 = arith.constant 0 : i32
    %c0_i32_1 = arith.constant 0 : i32
    return %c0_i32, %c0_i32_0 : i32, i32
  }
  func.func @transform_10(%arg0: i32) -> (i32, i32, i32) {
    %c0_i32 = arith.constant 0 : i32
    %c0_i32_0 = arith.constant 0 : i32
    %c0_i32_1 = arith.constant 0 : i32
    return %arg0, %c0_i32, %c0_i32_0 : i32, i32, i32
  }
}

</mosaic_0001>

<bundles_post_ra>
// kernel: tpu_custom_call.1
= control target key start
LH: loop header
LB: loop body
LE: loop exit
PB: predicated region body
PF: predicated region fallthrough
CT: control target
= control target key end

     0   :  { %s11331_s0 = inlined_call_operand.hbm [shape: f32[2,32,256], index: 0, kind: input, shape index: {}]   ;;  %s11332_s1 = inlined_call_operand.hbm [shape: f32[32,32], index: 1, kind: input, shape index: {}]   ;;  %s11333_s2 = inlined_call_operand.<no memory space> [shape: f32[1], index: 2, kind: input, shape index: {}]   ;;  %s11334_s3 = inlined_call_operand.hbm [shape: f32[9,256,256], index: 3, kind: input, shape index: {}]   ;;  %s11335_s4 = inlined_call_operand.hbm [shape: f32[3,32,288], index: 4, kind: input, shape index: {}]   ;;  %s11336_s5 = inlined_call_operand.vmem [shape: f32[3,32,1], index: 5, kind: input, shape index: {}]   ;;  %s11337_s6 = inlined_call_operand.vmem [shape: f32[3,32,1], index: 6, kind: input, shape index: {}]   ;;  %s11338_s7 = inlined_call_operand.vmem [shape: f32[3,32,1], index: 7, kind: input, shape index: {}]   ;;  %s11339_s8 = inlined_call_operand.hbm [shape: f32[3], index: 8, kind: input, shape index: {}]   ;;  %s11340_s9 = inlined_call_operand.hbm [shape: f32[32,32], index: 9, kind: input, shape index: {}]   ;;  %s11341_s10 = inlined_call_operand.hbm [shape: f32[2,32,256], index: 10, kind: output, shape index: {}]  }
   0x1   :  { %11360 = sst [smem:[#allocation31_spill]] %s11341_s10 }
   0x2   :  { %15 = sst [smem:[#allocation3]] %s11333_s2 }
   0x3   :  { %16 = vsyncpa [#allocation5], 0 }
   0x4   :  { %18 = vsyncpa [#allocation5 + $0x1], 0 }
   0x5   :  { %19 = vsyncpa [#allocation9], 0 }
   0x6   :  { %20 = vsyncpa [#allocation12], 0 }
   0x7   :  { %21 = vsyncpa [#allocation7], 0 }
   0x8   :  { %22 = vsyncpa [#allocation6], 0 }
   0x9   :  { %24 = vsyncpa [#allocation6 + $0x1], 0  ;;  %s9396_s15 = smov 0   ;;  %s9398_s16 = smov 0  }
   0xa   :  { %s9400_s17 = smov 0   ;;  %s9402_s18 = smov 0  }
   0xb LB: > { %s9321_s2 = smov [#allocation8]   ;;  %s9417_s20 = sadd.s32 4294967295, %s9319_s18   ;;  %s9319_s18 = sphi %s9402_s18, %s11419_s18   ;;  %s9315_s17 = sphi %s9400_s17, %s11418_s17   ;;  %s9311_s16 = sphi %s9398_s16, %s11417_s16   ;;  %s9307_s15 = sphi %s9396_s15, %s11416_s15  }
   0xc   : > { %s288_s19 = sshll.u32 %s9321_s2, 4  ;;  %p6567_p0 = scmp.ge.s32.totalorder %s9319_s18, 1  ;;  %s9422_s19 = int_to_ptr.vmem [resolvable:$true] %s288_s19 }
   0xd   : > { %p11344_p1 = scmp.eq.s32.totalorder %s9417_s20, 0  ;;  %p276_p2 = scmp.lt.s32.totalorder %s9319_s18, 3 }
   0xe   : > { %s9322_s22 = smov [#allocation11]   ;;  %s9323_s25 = smov [#allocation10]  }
   0xf   : > { %p9424_p3 = pnand %p6567_p0, %p276_p2  ;;  %s317_s23 = sshll.u32 %s9322_s22, 4  ;;  %s9437_s23 = int_to_ptr.vmem [resolvable:$true] %s317_s23 }
  0x10   : > { %s9439_s26 = sshll.u32 %s9323_s25, 4  ;;  %s9082_s29 = scalar_lea.hbm %s11332_s1, 512  ;;  %s305_s26 = int_to_ptr.vmem [resolvable:$true] %s9439_s26 }
  0x11   : > { %s11361_s21 = scalar_select %p9424_p3, 1, 0 }
  0x12   : > { %p8886_p5 = pneg %p9424_p3  ;;  %p9083_p7 = scmp.ne.s32.totalorder %s11332_s1, %s9082_s29 }
  0x13   : > { %p9089_p11 = scmp.lt.u32.totalorder %s9082_s29, %s11332_s1 }
  0x14   : > { %p9433_p6 = pnand %p8886_p5, %p11344_p1 }
  0x16   : > { %p9449_p8 = pneg %p9433_p6 }
  0x18   : > { %p9085_p9 = pnand %p9449_p8, %p9083_p7 }
  0x1a   : > { %p9086_p10 = pneg %p9085_p9 }
  0x1c   : > { %p9091_p12 = pnand %p9089_p11, %p9086_p10 }
  0x1e   : > { %9094 = shalt.err (!%p9091_p12)
}
  0x1f   : > { %s9095_s2 = scalar_lea.vmem %s9422_s19, 512  ;;  %p9103_p5 = scmp.lt.s32.totalorder %s9422_s19, %s9422_s19 }
  0x20   : > { %p9096_p13 = scmp.ne.s32.totalorder %s9422_s19, %s9095_s2  ;;  %p9104_p4 = scmp.lt.s32.totalorder %s9095_s2, %s9095_s2 }
  0x22   : > { %p9098_p0 = pnand %p9096_p13, %p9449_p8  ;;  %p9105_p7 = por %p9104_p4, %p9103_p5 }
  0x24   : > { %p9099_p2 = pneg %p9098_p0 }
  0x26   : > { %p9106_p9 = pnand %p9105_p7, %p9099_p2 }
  0x28   : > { %9109 = shalt.err (!%p9106_p9)
}
  0x29   : > { %s11343_s22 = smov 128   ;;  %s9325_s25 = smov 8  }
  0x2a   : > { %8889 = dma.hbm_to_vmem [thread:$0]  (!%p9433_p6), %s11332_s1, 512, %s9422_s19, [#allocation9], %s11343_s22, %s11343_s22, %s9325_s25  }
  0x2b   : > { %s9110_s11 = scalar_lea.hbm %s11335_s4, 4608 }
  0x2c   : > { %p9111_p4 = scmp.ne.s32.totalorder %s11335_s4, %s9110_s11  ;;  %p9117_p12 = scmp.lt.u32.totalorder %s9110_s11, %s11335_s4 }
  0x2e   : > { %p9113_p10 = pnand %p9111_p4, %p9449_p8 }
  0x30   : > { %p9114_p11 = pneg %p9113_p10 }
  0x32   : > { %p9119_p13 = pnand %p9117_p12, %p9114_p11 }
  0x34   : > { %9122 = shalt.err (!%p9119_p13)
}
  0x35   : > { %s9123_s19 = scalar_lea.vmem %s9437_s23, 4608  ;;  %p9131_p7 = scmp.lt.s32.totalorder %s9437_s23, %s9437_s23 }
  0x36   : > { %p9124_p0 = scmp.ne.s32.totalorder %s9437_s23, %s9123_s19  ;;  %p9132_p9 = scmp.lt.s32.totalorder %s9123_s19, %s9123_s19 }
  0x38   : > { %p9126_p2 = pnand %p9124_p0, %p9449_p8  ;;  %p9133_p4 = por %p9132_p9, %p9131_p7 }
  0x3a   : > { %p9127_p5 = pneg %p9126_p2 }
  0x3c   : > { %p9134_p10 = pnand %p9133_p4, %p9127_p5 }
  0x3e   : > { %9137 = shalt.err (!%p9134_p10)
}
  0x3f   : > { %s9326_s27 = smov 384   ;;  %s9327_s10 = smov 24  }
  0x40   : > { %8895 = dma.hbm_to_vmem [thread:$0]  (!%p9433_p6), %s11335_s4, 4608, %s9437_s23, [#allocation12], %s9326_s27, %s9326_s27, %s9327_s10  }
  0x41   : > { %s9138_s13 = scalar_lea.hbm %s11334_s3, 73728 }
  0x42   : > { %p9139_p11 = scmp.ne.s32.totalorder %s11334_s3, %s9138_s13  ;;  %p9145_p0 = scmp.lt.u32.totalorder %s9138_s13, %s11334_s3 }
  0x44   : > { %p9141_p12 = pnand %p9139_p11, %p9449_p8 }
  0x46   : > { %p9142_p13 = pneg %p9141_p12 }
  0x48   : > { %p9147_p2 = pnand %p9145_p0, %p9142_p13 }
  0x4a   : > { %9150 = shalt.err (!%p9147_p2)
}
  0x4b   : > { %s9151_s28 = scalar_lea.vmem %s305_s26, 73728  ;;  %p9159_p4 = scmp.lt.s32.totalorder %s305_s26, %s305_s26 }
  0x4c   : > { %p9152_p5 = scmp.ne.s32.totalorder %s305_s26, %s9151_s28  ;;  %p9160_p10 = scmp.lt.s32.totalorder %s9151_s28, %s9151_s28 }
  0x4e   : > { %p9154_p7 = pnand %p9152_p5, %p9449_p8  ;;  %p9161_p1 = por %p9160_p10, %p9159_p4 }
  0x50   : > { %p9155_p9 = pneg %p9154_p7 }
  0x52   : > { %p9162_p3 = pnand %p9161_p1, %p9155_p9 }
  0x54   : > { %9165 = shalt.err (!%p9162_p3)
}
  0x55   : > { %s11346_s23 = smov 256   ;;  %s11347_s27 = smov 16  }
  0x56   : > { %8892 = dma.hbm_to_vmem [thread:$0]  (!%p9433_p6), %s11334_s3, 73728, %s305_s26, [#allocation9], %s11346_s23, %s11346_s23, %s11347_s27  }
  0x57   : > { %s9166_s11 = scalar_lea.hbm %s11339_s8, 16 }
  0x58   : > { %p9167_p1 = scmp.ne.s32.totalorder %s11339_s8, %s9166_s11  ;;  %p9173_p12 = scmp.lt.u32.totalorder %s9166_s11, %s11339_s8 }
  0x5a   : > { %p9169_p3 = pnand %p9167_p1, %p9449_p8 }
  0x5c   : > { %p9170_p11 = pneg %p9169_p3 }
  0x5e   : > { %p9175_p13 = pnand %p9173_p12, %p9170_p11 }
  0x60   : > { %9178 = shalt.err (!%p9175_p13)
}
  0x61   : > { %s9330_s28 = smov [#allocation13]   ;;  %s9331_s10 = smov [#allocation14]  }
  0x62   : > { %8898 = dma.hbm_to_smem (!%p9433_p6), %s11339_s8, 16, %s9330_s28, [#allocation7]  }
  0x63   : > { %s348_s29 = sshll.u32 %s9331_s10, 4  ;;  %s9179_s14 = scalar_lea.hbm %s11340_s9, 512  ;;  %s349_s29 = int_to_ptr.vmem [resolvable:$true] %s348_s29 }
  0x64   : > { %p9180_p0 = scmp.ne.s32.totalorder %s11340_s9, %s9179_s14  ;;  %p9186_p7 = scmp.lt.u32.totalorder %s9179_s14, %s11340_s9 }
  0x66   : > { %p9182_p2 = pnand %p9180_p0, %p9449_p8 }
  0x68   : > { %p9183_p5 = pneg %p9182_p2 }
  0x6a   : > { %p9188_p9 = pnand %p9186_p7, %p9183_p5 }
  0x6c   : > { %9191 = shalt.err (!%p9188_p9)
}
  0x6d   : > { %s9192_s28 = scalar_lea.vmem %s349_s29, 512  ;;  %p9200_p3 = scmp.lt.s32.totalorder %s349_s29, %s349_s29 }
  0x6e   : > { %p9193_p4 = scmp.ne.s32.totalorder %s349_s29, %s9192_s28  ;;  %p9201_p11 = scmp.lt.s32.totalorder %s9192_s28, %s9192_s28 }
  0x70   : > { %p9195_p10 = pnand %p9193_p4, %p9449_p8  ;;  %p9202_p12 = por %p9201_p11, %p9200_p3 }
  0x72   : > { %p9196_p1 = pneg %p9195_p10 }
  0x74   : > { %p9203_p13 = pnand %p9202_p12, %p9196_p1 }
  0x76   : > { %9206 = shalt.err (!%p9203_p13)
}
  0x77   : > { %s11364_s23 = smov 128   ;;  %s6566_s24 = sadd.s32 4294967294, %s9319_s18  }
  0x78   : > { %8901 = dma.hbm_to_vmem [thread:$0]  (!%p9433_p6), %s11340_s9, 512, %s349_s29, [#allocation12], %s11364_s23, %s11364_s23, %s9325_s25  }
  0x79   : > { %s9557_s12 = sadd.s32 1, %s9319_s18   ;;  %s37_s10 = sadd.s32 1, %s9315_s17 }
  0x7a   : > { %s34_s30 = ssub.s32 %s9319_s18, %s9557_s12  ;;  %p44_p8 = scmp.ne.s32.totalorder %s9315_s17, %s9311_s16 }
  0x7b   : > { %p35_p0 = scmp.eq.s32.totalorder %s34_s30, 0  ;;  %p45_p2 = scmp.eq.s32.totalorder %s9319_s18, 0 }
  0x7c   : > { %p50_p5 = scmp.ne.s32.totalorder %s9311_s16, %s9307_s15  ;;  %p263_p7 = scmp.eq.s32.totalorder %s9417_s20, 1 }
  0x7d   : > { %s9569_s13 = scalar_select %p35_p0, %s9315_s17, %s37_s10  }
  0x7e   : > { %p46_p9 = por %p45_p2, %p44_p8  ;;  %p11365_p4 = scmp.eq.s32.totalorder %s9417_s20, 0 }
  0x7f   : > { %p9577_p6 = por %p263_p7, %p44_p8  ;;  %p269_p1 = scmp.eq.s32.totalorder %s6566_s24, 1 }
  0x80   : > { %p9573_p10 = por %p11365_p4, %p50_p5  ;;  %p8915_p3 = scmp.lt.s32.totalorder %s9319_s18, 2 }
  0x81   : > { %s11367_s25 = scalar_select %p9577_p6, 1, 0 }
  0x82   : > { %s362_s29 = sand.u32 1, %s9315_s17   ;;  %p9583_p11 = por %p269_p1, %p50_p5 }
  0x83   : > { %s6574_s11 = sshll.u32 %s362_s29, 6  ;;  %s6856_s19 = sshll.u32 %s9319_s18, 10 }
  0x84   : > { %s11368_s2 = scalar_select %p9583_p11, 1, 0 }
  0x85   : > { %s9591_s26 = scalar_lea.hbm %s11331_s0, %s6856_s19  ;;  %s366_s22 = scalar_lea.vmem [#allocation4], %s6574_s11 }
  0x86   : > { %s373_s10 = sshll.u32 %s366_s22, 4  ;;  %p9593_p12 = pnand %p8915_p3, %p46_p9  ;;  %s9597_s10 = int_to_ptr.vmem [resolvable:$true] %s373_s10 }
  0x87   : > { %s9599_s30 = scalar_lea.sflag [#allocation5], %s362_s29  ;;  %s9207_s27 = scalar_lea.hbm %s9591_s26, 1024 }
  0x88   : > { %p9208_p13 = scmp.ne.s32.totalorder %s9591_s26, %s9207_s27  ;;  %p9209_p8 = pneg %p9593_p12 }
  0x89   : > { %s9212_s28 = scalar_lea.hbm %s11331_s0, 2048  ;;  %p9213_p5 = scmp.lt.u32.totalorder %s9591_s26, %s11331_s0 }
  0x8a   : > { %p9210_p0 = pnand %p9209_p8, %p9208_p13  ;;  %p9214_p7 = scmp.lt.u32.totalorder %s9212_s28, %s9207_s27 }
  0x8b   : > { %p9216_p4 = scmp.lt.u32.totalorder %s9207_s27, %s9591_s26 }
  0x8c   : > { %p9211_p2 = pneg %p9210_p0  ;;  %p9215_p9 = por %p9214_p7, %p9213_p5 }
  0x8e   : > { %p9217_p1 = por %p9216_p4, %p9215_p9 }
  0x90   : > { %p9218_p3 = pnand %p9217_p1, %p9211_p2 }
  0x92   : > { %9221 = shalt.err (!%p9218_p3)
}
  0x93   : > { %s9222_s29 = scalar_lea.vmem %s9597_s10, 1024  ;;  %s9332_s11 = smov [#allocation4]  }
  0x94   : > { %p9223_p13 = scmp.ne.s32.totalorder %s9597_s10, %s9222_s29  ;;  %s9227_s19 = sshll.u32 %s9332_s11, 4  ;;  %s9228_s19 = int_to_ptr.vmem [resolvable:$false] %s9227_s19 }
  0x95   : > { %s9229_s23 = scalar_lea.vmem %s9228_s19, 2048  ;;  %p9230_p6 = scmp.lt.s32.totalorder %s9597_s10, %s9228_s19 }
  0x96   : > { %p9225_p0 = pnand %p9223_p13, %p9209_p8  ;;  %p9231_p5 = scmp.lt.s32.totalorder %s9229_s23, %s9222_s29 }
  0x98   : > { %p9226_p11 = pneg %p9225_p0  ;;  %p9232_p7 = por %p9231_p5, %p9230_p6 }
  0x9a   : > { %p9233_p9 = pnand %p9232_p7, %p9226_p11 }
  0x9c   : > { %9236 = shalt.err (!%p9233_p9)
}
  0x9d   : > { %s11370_s27 = smov 16   ;;  %s11371_s28 = smov 256  }
  0x9e   : > { %8905 = dma.hbm_to_vmem [thread:$0]  (!%p9593_p12), %s9591_s26, 1024, %s9597_s10, %s9599_s30, %s11371_s28, %s11371_s28, %s11370_s27  }
  0x9f   : > { %p11372_p8 = scmp.ne.s32.totalorder %s11361_s21, 0 }
  0xa1   : > { %385 = sbr.rel (%p11372_p8) target bundleno = 2540 (0x9ec), region = 60 }
  0xa8   : > { %s9633_s22 = sand.u32 1, %s9311_s16  }
  0xa9   : > { %s6578_s29 = sshll.u32 %s9633_s22, 6  ;;  %s388_s11 = scalar_lea.sflag [#allocation5], %s9633_s22 }
  0xaa   : > { %s9639_s24 = scalar_lea.vmem [#allocation4], %s6578_s29 }
  0xab   : > { %9282 = dma.done.wait (%p9573_p10), %s388_s11, 1024  }
  0xac   : > { %9284 = vsyncadd (%p9573_p10), %s388_s11, 4294966272  ;;  %p11373_p6 = scmp.eq.s32.totalorder %s9417_s20, 0 }
  0xae   : > { %9286 = dma.done.wait (%p11373_p6), [#allocation9], 74240   ;;  %p11374_p11 = pmov %p11373_p6 }
  0xaf   : > { %p11375_p12 = pmov %p11373_p6 }
  0xb0   : > { %9288 = vsyncadd (%p11374_p11), [#allocation9], 4294893056 }
  0xb1   : > { %9290 = dma.done.wait (%p11375_p12), [#allocation12], 4608   ;;  %p11376_p2 = pmov %p11373_p6 }
  0xb3   : > { %9292 = vsyncadd (%p11376_p2), [#allocation12], 4294962688  ;;  %p11377_p4 = pmov %p11376_p2 }
  0xb4   : > { %p11378_p1 = pmov %p11376_p2 }
  0xb5   : > { %9294 = dma.done.wait (%p11377_p4), [#allocation7], 16  }
  0xb6   : > { %9296 = vsyncadd (%p11378_p1), [#allocation7], 4294967280  ;;  %p11379_p10 = pmov %p11378_p1 }
  0xb7   : > { %p11380_p3 = pmov %p11378_p1 }
  0xb8   : > { %9298 = dma.done.wait (%p11379_p10), [#allocation12], 512  }
  0xb9   : > { %9300 = vsyncadd (%p11380_p3), [#allocation12], 4294966784 }
  0xba   : > { %416 = sfence }
  0xbb   : > { %v9662_v0 = vld [vmem:[%s9639_s24 + $0x8] sm:$0xff]  ;;  %v9665_v1 = vld [vmem:[%s9639_s24 + $0x18] sm:$0xff]  ;;  %v9668_v2 = vld [vmem:[%s9639_s24] sm:$0xff]  ;;  %v11349_v7 = vmov 0.0   ;;  %vm463_vm0 = vcmask 261120   ;;  %s461_s21 = sld [smem:[#allocation3]] }
  0xbc   : > { %v6858_v3 = vpack.c.bf16 %v9665_v1, %v9662_v0  ;;  %v9673_v4 = vld [vmem:[%s9639_s24 + $0x10] sm:$0xff]  ;;  %v9676_v5 = vld [vmem:[%s9639_s24 + $0x28] sm:$0xff]  ;;  %v9679_v6 = vld [vmem:[%s9639_s24 + $0x38] sm:$0xff]  ;;  %540 = vmatprep.mubr.f32.mxu0 %v11349_v7  ;;  %s6761_s28 = sld [smem:[#allocation13 + $0x1]]  ;;  %s2521_s11 = sld [smem:[#allocation13]] }
  0xbd   : > { %v6860_v8 = vpack.c.bf16 %v9673_v4, %v9668_v2  ;;  %v6862_v9 = vpack.c.bf16 %v9679_v6, %v9676_v5  ;;  %v9687_v10 = vld [vmem:[%s9639_s24 + $0x20] sm:$0xff]  ;;  %v9690_v11 = vld [vmem:[%s9639_s24 + $0x30] sm:$0xff]  ;;  %v630_v13 = vld [vmem:[#allocation10 + $0x8] sm:$0xff]  ;;  %s11232_s14 = scalar_lea.vmem [#allocation15], %s6578_s29  ;;  %s6857_s29 = sshll.u32 %s9417_s20, 10 }
  0xbe   : > { %6859 = vmatprep.subr.bf16.mxu0 %v6858_v3  ;;  %v6864_v12 = vpack.c.bf16 %v9690_v11, %v9687_v10  ;;  %v632_v14 = vld [vmem:[#allocation10 + $0x18] sm:$0xff]  ;;  %v792_v15 = vld [vmem:[#allocation10 + $0x208] sm:$0xff]  ;;  %v629_v18 = vld [vmem:[#allocation10] sm:$0xff]  ;;  %s6443_s26 = sshll.u32 %s11232_s14, 4  ;;  %s11412_s20 = sld [smem:[#allocation31_spill]]  ;;  %s11285_s26 = int_to_ptr.vmem [resolvable:$true] %s6443_s26 }
  0xbf   : > { %6861 = vmatpush1.bf16.msra.mxu0 %v6860_v8  ;;  %v6866_v16 = vpack.c.bf16 %v632_v14, %v630_v13  ;;  %v794_v17 = vld [vmem:[#allocation10 + $0x218] sm:$0xff]  ;;  %v631_v19 = vld [vmem:[#allocation10 + $0x10] sm:$0xff]  ;;  %v457_v20 = vld [vmem:[#allocation8] sm:$0xff]  ;;  %s6430_s19 = scalar_lea.sflag [#allocation6], %s9633_s22  ;;  %s9237_s23 = scalar_lea.vmem %s11285_s26, 1024 }
  0xc0   : > { %6863 = vmatprep.subr.bf16.mxu0 %v6862_v9  ;;  %v6930_v21 = vpack.c.bf16 %v794_v17, %v792_v15  ;;  %v6868_v22 = vpack.c.bf16 %v631_v19, %v629_v18  ;;  %v791_v23 = vld [vmem:[#allocation10 + $0x200] sm:$0xff]  ;;  %v793_v24 = vld [vmem:[#allocation10 + $0x210] sm:$0xff]  ;;  %v634_v25 = vld [vmem:[#allocation10 + $0x28] sm:$0xff]  ;;  %p9238_p13 = scmp.ne.s32.totalorder %s11285_s26, %s9237_s23  ;;  %p11413_p0 = scmp.ne.s32.totalorder %s11367_s25, 0 }
  0xc1   : > { %6867 = vmatprep.subr.bf16.mxu1 %v6866_v16  ;;  %v636_v26 = vld [vmem:[#allocation10 + $0x38] sm:$0xff]  ;;  %v796_v27 = vld [vmem:[#allocation10 + $0x228] sm:$0xff]  ;;  %v6932_v29 = vpack.c.bf16 %v793_v24, %v791_v23  ;;  %v633_v31 = vld [vmem:[#allocation10 + $0x20] sm:$0xff]  ;;  %s9335_s27 = smov [#allocation15]  }
  0xc2   : > { %v798_v28 = vld [vmem:[#allocation10 + $0x238] sm:$0xff]  ;;  %6869 = vmatpush1.bf16.msra.mxu1 %v6868_v22  ;;  %v6870_v30 = vpack.c.bf16 %v636_v26, %v634_v25  ;;  %v635_v32 = vld [vmem:[#allocation10 + $0x30] sm:$0xff]  ;;  %v795_v33 = vld [vmem:[#allocation10 + $0x220] sm:$0xff]  ;;  %p9239_p5 = pnand %p9238_p13, %p11413_p0 }
  0xc3   : > { %6865 = vmatpush1.bf16.msra.mxu0 %v6864_v12  ;;  %v6934_v34 = vpack.c.bf16 %v798_v28, %v796_v27  ;;  %v6872_v35 = vpack.c.bf16 %v635_v32, %v633_v31  ;;  %v797_v36 = vld [vmem:[#allocation10 + $0x230] sm:$0xff]  ;;  %v638_v37 = vld [vmem:[#allocation10 + $0x48] sm:$0xff]  ;;  %v640_v38 = vld [vmem:[#allocation10 + $0x58] sm:$0xff] }
  0xc4   : > { %6931 = vmatprep.subr.bf16.mxu0 %v6930_v21  ;;  %6871 = vmatprep.subr.bf16.mxu1 %v6870_v30  ;;  %v6874_v39 = vpack.c.bf16 %v640_v38, %v638_v37  ;;  %v800_v40 = vld [vmem:[#allocation10 + $0x248] sm:$0xff]  ;;  %v802_v41 = vld [vmem:[#allocation10 + $0x258] sm:$0xff]  ;;  %v637_v42 = vld [vmem:[#allocation10 + $0x40] sm:$0xff]  ;;  %v6936_v45 = vpack.c.bf16 %v797_v36, %v795_v33  ;;  %p9240_p7 = pneg %p9239_p5 }
  0xc5   : > { %v639_v43 = vld [vmem:[#allocation10 + $0x50] sm:$0xff]  ;;  %v458_v44 = vld [vmem:[#allocation8 + $0x8] sm:$0xff]  ;;  %v644_v47 = vld [vmem:[#allocation10 + $0x78] sm:$0xff]  ;;  %v6938_v48 = vpack.c.bf16 %v802_v41, %v800_v40 }
  0xc6   : > { %6585 = vmatmul.mubr.msk.f32.vlgmr.msra.gmra.mrb[0].mxu0 %vm463_vm0, %v457_v20  ;;  %v642_v46 = vld [vmem:[#allocation10 + $0x68] sm:$0xff]  ;;  %6873 = vmatpush1.bf16.msra.mxu1 %v6872_v35  ;;  %v6876_v49 = vpack.c.bf16 %v639_v43, %v637_v42  ;;  %v799_v50 = vld [vmem:[#allocation10 + $0x240] sm:$0xff]  ;;  %v801_v51 = vld [vmem:[#allocation10 + $0x250] sm:$0xff] }
  0xc7   : > { %546 = vmatprep.mubr.f32.mxu0 %v11349_v7  ;;  %6933 = vmatpush1.bf16.msra.mxu0 %v6932_v29  ;;  %v804_v52 = vld [vmem:[#allocation10 + $0x268] sm:$0xff]  ;;  %v6878_v53 = vpack.c.bf16 %v644_v47, %v642_v46  ;;  %v806_v54 = vld [vmem:[#allocation10 + $0x278] sm:$0xff]  ;;  %v641_v55 = vld [vmem:[#allocation10 + $0x60] sm:$0xff]  ;;  %v6940_v60 = vpack.c.bf16 %v801_v51, %v799_v50 }
  0xc8   : > { %6935 = vmatprep.subr.bf16.mxu0 %v6934_v34  ;;  %6875 = vmatprep.subr.bf16.mxu1 %v6874_v39  ;;  %v643_v56 = vld [vmem:[#allocation10 + $0x70] sm:$0xff]  ;;  %v646_v57 = vld [vmem:[#allocation10 + $0x88] sm:$0xff]  ;;  %v648_v58 = vld [vmem:[#allocation10 + $0x98] sm:$0xff]  ;;  %v6942_v61 = vpack.c.bf16 %v806_v54, %v804_v52 }
  0xc9   : > { %v459_v59 = vld [vmem:[#allocation8 + $0x10] sm:$0xff]  ;;  %v6880_v62 = vpack.c.bf16 %v643_v56, %v641_v55  ;;  %v803_v63 = vld [vmem:[#allocation10 + $0x260] sm:$0xff]  ;;  %v808_v8 = vld [vmem:[#allocation10 + $0x288] sm:$0xff]  ;;  %v6882_v9 = vpack.c.bf16 %v648_v58, %v646_v57 }
  0xca   : > { %6586 = vmatmul.mubr.msk.f32.gmra.mrb[2].mxu0 %vm463_vm0, %v458_v44  ;;  %6877 = vmatpush1.bf16.msra.mxu1 %v6876_v49  ;;  %v805_v3 = vld [vmem:[#allocation10 + $0x270] sm:$0xff]  ;;  %v810_v12 = vld [vmem:[#allocation10 + $0x298] sm:$0xff]  ;;  %v645_v13 = vld [vmem:[#allocation10 + $0x80] sm:$0xff] }
  0xcb   : > { %552 = vmatprep.mubr.f32.mxu0 %v11349_v7  ;;  %6937 = vmatpush1.bf16.msra.mxu0 %v6936_v45  ;;  %v647_v14 = vld [vmem:[#allocation10 + $0x90] sm:$0xff]  ;;  %v650_v15 = vld [vmem:[#allocation10 + $0xa8] sm:$0xff]  ;;  %v652_v16 = vld [vmem:[#allocation10 + $0xb8] sm:$0xff]  ;;  %v6944_v18 = vpack.c.bf16 %v805_v3, %v803_v63  ;;  %v6946_v19 = vpack.c.bf16 %v810_v12, %v808_v8 }
  0xcc   : > { %6939 = vmatprep.subr.bf16.mxu0 %v6938_v48  ;;  %6879 = vmatprep.subr.bf16.mxu1 %v6878_v53  ;;  %v460_v17 = vld [vmem:[#allocation8 + $0x18] sm:$0xff]  ;;  %v6884_v20 = vpack.c.bf16 %v647_v14, %v645_v13  ;;  %v807_v21 = vld [vmem:[#allocation10 + $0x280] sm:$0xff]  ;;  %v809_v22 = vld [vmem:[#allocation10 + $0x290] sm:$0xff]  ;;  %v6886_v24 = vpack.c.bf16 %v652_v16, %v650_v15 }
  0xcd   : > { %v812_v23 = vld [vmem:[#allocation10 + $0x2a8] sm:$0xff]  ;;  %v814_v25 = vld [vmem:[#allocation10 + $0x2b8] sm:$0xff]  ;;  %v649_v26 = vld [vmem:[#allocation10 + $0xa0] sm:$0xff]  ;;  %v6948_v30 = vpack.c.bf16 %v809_v22, %v807_v21 }
  0xce   : > { %6587 = vmatmul.mubr.msk.f32.gmra.mrb[4].mxu0 %vm463_vm0, %v459_v59  ;;  %6881 = vmatpush1.bf16.msra.mxu1 %v6880_v62  ;;  %v651_v27 = vld [vmem:[#allocation10 + $0xb0] sm:$0xff]  ;;  %v654_v28 = vld [vmem:[#allocation10 + $0xc8] sm:$0xff]  ;;  %v656_v29 = vld [vmem:[#allocation10 + $0xd8] sm:$0xff]  ;;  %v6950_v31 = vpack.c.bf16 %v814_v25, %v812_v23 }
  0xcf   : > { %558 = vmatprep.mubr.f32.mxu0 %v11349_v7  ;;  %6941 = vmatpush1.bf16.msra.mxu0 %v6940_v60  ;;  %v6888_v32 = vpack.c.bf16 %v651_v27, %v649_v26  ;;  %v811_v33 = vld [vmem:[#allocation10 + $0x2a0] sm:$0xff]  ;;  %v813_v34 = vld [vmem:[#allocation10 + $0x2b0] sm:$0xff]  ;;  %v816_v35 = vld [vmem:[#allocation10 + $0x2c8] sm:$0xff]  ;;  %v6890_v36 = vpack.c.bf16 %v656_v29, %v654_v28 }
  0xd0   : > { %6943 = vmatprep.subr.bf16.mxu0 %v6942_v61  ;;  %6883 = vmatprep.subr.bf16.mxu1 %v6882_v9  ;;  %v818_v37 = vld [vmem:[#allocation10 + $0x2d8] sm:$0xff]  ;;  %v653_v38 = vld [vmem:[#allocation10 + $0xc0] sm:$0xff]  ;;  %v655_v39 = vld [vmem:[#allocation10 + $0xd0] sm:$0xff]  ;;  %v6952_v42 = vpack.c.bf16 %v813_v34, %v811_v33 }
  0xd1   : > { %v658_v40 = vld [vmem:[#allocation10 + $0xe8] sm:$0xff]  ;;  %v660_v41 = vld [vmem:[#allocation10 + $0xf8] sm:$0xff]  ;;  %v6954_v43 = vpack.c.bf16 %v818_v37, %v816_v35  ;;  %v6892_v44 = vpack.c.bf16 %v655_v39, %v653_v38  ;;  %v815_v45 = vld [vmem:[#allocation10 + $0x2c0] sm:$0xff] }
  0xd2   : > { %6588 = vmatmul.mubr.msk.f32.gmra.mrb[6].mxu0 %vm463_vm0, %v460_v17  ;;  %6885 = vmatpush1.bf16.msra.mxu1 %v6884_v20  ;;  %v817_v46 = vld [vmem:[#allocation10 + $0x2d0] sm:$0xff]  ;;  %v820_v47 = vld [vmem:[#allocation10 + $0x2e8] sm:$0xff]  ;;  %v6894_v48 = vpack.c.bf16 %v660_v41, %v658_v40  ;;  %v822_v49 = vld [vmem:[#allocation10 + $0x2f8] sm:$0xff] }
  0xd3   : > { %6945 = vmatpush1.bf16.msra.mxu0 %v6944_v18  ;;  %6887 = vmatprep.subr.bf16.mxu1 %v6886_v24  ;;  %v657_v50 = vld [vmem:[#allocation10 + $0xe0] sm:$0xff]  ;;  %v659_v51 = vld [vmem:[#allocation10 + $0xf0] sm:$0xff]  ;;  %v662_v52 = vld [vmem:[#allocation10 + $0x108] sm:$0xff]  ;;  %v6956_v54 = vpack.c.bf16 %v817_v46, %v815_v45  ;;  %v6958_v55 = vpack.c.bf16 %v822_v49, %v820_v47 }
  0xd4   : > { %6947 = vmatprep.subr.bf16.mxu0 %v6946_v19  ;;  %v664_v53 = vld [vmem:[#allocation10 + $0x118] sm:$0xff]  ;;  %v6896_v56 = vpack.c.bf16 %v659_v51, %v657_v50  ;;  %v819_v57 = vld [vmem:[#allocation10 + $0x2e0] sm:$0xff]  ;;  %v821_v58 = vld [vmem:[#allocation10 + $0x2f0] sm:$0xff] }
  0xd5   : > { %v6898_v59 = vpack.c.bf16 %v664_v53, %v662_v52  ;;  %v824_v60 = vld [vmem:[#allocation10 + $0x308] sm:$0xff]  ;;  %v826_v61 = vld [vmem:[#allocation10 + $0x318] sm:$0xff]  ;;  %v6960_v62 = vpack.c.bf16 %v821_v58, %v819_v57  ;;  %v661_v3 = vld [vmem:[#allocation10 + $0x100] sm:$0xff] }
  0xd6   : > { %6889 = vmatpush1.bf16.msra.mxu1 %v6888_v32  ;;  %v6962_v63 = vpack.c.bf16 %v826_v61, %v824_v60  ;;  %v663_v8 = vld [vmem:[#allocation10 + $0x110] sm:$0xff]  ;;  %v823_v9 = vld [vmem:[#allocation10 + $0x300] sm:$0xff]  ;;  %v666_v15 = vld [vmem:[#allocation10 + $0x128] sm:$0xff] }
  0xd7   : > { %6949 = vmatpush1.bf16.msra.mxu0 %v6948_v30  ;;  %6891 = vmatprep.subr.bf16.mxu1 %v6890_v36  ;;  %v6900_v12 = vpack.c.bf16 %v663_v8, %v661_v3  ;;  %v825_v13 = vld [vmem:[#allocation10 + $0x310] sm:$0xff]  ;;  %v668_v16 = vld [vmem:[#allocation10 + $0x138] sm:$0xff]  ;;  %v828_v17 = vld [vmem:[#allocation10 + $0x328] sm:$0xff] }
  0xd8   : > { %6951 = vmatprep.subr.bf16.mxu0 %v6950_v31  ;;  %v6964_v14 = vpack.c.bf16 %v825_v13, %v823_v9  ;;  %v6902_v18 = vpack.c.bf16 %v668_v16, %v666_v15  ;;  %v830_v19 = vld [vmem:[#allocation10 + $0x338] sm:$0xff]  ;;  %v665_v20 = vld [vmem:[#allocation10 + $0x120] sm:$0xff]  ;;  %v667_v21 = vld [vmem:[#allocation10 + $0x130] sm:$0xff] }
  0xd9   : > { %v6966_v22 = vpack.c.bf16 %v830_v19, %v828_v17  ;;  %v6904_v23 = vpack.c.bf16 %v667_v21, %v665_v20  ;;  %v827_v24 = vld [vmem:[#allocation10 + $0x320] sm:$0xff]  ;;  %v829_v25 = vld [vmem:[#allocation10 + $0x330] sm:$0xff]  ;;  %v670_v27 = vld [vmem:[#allocation10 + $0x148] sm:$0xff] }
  0xda   : > { %6893 = vmatpush1.bf16.msra.mxu1 %v6892_v44  ;;  %v6968_v26 = vpack.c.bf16 %v829_v25, %v827_v24  ;;  %v672_v28 = vld [vmem:[#allocation10 + $0x158] sm:$0xff]  ;;  %v832_v29 = vld [vmem:[#allocation10 + $0x348] sm:$0xff]  ;;  %v669_v32 = vld [vmem:[#allocation10 + $0x140] sm:$0xff] }
  0xdb   : > { %6953 = vmatpush1.bf16.msra.mxu0 %v6952_v42  ;;  %6895 = vmatprep.subr.bf16.mxu1 %v6894_v48  ;;  %v6906_v30 = vpack.c.bf16 %v672_v28, %v670_v27  ;;  %v834_v31 = vld [vmem:[#allocation10 + $0x358] sm:$0xff]  ;;  %v671_v33 = vld [vmem:[#allocation10 + $0x150] sm:$0xff]  ;;  %v831_v36 = vld [vmem:[#allocation10 + $0x340] sm:$0xff] }
  0xdc   : > { %6955 = vmatprep.subr.bf16.mxu0 %v6954_v43  ;;  %v6970_v34 = vpack.c.bf16 %v834_v31, %v832_v29  ;;  %v6908_v35 = vpack.c.bf16 %v671_v33, %v669_v32  ;;  %v833_v37 = vld [vmem:[#allocation10 + $0x350] sm:$0xff]  ;;  %v674_v39 = vld [vmem:[#allocation10 + $0x168] sm:$0xff]  ;;  %v676_v40 = vld [vmem:[#allocation10 + $0x178] sm:$0xff] }
  0xdd   : > { %v6972_v38 = vpack.c.bf16 %v833_v37, %v831_v36  ;;  %v836_v41 = vld [vmem:[#allocation10 + $0x368] sm:$0xff]  ;;  %v6910_v42 = vpack.c.bf16 %v676_v40, %v674_v39  ;;  %v838_v43 = vld [vmem:[#allocation10 + $0x378] sm:$0xff]  ;;  %v673_v44 = vld [vmem:[#allocation10 + $0x160] sm:$0xff] }
  0xde   : > { %6897 = vmatpush1.bf16.msra.mxu1 %v6896_v56  ;;  %v675_v45 = vld [vmem:[#allocation10 + $0x170] sm:$0xff]  ;;  %v6974_v46 = vpack.c.bf16 %v838_v43, %v836_v41  ;;  %v835_v48 = vld [vmem:[#allocation10 + $0x360] sm:$0xff]  ;;  %v678_v51 = vld [vmem:[#allocation10 + $0x188] sm:$0xff] }
  0xdf   : > { %6957 = vmatpush1.bf16.msra.mxu0 %v6956_v54  ;;  %6899 = vmatprep.subr.bf16.mxu1 %v6898_v59  ;;  %v6912_v47 = vpack.c.bf16 %v675_v45, %v673_v44  ;;  %v837_v49 = vld [vmem:[#allocation10 + $0x370] sm:$0xff]  ;;  %v680_v52 = vld [vmem:[#allocation10 + $0x198] sm:$0xff]  ;;  %v840_v53 = vld [vmem:[#allocation10 + $0x388] sm:$0xff] }
  0xe0   : > { %6959 = vmatprep.subr.bf16.mxu0 %v6958_v55  ;;  %v6976_v50 = vpack.c.bf16 %v837_v49, %v835_v48  ;;  %v6914_v54 = vpack.c.bf16 %v680_v52, %v678_v51  ;;  %v842_v55 = vld [vmem:[#allocation10 + $0x398] sm:$0xff]  ;;  %v677_v56 = vld [vmem:[#allocation10 + $0x180] sm:$0xff]  ;;  %v679_v57 = vld [vmem:[#allocation10 + $0x190] sm:$0xff] }
  0xe1   : > { %v6978_v58 = vpack.c.bf16 %v842_v55, %v840_v53  ;;  %v6916_v59 = vpack.c.bf16 %v679_v57, %v677_v56  ;;  %v839_v60 = vld [vmem:[#allocation10 + $0x380] sm:$0xff]  ;;  %v841_v61 = vld [vmem:[#allocation10 + $0x390] sm:$0xff]  ;;  %v684_v3 = vld [vmem:[#allocation10 + $0x1b8] sm:$0xff] }
  0xe2   : > { %6901 = vmatpush1.bf16.msra.mxu1 %v6900_v12  ;;  %v844_v8 = vld [vmem:[#allocation10 + $0x3a8] sm:$0xff]  ;;  %v846_v12 = vld [vmem:[#allocation10 + $0x3b8] sm:$0xff]  ;;  %v681_v13 = vld [vmem:[#allocation10 + $0x1a0] sm:$0xff] }
  0xe3   : > { %6961 = vmatpush1.bf16.msra.mxu0 %v6960_v62  ;;  %6903 = vmatprep.subr.bf16.mxu1 %v6902_v18  ;;  %v6980_v62 = vpack.c.bf16 %v841_v61, %v839_v60  ;;  %v6982_v15 = vpack.c.bf16 %v846_v12, %v844_v8  ;;  %v843_v17 = vld [vmem:[#allocation10 + $0x3a0] sm:$0xff]  ;;  %v845_v18 = vld [vmem:[#allocation10 + $0x3b0] sm:$0xff]  ;;  %v686_v20 = vld [vmem:[#allocation10 + $0x1c8] sm:$0xff] }
  0xe4   : > { %6963 = vmatprep.subr.bf16.mxu0 %v6962_v63  ;;  %v682_v63 = vld [vmem:[#allocation10 + $0x1a8] sm:$0xff]  ;;  %v6984_v19 = vpack.c.bf16 %v845_v18, %v843_v17  ;;  %v688_v21 = vld [vmem:[#allocation10 + $0x1d8] sm:$0xff]  ;;  %v685_v25 = vld [vmem:[#allocation10 + $0x1c0] sm:$0xff] }
  0xe5   : > { %v6918_v9 = vpack.c.bf16 %v684_v3, %v682_v63  ;;  %v850_v24 = vld [vmem:[#allocation10 + $0x3d8] sm:$0xff]  ;;  %v847_v29 = vld [vmem:[#allocation10 + $0x3c0] sm:$0xff]  ;;  %v690_v32 = vld [vmem:[#allocation10 + $0x1e8] sm:$0xff] }
  0xe6   : > { %6905 = vmatpush1.bf16.msra.mxu1 %v6904_v23  ;;  %v6922_v23 = vpack.c.bf16 %v688_v21, %v686_v20  ;;  %v692_v33 = vld [vmem:[#allocation10 + $0x1f8] sm:$0xff]  ;;  %v689_v37 = vld [vmem:[#allocation10 + $0x1e0] sm:$0xff]  ;;  %v954_v44 = vld [vmem:[#allocation10 + $0x408] sm:$0xff] }
  0xe7   : > { %6965 = vmatpush1.bf16.msra.mxu0 %v6964_v14  ;;  %6907 = vmatprep.subr.bf16.mxu1 %v6906_v30  ;;  %v683_v14 = vld [vmem:[#allocation10 + $0x1b0] sm:$0xff]  ;;  %v854_v36 = vld [vmem:[#allocation10 + $0x3f8] sm:$0xff]  ;;  %v851_v41 = vld [vmem:[#allocation10 + $0x3e0] sm:$0xff] }
  0xe8   : > { %6967 = vmatprep.subr.bf16.mxu0 %v6966_v22  ;;  %v6920_v16 = vpack.c.bf16 %v683_v14, %v681_v13  ;;  %v848_v22 = vld [vmem:[#allocation10 + $0x3c8] sm:$0xff]  ;;  %v849_v30 = vld [vmem:[#allocation10 + $0x3d0] sm:$0xff]  ;;  %v956_v45 = vld [vmem:[#allocation10 + $0x418] sm:$0xff] }
  0xe9   : > { %v6986_v27 = vpack.c.bf16 %v850_v24, %v848_v22  ;;  %v6988_v31 = vpack.c.bf16 %v849_v30, %v847_v29  ;;  %v1118_v48 = vld [vmem:[#allocation10 + $0x618] sm:$0xff] }
  0xea   : > { %6909 = vmatpush1.bf16.msra.mxu1 %v6908_v35  ;;  %v6926_v35 = vpack.c.bf16 %v692_v33, %v690_v32  ;;  %v953_v32 = vld [vmem:[#allocation10 + $0x400] sm:$0xff]  ;;  %v955_v33 = vld [vmem:[#allocation10 + $0x410] sm:$0xff] }
  0xeb   : > { %6969 = vmatpush1.bf16.msra.mxu0 %v6968_v26  ;;  %6911 = vmatprep.subr.bf16.mxu1 %v6910_v42  ;;  %v687_v26 = vld [vmem:[#allocation10 + $0x1d0] sm:$0xff] }
  0xec   : > { %6971 = vmatprep.subr.bf16.mxu0 %v6970_v34  ;;  %v6924_v28 = vpack.c.bf16 %v687_v26, %v685_v25  ;;  %v852_v34 = vld [vmem:[#allocation10 + $0x3e8] sm:$0xff]  ;;  %v853_v42 = vld [vmem:[#allocation10 + $0x3f0] sm:$0xff] }
  0xed   : > { %v6990_v39 = vpack.c.bf16 %v854_v36, %v852_v34  ;;  %v6992_v43 = vpack.c.bf16 %v853_v42, %v851_v41  ;;  %v1115_v34 = vld [vmem:[#allocation10 + $0x600] sm:$0xff]  ;;  %v958_v36 = vld [vmem:[#allocation10 + $0x428] sm:$0xff] }
  0xee   : > { %6913 = vmatpush1.bf16.msra.mxu1 %v6912_v47  ;;  %v6994_v47 = vpack.c.bf16 %v956_v45, %v954_v44  ;;  %v6996_v44 = vpack.c.bf16 %v955_v33, %v953_v32  ;;  %v971_v32 = vld [vmem:[#allocation10 + $0x490] sm:$0xff] }
  0xef   : > { %6973 = vmatpush1.bf16.msra.mxu0 %v6972_v38  ;;  %6915 = vmatprep.subr.bf16.mxu1 %v6914_v54  ;;  %v691_v38 = vld [vmem:[#allocation10 + $0x1f0] sm:$0xff] }
  0xf0   : > { %6975 = vmatprep.subr.bf16.mxu0 %v6974_v46  ;;  %v6928_v40 = vpack.c.bf16 %v691_v38, %v689_v37  ;;  %v1116_v46 = vld [vmem:[#allocation10 + $0x608] sm:$0xff]  ;;  %v960_v38 = vld [vmem:[#allocation10 + $0x438] sm:$0xff]  ;;  %v1133_v33 = vld [vmem:[#allocation10 + $0x690] sm:$0xff] }
  0xf1   : > { %v7058_v49 = vpack.c.bf16 %v1118_v48, %v1116_v46  ;;  %v957_v46 = vld [vmem:[#allocation10 + $0x420] sm:$0xff] }
  0xf2   : > { %6917 = vmatpush1.bf16.msra.mxu1 %v6916_v59 }
  0xf3   : > { %6977 = vmatpush1.bf16.msra.mxu0 %v6976_v50  ;;  %6919 = vmatprep.subr.bf16.mxu1 %v6918_v9  ;;  %v462_v50 = vstv %s461_s21  ;;  %s6850_s21 = sld [smem:[#allocation13 + $0x2]] }
  0xf4   : > { %6979 = vmatprep.subr.bf16.mxu0 %v6978_v58 }
  0xf6   : > { %6921 = vmatpush1.bf16.msra.mxu1 %v6920_v16 }
  0xf7   : > { %6981 = vmatpush1.bf16.msra.mxu0 %v6980_v62  ;;  %6923 = vmatprep.subr.bf16.mxu1 %v6922_v23 }
  0xf8   : > { %6983 = vmatprep.subr.bf16.mxu0 %v6982_v15 }
  0xfa   : > { %6925 = vmatpush1.bf16.msra.mxu1 %v6924_v28 }
  0xfb   : > { %6985 = vmatpush1.bf16.msra.mxu0 %v6984_v19  ;;  %6927 = vmatprep.subr.bf16.mxu1 %v6926_v35  ;;  %v1117_v35 = vld [vmem:[#allocation10 + $0x610] sm:$0xff] }
  0xfc   : > { %6987 = vmatprep.subr.bf16.mxu0 %v6986_v27  ;;  %v7060_v45 = vpack.c.bf16 %v1117_v35, %v1115_v34  ;;  %v974_v34 = vld [vmem:[#allocation10 + $0x4a8] sm:$0xff] }
  0xfe   : > { %6929 = vmatpush1.bf16.msra.mxu1 %v6928_v40  ;;  %v1122_v40 = vld [vmem:[#allocation10 + $0x638] sm:$0xff] }
  0xff   : > { %6989 = vmatpush1.bf16.msra.mxu0 %v6988_v31  ;;  %6995 = vmatprep.subr.bf16.mxu1 %v6994_v47  ;;  %v959_v47 = vld [vmem:[#allocation10 + $0x430] sm:$0xff] }
 0x100   : > { %6991 = vmatprep.subr.bf16.mxu0 %v6990_v39  ;;  %v1120_v39 = vld [vmem:[#allocation10 + $0x628] sm:$0xff] }
 0x103   : > { %6993 = vmatpush1.bf16.msra.mxu0 %v6992_v43 }
 0x104   : > { %7059 = vmatprep.subr.bf16.mxu0 %v7058_v49  ;;  %v6998_v49 = vpack.c.bf16 %v960_v38, %v958_v36  ;;  %v1136_v38 = vld [vmem:[#allocation10 + $0x6a8] sm:$0xff] }
 0x199   : > { %v542_v51 = vpop.f32.mrb[0].mxu0 }
 0x19a   : > { %v543_v52 = vadd.f32 %v542_v51, %v462_v50  ;;  %v544_v53 = vpop.f32.mrb[1].mxu0  ;;  %v1119_v51 = vld [vmem:[#allocation10 + $0x620] sm:$0xff] }
 0x19b   : > { %v545_v54 = vadd.f32 %v544_v53, %v462_v50  ;;  %v962_v53 = vld [vmem:[#allocation10 + $0x448] sm:$0xff] }
 0x19c   : > { %v6589_v55 = vmul.f32 -1.442695, %v543_v52  ;;  %v1121_v52 = vld [vmem:[#allocation10 + $0x630] sm:$0xff] }
 0x19d   : > { %v6590_v56 = vmul.f32 -1.442695, %v545_v54  ;;  %v548_v57 = vpop.f32.mrb[2].mxu0 }
 0x19e   : > { %8971 = vpow2.f32 %v6589_v55  ;;  %v549_v58 = vadd.f32 %v548_v57, %v462_v50  ;;  %v550_v59 = vpop.f32.mrb[3].mxu0  ;;  %v964_v55 = vld [vmem:[#allocation10 + $0x458] sm:$0xff] }
 0x19f   : > { %8973 = vpow2.f32 %v6590_v56  ;;  %v551_v60 = vadd.f32 %v550_v59, %v462_v50  ;;  %v1124_v56 = vld [vmem:[#allocation10 + $0x648] sm:$0xff]  ;;  %v1126_v57 = vld [vmem:[#allocation10 + $0x658] sm:$0xff] }
 0x1a0   : > { %v6591_v61 = vmul.f32 -1.442695, %v549_v58 }
 0x1a1   : > { %v6592_v62 = vmul.f32 -1.442695, %v551_v60  ;;  %v554_v63 = vpop.f32.mrb[4].mxu0  ;;  %v7000_v60 = vpack.c.bf16 %v959_v47, %v957_v46  ;;  %v1135_v47 = vld [vmem:[#allocation10 + $0x6a0] sm:$0xff] }
 0x1a2   : > { %8975 = vpow2.f32 %v6591_v61  ;;  %v555_v3 = vadd.f32 %v554_v63, %v462_v50  ;;  %v556_v8 = vpop.f32.mrb[5].mxu0  ;;  %v7064_v61 = vpack.c.bf16 %v1121_v52, %v1119_v51  ;;  %v963_v63 = vld [vmem:[#allocation10 + $0x450] sm:$0xff]  ;;  %v1142_v51 = vld [vmem:[#allocation10 + $0x6d8] sm:$0xff] }
 0x1a3   : > { %8977 = vpow2.f32 %v6592_v62  ;;  %v557_v9 = vadd.f32 %v556_v8, %v462_v50  ;;  %v961_v62 = vld [vmem:[#allocation10 + $0x440] sm:$0xff]  ;;  %v7066_v8 = vpack.c.bf16 %v1126_v57, %v1124_v56 }
 0x1a4   : > { %v6593_v12 = vmul.f32 -1.442695, %v555_v3  ;;  %v7002_v3 = vpack.c.bf16 %v964_v55, %v962_v53  ;;  %v979_v55 = vld [vmem:[#allocation10 + $0x4d0] sm:$0xff]  ;;  %v1139_v57 = vld [vmem:[#allocation10 + $0x6c0] sm:$0xff] }
 0x1a5   : > { %v6594_v13 = vmul.f32 -1.442695, %v557_v9  ;;  %v560_v14 = vpop.f32.mrb[6].mxu0  ;;  %v1123_v9 = vld [vmem:[#allocation10 + $0x640] sm:$0xff] }
 0x1a6   : > { %8979 = vpow2.f32 %v6593_v12  ;;  %v561_v15 = vadd.f32 %v560_v14, %v462_v50  ;;  %v562_v16 = vpop.f32.mrb[7].mxu0  ;;  %v1125_v12 = vld [vmem:[#allocation10 + $0x650] sm:$0xff]  ;;  %v1128_v14 = vld [vmem:[#allocation10 + $0x668] sm:$0xff] }
 0x1a7   : > { %8981 = vpow2.f32 %v6594_v13  ;;  %v563_v17 = vadd.f32 %v562_v16, %v462_v50  ;;  %v7062_v50 = vpack.c.bf16 %v1122_v40, %v1120_v39  ;;  %v968_v13 = vld [vmem:[#allocation10 + $0x478] sm:$0xff] }
 0x1a8   : > { %v8972_v18 = vpop.eup %8971  ;;  %v6595_v19 = vmul.f32 -1.442695, %v561_v15  ;;  %v1130_v15 = vld [vmem:[#allocation10 + $0x678] sm:$0xff] }
 0x1a9   : > { %v8974_v20 = vpop.eup %8973  ;;  %v589_v21 = vadd.f32 1.0, %v8972_v18  ;;  %v6596_v22 = vmul.f32 -1.442695, %v563_v17  ;;  %v7068_v18 = vpack.c.bf16 %v1125_v12, %v1123_v9  ;;  %v1138_v39 = vld [vmem:[#allocation10 + $0x6b8] sm:$0xff]  ;;  %v981_v12 = vld [vmem:[#allocation10 + $0x4e0] sm:$0xff] }
 0x1aa   : > { %v590_v23 = vadd.f32 1.0, %v8974_v20  ;;  %8983 = vpow2.f32 %v6595_v19  ;;  %v7070_v20 = vpack.c.bf16 %v1130_v15, %v1128_v14  ;;  %v7078_v46 = vpack.c.bf16 %v1138_v39, %v1136_v38  ;;  %v1143_v15 = vld [vmem:[#allocation10 + $0x6e0] sm:$0xff] }
 0x1ab   : > { %8985 = vrcp.f32 %v589_v21  ;;  %v1151_v39 = vld [vmem:[#allocation10 + $0x720] sm:$0xff] }
 0x1ac   : > { %v8976_v24 = vpop.eup %8975  ;;  %8987 = vrcp.f32 %v590_v23  ;;  %v1127_v23 = vld [vmem:[#allocation10 + $0x660] sm:$0xff] }
 0x1ad   : > { %v8978_v25 = vpop.eup %8977  ;;  %v591_v26 = vadd.f32 1.0, %v8976_v24  ;;  %8989 = vpow2.f32 %v6596_v22  ;;  %v967_v22 = vld [vmem:[#allocation10 + $0x470] sm:$0xff] }
 0x1ae   : > { %v592_v27 = vadd.f32 1.0, %v8978_v25  ;;  %v1129_v24 = vld [vmem:[#allocation10 + $0x670] sm:$0xff]  ;;  %v970_v25 = vld [vmem:[#allocation10 + $0x488] sm:$0xff] }
 0x1af   : > { %8991 = vrcp.f32 %v591_v26  ;;  %v1132_v26 = vld [vmem:[#allocation10 + $0x688] sm:$0xff] }
 0x1b0   : > { %v8980_v28 = vpop.eup %8979  ;;  %8993 = vrcp.f32 %v592_v27  ;;  %v1134_v27 = vld [vmem:[#allocation10 + $0x698] sm:$0xff] }
 0x1b1   : > { %v8982_v29 = vpop.eup %8981  ;;  %v593_v30 = vadd.f32 1.0, %v8980_v28  ;;  %v7074_v36 = vpack.c.bf16 %v1134_v27, %v1132_v26  ;;  %v1147_v27 = vld [vmem:[#allocation10 + $0x700] sm:$0xff] }
 0x1b2   : > { %v594_v31 = vadd.f32 1.0, %v8982_v29 }
 0x1b3   : > { %8995 = vrcp.f32 %v593_v30  ;;  %v7072_v30 = vpack.c.bf16 %v1129_v24, %v1127_v23  ;;  %v985_v24 = vld [vmem:[#allocation10 + $0x500] sm:$0xff] }
 0x1b4   : > { %v8984_v37 = vpop.eup %8983  ;;  %8997 = vrcp.f32 %v594_v31  ;;  %v969_v31 = vld [vmem:[#allocation10 + $0x480] sm:$0xff] }
 0x1b5   : > { %v9701_v41 = vpop.eup %8985  ;;  %v595_v42 = vadd.f32 1.0, %v8984_v37  ;;  %v976_v37 = vld [vmem:[#allocation10 + $0x4b8] sm:$0xff]  ;;  %v7012_v40 = vpack.c.bf16 %v971_v32, %v969_v31  ;;  %v1152_v32 = vld [vmem:[#allocation10 + $0x728] sm:$0xff] }
 0x1b6   : > { %v9703_v43 = vpop.eup %8987  ;;  %vm613_vm2 = vcmp.ge.f32.partialorder %v9701_v41, 0.3  ;;  %v992_v31 = vld [vmem:[#allocation10 + $0x538] sm:$0xff]  ;;  %vm2547_vm10 = vcmp.ge.f32.partialorder %v9701_v41, 0.5 }
 0x1b7   : > { %v8990_v48 = vpop.eup %8989  ;;  %8999 = vrcp.f32 %v595_v42  ;;  %vm614_vm1 = vcmp.ge.f32.partialorder %v9703_v43, 0.3  ;;  %vm2548_vm9 = vcmp.ge.f32.partialorder %v9703_v43, 0.5 }
 0x1b8   : > { %v596_v54 = vadd.f32 1.0, %v8990_v48  ;;  %6597 = vmatprep.mubr.msk.f32.mxu1 %vm614_vm1, %v9662_v0  ;;  %6605 = vmatprep.mubr.msk.f32.mxu0 %vm614_vm1, %v9662_v0  ;;  %v1137_v48 = vld [vmem:[#allocation10 + $0x6b0] sm:$0xff] }
 0x1b9   : > { %v9713_v58 = vpop.eup %8991  ;;  %6598 = vmatmul.mubr.msk.f32.vlgmr.msra.gmra.mrb[0].mxu1 %vm613_vm2, %v9668_v2  ;;  %6606 = vmatmul.mubr.msk.f32.vlgmr.msra.gmra.mrb[8].mxu0 %vm613_vm2, %v9668_v2  ;;  %v966_v2 = vld [vmem:[#allocation10 + $0x468] sm:$0xff]  ;;  %v7080_v53 = vpack.c.bf16 %v1137_v48, %v1135_v47  ;;  %v993_v48 = vld [vmem:[#allocation10 + $0x540] sm:$0xff] }
 0x1ba   : > { %v9721_v59 = vpop.eup %8993  ;;  %9001 = vrcp.f32 %v596_v54  ;;  %6997 = vmatpush1.bf16.msra.mxu1 %v6996_v44  ;;  %7061 = vmatpush1.bf16.msra.mxu0 %v7060_v45  ;;  %vm615_vm3 = vcmp.ge.f32.partialorder %v9713_v58, 0.3  ;;  %v7006_v19 = vpack.c.bf16 %v968_v13, %v966_v2  ;;  %v973_v44 = vld [vmem:[#allocation10 + $0x4a0] sm:$0xff]  ;;  %v975_v45 = vld [vmem:[#allocation10 + $0x4b0] sm:$0xff]  ;;  %vm2549_vm12 = vcmp.ge.f32.partialorder %v9713_v58, 0.5 }
 0x1bb   : > { %vm616_vm4 = vcmp.ge.f32.partialorder %v9721_v59, 0.3  ;;  %6999 = vmatprep.subr.bf16.mxu1 %v6998_v49  ;;  %7063 = vmatprep.subr.bf16.mxu0 %v7062_v50  ;;  %v978_v49 = vld [vmem:[#allocation10 + $0x4c8] sm:$0xff]  ;;  %v7016_v52 = vpack.c.bf16 %v975_v45, %v973_v44  ;;  %v977_v54 = vld [vmem:[#allocation10 + $0x4c0] sm:$0xff]  ;;  %v983_v2 = vld [vmem:[#allocation10 + $0x4f0] sm:$0xff]  ;;  %vm2550_vm11 = vcmp.ge.f32.partialorder %v9721_v59, 0.5 }
 0x1bc   : > { %6599 = vmatprep.mubr.msk.f32.mxu1 %vm616_vm4, %v9665_v1  ;;  %6607 = vmatprep.mubr.msk.f32.mxu0 %vm616_vm4, %v9665_v1  ;;  %v7004_v1 = vpack.c.bf16 %v963_v63, %v961_v62  ;;  %v1140_v50 = vld [vmem:[#allocation10 + $0x6c8] sm:$0xff]  ;;  %v984_v62 = vld [vmem:[#allocation10 + $0x4f8] sm:$0xff] }
 0x1bd   : > { %v9731_v16 = vpop.eup %8995  ;;  %6600 = vmatmul.mubr.msk.f32.gmra.mrb[2].mxu1 %vm615_vm3, %v9673_v4  ;;  %6608 = vmatmul.mubr.msk.f32.gmra.mrb[10].mxu0 %vm615_vm3, %v9673_v4  ;;  %v965_v4 = vld [vmem:[#allocation10 + $0x460] sm:$0xff]  ;;  %v1144_v63 = vld [vmem:[#allocation10 + $0x6e8] sm:$0xff]  ;;  %v996_v44 = vld [vmem:[#allocation10 + $0x558] sm:$0xff] }
 0x1be   : > { %v9739_v17 = vpop.eup %8997  ;;  %7001 = vmatpush1.bf16.msra.mxu1 %v7000_v60  ;;  %7065 = vmatpush1.bf16.msra.mxu0 %v7064_v61  ;;  %vm617_vm5 = vcmp.ge.f32.partialorder %v9731_v16, 0.3  ;;  %v7008_v29 = vpack.c.bf16 %v967_v22, %v965_v4  ;;  %v1141_v60 = vld [vmem:[#allocation10 + $0x6d0] sm:$0xff]  ;;  %v982_v61 = vld [vmem:[#allocation10 + $0x4e8] sm:$0xff]  ;;  %v1150_v4 = vld [vmem:[#allocation10 + $0x718] sm:$0xff]  ;;  %v7024_v22 = vpack.c.bf16 %v983_v2, %v981_v12  ;;  %vm2551_vm14 = vcmp.ge.f32.partialorder %v9731_v16, 0.5 }
 0x1bf   : > { %vm618_vm6 = vcmp.ge.f32.partialorder %v9739_v17, 0.3  ;;  %7003 = vmatprep.subr.bf16.mxu1 %v7002_v3  ;;  %7067 = vmatprep.subr.bf16.mxu0 %v7066_v8  ;;  %v1146_v3 = vld [vmem:[#allocation10 + $0x6f8] sm:$0xff]  ;;  %v7020_v8 = vpack.c.bf16 %v979_v55, %v977_v54  ;;  %v7084_v9 = vpack.c.bf16 %v1141_v60, %v1139_v57  ;;  %v7022_v13 = vpack.c.bf16 %v984_v62, %v982_v61  ;;  %v1156_v45 = vld [vmem:[#allocation10 + $0x748] sm:$0xff]  ;;  %v997_v60 = vld [vmem:[#allocation10 + $0x560] sm:$0xff] }
 0x1c0   : > { %6601 = vmatprep.mubr.msk.f32.mxu1 %vm618_vm6, %v9676_v5  ;;  %6609 = vmatprep.mubr.msk.f32.mxu0 %vm618_vm6, %v9676_v5  ;;  %v972_v5 = vld [vmem:[#allocation10 + $0x498] sm:$0xff]  ;;  %v7086_v14 = vpack.c.bf16 %v1146_v3, %v1144_v63  ;;  %v1160_v55 = vld [vmem:[#allocation10 + $0x768] sm:$0xff]  ;;  %v999_v61 = vld [vmem:[#allocation10 + $0x570] sm:$0xff]  ;;  %vm2552_vm13 = vcmp.ge.f32.partialorder %v9739_v17, 0.5 }
 0x1c1   : > { %v9749_v21 = vpop.eup %8999  ;;  %6602 = vmatmul.mubr.msk.f32.gmra.mrb[4].mxu1 %vm617_vm5, %v9687_v10  ;;  %6610 = vmatmul.mubr.msk.f32.gmra.mrb[12].mxu0 %vm617_vm5, %v9687_v10  ;;  %v1131_v10 = vld [vmem:[#allocation10 + $0x680] sm:$0xff]  ;;  %v7010_v35 = vpack.c.bf16 %v972_v5, %v970_v25  ;;  %v987_v25 = vld [vmem:[#allocation10 + $0x510] sm:$0xff]  ;;  %v1000_v54 = vld [vmem:[#allocation10 + $0x578] sm:$0xff] }
 0x1c2   : > { %7005 = vmatpush1.bf16.msra.mxu1 %v7004_v1  ;;  %7069 = vmatpush1.bf16.msra.mxu0 %v7068_v18  ;;  %vm619_vm7 = vcmp.ge.f32.partialorder %v9749_v21, 0.3  ;;  %v7076_v42 = vpack.c.bf16 %v1133_v33, %v1131_v10  ;;  %v1145_v1 = vld [vmem:[#allocation10 + $0x6f0] sm:$0xff]  ;;  %v986_v18 = vld [vmem:[#allocation10 + $0x508] sm:$0xff]  ;;  %v1154_v10 = vld [vmem:[#allocation10 + $0x738] sm:$0xff]  ;;  %v7028_v33 = vpack.c.bf16 %v987_v25, %v985_v24 }
 0x1c3   : > { %7007 = vmatprep.subr.bf16.mxu1 %v7006_v19  ;;  %7071 = vmatprep.subr.bf16.mxu0 %v7070_v20  ;;  %v988_v19 = vld [vmem:[#allocation10 + $0x518] sm:$0xff]  ;;  %v1148_v20 = vld [vmem:[#allocation10 + $0x708] sm:$0xff]  ;;  %v7088_v23 = vpack.c.bf16 %v1145_v1, %v1143_v15  ;;  %v7094_v38 = vpack.c.bf16 %v1154_v10, %v1152_v32  ;;  %v1159_v3 = vld [vmem:[#allocation10 + $0x760] sm:$0xff] }
 0x1c4   : > { %v9757_v28 = vpop.eup %9001  ;;  %v7026_v5 = vpack.c.bf16 %v988_v19, %v986_v18  ;;  %v7090_v26 = vpack.c.bf16 %v1150_v4, %v1148_v20  ;;  %v1004_v12 = vld [vmem:[#allocation10 + $0x598] sm:$0xff]  ;;  %v1164_v2 = vld [vmem:[#allocation10 + $0x788] sm:$0xff]  ;;  %v1001_v1 = vld [vmem:[#allocation10 + $0x580] sm:$0xff] }
 0x1c5   : > { %vm620_vm8 = vcmp.ge.f32.partialorder %v9757_v28, 0.3  ;;  %v1003_v18 = vld [vmem:[#allocation10 + $0x590] sm:$0xff]  ;;  %v1163_v4 = vld [vmem:[#allocation10 + $0x780] sm:$0xff]  ;;  %v1008_v24 = vld [vmem:[#allocation10 + $0x5b8] sm:$0xff]  ;;  %vm2554_vm15 = vcmp.ge.f32.partialorder %v9757_v28, 0.5 }
 0x1c6   : > { %6603 = vmatprep.mubr.msk.f32.mxu1 %vm620_vm8, %v9679_v6  ;;  %6611 = vmatprep.mubr.msk.f32.mxu0 %vm620_vm8, %v9679_v6  ;;  %v7014_v6 = vpack.c.bf16 %v976_v37, %v974_v34  ;;  %v1168_v25 = vld [vmem:[#allocation10 + $0x7a8] sm:$0xff]  ;;  %v1167_v10 = vld [vmem:[#allocation10 + $0x7a0] sm:$0xff] }
 0x1c7   : > { %6604 = vmatmul.mubr.msk.f32.gmra.mrb[6].mxu1 %vm619_vm7, %v9690_v11  ;;  %6612 = vmatmul.mubr.msk.f32.gmra.mrb[14].mxu0 %vm619_vm7, %v9690_v11  ;;  %v980_v11 = vld [vmem:[#allocation10 + $0x4d8] sm:$0xff] }
 0x1c8   : > { %7009 = vmatpush1.bf16.msra.mxu1 %v7008_v29  ;;  %7073 = vmatpush1.bf16.msra.mxu0 %v7072_v30  ;;  %v7018_v56 = vpack.c.bf16 %v980_v11, %v978_v49  ;;  %v1149_v29 = vld [vmem:[#allocation10 + $0x710] sm:$0xff]  ;;  %v990_v30 = vld [vmem:[#allocation10 + $0x528] sm:$0xff] }
 0x1c9   : > { %6613 = vmatprep.mubr.msk.f32.mxu1 %vm614_vm1, %v9662_v0  ;;  %6621 = vmatprep.mubr.msk.f32.mxu0 %vm614_vm1, %v9662_v0  ;;  %v7082_v0 = vpack.c.bf16 %v1142_v51, %v1140_v50  ;;  %v7092_v34 = vpack.c.bf16 %v1149_v29, %v1147_v27  ;;  %v7030_v37 = vpack.c.bf16 %v992_v31, %v990_v30  ;;  %v995_v49 = vld [vmem:[#allocation10 + $0x550] sm:$0xff]  ;;  %v1155_v51 = vld [vmem:[#allocation10 + $0x740] sm:$0xff] }
 0x1ca   : > { %7011 = vmatprep.subr.bf16.mxu1 %v7010_v35  ;;  %7075 = vmatprep.subr.bf16.mxu0 %v7074_v36  ;;  %v989_v35 = vld [vmem:[#allocation10 + $0x520] sm:$0xff]  ;;  %v991_v36 = vld [vmem:[#allocation10 + $0x530] sm:$0xff] }
 0x1cb   : > { %v1005_v29 = vld [vmem:[#allocation10 + $0x5a0] sm:$0xff]  ;;  %v1007_v30 = vld [vmem:[#allocation10 + $0x5b0] sm:$0xff] }
 0x1cc   : > { %7013 = vmatpush1.bf16.msra.mxu1 %v7012_v40  ;;  %7077 = vmatpush1.bf16.msra.mxu0 %v7076_v42  ;;  %v1153_v40 = vld [vmem:[#allocation10 + $0x730] sm:$0xff]  ;;  %v994_v42 = vld [vmem:[#allocation10 + $0x548] sm:$0xff] }
 0x1cd   : > { %7015 = vmatprep.subr.bf16.mxu1 %v7014_v6  ;;  %7079 = vmatprep.subr.bf16.mxu0 %v7078_v46  ;;  %v1158_v6 = vld [vmem:[#allocation10 + $0x758] sm:$0xff]  ;;  %v7032_v46 = vpack.c.bf16 %v991_v36, %v989_v35  ;;  %v7096_v47 = vpack.c.bf16 %v1153_v40, %v1151_v39  ;;  %v7034_v11 = vpack.c.bf16 %v996_v44, %v994_v42  ;;  %v1172_v36 = vld [vmem:[#allocation10 + $0x7c8] sm:$0xff]  ;;  %v1009_v40 = vld [vmem:[#allocation10 + $0x5c0] sm:$0xff] }
 0x1ce   : > { %v7098_v50 = vpack.c.bf16 %v1158_v6, %v1156_v45  ;;  %v1012_v35 = vld [vmem:[#allocation10 + $0x5d8] sm:$0xff]  ;;  %v1011_v42 = vld [vmem:[#allocation10 + $0x5d0] sm:$0xff]  ;;  %v1171_v6 = vld [vmem:[#allocation10 + $0x7c0] sm:$0xff] }
 0x1d0   : > { %7017 = vmatpush1.bf16.msra.mxu1 %v7016_v52  ;;  %7081 = vmatpush1.bf16.msra.mxu0 %v7080_v53  ;;  %v1157_v52 = vld [vmem:[#allocation10 + $0x750] sm:$0xff]  ;;  %v998_v53 = vld [vmem:[#allocation10 + $0x568] sm:$0xff] }
 0x1d1   : > { %7019 = vmatprep.subr.bf16.mxu1 %v7018_v56  ;;  %7083 = vmatprep.subr.bf16.mxu0 %v7082_v0  ;;  %v1162_v56 = vld [vmem:[#allocation10 + $0x778] sm:$0xff]  ;;  %v7036_v0 = vpack.c.bf16 %v995_v49, %v993_v48  ;;  %v7100_v57 = vpack.c.bf16 %v1157_v52, %v1155_v51  ;;  %v7038_v62 = vpack.c.bf16 %v1000_v54, %v998_v53  ;;  %v1176_v49 = vld [vmem:[#allocation10 + $0x7e8] sm:$0xff]  ;;  %v1013_v52 = vld [vmem:[#allocation10 + $0x5e0] sm:$0xff] }
 0x1d2   : > { %v7102_v63 = vpack.c.bf16 %v1162_v56, %v1160_v55  ;;  %v1016_v48 = vld [vmem:[#allocation10 + $0x5f8] sm:$0xff]  ;;  %v1015_v53 = vld [vmem:[#allocation10 + $0x5f0] sm:$0xff]  ;;  %v1175_v56 = vld [vmem:[#allocation10 + $0x7e0] sm:$0xff] }
 0x1d4   : > { %7021 = vmatpush1.bf16.msra.mxu1 %v7020_v8  ;;  %7085 = vmatpush1.bf16.msra.mxu0 %v7084_v9  ;;  %v1161_v8 = vld [vmem:[#allocation10 + $0x770] sm:$0xff]  ;;  %v1002_v9 = vld [vmem:[#allocation10 + $0x588] sm:$0xff] }
 0x1d5   : > { %7023 = vmatprep.subr.bf16.mxu1 %v7022_v13  ;;  %7087 = vmatprep.subr.bf16.mxu0 %v7086_v14  ;;  %v1166_v13 = vld [vmem:[#allocation10 + $0x798] sm:$0xff]  ;;  %v7040_v14 = vpack.c.bf16 %v999_v61, %v997_v60  ;;  %v7104_v15 = vpack.c.bf16 %v1161_v8, %v1159_v3  ;;  %v7042_v19 = vpack.c.bf16 %v1004_v12, %v1002_v9  ;;  %v1440_v61 = vld [vmem:[#allocation10 + $0xa08] sm:$0xff]  ;;  %v1277_v12 = vld [vmem:[#allocation10 + $0x800] sm:$0xff] }
 0x1d6   : > { %v7106_v20 = vpack.c.bf16 %v1166_v13, %v1164_v2  ;;  %v1280_v60 = vld [vmem:[#allocation10 + $0x818] sm:$0xff]  ;;  %v1279_v2 = vld [vmem:[#allocation10 + $0x810] sm:$0xff]  ;;  %v1439_v13 = vld [vmem:[#allocation10 + $0xa00] sm:$0xff] }
 0x1d8   : > { %7025 = vmatpush1.bf16.msra.mxu1 %v7024_v22  ;;  %7089 = vmatpush1.bf16.msra.mxu0 %v7088_v23  ;;  %v1165_v22 = vld [vmem:[#allocation10 + $0x790] sm:$0xff]  ;;  %v1006_v23 = vld [vmem:[#allocation10 + $0x5a8] sm:$0xff] }
 0x1d9   : > { %7027 = vmatprep.subr.bf16.mxu1 %v7026_v5  ;;  %7091 = vmatprep.subr.bf16.mxu0 %v7090_v26  ;;  %v1170_v5 = vld [vmem:[#allocation10 + $0x7b8] sm:$0xff]  ;;  %v7044_v26 = vpack.c.bf16 %v1003_v18, %v1001_v1  ;;  %v7108_v27 = vpack.c.bf16 %v1165_v22, %v1163_v4  ;;  %v7046_v31 = vpack.c.bf16 %v1008_v24, %v1006_v23  ;;  %v1444_v18 = vld [vmem:[#allocation10 + $0xa28] sm:$0xff]  ;;  %v1281_v22 = vld [vmem:[#allocation10 + $0x820] sm:$0xff] }
 0x1da   : > { %v7110_v32 = vpack.c.bf16 %v1170_v5, %v1168_v25  ;;  %v1284_v1 = vld [vmem:[#allocation10 + $0x838] sm:$0xff]  ;;  %v1283_v23 = vld [vmem:[#allocation10 + $0x830] sm:$0xff]  ;;  %v1443_v5 = vld [vmem:[#allocation10 + $0xa20] sm:$0xff] }
 0x1dc   : > { %7029 = vmatpush1.bf16.msra.mxu1 %v7028_v33  ;;  %7093 = vmatpush1.bf16.msra.mxu0 %v7092_v34  ;;  %v1169_v33 = vld [vmem:[#allocation10 + $0x7b0] sm:$0xff]  ;;  %v1010_v34 = vld [vmem:[#allocation10 + $0x5c8] sm:$0xff] }
 0x1dd   : > { %7031 = vmatprep.subr.bf16.mxu1 %v7030_v37  ;;  %7095 = vmatprep.subr.bf16.mxu0 %v7094_v38  ;;  %v1174_v37 = vld [vmem:[#allocation10 + $0x7d8] sm:$0xff]  ;;  %v7048_v38 = vpack.c.bf16 %v1007_v30, %v1005_v29  ;;  %v7112_v39 = vpack.c.bf16 %v1169_v33, %v1167_v10  ;;  %v7050_v44 = vpack.c.bf16 %v1012_v35, %v1010_v34  ;;  %v9780_v29 = vld [vmem:[%s9639_s24] sm:$0xff] }
 0x1de   : > { %v7114_v45 = vpack.c.bf16 %v1174_v37, %v1172_v36  ;;  %v1288_v30 = vld [vmem:[#allocation10 + $0x858] sm:$0xff]  ;;  %v7128_v33 = vpack.c.bf16 %v1283_v23, %v1281_v22  ;;  %v1285_v35 = vld [vmem:[#allocation10 + $0x840] sm:$0xff]  ;;  %v1287_v36 = vld [vmem:[#allocation10 + $0x850] sm:$0xff] }
 0x1df   : > { %v9789_v10 = vld [vmem:[%s9639_s24 + $0x18] sm:$0xff]  ;;  %v1297_v23 = vld [vmem:[#allocation10 + $0x8a0] sm:$0xff] }
 0x1e0   : > { %7033 = vmatpush1.bf16.msra.mxu1 %v7032_v46  ;;  %7097 = vmatpush1.bf16.msra.mxu0 %v7096_v47  ;;  %v1173_v46 = vld [vmem:[#allocation10 + $0x7d0] sm:$0xff]  ;;  %v1014_v47 = vld [vmem:[#allocation10 + $0x5e8] sm:$0xff] }
 0x1e1   : > { %7035 = vmatprep.subr.bf16.mxu1 %v7034_v11  ;;  %7099 = vmatprep.subr.bf16.mxu0 %v7098_v50  ;;  %v1178_v11 = vld [vmem:[#allocation10 + $0x7f8] sm:$0xff]  ;;  %v7052_v50 = vpack.c.bf16 %v1011_v42, %v1009_v40  ;;  %v7116_v51 = vpack.c.bf16 %v1173_v46, %v1171_v6  ;;  %v7054_v54 = vpack.c.bf16 %v1016_v48, %v1014_v47  ;;  %v1449_v40 = vld [vmem:[#allocation10 + $0xa50] sm:$0xff]  ;;  %v1290_v42 = vld [vmem:[#allocation10 + $0x868] sm:$0xff] }
 0x1e2   : > { %v7118_v55 = vpack.c.bf16 %v1178_v11, %v1176_v49  ;;  %v1452_v6 = vld [vmem:[#allocation10 + $0xa68] sm:$0xff]  ;;  %v1454_v46 = vld [vmem:[#allocation10 + $0xa78] sm:$0xff]  ;;  %v7132_v48 = vpack.c.bf16 %v1287_v36, %v1285_v35  ;;  %v1289_v11 = vld [vmem:[#allocation10 + $0x860] sm:$0xff] }
 0x1e3   : > { %v9807_v47 = vld [vmem:[%s9639_s24 + $0x28] sm:$0xff]  ;;  %v1301_v36 = vld [vmem:[#allocation10 + $0x8c0] sm:$0xff] }
 0x1e4   : > { %7037 = vmatpush1.bf16.msra.mxu1 %v7036_v0  ;;  %7101 = vmatpush1.bf16.msra.mxu0 %v7100_v57  ;;  %v1177_v0 = vld [vmem:[#allocation10 + $0x7f0] sm:$0xff]  ;;  %v1278_v57 = vld [vmem:[#allocation10 + $0x808] sm:$0xff] }
 0x1e5   : > { %7039 = vmatprep.subr.bf16.mxu1 %v7038_v62  ;;  %7103 = vmatprep.subr.bf16.mxu0 %v7102_v63  ;;  %v1442_v62 = vld [vmem:[#allocation10 + $0xa18] sm:$0xff]  ;;  %v7056_v63 = vpack.c.bf16 %v1015_v53, %v1013_v52  ;;  %v7120_v3 = vpack.c.bf16 %v1177_v0, %v1175_v56  ;;  %v7122_v8 = vpack.c.bf16 %v1280_v60, %v1278_v57  ;;  %v1451_v53 = vld [vmem:[#allocation10 + $0xa60] sm:$0xff]  ;;  %v1456_v57 = vld [vmem:[#allocation10 + $0xa88] sm:$0xff] }
 0x1e6   : > { %v7186_v9 = vpack.c.bf16 %v1442_v62, %v1440_v61  ;;  %v7198_v52 = vpack.c.bf16 %v1454_v46, %v1452_v6  ;;  %v9816_v56 = vld [vmem:[%s9639_s24 + $0x20] sm:$0xff]  ;;  %v1296_v0 = vld [vmem:[#allocation10 + $0x898] sm:$0xff]  ;;  %v1468_v46 = vld [vmem:[#allocation10 + $0xae8] sm:$0xff] }
 0x1e7   : > { %v1458_v60 = vld [vmem:[#allocation10 + $0xa98] sm:$0xff] }
 0x1e8   : > { %7041 = vmatpush1.bf16.msra.mxu1 %v7040_v14  ;;  %7105 = vmatpush1.bf16.msra.mxu0 %v7104_v15  ;;  %v1441_v14 = vld [vmem:[#allocation10 + $0xa10] sm:$0xff]  ;;  %v1282_v15 = vld [vmem:[#allocation10 + $0x828] sm:$0xff]  ;;  %v9825_v61 = vld [vmem:[%s9639_s24 + $0x38] sm:$0xff] }
 0x1e9   : > { %7043 = vmatprep.subr.bf16.mxu1 %v7042_v19  ;;  %7107 = vmatprep.subr.bf16.mxu0 %v7106_v20  ;;  %v1446_v19 = vld [vmem:[#allocation10 + $0xa38] sm:$0xff]  ;;  %v7124_v20 = vpack.c.bf16 %v1279_v2, %v1277_v12  ;;  %v7188_v4 = vpack.c.bf16 %v1441_v14, %v1439_v13  ;;  %v7126_v24 = vpack.c.bf16 %v1284_v1, %v1282_v15  ;;  %v1455_v2 = vld [vmem:[#allocation10 + $0xa80] sm:$0xff]  ;;  %v1457_v13 = vld [vmem:[#allocation10 + $0xa90] sm:$0xff] }
 0x1ea   : > { %v7190_v25 = vpack.c.bf16 %v1446_v19, %v1444_v18  ;;  %v7202_v12 = vpack.c.bf16 %v1458_v60, %v1456_v57  ;;  %v1298_v14 = vld [vmem:[#allocation10 + $0x8a8] sm:$0xff]  ;;  %v9834_v15 = vld [vmem:[%s9639_s24 + $0x30] sm:$0xff]  ;;  %v1300_v1 = vld [vmem:[#allocation10 + $0x8b8] sm:$0xff]  ;;  %v7204_v22 = vpack.c.bf16 %v1457_v13, %v1455_v2 }
 0x1eb   : > { %v1460_v18 = vld [vmem:[#allocation10 + $0xaa8] sm:$0xff]  ;;  %v1462_v19 = vld [vmem:[#allocation10 + $0xab8] sm:$0xff]  ;;  %v1471_v13 = vld [vmem:[#allocation10 + $0xb00] sm:$0xff] }
 0x1ec   : > { %7045 = vmatpush1.bf16.msra.mxu1 %v7044_v26  ;;  %7109 = vmatpush1.bf16.msra.mxu0 %v7108_v27  ;;  %v1445_v26 = vld [vmem:[#allocation10 + $0xa30] sm:$0xff]  ;;  %v1286_v27 = vld [vmem:[#allocation10 + $0x848] sm:$0xff]  ;;  %v1308_v6 = vld [vmem:[#allocation10 + $0x8f8] sm:$0xff] }
 0x1ed   : > { %7047 = vmatprep.subr.bf16.mxu1 %v7046_v31  ;;  %7111 = vmatprep.subr.bf16.mxu0 %v7110_v32  ;;  %v1448_v31 = vld [vmem:[#allocation10 + $0xa48] sm:$0xff]  ;;  %v1450_v32 = vld [vmem:[#allocation10 + $0xa58] sm:$0xff]  ;;  %v7192_v34 = vpack.c.bf16 %v1445_v26, %v1443_v5  ;;  %v7130_v37 = vpack.c.bf16 %v1288_v30, %v1286_v27  ;;  %v7206_v5 = vpack.c.bf16 %v1462_v19, %v1460_v18  ;;  %v1459_v26 = vld [vmem:[#allocation10 + $0xaa0] sm:$0xff] }
 0x1ee   : > { %v1461_v27 = vld [vmem:[#allocation10 + $0xab0] sm:$0xff]  ;;  %v1302_v30 = vld [vmem:[#allocation10 + $0x8c8] sm:$0xff]  ;;  %v1312_v57 = vld [vmem:[#allocation10 + $0x918] sm:$0xff] }
 0x1ef   : > { %v7208_v35 = vpack.c.bf16 %v1461_v27, %v1459_v26  ;;  %v1472_v60 = vld [vmem:[#allocation10 + $0xb08] sm:$0xff]  ;;  %v1316_v18 = vld [vmem:[#allocation10 + $0x938] sm:$0xff]  ;;  %v1475_v27 = vld [vmem:[#allocation10 + $0xb20] sm:$0xff] }
 0x1f0   : > { %7049 = vmatpush1.bf16.msra.mxu1 %v7048_v38  ;;  %7113 = vmatpush1.bf16.msra.mxu0 %v7112_v39  ;;  %v7194_v38 = vpack.c.bf16 %v1450_v32, %v1448_v31  ;;  %v1447_v39 = vld [vmem:[#allocation10 + $0xa40] sm:$0xff]  ;;  %v1304_v31 = vld [vmem:[#allocation10 + $0x8d8] sm:$0xff]  ;;  %v1464_v32 = vld [vmem:[#allocation10 + $0xac8] sm:$0xff] }
 0x1f1   : > { %7051 = vmatprep.subr.bf16.mxu1 %v7050_v44  ;;  %7115 = vmatprep.subr.bf16.mxu0 %v7114_v45  ;;  %v9798_v44 = vld [vmem:[%s9639_s24 + $0x10] sm:$0xff]  ;;  %v1292_v45 = vld [vmem:[#allocation10 + $0x878] sm:$0xff]  ;;  %v7196_v49 = vpack.c.bf16 %v1449_v40, %v1447_v39  ;;  %v1463_v40 = vld [vmem:[#allocation10 + $0xac0] sm:$0xff] }
 0x1f2   : > { %v1476_v19 = vld [vmem:[#allocation10 + $0xb28] sm:$0xff] }
 0x1f4   : > { %7053 = vmatpush1.bf16.msra.mxu1 %v7052_v50  ;;  %7117 = vmatpush1.bf16.msra.mxu0 %v7116_v51  ;;  %v1291_v50 = vld [vmem:[#allocation10 + $0x870] sm:$0xff]  ;;  %v7134_v51 = vpack.c.bf16 %v1292_v45, %v1290_v42  ;;  %v1306_v45 = vld [vmem:[#allocation10 + $0x8e8] sm:$0xff] }
 0x1f5   : > { %7055 = vmatprep.subr.bf16.mxu1 %v7054_v54  ;;  %7119 = vmatprep.subr.bf16.mxu0 %v7118_v55  ;;  %v1453_v54 = vld [vmem:[#allocation10 + $0xa70] sm:$0xff]  ;;  %v1294_v55 = vld [vmem:[#allocation10 + $0x888] sm:$0xff]  ;;  %v7136_v62 = vpack.c.bf16 %v1291_v50, %v1289_v11  ;;  %v1305_v50 = vld [vmem:[#allocation10 + $0x8e0] sm:$0xff] }
 0x1f6   : > { %v1465_v42 = vld [vmem:[#allocation10 + $0xad0] sm:$0xff] }
 0x1f7   : > { %v7212_v11 = vpack.c.bf16 %v1465_v42, %v1463_v40  ;;  %v1479_v42 = vld [vmem:[#allocation10 + $0xb40] sm:$0xff] }
 0x1f8   : > { %7057 = vmatpush1.bf16.msra.mxu1 %v7056_v63  ;;  %7121 = vmatpush1.bf16.msra.mxu0 %v7120_v3  ;;  %v7200_v63 = vpack.c.bf16 %v1453_v54, %v1451_v53  ;;  %v1293_v3 = vld [vmem:[#allocation10 + $0x880] sm:$0xff] }
 0x1f9   : > { %7123 = vmatprep.subr.bf16.mxu1 %v7122_v8  ;;  %7187 = vmatprep.subr.bf16.mxu0 %v7186_v9  ;;  %v1295_v8 = vld [vmem:[#allocation10 + $0x890] sm:$0xff]  ;;  %v7138_v9 = vpack.c.bf16 %v1296_v0, %v1294_v55  ;;  %v1467_v54 = vld [vmem:[#allocation10 + $0xae0] sm:$0xff]  ;;  %v1310_v0 = vld [vmem:[#allocation10 + $0x908] sm:$0xff] }
 0x1fa   : > { %v1469_v55 = vld [vmem:[#allocation10 + $0xaf0] sm:$0xff] }
 0x1fb   : > { %6614 = vmatmul.mubr.msk.f32.vlgmr.msra.gmra.mrb[8].mxu1 %vm613_vm2, %v9780_v29  ;;  %6622 = vmatmul.mubr.msk.f32.vlgmr.msra.gmra.mrb[16].mxu0 %vm613_vm2, %v9780_v29 }
 0x1fc   : > { %6615 = vmatprep.mubr.msk.f32.mxu1 %vm616_vm4, %v9789_v10  ;;  %6623 = vmatprep.mubr.msk.f32.mxu0 %vm616_vm4, %v9789_v10 }
 0x1fd   : > { %7125 = vmatpush1.bf16.msra.mxu1 %v7124_v20  ;;  %7189 = vmatpush1.bf16.msra.mxu0 %v7188_v4  ;;  %v9843_v20 = vld [vmem:[%s9639_s24 + $0x8] sm:$0xff]  ;;  %v7140_v4 = vpack.c.bf16 %v1295_v8, %v1293_v3  ;;  %v7216_v3 = vpack.c.bf16 %v1469_v55, %v1467_v54  ;;  %v1309_v8 = vld [vmem:[#allocation10 + $0x900] sm:$0xff] }
 0x1fe   : > { %7127 = vmatprep.subr.bf16.mxu1 %v7126_v24  ;;  %7191 = vmatprep.subr.bf16.mxu0 %v7190_v25  ;;  %v1299_v24 = vld [vmem:[#allocation10 + $0x8b0] sm:$0xff]  ;;  %v7142_v25 = vpack.c.bf16 %v1300_v1, %v1298_v14  ;;  %v1314_v1 = vld [vmem:[#allocation10 + $0x928] sm:$0xff]  ;;  %v1483_v55 = vld [vmem:[#allocation10 + $0xb60] sm:$0xff] }
 0x1ff   : > { %6616 = vmatmul.mubr.msk.f32.gmra.mrb[10].mxu1 %vm615_vm3, %v9798_v44  ;;  %6624 = vmatmul.mubr.msk.f32.gmra.mrb[18].mxu0 %vm615_vm3, %v9798_v44  ;;  %v1473_v14 = vld [vmem:[#allocation10 + $0xb10] sm:$0xff] }
 0x200   : > { %6617 = vmatprep.mubr.msk.f32.mxu1 %vm618_vm6, %v9807_v47  ;;  %6625 = vmatprep.mubr.msk.f32.mxu0 %vm618_vm6, %v9807_v47 }
 0x201   : > { %7129 = vmatpush1.bf16.msra.mxu1 %v7128_v33  ;;  %7193 = vmatpush1.bf16.msra.mxu0 %v7192_v34  ;;  %v1466_v33 = vld [vmem:[#allocation10 + $0xad8] sm:$0xff]  ;;  %v7144_v34 = vpack.c.bf16 %v1299_v24, %v1297_v23  ;;  %v7220_v23 = vpack.c.bf16 %v1473_v14, %v1471_v13  ;;  %v1313_v24 = vld [vmem:[#allocation10 + $0x920] sm:$0xff] }
 0x202   : > { %7131 = vmatprep.subr.bf16.mxu1 %v7130_v37  ;;  %7195 = vmatprep.subr.bf16.mxu0 %v7194_v38  ;;  %v1303_v37 = vld [vmem:[#allocation10 + $0x8d0] sm:$0xff]  ;;  %v7146_v38 = vpack.c.bf16 %v1304_v31, %v1302_v30  ;;  %v7210_v39 = vpack.c.bf16 %v1466_v33, %v1464_v32  ;;  %v1318_v31 = vld [vmem:[#allocation10 + $0x948] sm:$0xff]  ;;  %v1320_v32 = vld [vmem:[#allocation10 + $0x958] sm:$0xff] }
 0x203   : > { %6618 = vmatmul.mubr.msk.f32.gmra.mrb[12].mxu1 %vm617_vm5, %v9816_v56  ;;  %6626 = vmatmul.mubr.msk.f32.gmra.mrb[20].mxu0 %vm617_vm5, %v9816_v56  ;;  %v1477_v30 = vld [vmem:[#allocation10 + $0xb30] sm:$0xff]  ;;  %v1480_v33 = vld [vmem:[#allocation10 + $0xb48] sm:$0xff]  ;;  %v1487_v14 = vld [vmem:[#allocation10 + $0xb80] sm:$0xff] }
 0x204   : > { %6619 = vmatprep.mubr.msk.f32.mxu1 %vm620_vm8, %v9825_v61  ;;  %6627 = vmatprep.mubr.msk.f32.mxu0 %vm620_vm8, %v9825_v61 }
 0x205   : > { %7133 = vmatpush1.bf16.msra.mxu1 %v7132_v48  ;;  %7197 = vmatpush1.bf16.msra.mxu0 %v7196_v49  ;;  %v1470_v48 = vld [vmem:[#allocation10 + $0xaf8] sm:$0xff]  ;;  %v7148_v49 = vpack.c.bf16 %v1303_v37, %v1301_v36  ;;  %v7224_v36 = vpack.c.bf16 %v1477_v30, %v1475_v27  ;;  %v1317_v37 = vld [vmem:[#allocation10 + $0x940] sm:$0xff] }
 0x206   : > { %7135 = vmatprep.subr.bf16.mxu1 %v7134_v51  ;;  %7199 = vmatprep.subr.bf16.mxu0 %v7198_v52  ;;  %v1307_v51 = vld [vmem:[#allocation10 + $0x8f0] sm:$0xff]  ;;  %v7150_v52 = vpack.c.bf16 %v1308_v6, %v1306_v45  ;;  %v7214_v53 = vpack.c.bf16 %v1470_v48, %v1468_v46  ;;  %v1322_v6 = vld [vmem:[#allocation10 + $0x968] sm:$0xff]  ;;  %v1324_v46 = vld [vmem:[#allocation10 + $0x978] sm:$0xff] }
 0x207   : > { %6620 = vmatmul.mubr.msk.f32.gmra.mrb[14].mxu1 %vm619_vm7, %v9834_v15  ;;  %6628 = vmatmul.mubr.msk.f32.gmra.mrb[22].mxu0 %vm619_vm7, %v9834_v15  ;;  %v1481_v45 = vld [vmem:[#allocation10 + $0xb50] sm:$0xff]  ;;  %v1484_v48 = vld [vmem:[#allocation10 + $0xb68] sm:$0xff]  ;;  %v1491_v30 = vld [vmem:[#allocation10 + $0xba0] sm:$0xff] }
 0x208   : > { %6629 = vmatprep.mubr.msk.f32.mxu1 %vm614_vm1, %v9843_v20  ;;  %6637 = vmatprep.mubr.msk.f32.mxu0 %vm614_vm1, %v9843_v20 }
 0x209   : > { %7137 = vmatpush1.bf16.msra.mxu1 %v7136_v62  ;;  %7201 = vmatpush1.bf16.msra.mxu0 %v7200_v63  ;;  %v1474_v62 = vld [vmem:[#allocation10 + $0xb18] sm:$0xff]  ;;  %v7152_v63 = vpack.c.bf16 %v1307_v51, %v1305_v50  ;;  %v7228_v50 = vpack.c.bf16 %v1481_v45, %v1479_v42  ;;  %v1321_v51 = vld [vmem:[#allocation10 + $0x960] sm:$0xff] }
 0x20a   : > { %7139 = vmatprep.subr.bf16.mxu1 %v7138_v9  ;;  %7203 = vmatprep.subr.bf16.mxu0 %v7202_v12  ;;  %v1311_v9 = vld [vmem:[#allocation10 + $0x910] sm:$0xff]  ;;  %v7154_v12 = vpack.c.bf16 %v1312_v57, %v1310_v0  ;;  %v7218_v2 = vpack.c.bf16 %v1474_v62, %v1472_v60  ;;  %v1326_v57 = vld [vmem:[#allocation10 + $0x988] sm:$0xff]  ;;  %v1328_v60 = vld [vmem:[#allocation10 + $0x998] sm:$0xff] }
 0x20b   : > { %v1485_v0 = vld [vmem:[#allocation10 + $0xb70] sm:$0xff]  ;;  %v1488_v62 = vld [vmem:[#allocation10 + $0xb88] sm:$0xff]  ;;  %v1495_v45 = vld [vmem:[#allocation10 + $0xbc0] sm:$0xff] }
 0x20d   : > { %7141 = vmatpush1.bf16.msra.mxu1 %v7140_v4  ;;  %7205 = vmatpush1.bf16.msra.mxu0 %v7204_v22  ;;  %v1478_v4 = vld [vmem:[#allocation10 + $0xb38] sm:$0xff]  ;;  %v7156_v22 = vpack.c.bf16 %v1311_v9, %v1309_v8  ;;  %v7232_v8 = vpack.c.bf16 %v1485_v0, %v1483_v55  ;;  %v1325_v9 = vld [vmem:[#allocation10 + $0x980] sm:$0xff] }
 0x20e   : > { %7143 = vmatprep.subr.bf16.mxu1 %v7142_v25  ;;  %7207 = vmatprep.subr.bf16.mxu0 %v7206_v5  ;;  %v1315_v25 = vld [vmem:[#allocation10 + $0x930] sm:$0xff]  ;;  %v7158_v5 = vpack.c.bf16 %v1316_v18, %v1314_v1  ;;  %v7222_v26 = vpack.c.bf16 %v1478_v4, %v1476_v19  ;;  %v1330_v18 = vld [vmem:[#allocation10 + $0x9a8] sm:$0xff]  ;;  %v1332_v19 = vld [vmem:[#allocation10 + $0x9b8] sm:$0xff] }
 0x20f   : > { %v1489_v1 = vld [vmem:[#allocation10 + $0xb90] sm:$0xff]  ;;  %v1492_v4 = vld [vmem:[#allocation10 + $0xba8] sm:$0xff]  ;;  %v1499_v0 = vld [vmem:[#allocation10 + $0xbe0] sm:$0xff] }
 0x211   : > { %7145 = vmatpush1.bf16.msra.mxu1 %v7144_v34  ;;  %7209 = vmatpush1.bf16.msra.mxu0 %v7208_v35  ;;  %v1482_v34 = vld [vmem:[#allocation10 + $0xb58] sm:$0xff]  ;;  %v7160_v35 = vpack.c.bf16 %v1315_v25, %v1313_v24  ;;  %v7236_v24 = vpack.c.bf16 %v1489_v1, %v1487_v14  ;;  %v1329_v25 = vld [vmem:[#allocation10 + $0x9a0] sm:$0xff]  ;;  %v1603_v14 = vld [vmem:[#allocation10 + $0xc10] sm:$0xff] }
 0x212   : > { %7147 = vmatprep.subr.bf16.mxu1 %v7146_v38  ;;  %7211 = vmatprep.subr.bf16.mxu0 %v7210_v39  ;;  %v1319_v38 = vld [vmem:[#allocation10 + $0x950] sm:$0xff]  ;;  %v7162_v39 = vpack.c.bf16 %v1320_v32, %v1318_v31  ;;  %v7226_v40 = vpack.c.bf16 %v1482_v34, %v1480_v33  ;;  %v1334_v32 = vld [vmem:[#allocation10 + $0x9c8] sm:$0xff]  ;;  %v1336_v33 = vld [vmem:[#allocation10 + $0x9d8] sm:$0xff] }
 0x213   : > { %v1493_v31 = vld [vmem:[#allocation10 + $0xbb0] sm:$0xff]  ;;  %v1496_v34 = vld [vmem:[#allocation10 + $0xbc8] sm:$0xff]  ;;  %v1763_v1 = vld [vmem:[#allocation10 + $0xe00] sm:$0xff] }
 0x215   : > { %7149 = vmatpush1.bf16.msra.mxu1 %v7148_v49  ;;  %7213 = vmatpush1.bf16.msra.mxu0 %v7212_v11  ;;  %v1486_v49 = vld [vmem:[#allocation10 + $0xb78] sm:$0xff]  ;;  %v7164_v11 = vpack.c.bf16 %v1319_v38, %v1317_v37  ;;  %v7240_v37 = vpack.c.bf16 %v1493_v31, %v1491_v30  ;;  %v1333_v38 = vld [vmem:[#allocation10 + $0x9c0] sm:$0xff] }
 0x216   : > { %7151 = vmatprep.subr.bf16.mxu1 %v7150_v52  ;;  %7215 = vmatprep.subr.bf16.mxu0 %v7214_v53  ;;  %v1323_v52 = vld [vmem:[#allocation10 + $0x970] sm:$0xff]  ;;  %v7166_v53 = vpack.c.bf16 %v1324_v46, %v1322_v6  ;;  %v7230_v54 = vpack.c.bf16 %v1486_v49, %v1484_v48  ;;  %v1338_v46 = vld [vmem:[#allocation10 + $0x9e8] sm:$0xff]  ;;  %v1340_v48 = vld [vmem:[#allocation10 + $0x9f8] sm:$0xff] }
 0x217   : > { %v1497_v6 = vld [vmem:[#allocation10 + $0xbd0] sm:$0xff]  ;;  %v1500_v49 = vld [vmem:[#allocation10 + $0xbe8] sm:$0xff]  ;;  %v1767_v31 = vld [vmem:[#allocation10 + $0xe20] sm:$0xff] }
 0x219   : > { %7153 = vmatpush1.bf16.msra.mxu1 %v7152_v63  ;;  %7217 = vmatpush1.bf16.msra.mxu0 %v7216_v3  ;;  %v1490_v63 = vld [vmem:[#allocation10 + $0xb98] sm:$0xff]  ;;  %v7168_v3 = vpack.c.bf16 %v1323_v52, %v1321_v51  ;;  %v7244_v51 = vpack.c.bf16 %v1497_v6, %v1495_v45  ;;  %v1337_v52 = vld [vmem:[#allocation10 + $0x9e0] sm:$0xff]  ;;  %v1773_v6 = vld [vmem:[#allocation10 + $0xe50] sm:$0xff] }
 0x21a   : > { %7155 = vmatprep.subr.bf16.mxu1 %v7154_v12  ;;  %7219 = vmatprep.subr.bf16.mxu0 %v7218_v2  ;;  %v1327_v12 = vld [vmem:[#allocation10 + $0x990] sm:$0xff]  ;;  %v7170_v2 = vpack.c.bf16 %v1328_v60, %v1326_v57  ;;  %v7234_v13 = vpack.c.bf16 %v1490_v63, %v1488_v62  ;;  %v1602_v60 = vld [vmem:[#allocation10 + $0xc08] sm:$0xff]  ;;  %v1604_v62 = vld [vmem:[#allocation10 + $0xc18] sm:$0xff] }
 0x21b   : > { %v1501_v57 = vld [vmem:[#allocation10 + $0xbf0] sm:$0xff]  ;;  %v1764_v63 = vld [vmem:[#allocation10 + $0xe08] sm:$0xff]  ;;  %v1771_v45 = vld [vmem:[#allocation10 + $0xe40] sm:$0xff] }
 0x21d   : > { %7157 = vmatpush1.bf16.msra.mxu1 %v7156_v22  ;;  %7221 = vmatpush1.bf16.msra.mxu0 %v7220_v23  ;;  %v1494_v22 = vld [vmem:[#allocation10 + $0xbb8] sm:$0xff]  ;;  %v7172_v23 = vpack.c.bf16 %v1327_v12, %v1325_v9  ;;  %v7248_v9 = vpack.c.bf16 %v1501_v57, %v1499_v0  ;;  %v7250_v12 = vpack.c.bf16 %v1604_v62, %v1602_v60  ;;  %v1618_v0 = vld [vmem:[#allocation10 + $0xc88] sm:$0xff] }
 0x21e   : > { %7159 = vmatprep.subr.bf16.mxu1 %v7158_v5  ;;  %7223 = vmatprep.subr.bf16.mxu0 %v7222_v26  ;;  %v1331_v5 = vld [vmem:[#allocation10 + $0x9b0] sm:$0xff]  ;;  %v7174_v26 = vpack.c.bf16 %v1332_v19, %v1330_v18  ;;  %v7238_v27 = vpack.c.bf16 %v1494_v22, %v1492_v4  ;;  %v1606_v19 = vld [vmem:[#allocation10 + $0xc28] sm:$0xff]  ;;  %v1608_v4 = vld [vmem:[#allocation10 + $0xc38] sm:$0xff] }
 0x21f   : > { %v1765_v18 = vld [vmem:[#allocation10 + $0xe10] sm:$0xff]  ;;  %v1768_v22 = vld [vmem:[#allocation10 + $0xe28] sm:$0xff]  ;;  %v1782_v60 = vld [vmem:[#allocation10 + $0xe98] sm:$0xff] }
 0x220   : > { %v1780_v57 = vld [vmem:[#allocation10 + $0xe88] sm:$0xff] }
 0x221   : > { %7161 = vmatpush1.bf16.msra.mxu1 %v7160_v35  ;;  %7225 = vmatpush1.bf16.msra.mxu0 %v7224_v36  ;;  %v1498_v35 = vld [vmem:[#allocation10 + $0xbd8] sm:$0xff]  ;;  %v7176_v36 = vpack.c.bf16 %v1331_v5, %v1329_v25  ;;  %v7316_v25 = vpack.c.bf16 %v1765_v18, %v1763_v1  ;;  %v1605_v5 = vld [vmem:[#allocation10 + $0xc20] sm:$0xff] }
 0x222   : > { %7163 = vmatprep.subr.bf16.mxu1 %v7162_v39  ;;  %7227 = vmatprep.subr.bf16.mxu0 %v7226_v40  ;;  %v1335_v39 = vld [vmem:[#allocation10 + $0x9d0] sm:$0xff]  ;;  %v7178_v40 = vpack.c.bf16 %v1336_v33, %v1334_v32  ;;  %v7242_v42 = vpack.c.bf16 %v1498_v35, %v1496_v34  ;;  %v1610_v33 = vld [vmem:[#allocation10 + $0xc48] sm:$0xff]  ;;  %v1612_v34 = vld [vmem:[#allocation10 + $0xc58] sm:$0xff] }
 0x223   : > { %v1769_v32 = vld [vmem:[#allocation10 + $0xe30] sm:$0xff]  ;;  %v1772_v35 = vld [vmem:[#allocation10 + $0xe48] sm:$0xff]  ;;  %v1786_v1 = vld [vmem:[#allocation10 + $0xeb8] sm:$0xff] }
 0x225   : > { %7165 = vmatpush1.bf16.msra.mxu1 %v7164_v11  ;;  %7229 = vmatpush1.bf16.msra.mxu0 %v7228_v50  ;;  %v1502_v11 = vld [vmem:[#allocation10 + $0xbf8] sm:$0xff]  ;;  %v7180_v50 = vpack.c.bf16 %v1335_v39, %v1333_v38  ;;  %v7320_v38 = vpack.c.bf16 %v1769_v32, %v1767_v31  ;;  %v1609_v39 = vld [vmem:[#allocation10 + $0xc40] sm:$0xff] }
 0x226   : > { %7167 = vmatprep.subr.bf16.mxu1 %v7166_v53  ;;  %7231 = vmatprep.subr.bf16.mxu0 %v7230_v54  ;;  %v1339_v53 = vld [vmem:[#allocation10 + $0x9f0] sm:$0xff]  ;;  %v7182_v54 = vpack.c.bf16 %v1340_v48, %v1338_v46  ;;  %v7246_v55 = vpack.c.bf16 %v1502_v11, %v1500_v49  ;;  %v1614_v46 = vld [vmem:[#allocation10 + $0xc68] sm:$0xff]  ;;  %v1778_v49 = vld [vmem:[#allocation10 + $0xe78] sm:$0xff] }
 0x227   : > { %v1776_v48 = vld [vmem:[#allocation10 + $0xe68] sm:$0xff]  ;;  %v1790_v31 = vld [vmem:[#allocation10 + $0xed8] sm:$0xff] }
 0x229   : > { %7169 = vmatpush1.bf16.msra.mxu1 %v7168_v3  ;;  %7233 = vmatpush1.bf16.msra.mxu0 %v7232_v8  ;;  %v1766_v3 = vld [vmem:[#allocation10 + $0xe18] sm:$0xff]  ;;  %v7184_v8 = vpack.c.bf16 %v1339_v53, %v1337_v52  ;;  %v1615_v52 = vld [vmem:[#allocation10 + $0xc70] sm:$0xff]  ;;  %v7326_v53 = vpack.c.bf16 %v1778_v49, %v1776_v48 }
 0x22a   : > { %7171 = vmatprep.subr.bf16.mxu1 %v7170_v2  ;;  %7235 = vmatprep.subr.bf16.mxu0 %v7234_v13  ;;  %v7314_v2 = vpack.c.bf16 %v1766_v3, %v1764_v63  ;;  %v1601_v13 = vld [vmem:[#allocation10 + $0xc00] sm:$0xff]  ;;  %v1631_v48 = vld [vmem:[#allocation10 + $0xcf0] sm:$0xff] }
 0x22b   : > { %v1617_v3 = vld [vmem:[#allocation10 + $0xc80] sm:$0xff] }
 0x22d   : > { %7173 = vmatpush1.bf16.msra.mxu1 %v7172_v23  ;;  %7237 = vmatpush1.bf16.msra.mxu0 %v7236_v24  ;;  %v1770_v23 = vld [vmem:[#allocation10 + $0xe38] sm:$0xff]  ;;  %v7252_v24 = vpack.c.bf16 %v1603_v14, %v1601_v13  ;;  %v1622_v13 = vld [vmem:[#allocation10 + $0xca8] sm:$0xff] }
 0x22e   : > { %7175 = vmatprep.subr.bf16.mxu1 %v7174_v26  ;;  %7239 = vmatprep.subr.bf16.mxu0 %v7238_v27  ;;  %v1607_v26 = vld [vmem:[#allocation10 + $0xc30] sm:$0xff]  ;;  %v7254_v27 = vpack.c.bf16 %v1608_v4, %v1606_v19  ;;  %v7318_v30 = vpack.c.bf16 %v1770_v23, %v1768_v22  ;;  %v1784_v14 = vld [vmem:[#allocation10 + $0xea8] sm:$0xff]  ;;  %v1621_v4 = vld [vmem:[#allocation10 + $0xca0] sm:$0xff] }
 0x22f   : > { %v1623_v22 = vld [vmem:[#allocation10 + $0xcb0] sm:$0xff] }
 0x230   : > { %v7272_v32 = vpack.c.bf16 %v1623_v22, %v1621_v4  ;;  %v1801_v4 = vld [vmem:[#allocation10 + $0xf30] sm:$0xff]  ;;  %v1642_v22 = vld [vmem:[#allocation10 + $0xd48] sm:$0xff] }
 0x231   : > { %7177 = vmatpush1.bf16.msra.mxu1 %v7176_v36  ;;  %7241 = vmatpush1.bf16.msra.mxu0 %v7240_v37  ;;  %v1774_v36 = vld [vmem:[#allocation10 + $0xe58] sm:$0xff]  ;;  %v7256_v37 = vpack.c.bf16 %v1607_v26, %v1605_v5  ;;  %v1785_v5 = vld [vmem:[#allocation10 + $0xeb0] sm:$0xff]  ;;  %v1626_v26 = vld [vmem:[#allocation10 + $0xcc8] sm:$0xff] }
 0x232   : > { %7179 = vmatprep.subr.bf16.mxu1 %v7178_v40  ;;  %7243 = vmatprep.subr.bf16.mxu0 %v7242_v42  ;;  %v1611_v40 = vld [vmem:[#allocation10 + $0xc50] sm:$0xff]  ;;  %v7322_v42 = vpack.c.bf16 %v1774_v36, %v1772_v35 }
 0x233   : > { %v7260_v11 = vpack.c.bf16 %v1611_v40, %v1609_v39  ;;  %v1627_v35 = vld [vmem:[#allocation10 + $0xcd0] sm:$0xff]  ;;  %v1630_v40 = vld [vmem:[#allocation10 + $0xce8] sm:$0xff] }
 0x234   : > { %v1789_v39 = vld [vmem:[#allocation10 + $0xed0] sm:$0xff] }
 0x235   : > { %7181 = vmatpush1.bf16.msra.mxu1 %v7180_v50  ;;  %7245 = vmatpush1.bf16.msra.mxu0 %v7244_v51  ;;  %v7324_v50 = vpack.c.bf16 %v1773_v6, %v1771_v45  ;;  %v1613_v51 = vld [vmem:[#allocation10 + $0xc60] sm:$0xff]  ;;  %v1794_v45 = vld [vmem:[#allocation10 + $0xef8] sm:$0xff] }
 0x236   : > { %7183 = vmatprep.subr.bf16.mxu1 %v7182_v54  ;;  %7247 = vmatprep.subr.bf16.mxu0 %v7246_v55  ;;  %v1775_v54 = vld [vmem:[#allocation10 + $0xe60] sm:$0xff]  ;;  %v1777_v55 = vld [vmem:[#allocation10 + $0xe70] sm:$0xff]  ;;  %v7264_v62 = vpack.c.bf16 %v1615_v52, %v1613_v51  ;;  %v1634_v52 = vld [vmem:[#allocation10 + $0xd08] sm:$0xff] }
 0x237   : > { %v7328_v63 = vpack.c.bf16 %v1777_v55, %v1775_v54  ;;  %v1793_v51 = vld [vmem:[#allocation10 + $0xef0] sm:$0xff]  ;;  %v1798_v54 = vld [vmem:[#allocation10 + $0xf18] sm:$0xff] }
 0x239   : > { %7185 = vmatpush1.bf16.msra.mxu1 %v7184_v8  ;;  %7249 = vmatpush1.bf16.msra.mxu0 %v7248_v9  ;;  %v1619_v8 = vld [vmem:[#allocation10 + $0xc90] sm:$0xff]  ;;  %v7330_v9 = vpack.c.bf16 %v1782_v60, %v1780_v57 }
 0x23a   : > { %7251 = vmatprep.subr.bf16.mxu1 %v7250_v12  ;;  %7315 = vmatprep.subr.bf16.mxu0 %v7314_v2  ;;  %v1779_v12 = vld [vmem:[#allocation10 + $0xe80] sm:$0xff]  ;;  %v1781_v2 = vld [vmem:[#allocation10 + $0xe90] sm:$0xff]  ;;  %v7268_v18 = vpack.c.bf16 %v1619_v8, %v1617_v3  ;;  %v1638_v8 = vld [vmem:[#allocation10 + $0xd28] sm:$0xff] }
 0x23b   : > { %v7332_v19 = vpack.c.bf16 %v1781_v2, %v1779_v12  ;;  %v1635_v57 = vld [vmem:[#allocation10 + $0xd10] sm:$0xff]  ;;  %v1802_v12 = vld [vmem:[#allocation10 + $0xf38] sm:$0xff] }
 0x23c   : > { %6630 = vmatmul.mubr.msk.f32.vlgmr.msra.gmra.mrb[16].mxu1 %vm613_vm2, %v9780_v29  ;;  %6638 = vmatmul.mubr.msk.f32.vlgmr.msra.gmra.mrb[24].mxu0 %vm613_vm2, %v9780_v29  ;;  %v7258_v29 = vpack.c.bf16 %v1612_v34, %v1610_v33  ;;  %v1625_v34 = vld [vmem:[#allocation10 + $0xcc0] sm:$0xff]  ;;  %v1797_v3 = vld [vmem:[#allocation10 + $0xf10] sm:$0xff] }
 0x23d   : > { %6631 = vmatprep.mubr.msk.f32.mxu1 %vm616_vm4, %v9789_v10  ;;  %6639 = vmatprep.mubr.msk.f32.mxu0 %vm616_vm4, %v9789_v10  ;;  %v1616_v10 = vld [vmem:[#allocation10 + $0xc78] sm:$0xff]  ;;  %v7276_v6 = vpack.c.bf16 %v1627_v35, %v1625_v34  ;;  %v1805_v34 = vld [vmem:[#allocation10 + $0xf50] sm:$0xff]  ;;  %v1646_v35 = vld [vmem:[#allocation10 + $0xd68] sm:$0xff] }
 0x23e   : > { %7253 = vmatpush1.bf16.msra.mxu1 %v7252_v24  ;;  %7317 = vmatpush1.bf16.msra.mxu0 %v7316_v25  ;;  %v7334_v24 = vpack.c.bf16 %v1786_v1, %v1784_v14  ;;  %v1783_v25 = vld [vmem:[#allocation10 + $0xea0] sm:$0xff]  ;;  %v1639_v14 = vld [vmem:[#allocation10 + $0xd30] sm:$0xff] }
 0x23f   : > { %7255 = vmatprep.subr.bf16.mxu1 %v7254_v27  ;;  %7319 = vmatprep.subr.bf16.mxu0 %v7318_v30  ;;  %v1628_v27 = vld [vmem:[#allocation10 + $0xcd8] sm:$0xff]  ;;  %v1788_v30 = vld [vmem:[#allocation10 + $0xec8] sm:$0xff]  ;;  %v7336_v33 = vpack.c.bf16 %v1785_v5, %v1783_v25 }
 0x240   : > { %6632 = vmatmul.mubr.msk.f32.gmra.mrb[18].mxu1 %vm615_vm3, %v9798_v44  ;;  %6640 = vmatmul.mubr.msk.f32.gmra.mrb[26].mxu0 %vm615_vm3, %v9798_v44  ;;  %v7262_v44 = vpack.c.bf16 %v1616_v10, %v1614_v46  ;;  %v7274_v36 = vpack.c.bf16 %v1628_v27, %v1626_v26  ;;  %v1629_v10 = vld [vmem:[#allocation10 + $0xce0] sm:$0xff]  ;;  %v1806_v25 = vld [vmem:[#allocation10 + $0xf58] sm:$0xff] }
 0x241   : > { %6633 = vmatprep.mubr.msk.f32.mxu1 %vm618_vm6, %v9807_v47  ;;  %6641 = vmatprep.mubr.msk.f32.mxu0 %vm618_vm6, %v9807_v47  ;;  %v1620_v47 = vld [vmem:[#allocation10 + $0xc98] sm:$0xff]  ;;  %v7280_v55 = vpack.c.bf16 %v1631_v48, %v1629_v10  ;;  %v1641_v27 = vld [vmem:[#allocation10 + $0xd40] sm:$0xff]  ;;  %v1809_v10 = vld [vmem:[#allocation10 + $0xf70] sm:$0xff] }
 0x242   : > { %7257 = vmatpush1.bf16.msra.mxu1 %v7256_v37  ;;  %7321 = vmatpush1.bf16.msra.mxu0 %v7320_v38  ;;  %v7338_v37 = vpack.c.bf16 %v1790_v31, %v1788_v30  ;;  %v1787_v38 = vld [vmem:[#allocation10 + $0xec0] sm:$0xff]  ;;  %v1643_v30 = vld [vmem:[#allocation10 + $0xd50] sm:$0xff]  ;;  %v1650_v48 = vld [vmem:[#allocation10 + $0xd88] sm:$0xff] }
 0x243   : > { %7259 = vmatprep.subr.bf16.mxu1 %v7258_v29  ;;  %7323 = vmatprep.subr.bf16.mxu0 %v7322_v42  ;;  %v1632_v29 = vld [vmem:[#allocation10 + $0xcf8] sm:$0xff]  ;;  %v1792_v42 = vld [vmem:[#allocation10 + $0xee8] sm:$0xff]  ;;  %v7340_v46 = vpack.c.bf16 %v1789_v39, %v1787_v38  ;;  %v7292_v39 = vpack.c.bf16 %v1643_v30, %v1641_v27  ;;  %v1821_v27 = vld [vmem:[#allocation10 + $0xfd0] sm:$0xff] }
 0x244   : > { %6634 = vmatmul.mubr.msk.f32.gmra.mrb[20].mxu1 %vm617_vm5, %v9816_v56  ;;  %6642 = vmatmul.mubr.msk.f32.gmra.mrb[28].mxu0 %vm617_vm5, %v9816_v56  ;;  %v7266_v56 = vpack.c.bf16 %v1620_v47, %v1618_v0  ;;  %v7278_v49 = vpack.c.bf16 %v1632_v29, %v1630_v40  ;;  %v1633_v47 = vld [vmem:[#allocation10 + $0xd00] sm:$0xff]  ;;  %v1810_v38 = vld [vmem:[#allocation10 + $0xf78] sm:$0xff]  ;;  %v1662_v30 = vld [vmem:[#allocation10 + $0xde8] sm:$0xff] }
 0x245   : > { %6635 = vmatprep.mubr.msk.f32.mxu1 %vm620_vm8, %v9825_v61  ;;  %6643 = vmatprep.mubr.msk.f32.mxu0 %vm620_vm8, %v9825_v61  ;;  %v1624_v61 = vld [vmem:[#allocation10 + $0xcb8] sm:$0xff]  ;;  %v7284_v2 = vpack.c.bf16 %v1635_v57, %v1633_v47  ;;  %v1645_v29 = vld [vmem:[#allocation10 + $0xd60] sm:$0xff]  ;;  %v1813_v47 = vld [vmem:[#allocation10 + $0xf90] sm:$0xff] }
 0x246   : > { %7261 = vmatpush1.bf16.msra.mxu1 %v7260_v11  ;;  %7325 = vmatpush1.bf16.msra.mxu0 %v7324_v50  ;;  %v7270_v23 = vpack.c.bf16 %v1624_v61, %v1622_v13  ;;  %v7342_v11 = vpack.c.bf16 %v1794_v45, %v1792_v42  ;;  %v1791_v50 = vld [vmem:[#allocation10 + $0xee0] sm:$0xff]  ;;  %v1647_v42 = vld [vmem:[#allocation10 + $0xd70] sm:$0xff]  ;;  %v1654_v57 = vld [vmem:[#allocation10 + $0xda8] sm:$0xff] }
 0x247   : > { %7263 = vmatprep.subr.bf16.mxu1 %v7262_v44  ;;  %7327 = vmatprep.subr.bf16.mxu0 %v7326_v53  ;;  %v1636_v44 = vld [vmem:[#allocation10 + $0xd18] sm:$0xff]  ;;  %v1796_v53 = vld [vmem:[#allocation10 + $0xf08] sm:$0xff]  ;;  %v7344_v0 = vpack.c.bf16 %v1793_v51, %v1791_v50  ;;  %v1637_v61 = vld [vmem:[#allocation10 + $0xd20] sm:$0xff]  ;;  %v7296_v51 = vpack.c.bf16 %v1647_v42, %v1645_v29 }
 0x248   : > { %6636 = vmatmul.mubr.msk.f32.gmra.mrb[22].mxu1 %vm619_vm7, %v9834_v15  ;;  %6644 = vmatmul.mubr.msk.f32.gmra.mrb[30].mxu0 %vm619_vm7, %v9834_v15  ;;  %v7282_v60 = vpack.c.bf16 %v1636_v44, %v1634_v52  ;;  %v7288_v5 = vpack.c.bf16 %v1639_v14, %v1637_v61  ;;  %v1814_v50 = vld [vmem:[#allocation10 + $0xf98] sm:$0xff]  ;;  %v1649_v44 = vld [vmem:[#allocation10 + $0xd80] sm:$0xff]  ;;  %v1817_v61 = vld [vmem:[#allocation10 + $0xfb0] sm:$0xff] }
 0x249   : > { %6645 = vmatprep.mubr.msk.f32.mxu1 %vm614_vm1, %v9843_v20  ;;  %6653 = vmatprep.mubr.msk.f32.mxu0 %vm614_vm1, %v9843_v20  ;;  %v1658_v14 = vld [vmem:[#allocation10 + $0xdc8] sm:$0xff]  ;;  %v1825_v29 = vld [vmem:[#allocation10 + $0xff0] sm:$0xff] }
 0x24a   : > { %7265 = vmatpush1.bf16.msra.mxu1 %v7264_v62  ;;  %7329 = vmatpush1.bf16.msra.mxu0 %v7328_v63  ;;  %v7346_v62 = vpack.c.bf16 %v1798_v54, %v1796_v53  ;;  %v1795_v63 = vld [vmem:[#allocation10 + $0xf00] sm:$0xff]  ;;  %v1651_v53 = vld [vmem:[#allocation10 + $0xd90] sm:$0xff]  ;;  %v1926_v42 = vld [vmem:[#allocation10 + $0x1008] sm:$0xff] }
 0x24b   : > { %7267 = vmatprep.subr.bf16.mxu1 %v7266_v56  ;;  %7331 = vmatprep.subr.bf16.mxu0 %v7330_v9  ;;  %v1640_v56 = vld [vmem:[#allocation10 + $0xd38] sm:$0xff]  ;;  %v1800_v9 = vld [vmem:[#allocation10 + $0xf28] sm:$0xff]  ;;  %v7348_v13 = vpack.c.bf16 %v1797_v3, %v1795_v63  ;;  %v7300_v3 = vpack.c.bf16 %v1651_v53, %v1649_v44  ;;  %v1929_v44 = vld [vmem:[#allocation10 + $0x1020] sm:$0xff] }
 0x24c   : > { %v7286_v1 = vpack.c.bf16 %v1640_v56, %v1638_v8  ;;  %v1818_v63 = vld [vmem:[#allocation10 + $0xfb8] sm:$0xff]  ;;  %v1653_v56 = vld [vmem:[#allocation10 + $0xda0] sm:$0xff]  ;;  %v1931_v53 = vld [vmem:[#allocation10 + $0x1030] sm:$0xff] }
 0x24e   : > { %7269 = vmatpush1.bf16.msra.mxu1 %v7268_v18  ;;  %7333 = vmatpush1.bf16.msra.mxu0 %v7332_v19  ;;  %v7350_v18 = vpack.c.bf16 %v1802_v12, %v1800_v9  ;;  %v1799_v19 = vld [vmem:[#allocation10 + $0xf20] sm:$0xff]  ;;  %v1655_v9 = vld [vmem:[#allocation10 + $0xdb0] sm:$0xff] }
 0x24f   : > { %7271 = vmatprep.subr.bf16.mxu1 %v7270_v23  ;;  %7335 = vmatprep.subr.bf16.mxu0 %v7334_v24  ;;  %v1644_v23 = vld [vmem:[#allocation10 + $0xd58] sm:$0xff]  ;;  %v1804_v24 = vld [vmem:[#allocation10 + $0xf48] sm:$0xff]  ;;  %v7352_v26 = vpack.c.bf16 %v1801_v4, %v1799_v19  ;;  %v7304_v4 = vpack.c.bf16 %v1655_v9, %v1653_v56 }
 0x250   : > { %v7290_v31 = vpack.c.bf16 %v1644_v23, %v1642_v22  ;;  %v1822_v19 = vld [vmem:[#allocation10 + $0xfd8] sm:$0xff]  ;;  %v1657_v23 = vld [vmem:[#allocation10 + $0xdc0] sm:$0xff]  ;;  %v9927_v9 = vld [vmem:[%s9639_s24 + $0x28] sm:$0xff] }
 0x251   : > { %v1940_v56 = vld [vmem:[#allocation10 + $0x1078] sm:$0xff] }
 0x252   : > { %7273 = vmatpush1.bf16.msra.mxu1 %v7272_v32  ;;  %7337 = vmatpush1.bf16.msra.mxu0 %v7336_v33  ;;  %v7354_v32 = vpack.c.bf16 %v1806_v25, %v1804_v24  ;;  %v1803_v33 = vld [vmem:[#allocation10 + $0xf40] sm:$0xff]  ;;  %v1659_v24 = vld [vmem:[#allocation10 + $0xdd0] sm:$0xff] }
 0x253   : > { %7275 = vmatprep.subr.bf16.mxu1 %v7274_v36  ;;  %7339 = vmatprep.subr.bf16.mxu0 %v7338_v37  ;;  %v1648_v36 = vld [vmem:[#allocation10 + $0xd78] sm:$0xff]  ;;  %v1808_v37 = vld [vmem:[#allocation10 + $0xf68] sm:$0xff]  ;;  %v7356_v40 = vpack.c.bf16 %v1805_v34, %v1803_v33  ;;  %v7308_v34 = vpack.c.bf16 %v1659_v24, %v1657_v23  ;;  %v1941_v23 = vld [vmem:[#allocation10 + $0x1080] sm:$0xff] }
 0x254   : > { %v7294_v45 = vpack.c.bf16 %v1648_v36, %v1646_v35  ;;  %v1826_v33 = vld [vmem:[#allocation10 + $0xff8] sm:$0xff]  ;;  %v1661_v36 = vld [vmem:[#allocation10 + $0xde0] sm:$0xff]  ;;  %v1943_v24 = vld [vmem:[#allocation10 + $0x1090] sm:$0xff] }
 0x256   : > { %7277 = vmatpush1.bf16.msra.mxu1 %v7276_v6  ;;  %7341 = vmatpush1.bf16.msra.mxu0 %v7340_v46  ;;  %v7358_v6 = vpack.c.bf16 %v1810_v38, %v1808_v37  ;;  %v1807_v46 = vld [vmem:[#allocation10 + $0xf60] sm:$0xff] }
 0x257   : > { %7279 = vmatprep.subr.bf16.mxu1 %v7278_v49  ;;  %7343 = vmatprep.subr.bf16.mxu0 %v7342_v11  ;;  %v1652_v49 = vld [vmem:[#allocation10 + $0xd98] sm:$0xff]  ;;  %v1812_v11 = vld [vmem:[#allocation10 + $0xf88] sm:$0xff]  ;;  %v7360_v52 = vpack.c.bf16 %v1809_v10, %v1807_v46 }
 0x258   : > { %v7298_v54 = vpack.c.bf16 %v1652_v49, %v1650_v48  ;;  %v1925_v48 = vld [vmem:[#allocation10 + $0x1000] sm:$0xff]  ;;  %v1927_v49 = vld [vmem:[#allocation10 + $0x1010] sm:$0xff] }
 0x25a   : > { %7281 = vmatpush1.bf16.msra.mxu1 %v7280_v55  ;;  %7345 = vmatpush1.bf16.msra.mxu0 %v7344_v0  ;;  %v7362_v55 = vpack.c.bf16 %v1814_v50, %v1812_v11  ;;  %v1811_v0 = vld [vmem:[#allocation10 + $0xf80] sm:$0xff]  ;;  %v1930_v11 = vld [vmem:[#allocation10 + $0x1028] sm:$0xff]  ;;  %v1932_v50 = vld [vmem:[#allocation10 + $0x1038] sm:$0xff] }
 0x25b   : > { %7283 = vmatprep.subr.bf16.mxu1 %v7282_v60  ;;  %7347 = vmatprep.subr.bf16.mxu0 %v7346_v62  ;;  %v1656_v60 = vld [vmem:[#allocation10 + $0xdb8] sm:$0xff]  ;;  %v1816_v62 = vld [vmem:[#allocation10 + $0xfa8] sm:$0xff]  ;;  %v7364_v8 = vpack.c.bf16 %v1813_v47, %v1811_v0 }
 0x25c   : > { %v7302_v12 = vpack.c.bf16 %v1656_v60, %v1654_v57  ;;  %v1936_v0 = vld [vmem:[#allocation10 + $0x1058] sm:$0xff]  ;;  %v7384_v57 = vpack.c.bf16 %v1931_v53, %v1929_v44  ;;  %v1955_v44 = vld [vmem:[#allocation10 + $0x10f0] sm:$0xff] }
 0x25d   : > { %v9909_v47 = vld [vmem:[%s9639_s24 + $0x18] sm:$0xff] }
 0x25e   : > { %7285 = vmatpush1.bf16.msra.mxu1 %v7284_v2  ;;  %7349 = vmatpush1.bf16.msra.mxu0 %v7348_v13  ;;  %v7366_v2 = vpack.c.bf16 %v1818_v63, %v1816_v62  ;;  %v1815_v13 = vld [vmem:[#allocation10 + $0xfa0] sm:$0xff]  ;;  %v1935_v63 = vld [vmem:[#allocation10 + $0x1050] sm:$0xff] }
 0x25f   : > { %7287 = vmatprep.subr.bf16.mxu1 %v7286_v1  ;;  %7351 = vmatprep.subr.bf16.mxu0 %v7350_v18  ;;  %v1660_v1 = vld [vmem:[#allocation10 + $0xdd8] sm:$0xff]  ;;  %v1820_v18 = vld [vmem:[#allocation10 + $0xfc8] sm:$0xff]  ;;  %v7368_v22 = vpack.c.bf16 %v1817_v61, %v1815_v13  ;;  %v1933_v62 = vld [vmem:[#allocation10 + $0x1040] sm:$0xff] }
 0x260   : > { %v7306_v25 = vpack.c.bf16 %v1660_v1, %v1658_v14  ;;  %v1937_v13 = vld [vmem:[#allocation10 + $0x1060] sm:$0xff]  ;;  %v1939_v61 = vld [vmem:[#allocation10 + $0x1070] sm:$0xff]  ;;  %v1942_v1 = vld [vmem:[#allocation10 + $0x1088] sm:$0xff] }
 0x261   : > { %v9936_v14 = vld [vmem:[%s9639_s24 + $0x20] sm:$0xff] }
 0x262   : > { %7289 = vmatpush1.bf16.msra.mxu1 %v7288_v5  ;;  %7353 = vmatpush1.bf16.msra.mxu0 %v7352_v26  ;;  %v7370_v5 = vpack.c.bf16 %v1822_v19, %v1820_v18  ;;  %v1819_v26 = vld [vmem:[#allocation10 + $0xfc0] sm:$0xff]  ;;  %v1944_v18 = vld [vmem:[#allocation10 + $0x1098] sm:$0xff] }
 0x263   : > { %7291 = vmatprep.subr.bf16.mxu1 %v7290_v31  ;;  %7355 = vmatprep.subr.bf16.mxu0 %v7354_v32  ;;  %v1664_v31 = vld [vmem:[#allocation10 + $0xdf8] sm:$0xff]  ;;  %v1824_v32 = vld [vmem:[#allocation10 + $0xfe8] sm:$0xff]  ;;  %v7372_v35 = vpack.c.bf16 %v1821_v27, %v1819_v26  ;;  %v7396_v26 = vpack.c.bf16 %v1943_v24, %v1941_v23 }
 0x264   : > { %v7310_v37 = vpack.c.bf16 %v1664_v31, %v1662_v30  ;;  %v7374_v38 = vpack.c.bf16 %v1826_v33, %v1824_v32  ;;  %v9945_v19 = vld [vmem:[%s9639_s24 + $0x38] sm:$0xff]  ;;  %v1945_v32 = vld [vmem:[#allocation10 + $0x10a0] sm:$0xff]  ;;  %v1947_v33 = vld [vmem:[#allocation10 + $0x10b0] sm:$0xff] }
 0x266   : > { %7293 = vmatpush1.bf16.msra.mxu1 %v7292_v39  ;;  %7357 = vmatpush1.bf16.msra.mxu0 %v7356_v40  ;;  %v1663_v39 = vld [vmem:[#allocation10 + $0xdf0] sm:$0xff]  ;;  %v1823_v40 = vld [vmem:[#allocation10 + $0xfe0] sm:$0xff] }
 0x267   : > { %7295 = vmatprep.subr.bf16.mxu1 %v7294_v45  ;;  %7359 = vmatprep.subr.bf16.mxu0 %v7358_v6  ;;  %v1928_v45 = vld [vmem:[#allocation10 + $0x1018] sm:$0xff]  ;;  %v7312_v6 = vpack.c.bf16 %v1663_v39, %v1661_v36  ;;  %v7376_v46 = vpack.c.bf16 %v1825_v29, %v1823_v40  ;;  %v1950_v36 = vld [vmem:[#allocation10 + $0x10c8] sm:$0xff]  ;;  %v1949_v40 = vld [vmem:[#allocation10 + $0x10c0] sm:$0xff] }
 0x268   : > { %v7378_v10 = vpack.c.bf16 %v1928_v45, %v1926_v42  ;;  %v1951_v29 = vld [vmem:[#allocation10 + $0x10d0] sm:$0xff] }
 0x26a   : > { %7297 = vmatpush1.bf16.msra.mxu1 %v7296_v51  ;;  %7361 = vmatpush1.bf16.msra.mxu0 %v7360_v52  ;;  %v7380_v51 = vpack.c.bf16 %v1927_v49, %v1925_v48  ;;  %v7382_v52 = vpack.c.bf16 %v1932_v50, %v1930_v11  ;;  %v1956_v48 = vld [vmem:[#allocation10 + $0x10f8] sm:$0xff]  ;;  %v7404_v50 = vpack.c.bf16 %v1951_v29, %v1949_v40  ;;  %v1971_v40 = vld [vmem:[#allocation10 + $0x1170] sm:$0xff]  ;;  %v1974_v29 = vld [vmem:[#allocation10 + $0x1188] sm:$0xff] }
 0x26b   : > { %7299 = vmatprep.subr.bf16.mxu1 %v7298_v54  ;;  %7363 = vmatprep.subr.bf16.mxu0 %v7362_v55  ;;  %v9900_v54 = vld [vmem:[%s9639_s24] sm:$0xff]  ;;  %v1934_v55 = vld [vmem:[#allocation10 + $0x1048] sm:$0xff] }
 0x26c   : > { %v7386_v60 = vpack.c.bf16 %v1936_v0, %v1934_v55 }
 0x26e   : > { %7301 = vmatpush1.bf16.msra.mxu1 %v7300_v3  ;;  %7365 = vmatpush1.bf16.msra.mxu0 %v7364_v8  ;;  %v9918_v3 = vld [vmem:[%s9639_s24 + $0x10] sm:$0xff]  ;;  %v1938_v8 = vld [vmem:[#allocation10 + $0x1068] sm:$0xff] }
 0x26f   : > { %7303 = vmatprep.subr.bf16.mxu1 %v7302_v12  ;;  %7367 = vmatprep.subr.bf16.mxu0 %v7366_v2  ;;  %v7388_v12 = vpack.c.bf16 %v1935_v63, %v1933_v62  ;;  %v7390_v2 = vpack.c.bf16 %v1940_v56, %v1938_v8  ;;  %v1957_v56 = vld [vmem:[#allocation10 + $0x1100] sm:$0xff] }
 0x272   : > { %7305 = vmatpush1.bf16.msra.mxu1 %v7304_v4  ;;  %7369 = vmatpush1.bf16.msra.mxu0 %v7368_v22  ;;  %v7392_v4 = vpack.c.bf16 %v1939_v61, %v1937_v13  ;;  %v7394_v22 = vpack.c.bf16 %v1944_v18, %v1942_v1  ;;  %v1964_v13 = vld [vmem:[#allocation10 + $0x1138] sm:$0xff] }
 0x273   : > { %7307 = vmatprep.subr.bf16.mxu1 %v7306_v25  ;;  %7371 = vmatprep.subr.bf16.mxu0 %v7370_v5  ;;  %v1946_v25 = vld [vmem:[#allocation10 + $0x10a8] sm:$0xff]  ;;  %v1948_v5 = vld [vmem:[#allocation10 + $0x10b8] sm:$0xff] }
 0x274   : > { %v7398_v31 = vpack.c.bf16 %v1948_v5, %v1946_v25 }
 0x276   : > { %7309 = vmatpush1.bf16.msra.mxu1 %v7308_v34  ;;  %7373 = vmatpush1.bf16.msra.mxu0 %v7372_v35 }
 0x277   : > { %7311 = vmatprep.subr.bf16.mxu1 %v7310_v37  ;;  %7375 = vmatprep.subr.bf16.mxu0 %v7374_v38  ;;  %v1952_v37 = vld [vmem:[#allocation10 + $0x10d8] sm:$0xff] }
 0x27a   : > { %7313 = vmatpush1.bf16.msra.mxu1 %v7312_v6  ;;  %7377 = vmatpush1.bf16.msra.mxu0 %v7376_v46 }
 0x27b   : > { %7379 = vmatprep.subr.bf16.mxu1 %v7378_v10  ;;  %v1954_v10 = vld [vmem:[#allocation10 + $0x10e8] sm:$0xff] }
 0x27d   : > { %6646 = vmatmul.mubr.msk.f32.vlgmr.msra.gmra.mrb[24].mxu1 %vm613_vm2, %v9900_v54  ;;  %6654 = vmatmul.mubr.msk.f32.vlgmr.msra.gmra.mrb[32].mxu0 %vm613_vm2, %v9900_v54 }
 0x27e   : > { %6647 = vmatprep.mubr.msk.f32.mxu1 %vm616_vm4, %v9909_v47  ;;  %6655 = vmatprep.mubr.msk.f32.mxu0 %vm616_vm4, %v9909_v47 }
 0x27f   : > { %7381 = vmatpush1.bf16.msra.mxu1 %v7380_v51  ;;  %v7406_v51 = vpack.c.bf16 %v1956_v48, %v1954_v10  ;;  %v1973_v10 = vld [vmem:[#allocation10 + $0x1180] sm:$0xff]  ;;  %v1975_v48 = vld [vmem:[#allocation10 + $0x1190] sm:$0xff] }
 0x280   : > { %7383 = vmatprep.subr.bf16.mxu1 %v7382_v52  ;;  %v1953_v52 = vld [vmem:[#allocation10 + $0x10e0] sm:$0xff] }
 0x281   : > { %6648 = vmatmul.mubr.msk.f32.gmra.mrb[26].mxu1 %vm615_vm3, %v9918_v3  ;;  %6656 = vmatmul.mubr.msk.f32.gmra.mrb[34].mxu0 %vm615_vm3, %v9918_v3  ;;  %v7408_v63 = vpack.c.bf16 %v1955_v44, %v1953_v52  ;;  %v1979_v52 = vld [vmem:[#allocation10 + $0x11b0] sm:$0xff]  ;;  %v1982_v44 = vld [vmem:[#allocation10 + $0x11c8] sm:$0xff] }
 0x282   : > { %6649 = vmatprep.mubr.msk.f32.mxu1 %vm618_vm6, %v9927_v9  ;;  %6657 = vmatprep.mubr.msk.f32.mxu0 %vm618_vm6, %v9927_v9 }
 0x283   : > { %7385 = vmatpush1.bf16.msra.mxu1 %v7384_v57  ;;  %v1958_v57 = vld [vmem:[#allocation10 + $0x1108] sm:$0xff] }
 0x284   : > { %7387 = vmatprep.subr.bf16.mxu1 %v7386_v60  ;;  %v1960_v60 = vld [vmem:[#allocation10 + $0x1118] sm:$0xff] }
 0x285   : > { %6650 = vmatmul.mubr.msk.f32.gmra.mrb[28].mxu1 %vm617_vm5, %v9936_v14  ;;  %6658 = vmatmul.mubr.msk.f32.gmra.mrb[36].mxu0 %vm617_vm5, %v9936_v14  ;;  %v7410_v8 = vpack.c.bf16 %v1960_v60, %v1958_v57  ;;  %v1981_v57 = vld [vmem:[#allocation10 + $0x11c0] sm:$0xff]  ;;  %v1983_v60 = vld [vmem:[#allocation10 + $0x11d0] sm:$0xff] }
 0x286   : > { %6651 = vmatprep.mubr.msk.f32.mxu1 %vm620_vm8, %v9945_v19  ;;  %6659 = vmatprep.mubr.msk.f32.mxu0 %vm620_vm8, %v9945_v19 }
 0x287   : > { %7389 = vmatpush1.bf16.msra.mxu1 %v7388_v12  ;;  %v1959_v12 = vld [vmem:[#allocation10 + $0x1110] sm:$0xff] }
 0x288   : > { %7391 = vmatprep.subr.bf16.mxu1 %v7390_v2  ;;  %v1962_v2 = vld [vmem:[#allocation10 + $0x1128] sm:$0xff] }
 0x289   : > { %6652 = vmatmul.mubr.msk.f32.gmra.mrb[30].mxu1 %vm619_vm7, %v9834_v15  ;;  %6660 = vmatmul.mubr.msk.f32.gmra.mrb[38].mxu0 %vm619_vm7, %v9834_v15  ;;  %v7400_v15 = vpack.c.bf16 %v1947_v33, %v1945_v32  ;;  %v7414_v5 = vpack.c.bf16 %v1964_v13, %v1962_v2  ;;  %v1968_v32 = vld [vmem:[#allocation10 + $0x1158] sm:$0xff]  ;;  %v1987_v2 = vld [vmem:[#allocation10 + $0x11f0] sm:$0xff] }
 0x28a   : > { %6661 = vmatprep.mubr.msk.f32.mxu1 %vm614_vm1, %v9843_v20  ;;  %v7402_v20 = vpack.c.bf16 %v1952_v37, %v1950_v36  ;;  %v1967_v36 = vld [vmem:[#allocation10 + $0x1150] sm:$0xff]  ;;  %v1970_v37 = vld [vmem:[#allocation10 + $0x1168] sm:$0xff]  ;;  %vm2553_vm1 = vcmp.ge.f32.partialorder %v9749_v21, 0.5 }
 0x28b   : > { %7393 = vmatpush1.bf16.msra.mxu1 %v7392_v4 }
 0x28c   : > { %7395 = vmatprep.subr.bf16.mxu1 %v7394_v22  ;;  %v759_v27 = vpop.f32.mrb[0].mxu1  ;;  %v9962_v30 = vpop.f32.mrb[8].mxu0  ;;  %v7412_v22 = vpack.c.bf16 %v1959_v12, %v1957_v56  ;;  %v1985_v12 = vld [vmem:[#allocation10 + $0x11e0] sm:$0xff] }
 0x28d   : > { %v761_v34 = vpop.f32.mrb[1].mxu1  ;;  %v923_v35 = vpop.f32.mrb[9].mxu0  ;;  %v7440_v13 = vpack.c.bf16 %v1987_v2, %v1985_v12 }
 0x28f   : > { %7397 = vmatpush1.bf16.msra.mxu1 %v7396_v26  ;;  %v1961_v26 = vld [vmem:[#allocation10 + $0x1120] sm:$0xff] }
 0x290   : > { %7399 = vmatprep.subr.bf16.mxu1 %v7398_v31  ;;  %v765_v38 = vpop.f32.mrb[2].mxu1  ;;  %v9964_v39 = vpop.f32.mrb[10].mxu0  ;;  %v1966_v31 = vld [vmem:[#allocation10 + $0x1148] sm:$0xff] }
 0x291   : > { %v7444_v42 = vpack.c.bf16 %v765_v38, %v759_v27  ;;  %v7452_v45 = vpack.c.bf16 %v9964_v39, %v9962_v30  ;;  %v767_v6 = vpop.f32.mrb[3].mxu1  ;;  %v929_v46 = vpop.f32.mrb[11].mxu0  ;;  %v1963_v27 = vld [vmem:[#allocation10 + $0x1130] sm:$0xff] }
 0x292   : > { %v7442_v49 = vpack.c.bf16 %v767_v6, %v761_v34  ;;  %v7450_v11 = vpack.c.bf16 %v929_v46, %v923_v35  ;;  %v7416_v33 = vpack.c.bf16 %v1963_v27, %v1961_v26  ;;  %v7418_v34 = vpack.c.bf16 %v1968_v32, %v1966_v31  ;;  %v1965_v35 = vld [vmem:[#allocation10 + $0x1140] sm:$0xff] }
 0x293   : > { %7401 = vmatpush1.bf16.msra.mxu1 %v7400_v15  ;;  %v1972_v15 = vld [vmem:[#allocation10 + $0x1178] sm:$0xff]  ;;  %v7420_v38 = vpack.c.bf16 %v1967_v36, %v1965_v35 }
 0x294   : > { %7403 = vmatprep.subr.bf16.mxu1 %v7402_v20  ;;  %7443 = vmatprep.subr.bf16.mxu0 %v7442_v49  ;;  %v771_v53 = vpop.f32.mrb[4].mxu1  ;;  %v933_v55 = vpop.f32.mrb[12].mxu0  ;;  %v7422_v39 = vpack.c.bf16 %v1972_v15, %v1970_v37  ;;  %v1969_v20 = vld [vmem:[#allocation10 + $0x1160] sm:$0xff]  ;;  %v1978_v49 = vld [vmem:[#allocation10 + $0x11a8] sm:$0xff] }
 0x295   : > { %7445 = vmatpush1.bf16.msra.mxu0 %v7444_v42  ;;  %v773_v0 = vpop.f32.mrb[5].mxu1  ;;  %v935_v62 = vpop.f32.mrb[13].mxu0  ;;  %v1976_v42 = vld [vmem:[#allocation10 + $0x1198] sm:$0xff]  ;;  %v7424_v6 = vpack.c.bf16 %v1971_v40, %v1969_v20 }
 0x296   : > { %v7426_v46 = vpack.c.bf16 %v1976_v42, %v1974_v29  ;;  %v2087_v42 = vld [vmem:[#allocation11 + $0x8] sm:$0xff] }
 0x297   : > { %7405 = vmatpush1.bf16.msra.mxu1 %v7404_v50  ;;  %v7428_v50 = vpack.c.bf16 %v1975_v48, %v1973_v10  ;;  %2270 = vmatprep.mubr.f32.mxu0 %v2087_v42 }
 0x298   : > { %7407 = vmatprep.subr.bf16.mxu1 %v7406_v51  ;;  %v1977_v51 = vld [vmem:[#allocation10 + $0x11a0] sm:$0xff] }
 0x29a   : > { %v777_v61 = vpop.f32.mrb[6].mxu1  ;;  %v939_v1 = vpop.f32.mrb[14].mxu0 }
 0x29b   : > { %7409 = vmatpush1.bf16.msra.mxu1 %v7408_v63  ;;  %v7448_v18 = vpack.c.bf16 %v777_v61, %v771_v53  ;;  %v779_v4 = vpop.f32.mrb[7].mxu1  ;;  %v7456_v23 = vpack.c.bf16 %v939_v1, %v933_v55  ;;  %v941_v24 = vpop.f32.mrb[15].mxu0  ;;  %v1984_v53 = vld [vmem:[#allocation10 + $0x11d8] sm:$0xff]  ;;  %v7432_v55 = vpack.c.bf16 %v1979_v52, %v1977_v51  ;;  %v9987_v61 = vld [vmem:[%s9639_s24 + $0x30] sm:$0xff] }
 0x29c   : > { %7411 = vmatprep.subr.bf16.mxu1 %v7410_v8  ;;  %v7446_v25 = vpack.c.bf16 %v779_v4, %v773_v0  ;;  %v7454_v30 = vpack.c.bf16 %v941_v24, %v935_v62  ;;  %v7434_v0 = vpack.c.bf16 %v1984_v53, %v1982_v44  ;;  %v1986_v62 = vld [vmem:[#allocation10 + $0x11e8] sm:$0xff]  ;;  %v1988_v63 = vld [vmem:[#allocation10 + $0x11f8] sm:$0xff]  ;;  %v7436_v8 = vpack.c.bf16 %v1983_v60, %v1981_v57 }
 0x29d   : > { %v7438_v56 = vpack.c.bf16 %v1988_v63, %v1986_v62 }
 0x29e   : > { %7447 = vmatprep.subr.bf16.mxu0 %v7446_v25 }
 0x29f   : > { %7413 = vmatpush1.bf16.msra.mxu1 %v7412_v22  ;;  %7449 = vmatpush1.bf16.msra.mxu0 %v7448_v18 }
 0x2a0   : > { %7415 = vmatprep.subr.bf16.mxu1 %v7414_v5  ;;  %7451 = vmatprep.subr.bf16.mxu0 %v7450_v11  ;;  %v1980_v11 = vld [vmem:[#allocation10 + $0x11b8] sm:$0xff] }
 0x2a3   : > { %7417 = vmatpush1.bf16.msra.mxu1 %v7416_v33  ;;  %7453 = vmatpush1.bf16.msra.mxu0 %v7452_v45  ;;  %v7430_v45 = vpack.c.bf16 %v1980_v11, %v1978_v49 }
 0x2a4   : > { %7419 = vmatprep.subr.bf16.mxu1 %v7418_v34  ;;  %7455 = vmatprep.subr.bf16.mxu0 %v7454_v30 }
 0x2a7   : > { %7421 = vmatpush1.bf16.msra.mxu1 %v7420_v38  ;;  %7457 = vmatpush1.bf16.msra.mxu0 %v7456_v23 }
 0x2a8   : > { %7423 = vmatprep.subr.bf16.mxu1 %v7422_v39 }
 0x2ab   : > { %7425 = vmatpush1.bf16.msra.mxu1 %v7424_v6 }
 0x2ac   : > { %7427 = vmatprep.subr.bf16.mxu1 %v7426_v46 }
 0x2af   : > { %7429 = vmatpush1.bf16.msra.mxu1 %v7428_v50 }
 0x2b0   : > { %7431 = vmatprep.subr.bf16.mxu1 %v7430_v45 }
 0x2b3   : > { %7433 = vmatpush1.bf16.msra.mxu1 %v7432_v55 }
 0x2b4   : > { %7435 = vmatprep.subr.bf16.mxu1 %v7434_v0 }
 0x2b7   : > { %7437 = vmatpush1.bf16.msra.mxu1 %v7436_v8 }
 0x2b8   : > { %7439 = vmatprep.subr.bf16.mxu1 %v7438_v56 }
 0x2bb   : > { %7441 = vmatpush1.bf16.msra.mxu1 %v7440_v13 }
 0x2be   : > { %6662 = vmatmul.mubr.msk.f32.vlgmr.msra.gmra.mrb[32].mxu1 %vm613_vm2, %v9900_v54  ;;  %vm4485_vm2 = vcmp.ge.f32.partialorder %v9703_v43, 0.7 }
 0x2bf   : > { %6663 = vmatprep.mubr.msk.f32.mxu1 %vm616_vm4, %v9909_v47  ;;  %vm4487_vm4 = vcmp.ge.f32.partialorder %v9721_v59, 0.7  ;;  %v9079_v59 = vld [vmem:[%s9639_s24 + $0x20] sm:$0xff] }
 0x2c2   : > { %6664 = vmatmul.mubr.msk.f32.gmra.mrb[34].mxu1 %vm615_vm3, %v9918_v3  ;;  %vm4484_vm3 = vcmp.ge.f32.partialorder %v9701_v41, 0.7 }
 0x2c3   : > { %6665 = vmatprep.mubr.msk.f32.mxu1 %vm618_vm6, %v9927_v9  ;;  %vm4489_vm6 = vcmp.ge.f32.partialorder %v9739_v17, 0.7 }
 0x2c6   : > { %6666 = vmatmul.mubr.msk.f32.gmra.mrb[36].mxu1 %vm617_vm5, %v9936_v14  ;;  %vm4486_vm5 = vcmp.ge.f32.partialorder %v9713_v58, 0.7 }
 0x2c7   : > { %6667 = vmatprep.mubr.msk.f32.mxu1 %vm620_vm8, %v9945_v19  ;;  %vm4491_vm8 = vcmp.ge.f32.partialorder %v9757_v28, 0.7 }
 0x2ca   : > { %6668 = vmatmul.mubr.msk.f32.gmra.mrb[38].mxu1 %vm619_vm7, %v9987_v61  ;;  %vm4488_vm7 = vcmp.ge.f32.partialorder %v9731_v16, 0.7 }
 0x2cb   : > { %2359 = vmatprep.mubr.f32.mxu1 %v11349_v7 }
 0x2ce   : > { %v1083_v1 = vpop.f32.mrb[8].mxu1  ;;  %v1245_v18 = vpop.f32.mrb[16].mxu0 }
 0x2cf   : > { %v1085_v4 = vpop.f32.mrb[9].mxu1  ;;  %v1247_v22 = vpop.f32.mrb[17].mxu0 }
 0x2d2   : > { %v1089_v23 = vpop.f32.mrb[10].mxu1  ;;  %v1251_v24 = vpop.f32.mrb[18].mxu0 }
 0x2d3   : > { %v7460_v25 = vpack.c.bf16 %v1089_v23, %v1083_v1  ;;  %v7468_v5 = vpack.c.bf16 %v1251_v24, %v1245_v18  ;;  %v1091_v26 = vpop.f32.mrb[11].mxu1  ;;  %v1253_v27 = vpop.f32.mrb[19].mxu0 }
 0x2d4   : > { %v7458_v30 = vpack.c.bf16 %v1091_v26, %v1085_v4  ;;  %v7466_v31 = vpack.c.bf16 %v1253_v27, %v1247_v22 }
 0x2d6   : > { %v1095_v32 = vpop.f32.mrb[12].mxu1  ;;  %v1257_v33 = vpop.f32.mrb[20].mxu0  ;;  %7459 = vmatprep.subr.bf16.mxu0 %v7458_v30 }
 0x2d7   : > { %v1097_v34 = vpop.f32.mrb[13].mxu1  ;;  %v1259_v35 = vpop.f32.mrb[21].mxu0  ;;  %7461 = vmatpush1.bf16.msra.mxu0 %v7460_v25 }
 0x2da   : > { %v1101_v36 = vpop.f32.mrb[14].mxu1  ;;  %v1263_v37 = vpop.f32.mrb[22].mxu0 }
 0x2db   : > { %v7464_v15 = vpack.c.bf16 %v1101_v36, %v1095_v32  ;;  %v7472_v38 = vpack.c.bf16 %v1263_v37, %v1257_v33  ;;  %v1103_v39 = vpop.f32.mrb[15].mxu1  ;;  %v1265_v20 = vpop.f32.mrb[23].mxu0 }
 0x2dc   : > { %v7462_v40 = vpack.c.bf16 %v1103_v39, %v1097_v34  ;;  %v7470_v29 = vpack.c.bf16 %v1265_v20, %v1259_v35 }
 0x2de   : > { %7463 = vmatprep.subr.bf16.mxu0 %v7462_v40 }
 0x2df   : > { %7465 = vmatpush1.bf16.msra.mxu0 %v7464_v15 }
 0x2e0   : > { %7467 = vmatprep.subr.bf16.mxu0 %v7466_v31 }
 0x2e3   : > { %7469 = vmatpush1.bf16.msra.mxu0 %v7468_v5 }
 0x2e4   : > { %7471 = vmatprep.subr.bf16.mxu0 %v7470_v29 }
 0x2e7   : > { %7473 = vmatpush1.bf16.msra.mxu0 %v7472_v38 }
 0x30f   : > { %v1407_v6 = vpop.f32.mrb[16].mxu1  ;;  %v1569_v46 = vpop.f32.mrb[24].mxu0 }
 0x310   : > { %v1409_v10 = vpop.f32.mrb[17].mxu1  ;;  %v1571_v48 = vpop.f32.mrb[25].mxu0 }
 0x313   : > { %v1413_v49 = vpop.f32.mrb[18].mxu1  ;;  %v1575_v11 = vpop.f32.mrb[26].mxu0 }
 0x314   : > { %v7476_v50 = vpack.c.bf16 %v1413_v49, %v1407_v6  ;;  %v7484_v45 = vpack.c.bf16 %v1575_v11, %v1569_v46  ;;  %v1415_v51 = vpop.f32.mrb[19].mxu1  ;;  %v1577_v52 = vpop.f32.mrb[27].mxu0  ;;  %v2725_v6 = vld [vmem:[#allocation10 + $0x208] sm:$0xff]  ;;  %v2727_v46 = vld [vmem:[#allocation10 + $0x218] sm:$0xff]  ;;  %v2726_v49 = vld [vmem:[#allocation10 + $0x210] sm:$0xff] }
 0x315   : > { %v7474_v44 = vpack.c.bf16 %v1415_v51, %v1409_v10  ;;  %v7482_v53 = vpack.c.bf16 %v1577_v52, %v1571_v48  ;;  %v7578_v10 = vpack.c.bf16 %v2727_v46, %v2725_v6  ;;  %v2724_v48 = vld [vmem:[#allocation10 + $0x200] sm:$0xff]  ;;  %v2729_v11 = vld [vmem:[#allocation10 + $0x228] sm:$0xff] }
 0x316   : > { %v7580_v51 = vpack.c.bf16 %v2726_v49, %v2724_v48  ;;  %v2090_v52 = vld [vmem:[#allocation11 + $0x20] sm:$0xff]  ;;  %v2753_v48 = vld [vmem:[#allocation10 + $0x2e8] sm:$0xff]  ;;  %v2755_v49 = vld [vmem:[#allocation10 + $0x2f8] sm:$0xff] }
 0x317   : > { %v1419_v55 = vpop.f32.mrb[20].mxu1  ;;  %v1581_v0 = vpop.f32.mrb[28].mxu0  ;;  %7475 = vmatprep.subr.bf16.mxu0 %v7474_v44  ;;  %v2748_v46 = vld [vmem:[#allocation10 + $0x2c0] sm:$0xff] }
 0x318   : > { %v1421_v57 = vpop.f32.mrb[21].mxu1  ;;  %v1583_v60 = vpop.f32.mrb[29].mxu0  ;;  %7477 = vmatpush1.bf16.msra.mxu0 %v7476_v50  ;;  %v2731_v50 = vld [vmem:[#allocation10 + $0x238] sm:$0xff] }
 0x319   : > { %v7582_v44 = vpack.c.bf16 %v2731_v50, %v2729_v11  ;;  %v7606_v50 = vpack.c.bf16 %v2755_v49, %v2753_v48 }
 0x31b   : > { %v1425_v62 = vpop.f32.mrb[22].mxu1  ;;  %v1587_v63 = vpop.f32.mrb[30].mxu0 }
 0x31c   : > { %v7480_v8 = vpack.c.bf16 %v1425_v62, %v1419_v55  ;;  %v7488_v56 = vpack.c.bf16 %v1587_v63, %v1581_v0  ;;  %v1427_v12 = vpop.f32.mrb[23].mxu1  ;;  %v1589_v2 = vpop.f32.mrb[31].mxu0  ;;  %v2730_v55 = vld [vmem:[#allocation10 + $0x230] sm:$0xff]  ;;  %v2733_v0 = vld [vmem:[#allocation10 + $0x248] sm:$0xff]  ;;  %v2093_v63 = vld [vmem:[#allocation11 + $0x38] sm:$0xff] }
 0x31d   : > { %v7478_v13 = vpack.c.bf16 %v1427_v12, %v1421_v57  ;;  %v7486_v1 = vpack.c.bf16 %v1589_v2, %v1583_v60  ;;  %v2735_v57 = vld [vmem:[#allocation10 + $0x258] sm:$0xff]  ;;  %v2734_v12 = vld [vmem:[#allocation10 + $0x250] sm:$0xff]  ;;  %v2737_v2 = vld [vmem:[#allocation10 + $0x268] sm:$0xff] }
 0x31e   : > { %v2089_v60 = vld [vmem:[#allocation11 + $0x18] sm:$0xff] }
 0x31f   : > { %7479 = vmatprep.subr.bf16.mxu0 %v7478_v13  ;;  %v2739_v13 = vld [vmem:[#allocation10 + $0x278] sm:$0xff] }
 0x320   : > { %7481 = vmatpush1.bf16.msra.mxu0 %v7480_v8  ;;  %v7586_v8 = vpack.c.bf16 %v2735_v57, %v2733_v0  ;;  %v2756_v0 = vld [vmem:[#allocation10 + $0x300] sm:$0xff]  ;;  %v2758_v57 = vld [vmem:[#allocation10 + $0x310] sm:$0xff] }
 0x321   : > { %7483 = vmatprep.subr.bf16.mxu0 %v7482_v53  ;;  %v2728_v53 = vld [vmem:[#allocation10 + $0x220] sm:$0xff] }
 0x322   : > { %v7584_v62 = vpack.c.bf16 %v2730_v55, %v2728_v53 }
 0x324   : > { %7485 = vmatpush1.bf16.msra.mxu0 %v7484_v45  ;;  %v2086_v45 = vld [vmem:[#allocation11] sm:$0xff] }
 0x325   : > { %7487 = vmatprep.subr.bf16.mxu0 %v7486_v1  ;;  %v2092_v1 = vld [vmem:[#allocation11 + $0x30] sm:$0xff] }
 0x328   : > { %7489 = vmatpush1.bf16.msra.mxu0 %v7488_v56  ;;  %v2732_v56 = vld [vmem:[#allocation10 + $0x240] sm:$0xff] }
 0x350   : > { %v1731_v18 = vpop.f32.mrb[24].mxu1  ;;  %v1893_v4 = vpop.f32.mrb[32].mxu0 }
 0x351   : > { %v1733_v22 = vpop.f32.mrb[25].mxu1  ;;  %v1895_v23 = vpop.f32.mrb[33].mxu0 }
 0x354   : > { %v1737_v24 = vpop.f32.mrb[26].mxu1  ;;  %v1899_v25 = vpop.f32.mrb[34].mxu0 }
 0x355   : > { %v7492_v5 = vpack.c.bf16 %v1737_v24, %v1731_v18  ;;  %v7500_v26 = vpack.c.bf16 %v1899_v25, %v1893_v4  ;;  %v1739_v27 = vpop.f32.mrb[27].mxu1  ;;  %v1901_v30 = vpop.f32.mrb[35].mxu0  ;;  %v7588_v18 = vpack.c.bf16 %v2734_v12, %v2732_v56  ;;  %v2096_v4 = vld [vmem:[#allocation11 + $0x50] sm:$0xff]  ;;  %v2741_v25 = vld [vmem:[#allocation10 + $0x288] sm:$0xff]  ;;  %v2760_v56 = vld [vmem:[#allocation10 + $0x320] sm:$0xff] }
 0x356   : > { %v7490_v31 = vpack.c.bf16 %v1739_v27, %v1733_v22  ;;  %v7498_v32 = vpack.c.bf16 %v1901_v30, %v1895_v23  ;;  %v7590_v22 = vpack.c.bf16 %v2739_v13, %v2737_v2  ;;  %v2736_v23 = vld [vmem:[#allocation10 + $0x260] sm:$0xff]  ;;  %v2738_v24 = vld [vmem:[#allocation10 + $0x270] sm:$0xff]  ;;  %v2765_v2 = vld [vmem:[#allocation10 + $0x348] sm:$0xff] }
 0x357   : > { %v7592_v27 = vpack.c.bf16 %v2738_v24, %v2736_v23  ;;  %v2762_v12 = vld [vmem:[#allocation10 + $0x330] sm:$0xff]  ;;  %v2767_v13 = vld [vmem:[#allocation10 + $0x358] sm:$0xff]  ;;  %v2769_v23 = vld [vmem:[#allocation10 + $0x368] sm:$0xff] }
 0x358   : > { %v1743_v33 = vpop.f32.mrb[28].mxu1  ;;  %v1905_v34 = vpop.f32.mrb[36].mxu0  ;;  %7491 = vmatprep.subr.bf16.mxu0 %v7490_v31  ;;  %v2740_v31 = vld [vmem:[#allocation10 + $0x280] sm:$0xff]  ;;  %v2771_v24 = vld [vmem:[#allocation10 + $0x378] sm:$0xff] }
 0x359   : > { %v1745_v35 = vpop.f32.mrb[29].mxu1  ;;  %v1907_v36 = vpop.f32.mrb[37].mxu0  ;;  %7493 = vmatpush1.bf16.msra.mxu0 %v7492_v5  ;;  %v2743_v5 = vld [vmem:[#allocation10 + $0x298] sm:$0xff] }
 0x35a   : > { %v7594_v30 = vpack.c.bf16 %v2743_v5, %v2741_v25 }
 0x35c   : > { %v1749_v37 = vpop.f32.mrb[30].mxu1  ;;  %v1911_v15 = vpop.f32.mrb[38].mxu0 }
 0x35d   : > { %v7496_v38 = vpack.c.bf16 %v1749_v37, %v1743_v33  ;;  %v7504_v39 = vpack.c.bf16 %v1911_v15, %v1905_v34  ;;  %v1751_v20 = vpop.f32.mrb[31].mxu1  ;;  %v1913_v40 = vpop.f32.mrb[39].mxu0  ;;  %v2745_v33 = vld [vmem:[#allocation10 + $0x2a8] sm:$0xff]  ;;  %v2747_v34 = vld [vmem:[#allocation10 + $0x2b8] sm:$0xff] }
 0x35e   : > { %v7494_v29 = vpack.c.bf16 %v1751_v20, %v1745_v35  ;;  %v7502_v42 = vpack.c.bf16 %v1913_v40, %v1907_v36  ;;  %v2170_v35 = vld [vmem:[%s11336_s5] sm:$0xff]  ;;  %v9998_v36 = vld [vmem:[%s9639_s24 + $0x8] sm:$0xff]  ;;  %v7598_v15 = vpack.c.bf16 %v2747_v34, %v2745_v33  ;;  %v9334_v20 = vmov 0   ;;  %v2775_v33 = vld [vmem:[#allocation10 + $0x398] sm:$0xff] }
 0x35f   : > { %8969 = vset.pattern.permute.xlu0 %v9334_v20  ;;  %v2749_v40 = vld [vmem:[#allocation10 + $0x2c8] sm:$0xff]  ;;  %8970 = vset.pattern.permute.xlu1 %v9334_v20  ;;  %v2772_v20 = vld [vmem:[#allocation10 + $0x380] sm:$0xff] }
 0x360   : > { %7495 = vmatprep.subr.bf16.mxu0 %v7494_v29  ;;  %v2751_v29 = vld [vmem:[#allocation10 + $0x2d8] sm:$0xff]  ;;  %2176 = vperm.xlu0 %8969, %v2170_v35   ;;  %v2171_v34 = vld [vmem:[%s11336_s5 + $0x8] sm:$0xff] }
 0x361   : > { %7497 = vmatpush1.bf16.msra.mxu0 %v7496_v38  ;;  %v2744_v38 = vld [vmem:[#allocation10 + $0x2a0] sm:$0xff]  ;;  %v7602_v6 = vpack.c.bf16 %v2751_v29, %v2749_v40  ;;  %v2774_v40 = vld [vmem:[#allocation10 + $0x390] sm:$0xff] }
 0x362   : > { %7499 = vmatprep.subr.bf16.mxu0 %v7498_v32  ;;  %v2742_v32 = vld [vmem:[#allocation10 + $0x290] sm:$0xff]  ;;  %v7628_v48 = vpack.c.bf16 %v2774_v40, %v2772_v20  ;;  %v2571_v40 = vld [vmem:[#allocation10 + $0x40] sm:$0xff] }
 0x363   : > { %v7596_v37 = vpack.c.bf16 %v2742_v32, %v2740_v31  ;;  %v2770_v31 = vld [vmem:[#allocation10 + $0x370] sm:$0xff]  ;;  %v2773_v32 = vld [vmem:[#allocation10 + $0x388] sm:$0xff] }
 0x364   : > { %2181 = vperm.xlu0 %8969, %v2171_v34   ;;  %v2572_v34 = vld [vmem:[#allocation10 + $0x48] sm:$0xff] }
 0x365   : > { %7501 = vmatpush1.bf16.msra.mxu0 %v7500_v26  ;;  %v2095_v26 = vld [vmem:[#allocation11 + $0x48] sm:$0xff] }
 0x366   : > { %7503 = vmatprep.subr.bf16.mxu0 %v7502_v42 }
 0x369   : > { %7505 = vmatpush1.bf16.msra.mxu0 %v7504_v39  ;;  %v2746_v39 = vld [vmem:[#allocation10 + $0x2b0] sm:$0xff] }
 0x36a   : > { %7579 = vmatprep.subr.bf16.mxu0 %v7578_v10  ;;  %v7600_v42 = vpack.c.bf16 %v2746_v39, %v2744_v38  ;;  %v2750_v10 = vld [vmem:[#allocation10 + $0x2d0] sm:$0xff]  ;;  %v7626_v39 = vpack.c.bf16 %v2775_v33, %v2773_v32  ;;  %v2567_v32 = vld [vmem:[#allocation10 + $0x20] sm:$0xff] }
 0x36b   : > { %v7604_v11 = vpack.c.bf16 %v2750_v10, %v2748_v46  ;;  %v2172_v46 = vld [vmem:[%s11336_s5 + $0x10] sm:$0xff] }
 0x36c   : > { %2271 = vmatmul.mubr.f32.vlgmr.msra.gmra.mrb[40].mxu0 %v2086_v45  ;;  %v2752_v45 = vld [vmem:[#allocation10 + $0x2e0] sm:$0xff]  ;;  %2186 = vperm.xlu1 %8970, %v2172_v46   ;;  %v2569_v33 = vld [vmem:[#allocation10 + $0x30] sm:$0xff] }
 0x36d   : > { %7581 = vmatpush1.bf16.msra.mxu0 %v7580_v51  ;;  %2276 = vmatprep.mubr.f32.mxu0 %v2090_v52  ;;  %v2754_v51 = vld [vmem:[#allocation10 + $0x2f0] sm:$0xff]  ;;  %v2757_v52 = vld [vmem:[#allocation10 + $0x308] sm:$0xff]  ;;  %v7520_v20 = vpack.c.bf16 %v2569_v33, %v2567_v32  ;;  %v3046_v46 = vld [vmem:[#allocation10 + $0x600] sm:$0xff] }
 0x36e   : > { %7583 = vmatprep.subr.bf16.mxu0 %v7582_v44  ;;  %v2759_v44 = vld [vmem:[#allocation10 + $0x318] sm:$0xff]  ;;  %v7608_v53 = vpack.c.bf16 %v2754_v51, %v2752_v45  ;;  %v2778_v45 = vld [vmem:[#allocation10 + $0x3b0] sm:$0xff]  ;;  %v2781_v51 = vld [vmem:[#allocation10 + $0x3c8] sm:$0xff] }
 0x36f   : > { %v7610_v55 = vpack.c.bf16 %v2759_v44, %v2757_v52  ;;  %v2783_v52 = vld [vmem:[#allocation10 + $0x3d8] sm:$0xff]  ;;  %v2564_v44 = vld [vmem:[#allocation10 + $0x8] sm:$0xff]  ;;  %v3058_v32 = vld [vmem:[#allocation10 + $0x660] sm:$0xff] }
 0x370   : > { %2277 = vmatmul.mubr.f32.gmra.mrb[42].mxu0 %v2089_v60  ;;  %v2761_v60 = vld [vmem:[#allocation10 + $0x328] sm:$0xff]  ;;  %v3060_v33 = vld [vmem:[#allocation10 + $0x670] sm:$0xff] }
 0x371   : > { %7585 = vmatpush1.bf16.msra.mxu0 %v7584_v62  ;;  %2282 = vmatprep.mubr.f32.mxu0 %v2093_v63  ;;  %v2763_v62 = vld [vmem:[#allocation10 + $0x338] sm:$0xff]  ;;  %v7612_v63 = vpack.c.bf16 %v2758_v57, %v2756_v0 }
 0x372   : > { %7587 = vmatprep.subr.bf16.mxu0 %v7586_v8  ;;  %v7614_v8 = vpack.c.bf16 %v2763_v62, %v2761_v60 }
 0x374   : > { %2283 = vmatmul.mubr.f32.gmra.mrb[44].mxu0 %v2092_v1  ;;  %v7616_v1 = vpack.c.bf16 %v2762_v12, %v2760_v56  ;;  %v2782_v56 = vld [vmem:[#allocation10 + $0x3d0] sm:$0xff] }
 0x375   : > { %7589 = vmatpush1.bf16.msra.mxu0 %v7588_v18  ;;  %2288 = vmatprep.mubr.f32.mxu0 %v2096_v4  ;;  %v7618_v18 = vpack.c.bf16 %v2767_v13, %v2765_v2  ;;  %v2764_v4 = vld [vmem:[#allocation10 + $0x340] sm:$0xff] }
 0x376   : > { %7591 = vmatprep.subr.bf16.mxu0 %v7590_v22  ;;  %v2766_v22 = vld [vmem:[#allocation10 + $0x350] sm:$0xff]  ;;  %v2563_v13 = vld [vmem:[#allocation10] sm:$0xff] }
 0x377   : > { %v7620_v5 = vpack.c.bf16 %v2766_v22, %v2764_v4  ;;  %v2570_v4 = vld [vmem:[#allocation10 + $0x38] sm:$0xff]  ;;  %v2785_v22 = vld [vmem:[#allocation10 + $0x3e8] sm:$0xff] }
 0x378   : > { %2289 = vmatmul.mubr.f32.gmra.mrb[46].mxu0 %v2095_v26 }
 0x379   : > { %7593 = vmatpush1.bf16.msra.mxu0 %v7592_v27  ;;  %6681 = vmatprep.mubr.msk.f32.mxu0 %vm2548_vm9, %v9998_v36  ;;  %v7622_v27 = vpack.c.bf16 %v2771_v24, %v2769_v23  ;;  %v2787_v23 = vld [vmem:[#allocation10 + $0x3f8] sm:$0xff] }
 0x37a   : > { %7595 = vmatprep.subr.bf16.mxu0 %v7594_v30  ;;  %v2768_v30 = vld [vmem:[#allocation10 + $0x360] sm:$0xff] }
 0x37d   : > { %7597 = vmatpush1.bf16.msra.mxu0 %v7596_v37  ;;  %v7624_v37 = vpack.c.bf16 %v2770_v31, %v2768_v30  ;;  %v7638_v31 = vpack.c.bf16 %v2787_v23, %v2785_v22  ;;  %v3056_v22 = vld [vmem:[#allocation10 + $0x650] sm:$0xff]  ;;  %v2584_v23 = vld [vmem:[#allocation10 + $0xa8] sm:$0xff] }
 0x37e   : > { %7599 = vmatprep.subr.bf16.mxu0 %v7598_v15 }
 0x381   : > { %7601 = vmatpush1.bf16.msra.mxu0 %v7600_v42  ;;  %v2777_v42 = vld [vmem:[#allocation10 + $0x3a8] sm:$0xff] }
 0x382   : > { %7603 = vmatprep.subr.bf16.mxu0 %v7602_v6  ;;  %v2779_v6 = vld [vmem:[#allocation10 + $0x3b8] sm:$0xff] }
 0x385   : > { %7605 = vmatpush1.bf16.msra.mxu0 %v7604_v11  ;;  %v7630_v11 = vpack.c.bf16 %v2779_v6, %v2777_v42  ;;  %v2573_v6 = vld [vmem:[#allocation10 + $0x50] sm:$0xff] }
 0x386   : > { %7607 = vmatprep.subr.bf16.mxu0 %v7606_v50  ;;  %v2776_v50 = vld [vmem:[#allocation10 + $0x3a0] sm:$0xff] }
 0x387   : > { %v7632_v57 = vpack.c.bf16 %v2778_v45, %v2776_v50  ;;  %v3053_v50 = vld [vmem:[#allocation10 + $0x638] sm:$0xff]  ;;  %v2094_v45 = vld [vmem:[#allocation11 + $0x40] sm:$0xff] }
 0x389   : > { %7609 = vmatpush1.bf16.msra.mxu0 %v7608_v53  ;;  %v2566_v53 = vld [vmem:[#allocation10 + $0x18] sm:$0xff] }
 0x38a   : > { %7611 = vmatprep.subr.bf16.mxu0 %v7610_v55  ;;  %v2173_v55 = vld [vmem:[%s11336_s5 + $0x18] sm:$0xff]  ;;  %v7514_v2 = vpack.c.bf16 %v2566_v53, %v2564_v44  ;;  %v2575_v53 = vld [vmem:[#allocation10 + $0x60] sm:$0xff] }
 0x38b   : > { %2191 = vperm.xlu1 %8970, %v2173_v55   ;;  %v2577_v55 = vld [vmem:[#allocation10 + $0x70] sm:$0xff] }
 0x38d   : > { %7613 = vmatpush1.bf16.msra.mxu0 %v7612_v63  ;;  %v7634_v63 = vpack.c.bf16 %v2783_v52, %v2781_v51  ;;  %v7524_v51 = vpack.c.bf16 %v2573_v6, %v2571_v40  ;;  %v2589_v40 = vld [vmem:[#allocation10 + $0xd0] sm:$0xff]  ;;  %v2592_v6 = vld [vmem:[#allocation10 + $0xe8] sm:$0xff] }
 0x38e   : > { %7615 = vmatprep.subr.bf16.mxu0 %v7614_v8  ;;  %v2780_v8 = vld [vmem:[#allocation10 + $0x3c0] sm:$0xff] }
 0x38f   : > { %v7636_v24 = vpack.c.bf16 %v2782_v56, %v2780_v8  ;;  %v3055_v8 = vld [vmem:[#allocation10 + $0x648] sm:$0xff]  ;;  %v3057_v56 = vld [vmem:[#allocation10 + $0x658] sm:$0xff] }
 0x391   : > { %v2055_v25 = vpop.f32.mrb[32].mxu1  ;;  %7617 = vmatpush1.bf16.msra.mxu0 %v7616_v1  ;;  %v2565_v1 = vld [vmem:[#allocation10 + $0x10] sm:$0xff] }
 0x392   : > { %v2057_v26 = vpop.f32.mrb[33].mxu1  ;;  %7619 = vmatprep.subr.bf16.mxu0 %v7618_v18  ;;  %v2568_v18 = vld [vmem:[#allocation10 + $0x28] sm:$0xff] }
 0x393   : > { %v7518_v30 = vpack.c.bf16 %v2570_v4, %v2568_v18  ;;  %v2581_v18 = vld [vmem:[#allocation10 + $0x90] sm:$0xff]  ;;  %v3054_v4 = vld [vmem:[#allocation10 + $0x640] sm:$0xff] }
 0x395   : > { %v2061_v35 = vpop.f32.mrb[34].mxu1  ;;  %7621 = vmatpush1.bf16.msra.mxu0 %v7620_v5  ;;  %v7516_v5 = vpack.c.bf16 %v2565_v1, %v2563_v13  ;;  %v2579_v1 = vld [vmem:[#allocation10 + $0x80] sm:$0xff] }
 0x396   : > { %v7508_v15 = vpack.c.bf16 %v2061_v35, %v2055_v25  ;;  %v2063_v38 = vpop.f32.mrb[35].mxu1  ;;  %7623 = vmatprep.subr.bf16.mxu0 %v7622_v27  ;;  %v2088_v25 = vld [vmem:[#allocation11 + $0x10] sm:$0xff]  ;;  %v2574_v35 = vld [vmem:[#allocation10 + $0x58] sm:$0xff] }
 0x397   : > { %v7506_v29 = vpack.c.bf16 %v2063_v38, %v2057_v26  ;;  %v2784_v26 = vld [vmem:[#allocation10 + $0x3e0] sm:$0xff]  ;;  %v2786_v27 = vld [vmem:[#allocation10 + $0x3f0] sm:$0xff] }
 0x398   : > { %v7640_v38 = vpack.c.bf16 %v2786_v27, %v2784_v26  ;;  %v7716_v26 = vpack.c.bf16 %v3056_v22, %v3054_v4  ;;  %v3077_v4 = vld [vmem:[#allocation10 + $0x6f8] sm:$0xff] }
 0x399   : > { %v2067_v10 = vpop.f32.mrb[36].mxu1  ;;  %7507 = vmatprep.subr.bf16.mxu1 %v7506_v29  ;;  %7625 = vmatpush1.bf16.msra.mxu0 %v7624_v37  ;;  %v3047_v37 = vld [vmem:[#allocation10 + $0x608] sm:$0xff]  ;;  %v7522_v29 = vpack.c.bf16 %v2574_v35, %v2572_v34  ;;  %v2590_v35 = vld [vmem:[#allocation10 + $0xd8] sm:$0xff] }
 0x39a   : > { %v2069_v49 = vpop.f32.mrb[37].mxu1  ;;  %7509 = vmatpush1.bf16.msra.mxu1 %v7508_v15  ;;  %7627 = vmatprep.subr.bf16.mxu0 %v7626_v39  ;;  %v3049_v15 = vld [vmem:[#allocation10 + $0x618] sm:$0xff]  ;;  %v2091_v39 = vld [vmem:[#allocation11 + $0x28] sm:$0xff] }
 0x39b   : > { %v7706_v42 = vpack.c.bf16 %v3049_v15, %v3047_v37  ;;  %v2588_v34 = vld [vmem:[#allocation10 + $0xc8] sm:$0xff]  ;;  %v3065_v15 = vld [vmem:[#allocation10 + $0x698] sm:$0xff] }
 0x39c   : > { %v3063_v37 = vld [vmem:[#allocation10 + $0x688] sm:$0xff] }
 0x39d   : > { %v2073_v0 = vpop.f32.mrb[38].mxu1  ;;  %7629 = vmatpush1.bf16.msra.mxu0 %v7628_v48  ;;  %v2576_v48 = vld [vmem:[#allocation10 + $0x68] sm:$0xff] }
 0x39e   : > { %v7512_v60 = vpack.c.bf16 %v2073_v0, %v2067_v10  ;;  %v2075_v62 = vpop.f32.mrb[39].mxu1  ;;  %7631 = vmatprep.subr.bf16.mxu0 %v7630_v11  ;;  %v3048_v10 = vld [vmem:[#allocation10 + $0x610] sm:$0xff]  ;;  %v3051_v11 = vld [vmem:[#allocation10 + $0x628] sm:$0xff]  ;;  %v3050_v0 = vld [vmem:[#allocation10 + $0x620] sm:$0xff] }
 0x39f   : > { %v7510_v12 = vpack.c.bf16 %v2075_v62, %v2069_v49  ;;  %v2578_v49 = vld [vmem:[#allocation10 + $0x78] sm:$0xff]  ;;  %v7708_v52 = vpack.c.bf16 %v3048_v10, %v3046_v46  ;;  %v2580_v62 = vld [vmem:[#allocation10 + $0x88] sm:$0xff] }
 0x3a0   : > { %v7526_v44 = vpack.c.bf16 %v2578_v49, %v2576_v48  ;;  %v2594_v46 = vld [vmem:[#allocation10 + $0xf8] sm:$0xff]  ;;  %v3067_v10 = vld [vmem:[#allocation10 + $0x6a8] sm:$0xff] }
 0x3a1   : > { %7511 = vmatprep.subr.bf16.mxu1 %v7510_v12  ;;  %7633 = vmatpush1.bf16.msra.mxu0 %v7632_v57  ;;  %v7710_v57 = vpack.c.bf16 %v3053_v50, %v3051_v11  ;;  %v2097_v12 = vld [vmem:[#allocation11 + $0x58] sm:$0xff]  ;;  %v7542_v50 = vpack.c.bf16 %v2594_v46, %v2592_v6  ;;  %v2607_v46 = vld [vmem:[#allocation10 + $0x160] sm:$0xff] }
 0x3a2   : > { %7513 = vmatpush1.bf16.msra.mxu1 %v7512_v60  ;;  %7635 = vmatprep.subr.bf16.mxu0 %v7634_v63  ;;  %v3052_v60 = vld [vmem:[#allocation10 + $0x630] sm:$0xff]  ;;  %v2582_v63 = vld [vmem:[#allocation10 + $0x98] sm:$0xff] }
 0x3a3   : > { %7515 = vmatprep.subr.bf16.mxu1 %v7514_v2  ;;  %v7528_v2 = vpack.c.bf16 %v2577_v55, %v2575_v53  ;;  %v7530_v13 = vpack.c.bf16 %v2582_v63, %v2580_v62  ;;  %v3069_v48 = vld [vmem:[#allocation10 + $0x6b8] sm:$0xff]  ;;  %v2596_v53 = vld [vmem:[#allocation10 + $0x108] sm:$0xff] }
 0x3a4   : > { %v2598_v55 = vld [vmem:[#allocation10 + $0x118] sm:$0xff] }
 0x3a5   : > { %6669 = vmatmul.mubr.msk.f32.vlgmr.msra.gmra.mrb[40].mxu1 %vm463_vm0, %v2088_v25  ;;  %7637 = vmatpush1.bf16.msra.mxu0 %v7636_v24  ;;  %v2586_v24 = vld [vmem:[#allocation10 + $0xb8] sm:$0xff]  ;;  %v3059_v25 = vld [vmem:[#allocation10 + $0x668] sm:$0xff]  ;;  %v7546_v63 = vpack.c.bf16 %v2598_v55, %v2596_v53 }
 0x3a6   : > { %7517 = vmatpush1.bf16.msra.mxu1 %v7516_v5  ;;  %2365 = vmatprep.mubr.f32.mxu1 %v11349_v7  ;;  %v3061_v5 = vld [vmem:[#allocation10 + $0x678] sm:$0xff]  ;;  %v7534_v27 = vpack.c.bf16 %v2586_v24, %v2584_v23  ;;  %v2599_v24 = vld [vmem:[#allocation10 + $0x120] sm:$0xff] }
 0x3a7   : > { %7519 = vmatprep.subr.bf16.mxu1 %v7518_v30  ;;  %7639 = vmatprep.subr.bf16.mxu0 %v7638_v31  ;;  %v2583_v30 = vld [vmem:[#allocation10 + $0xa0] sm:$0xff]  ;;  %v2585_v31 = vld [vmem:[#allocation10 + $0xb0] sm:$0xff] }
 0x3a9   : > { %6670 = vmatmul.mubr.msk.f32.gmra.mrb[42].mxu1 %vm463_vm0, %v2091_v39  ;;  %7641 = vmatpush1.bf16.msra.mxu0 %v7640_v38  ;;  %v7536_v38 = vpack.c.bf16 %v2585_v31, %v2583_v30  ;;  %v7538_v39 = vpack.c.bf16 %v2590_v35, %v2588_v34  ;;  %v2606_v30 = vld [vmem:[#allocation10 + $0x158] sm:$0xff]  ;;  %v3079_v31 = vld [vmem:[#allocation10 + $0x708] sm:$0xff]  ;;  %v2603_v35 = vld [vmem:[#allocation10 + $0x140] sm:$0xff] }
 0x3aa   : > { %7521 = vmatpush1.bf16.msra.mxu1 %v7520_v20  ;;  %2371 = vmatprep.mubr.f32.mxu1 %v11349_v7  ;;  %v2587_v20 = vld [vmem:[#allocation10 + $0xc0] sm:$0xff] }
 0x3ab   : > { %7523 = vmatprep.subr.bf16.mxu1 %v7522_v29  ;;  %7707 = vmatprep.subr.bf16.mxu0 %v7706_v42  ;;  %v3062_v29 = vld [vmem:[#allocation10 + $0x680] sm:$0xff]  ;;  %v7722_v42 = vpack.c.bf16 %v3065_v15, %v3063_v37  ;;  %v7540_v49 = vpack.c.bf16 %v2589_v40, %v2587_v20  ;;  %v2605_v37 = vld [vmem:[#allocation10 + $0x150] sm:$0xff]  ;;  %v2610_v20 = vld [vmem:[#allocation10 + $0x178] sm:$0xff] }
 0x3ac   : > { %6682 = vmatmul.mubr.msk.f32.vlgmr.msra.gmra.mrb[48].mxu0 %vm2547_vm10, %v9900_v54  ;;  %v7712_v54 = vpack.c.bf16 %v3052_v60, %v3050_v0  ;;  %v3071_v0 = vld [vmem:[#allocation10 + $0x6c8] sm:$0xff]  ;;  %v3078_v15 = vld [vmem:[#allocation10 + $0x700] sm:$0xff] }
 0x3ad   : > { %6671 = vmatmul.mubr.msk.f32.gmra.mrb[44].mxu1 %vm463_vm0, %v2094_v45  ;;  %6683 = vmatprep.mubr.msk.f32.mxu0 %vm2550_vm11, %v9909_v47  ;;  %v7714_v47 = vpack.c.bf16 %v3057_v56, %v3055_v8  ;;  %v2591_v45 = vld [vmem:[#allocation10 + $0xe0] sm:$0xff]  ;;  %v2597_v56 = vld [vmem:[#allocation10 + $0x110] sm:$0xff]  ;;  %v3083_v40 = vld [vmem:[#allocation10 + $0x728] sm:$0xff] }
 0x3ae   : > { %7525 = vmatpush1.bf16.msra.mxu1 %v7524_v51  ;;  %7709 = vmatpush1.bf16.msra.mxu0 %v7708_v52  ;;  %v2593_v51 = vld [vmem:[#allocation10 + $0xf0] sm:$0xff]  ;;  %v7726_v52 = vpack.c.bf16 %v3069_v48, %v3067_v10  ;;  %v2595_v8 = vld [vmem:[#allocation10 + $0x100] sm:$0xff] }
 0x3af   : > { %2377 = vmatprep.mubr.f32.mxu1 %v11349_v7  ;;  %7527 = vmatprep.subr.bf16.mxu1 %v7526_v44  ;;  %v3068_v44 = vld [vmem:[#allocation10 + $0x6b0] sm:$0xff]  ;;  %v7544_v60 = vpack.c.bf16 %v2593_v51, %v2591_v45  ;;  %v3082_v48 = vld [vmem:[#allocation10 + $0x720] sm:$0xff]  ;;  %v2614_v45 = vld [vmem:[#allocation10 + $0x198] sm:$0xff] }
 0x3b0   : > { %6684 = vmatmul.mubr.msk.f32.gmra.mrb[50].mxu0 %vm2549_vm12, %v9918_v3  ;;  %7711 = vmatprep.subr.bf16.mxu0 %v7710_v57  ;;  %v7532_v3 = vpack.c.bf16 %v2581_v18, %v2579_v1  ;;  %v3073_v57 = vld [vmem:[#allocation10 + $0x6d8] sm:$0xff]  ;;  %v3075_v18 = vld [vmem:[#allocation10 + $0x6e8] sm:$0xff]  ;;  %v2609_v10 = vld [vmem:[#allocation10 + $0x170] sm:$0xff] }
 0x3b1   : > { %6672 = vmatmul.mubr.msk.f32.gmra.mrb[46].mxu1 %vm463_vm0, %v2097_v12  ;;  %6685 = vmatprep.mubr.msk.f32.mxu0 %vm2552_vm13, %v9927_v9  ;;  %v7718_v9 = vpack.c.bf16 %v3061_v5, %v3059_v25  ;;  %v3070_v12 = vld [vmem:[#allocation10 + $0x6c0] sm:$0xff]  ;;  %v2602_v1 = vld [vmem:[#allocation10 + $0x138] sm:$0xff]  ;;  %v2601_v25 = vld [vmem:[#allocation10 + $0x130] sm:$0xff] }
 0x3b2   : > { %7529 = vmatpush1.bf16.msra.mxu1 %v7528_v2  ;;  %6673 = vmatprep.mubr.msk.f32.mxu1 %vm2548_vm9, %v9998_v36  ;;  %v7730_v2 = vpack.c.bf16 %v3073_v57, %v3071_v0  ;;  %v3074_v5 = vld [vmem:[#allocation10 + $0x6e0] sm:$0xff]  ;;  %v3087_v51 = vld [vmem:[#allocation10 + $0x748] sm:$0xff]  ;;  %v2613_v57 = vld [vmem:[#allocation10 + $0x190] sm:$0xff] }
 0x3b3   : > { %7713 = vmatpush1.bf16.msra.mxu0 %v7712_v54  ;;  %7531 = vmatprep.subr.bf16.mxu1 %v7530_v13  ;;  %v3072_v54 = vld [vmem:[#allocation10 + $0x6d0] sm:$0xff]  ;;  %v2600_v13 = vld [vmem:[#allocation10 + $0x128] sm:$0xff]  ;;  %v2611_v0 = vld [vmem:[#allocation10 + $0x180] sm:$0xff] }
 0x3b4   : > { %6686 = vmatmul.mubr.msk.f32.gmra.mrb[52].mxu0 %vm2551_vm14, %v9936_v14  ;;  %7715 = vmatprep.subr.bf16.mxu0 %v7714_v47  ;;  %v7720_v14 = vpack.c.bf16 %v3060_v33, %v3058_v32  ;;  %v7548_v47 = vpack.c.bf16 %v2597_v56, %v2595_v8  ;;  %v7732_v22 = vpack.c.bf16 %v3072_v54, %v3070_v12  ;;  %v3081_v32 = vld [vmem:[#allocation10 + $0x718] sm:$0xff]  ;;  %v2616_v8 = vld [vmem:[#allocation10 + $0x1a8] sm:$0xff]  ;;  %v6747_v54 = vld [vmem:[%s11336_s5 + $0x30] sm:$0xff] }
 0x3b5   : > { %6687 = vmatprep.mubr.msk.f32.mxu0 %vm2554_vm15, %v9945_v19  ;;  %v3064_v19 = vld [vmem:[#allocation10 + $0x690] sm:$0xff]  ;;  %v7550_v23 = vpack.c.bf16 %v2602_v1, %v2600_v13  ;;  %v2618_v56 = vld [vmem:[#allocation10 + $0x1b8] sm:$0xff]  ;;  %v3091_v12 = vld [vmem:[#allocation10 + $0x768] sm:$0xff]  ;;  %v7564_v13 = vpack.c.bf16 %v2613_v57, %v2611_v0 }
 0x3b6   : > { %7533 = vmatpush1.bf16.msra.mxu1 %v7532_v3  ;;  %v7724_v11 = vpack.c.bf16 %v3064_v19, %v3062_v29  ;;  %v7734_v3 = vpack.c.bf16 %v3077_v4, %v3075_v18  ;;  %v3085_v29 = vld [vmem:[#allocation10 + $0x738] sm:$0xff]  ;;  %v7566_v18 = vpack.c.bf16 %v2618_v56, %v2616_v8  ;;  %v2615_v4 = vld [vmem:[#allocation10 + $0x1a0] sm:$0xff]  ;;  %v2887_v57 = vld [vmem:[#allocation10 + $0x410] sm:$0xff] }
 0x3b7   : > { %7717 = vmatpush1.bf16.msra.mxu0 %v7716_v26  ;;  %7535 = vmatprep.subr.bf16.mxu1 %v7534_v27  ;;  %v3076_v26 = vld [vmem:[#allocation10 + $0x6f0] sm:$0xff]  ;;  %v2604_v27 = vld [vmem:[#allocation10 + $0x148] sm:$0xff]  ;;  %v2885_v0 = vld [vmem:[#allocation10 + $0x400] sm:$0xff] }
 0x3b8   : > { %6688 = vmatmul.mubr.msk.f32.gmra.mrb[54].mxu0 %vm2553_vm1, %v9987_v61  ;;  %7719 = vmatprep.subr.bf16.mxu0 %v7718_v9  ;;  %v3066_v61 = vld [vmem:[#allocation10 + $0x6a0] sm:$0xff]  ;;  %v7552_v9 = vpack.c.bf16 %v2601_v25, %v2599_v24  ;;  %v7736_v33 = vpack.c.bf16 %v3076_v26, %v3074_v5  ;;  %v7554_v34 = vpack.c.bf16 %v2606_v30, %v2604_v27  ;;  %v3092_v24 = vld [vmem:[#allocation10 + $0x770] sm:$0xff]  ;;  %v2620_v25 = vld [vmem:[#allocation10 + $0x1c8] sm:$0xff] }
 0x3b9   : > { %6697 = vmatprep.mubr.msk.f32.mxu0 %vm2548_vm9, %v9998_v36  ;;  %v7728_v62 = vpack.c.bf16 %v3068_v44, %v3066_v61  ;;  %v3089_v61 = vld [vmem:[#allocation10 + $0x758] sm:$0xff]  ;;  %v7560_v44 = vpack.c.bf16 %v2609_v10, %v2607_v46  ;;  %v2625_v46 = vld [vmem:[#allocation10 + $0x1f0] sm:$0xff]  ;;  %v3098_v10 = vld [vmem:[#allocation10 + $0x7a0] sm:$0xff] }
 0x3ba   : > { %7537 = vmatpush1.bf16.msra.mxu1 %v7536_v38  ;;  %v7738_v38 = vpack.c.bf16 %v3081_v32, %v3079_v31  ;;  %v2622_v5 = vld [vmem:[#allocation10 + $0x1d8] sm:$0xff]  ;;  %v2619_v31 = vld [vmem:[#allocation10 + $0x1c0] sm:$0xff]  ;;  %v2890_v8 = vld [vmem:[#allocation10 + $0x428] sm:$0xff] }
 0x3bb   : > { %7721 = vmatpush1.bf16.msra.mxu0 %v7720_v14  ;;  %7539 = vmatprep.subr.bf16.mxu1 %v7538_v39  ;;  %v3080_v14 = vld [vmem:[#allocation10 + $0x710] sm:$0xff]  ;;  %v2608_v39 = vld [vmem:[#allocation10 + $0x168] sm:$0xff]  ;;  %v3097_v26 = vld [vmem:[#allocation10 + $0x798] sm:$0xff] }
 0x3bc   : > { %7723 = vmatprep.subr.bf16.mxu0 %v7722_v42  ;;  %v7556_v42 = vpack.c.bf16 %v2605_v37, %v2603_v35  ;;  %v7740_v19 = vpack.c.bf16 %v3080_v14, %v3078_v15  ;;  %v7558_v6 = vpack.c.bf16 %v2610_v20, %v2608_v39  ;;  %v6748_v27 = vld [vmem:[%s11336_s5 + $0x38] sm:$0xff]  ;;  %v3096_v35 = vld [vmem:[#allocation10 + $0x790] sm:$0xff]  ;;  %v2624_v15 = vld [vmem:[#allocation10 + $0x1e8] sm:$0xff] }
 0x3bd   : > { %v3099_v14 = vld [vmem:[#allocation10 + $0x7a8] sm:$0xff]  ;;  %v3101_v39 = vld [vmem:[#allocation10 + $0x7b8] sm:$0xff] }
 0x3be   : > { %7541 = vmatpush1.bf16.msra.mxu1 %v7540_v49  ;;  %v7742_v49 = vpack.c.bf16 %v3085_v29, %v3083_v40  ;;  %v6746_v20 = vld [vmem:[%s11336_s5 + $0x28] sm:$0xff]  ;;  %v6836_v40 = vld [vmem:[%s11336_s5 + $0x50] sm:$0xff]  ;;  %v2892_v56 = vld [vmem:[#allocation10 + $0x438] sm:$0xff] }
 0x3bf   : > { %7725 = vmatpush1.bf16.msra.mxu0 %v7724_v11  ;;  %7543 = vmatprep.subr.bf16.mxu1 %v7542_v50  ;;  %v3084_v11 = vld [vmem:[#allocation10 + $0x730] sm:$0xff]  ;;  %v2612_v50 = vld [vmem:[#allocation10 + $0x188] sm:$0xff] }
 0x3c0   : > { %7727 = vmatprep.subr.bf16.mxu0 %v7726_v52  ;;  %v6745_v52 = vld [vmem:[%s11336_s5 + $0x20] sm:$0xff]  ;;  %v7744_v53 = vpack.c.bf16 %v3084_v11, %v3082_v48  ;;  %v7562_v55 = vpack.c.bf16 %v2614_v45, %v2612_v50  ;;  %4109 = vperm.xlu0 %8969, %v6746_v20   ;;  %v3100_v48 = vld [vmem:[#allocation10 + $0x7b0] sm:$0xff]  ;;  %v2886_v11 = vld [vmem:[#allocation10 + $0x408] sm:$0xff] }
 0x3c1   : > { %4104 = vperm.xlu1 %8970, %v6745_v52   ;;  %v2888_v50 = vld [vmem:[#allocation10 + $0x418] sm:$0xff]  ;;  %v3103_v45 = vld [vmem:[#allocation10 + $0x7c8] sm:$0xff]  ;;  %v6834_v52 = vld [vmem:[%s11336_s5 + $0x40] sm:$0xff] }
 0x3c2   : > { %7545 = vmatpush1.bf16.msra.mxu1 %v7544_v60  ;;  %v3086_v60 = vld [vmem:[#allocation10 + $0x740] sm:$0xff]  ;;  %v10096_v20 = vld [vmem:[%s9639_s24 + $0x28] sm:$0xff] }
 0x3c3   : > { %7729 = vmatpush1.bf16.msra.mxu0 %v7728_v62  ;;  %7547 = vmatprep.subr.bf16.mxu1 %v7546_v63  ;;  %v7746_v62 = vpack.c.bf16 %v3089_v61, %v3087_v51  ;;  %v3088_v63 = vld [vmem:[#allocation10 + $0x750] sm:$0xff]  ;;  %v3105_v51 = vld [vmem:[#allocation10 + $0x7d8] sm:$0xff]  ;;  %v6835_v61 = vld [vmem:[%s11336_s5 + $0x48] sm:$0xff] }
 0x3c4   : > { %7731 = vmatprep.subr.bf16.mxu0 %v7730_v2  ;;  %v3093_v2 = vld [vmem:[#allocation10 + $0x778] sm:$0xff]  ;;  %v7748_v1 = vpack.c.bf16 %v3088_v63, %v3086_v60  ;;  %6046 = vperm.xlu0 %8969, %v6835_v61   ;;  %v3102_v60 = vld [vmem:[#allocation10 + $0x7c0] sm:$0xff]  ;;  %v3104_v63 = vld [vmem:[#allocation10 + $0x7d0] sm:$0xff] }
 0x3c5   : > { %4114 = vperm.xlu1 %8970, %v6747_v54   ;;  %v6837_v54 = vld [vmem:[%s11336_s5 + $0x58] sm:$0xff] }
 0x3c6   : > { %7549 = vmatpush1.bf16.msra.mxu1 %v7548_v47  ;;  %v2617_v47 = vld [vmem:[#allocation10 + $0x1b0] sm:$0xff]  ;;  %v10111_v61 = vld [vmem:[%s9639_s24 + $0x38] sm:$0xff] }
 0x3c7   : > { %7733 = vmatpush1.bf16.msra.mxu0 %v7732_v22  ;;  %7551 = vmatprep.subr.bf16.mxu1 %v7550_v23  ;;  %v3090_v22 = vld [vmem:[#allocation10 + $0x760] sm:$0xff]  ;;  %v7750_v23 = vpack.c.bf16 %v3093_v2, %v3091_v12  ;;  %v7568_v30 = vpack.c.bf16 %v2617_v47, %v2615_v4  ;;  %v3107_v12 = vld [vmem:[#allocation10 + $0x7e8] sm:$0xff]  ;;  %v3109_v2 = vld [vmem:[#allocation10 + $0x7f8] sm:$0xff] }
 0x3c8   : > { %7735 = vmatprep.subr.bf16.mxu0 %v7734_v3  ;;  %v3095_v3 = vld [vmem:[#allocation10 + $0x788] sm:$0xff]  ;;  %v7752_v32 = vpack.c.bf16 %v3092_v24, %v3090_v22  ;;  %6056 = vperm.xlu0 %8969, %v6837_v54   ;;  %v2889_v4 = vld [vmem:[#allocation10 + $0x420] sm:$0xff]  ;;  %v2891_v47 = vld [vmem:[#allocation10 + $0x430] sm:$0xff] }
 0x3c9   : > { %4119 = vperm.xlu1 %8970, %v6748_v27   ;;  %v7754_v37 = vpack.c.bf16 %v3097_v26, %v3095_v3  ;;  %v3106_v22 = vld [vmem:[#allocation10 + $0x7e0] sm:$0xff]  ;;  %v3108_v24 = vld [vmem:[#allocation10 + $0x7f0] sm:$0xff]  ;;  %v3369_v26 = vld [vmem:[#allocation10 + $0xa08] sm:$0xff] }
 0x3ca   : > { %7553 = vmatpush1.bf16.msra.mxu1 %v7552_v9  ;;  %v7570_v9 = vpack.c.bf16 %v2622_v5, %v2620_v25  ;;  %v2894_v25 = vld [vmem:[#allocation10 + $0x448] sm:$0xff]  ;;  %v2896_v5 = vld [vmem:[#allocation10 + $0x458] sm:$0xff]  ;;  %v10078_v3 = vld [vmem:[%s9639_s24] sm:$0xff] }
 0x3cb   : > { %7737 = vmatpush1.bf16.msra.mxu0 %v7736_v33  ;;  %7555 = vmatprep.subr.bf16.mxu1 %v7554_v34  ;;  %v2621_v33 = vld [vmem:[#allocation10 + $0x1d0] sm:$0xff]  ;;  %v3094_v34 = vld [vmem:[#allocation10 + $0x780] sm:$0xff]  ;;  %v3371_v27 = vld [vmem:[#allocation10 + $0xa18] sm:$0xff] }
 0x3cc   : > { %7739 = vmatprep.subr.bf16.mxu0 %v7738_v38  ;;  %v2626_v38 = vld [vmem:[#allocation10 + $0x1f8] sm:$0xff]  ;;  %v7572_v29 = vpack.c.bf16 %v2621_v33, %v2619_v31  ;;  %v7648_v31 = vpack.c.bf16 %v2891_v47, %v2889_v4  ;;  %v7834_v33 = vpack.c.bf16 %v3371_v27, %v3369_v26  ;;  %v3381_v54 = vld [vmem:[#allocation10 + $0xa68] sm:$0xff]  ;;  %v2905_v47 = vld [vmem:[#allocation10 + $0x4a0] sm:$0xff] }
 0x3cd   : > { %6051 = vperm.xlu1 %8970, %v6836_v40   ;;  %v3373_v40 = vld [vmem:[#allocation10 + $0xa28] sm:$0xff]  ;;  %v3387_v27 = vld [vmem:[#allocation10 + $0xa98] sm:$0xff] }
 0x3ce   : > { %7557 = vmatpush1.bf16.msra.mxu1 %v7556_v42  ;;  %v2623_v42 = vld [vmem:[#allocation10 + $0x1e0] sm:$0xff]  ;;  %v3385_v26 = vld [vmem:[#allocation10 + $0xa88] sm:$0xff] }
 0x3cf   : > { %7741 = vmatpush1.bf16.msra.mxu0 %v7740_v19  ;;  %7559 = vmatprep.subr.bf16.mxu1 %v7558_v6  ;;  %v7756_v19 = vpack.c.bf16 %v3096_v35, %v3094_v34  ;;  %v7574_v6 = vpack.c.bf16 %v2626_v38, %v2624_v15  ;;  %v2893_v34 = vld [vmem:[#allocation10 + $0x440] sm:$0xff]  ;;  %v2895_v35 = vld [vmem:[#allocation10 + $0x450] sm:$0xff] }
 0x3d0   : > { %7743 = vmatprep.subr.bf16.mxu0 %v7742_v49  ;;  %v7758_v49 = vpack.c.bf16 %v3101_v39, %v3099_v14  ;;  %v10090_v15 = vld [vmem:[%s9639_s24 + $0x10] sm:$0xff]  ;;  %v2898_v14 = vld [vmem:[#allocation10 + $0x468] sm:$0xff]  ;;  %v2900_v39 = vld [vmem:[#allocation10 + $0x478] sm:$0xff] }
 0x3d1   : > { %6041 = vperm.xlu1 %8970, %v6834_v52   ;;  %v3370_v38 = vld [vmem:[#allocation10 + $0xa10] sm:$0xff]  ;;  %v3377_v52 = vld [vmem:[#allocation10 + $0xa48] sm:$0xff] }
 0x3d2   : > { %7561 = vmatpush1.bf16.msra.mxu1 %v7560_v44  ;;  %v7576_v44 = vpack.c.bf16 %v2625_v46, %v2623_v42  ;;  %v7652_v42 = vpack.c.bf16 %v2895_v35, %v2893_v34  ;;  %v2897_v46 = vld [vmem:[#allocation10 + $0x460] sm:$0xff]  ;;  %v2911_v34 = vld [vmem:[#allocation10 + $0x4d0] sm:$0xff] }
 0x3d3   : > { %7745 = vmatpush1.bf16.msra.mxu0 %v7744_v53  ;;  %7563 = vmatprep.subr.bf16.mxu1 %v7562_v55  ;;  %v7760_v53 = vpack.c.bf16 %v3100_v48, %v3098_v10  ;;  %v7642_v55 = vpack.c.bf16 %v2888_v50, %v2886_v11  ;;  %v2899_v10 = vld [vmem:[#allocation10 + $0x470] sm:$0xff]  ;;  %v3372_v48 = vld [vmem:[#allocation10 + $0xa20] sm:$0xff] }
 0x3d4   : > { %7747 = vmatprep.subr.bf16.mxu0 %v7746_v62  ;;  %v7762_v62 = vpack.c.bf16 %v3105_v51, %v3103_v45  ;;  %v3374_v50 = vld [vmem:[#allocation10 + $0xa30] sm:$0xff]  ;;  %v2902_v45 = vld [vmem:[#allocation10 + $0x488] sm:$0xff]  ;;  %v2904_v51 = vld [vmem:[#allocation10 + $0x498] sm:$0xff] }
 0x3d5   : > { %v3384_v35 = vld [vmem:[#allocation10 + $0xa80] sm:$0xff] }
 0x3d6   : > { %7565 = vmatpush1.bf16.msra.mxu1 %v7564_v13  ;;  %v7644_v13 = vpack.c.bf16 %v2887_v57, %v2885_v0  ;;  %v7658_v0 = vpack.c.bf16 %v2904_v51, %v2902_v45  ;;  %v2901_v57 = vld [vmem:[#allocation10 + $0x480] sm:$0xff]  ;;  %v3390_v45 = vld [vmem:[#allocation10 + $0xab0] sm:$0xff]  ;;  %v2918_v51 = vld [vmem:[#allocation10 + $0x508] sm:$0xff] }
 0x3d7   : > { %7749 = vmatpush1.bf16.msra.mxu0 %v7748_v1  ;;  %7567 = vmatprep.subr.bf16.mxu1 %v7566_v18  ;;  %v7764_v1 = vpack.c.bf16 %v3104_v63, %v3102_v60  ;;  %v7646_v18 = vpack.c.bf16 %v2892_v56, %v2890_v8  ;;  %v2903_v60 = vld [vmem:[#allocation10 + $0x490] sm:$0xff] }
 0x3d8   : > { %7751 = vmatprep.subr.bf16.mxu0 %v7750_v23  ;;  %v7766_v23 = vpack.c.bf16 %v3109_v2, %v3107_v12  ;;  %v10120_v63 = vld [vmem:[%s9639_s24 + $0x30] sm:$0xff]  ;;  %v2906_v12 = vld [vmem:[#allocation10 + $0x4a8] sm:$0xff]  ;;  %v2908_v2 = vld [vmem:[#allocation10 + $0x4b8] sm:$0xff] }
 0x3d9   : > { %v3378_v56 = vld [vmem:[#allocation10 + $0xa50] sm:$0xff]  ;;  %v7662_v4 = vpack.c.bf16 %v2908_v2, %v2906_v12  ;;  %v2922_v2 = vld [vmem:[#allocation10 + $0x528] sm:$0xff] }
 0x3da   : > { %7569 = vmatpush1.bf16.msra.mxu1 %v7568_v30  ;;  %v10084_v30 = vld [vmem:[%s9639_s24 + $0x18] sm:$0xff]  ;;  %v3394_v12 = vld [vmem:[#allocation10 + $0xad0] sm:$0xff] }
 0x3db   : > { %7753 = vmatpush1.bf16.msra.mxu0 %v7752_v32  ;;  %7571 = vmatprep.subr.bf16.mxu1 %v7570_v9  ;;  %v7768_v32 = vpack.c.bf16 %v3108_v24, %v3106_v22  ;;  %v7650_v9 = vpack.c.bf16 %v2896_v5, %v2894_v25  ;;  %v2907_v22 = vld [vmem:[#allocation10 + $0x4b0] sm:$0xff]  ;;  %v2910_v5 = vld [vmem:[#allocation10 + $0x4c8] sm:$0xff] }
 0x3dc   : > { %7755 = vmatprep.subr.bf16.mxu0 %v7754_v37  ;;  %v3368_v37 = vld [vmem:[#allocation10 + $0xa00] sm:$0xff]  ;;  %v3382_v25 = vld [vmem:[#allocation10 + $0xa70] sm:$0xff] }
 0x3de   : > { %7573 = vmatpush1.bf16.msra.mxu1 %v7572_v29  ;;  %v3375_v29 = vld [vmem:[#allocation10 + $0xa38] sm:$0xff] }
 0x3df   : > { %7757 = vmatpush1.bf16.msra.mxu0 %v7756_v19  ;;  %7575 = vmatprep.subr.bf16.mxu1 %v7574_v6  ;;  %v7836_v19 = vpack.c.bf16 %v3370_v38, %v3368_v37  ;;  %v7654_v6 = vpack.c.bf16 %v2900_v39, %v2898_v14  ;;  %v7838_v11 = vpack.c.bf16 %v3375_v29, %v3373_v40  ;;  %v3386_v38 = vld [vmem:[#allocation10 + $0xa90] sm:$0xff]  ;;  %v2914_v14 = vld [vmem:[#allocation10 + $0x4e8] sm:$0xff]  ;;  %v2916_v39 = vld [vmem:[#allocation10 + $0x4f8] sm:$0xff] }
 0x3e0   : > { %7759 = vmatprep.subr.bf16.mxu0 %v7758_v49  ;;  %v10102_v49 = vld [vmem:[%s9639_s24 + $0x20] sm:$0xff]  ;;  %v7850_v37 = vpack.c.bf16 %v3387_v27, %v3385_v26  ;;  %v3389_v40 = vld [vmem:[#allocation10 + $0xaa8] sm:$0xff]  ;;  %v3391_v29 = vld [vmem:[#allocation10 + $0xab8] sm:$0xff] }
 0x3e1   : > { %v2928_v26 = vld [vmem:[#allocation10 + $0x558] sm:$0xff]  ;;  %v3401_v27 = vld [vmem:[#allocation10 + $0xb08] sm:$0xff] }
 0x3e2   : > { %7577 = vmatpush1.bf16.msra.mxu1 %v7576_v44  ;;  %v3379_v44 = vld [vmem:[#allocation10 + $0xa58] sm:$0xff] }
 0x3e3   : > { %7761 = vmatpush1.bf16.msra.mxu0 %v7760_v53  ;;  %7643 = vmatprep.subr.bf16.mxu1 %v7642_v55  ;;  %v7656_v53 = vpack.c.bf16 %v2899_v10, %v2897_v46  ;;  %v7840_v55 = vpack.c.bf16 %v3374_v50, %v3372_v48  ;;  %v7842_v8 = vpack.c.bf16 %v3379_v44, %v3377_v52  ;;  %v2913_v10 = vld [vmem:[#allocation10 + $0x4e0] sm:$0xff]  ;;  %v2915_v48 = vld [vmem:[#allocation10 + $0x4f0] sm:$0xff]  ;;  %v2920_v52 = vld [vmem:[#allocation10 + $0x518] sm:$0xff] }
 0x3e4   : > { %7763 = vmatprep.subr.bf16.mxu0 %v7762_v62  ;;  %v3376_v62 = vld [vmem:[#allocation10 + $0xa40] sm:$0xff]  ;;  %v7670_v46 = vpack.c.bf16 %v2916_v39, %v2914_v14  ;;  %v7854_v50 = vpack.c.bf16 %v3391_v29, %v3389_v40  ;;  %v3393_v44 = vld [vmem:[#allocation10 + $0xac8] sm:$0xff]  ;;  %v3402_v14 = vld [vmem:[#allocation10 + $0xb10] sm:$0xff] }
 0x3e5   : > { %6674 = vmatmul.mubr.msk.f32.vlgmr.msra.gmra.mrb[48].mxu1 %vm2547_vm10, %v10078_v3  ;;  %v2930_v39 = vld [vmem:[#allocation10 + $0x568] sm:$0xff]  ;;  %v2932_v40 = vld [vmem:[#allocation10 + $0x578] sm:$0xff] }
 0x3e6   : > { %6675 = vmatprep.mubr.msk.f32.mxu1 %vm2550_vm11, %v10084_v30  ;;  %7645 = vmatpush1.bf16.msra.mxu1 %v7644_v13  ;;  %v3383_v13 = vld [vmem:[#allocation10 + $0xa78] sm:$0xff]  ;;  %v3405_v29 = vld [vmem:[#allocation10 + $0xb28] sm:$0xff] }
 0x3e7   : > { %7765 = vmatpush1.bf16.msra.mxu0 %v7764_v1  ;;  %7647 = vmatprep.subr.bf16.mxu1 %v7646_v18  ;;  %v7660_v1 = vpack.c.bf16 %v2903_v60, %v2901_v57  ;;  %v7844_v18 = vpack.c.bf16 %v3378_v56, %v3376_v62  ;;  %v7846_v24 = vpack.c.bf16 %v3383_v13, %v3381_v54  ;;  %v2917_v60 = vld [vmem:[#allocation10 + $0x500] sm:$0xff]  ;;  %v2919_v62 = vld [vmem:[#allocation10 + $0x510] sm:$0xff]  ;;  %v2924_v54 = vld [vmem:[#allocation10 + $0x538] sm:$0xff] }
 0x3e8   : > { %7767 = vmatprep.subr.bf16.mxu0 %v7766_v23  ;;  %v3380_v23 = vld [vmem:[#allocation10 + $0xa60] sm:$0xff]  ;;  %v7674_v57 = vpack.c.bf16 %v2920_v52, %v2918_v51  ;;  %v3397_v13 = vld [vmem:[#allocation10 + $0xae8] sm:$0xff]  ;;  %v3406_v51 = vld [vmem:[#allocation10 + $0xb30] sm:$0xff] }
 0x3e9   : > { %6676 = vmatmul.mubr.msk.f32.gmra.mrb[50].mxu1 %vm2549_vm12, %v10090_v15  ;;  %v2934_v52 = vld [vmem:[#allocation10 + $0x588] sm:$0xff] }
 0x3ea   : > { %6677 = vmatprep.mubr.msk.f32.mxu1 %vm2552_vm13, %v10096_v20  ;;  %7649 = vmatpush1.bf16.msra.mxu1 %v7648_v31  ;;  %v7664_v31 = vpack.c.bf16 %v2907_v22, %v2905_v47  ;;  %v7678_v47 = vpack.c.bf16 %v2924_v54, %v2922_v2  ;;  %v2921_v22 = vld [vmem:[#allocation10 + $0x520] sm:$0xff]  ;;  %v3410_v2 = vld [vmem:[#allocation10 + $0xb50] sm:$0xff]  ;;  %v2938_v54 = vld [vmem:[#allocation10 + $0x5a8] sm:$0xff] }
 0x3eb   : > { %7769 = vmatpush1.bf16.msra.mxu0 %v7768_v32  ;;  %7651 = vmatprep.subr.bf16.mxu1 %v7650_v9  ;;  %v7848_v32 = vpack.c.bf16 %v3382_v25, %v3380_v23  ;;  %v2923_v23 = vld [vmem:[#allocation10 + $0x530] sm:$0xff] }
 0x3ec   : > { %7835 = vmatprep.subr.bf16.mxu0 %v7834_v33  ;;  %v2909_v33 = vld [vmem:[#allocation10 + $0x4c0] sm:$0xff] }
 0x3ed   : > { %6678 = vmatmul.mubr.msk.f32.gmra.mrb[52].mxu1 %vm2551_vm14, %v10102_v49 }
 0x3ee   : > { %6698 = vmatmul.mubr.msk.f32.vlgmr.msra.gmra.mrb[56].mxu0 %vm2547_vm10, %v10078_v3  ;;  %6679 = vmatprep.mubr.msk.f32.mxu1 %vm2554_vm15, %v10111_v61 }
 0x3ef   : > { %7653 = vmatpush1.bf16.msra.mxu1 %v7652_v42  ;;  %6699 = vmatprep.mubr.msk.f32.mxu0 %vm2550_vm11, %v10084_v30  ;;  %v10144_v42 = vld [vmem:[%s9639_s24 + $0x8] sm:$0xff] }
 0x3f0   : > { %7837 = vmatpush1.bf16.msra.mxu0 %v7836_v19  ;;  %7655 = vmatprep.subr.bf16.mxu1 %v7654_v6  ;;  %v7668_v19 = vpack.c.bf16 %v2911_v34, %v2909_v33  ;;  %v7852_v6 = vpack.c.bf16 %v3386_v38, %v3384_v35  ;;  %v2925_v34 = vld [vmem:[#allocation10 + $0x540] sm:$0xff]  ;;  %v2927_v35 = vld [vmem:[#allocation10 + $0x550] sm:$0xff] }
 0x3f1   : > { %6680 = vmatmul.mubr.msk.f32.gmra.mrb[54].mxu1 %vm2553_vm1, %v10120_v63  ;;  %7839 = vmatprep.subr.bf16.mxu0 %v7838_v11  ;;  %v3388_v11 = vld [vmem:[#allocation10 + $0xaa0] sm:$0xff] }
 0x3f2   : > { %6700 = vmatmul.mubr.msk.f32.gmra.mrb[58].mxu0 %vm2549_vm12, %v10090_v15  ;;  %6689 = vmatprep.mubr.msk.f32.mxu1 %vm2548_vm9, %v9998_v36  ;;  %v2912_v36 = vld [vmem:[#allocation10 + $0x4d8] sm:$0xff] }
 0x3f3   : > { %7657 = vmatpush1.bf16.msra.mxu1 %v7656_v53  ;;  %6701 = vmatprep.mubr.msk.f32.mxu0 %vm2552_vm13, %v10096_v20  ;;  %v7666_v9 = vpack.c.bf16 %v2912_v36, %v2910_v5  ;;  %v3395_v53 = vld [vmem:[#allocation10 + $0xad8] sm:$0xff]  ;;  %v3398_v5 = vld [vmem:[#allocation10 + $0xaf0] sm:$0xff]  ;;  %v2926_v36 = vld [vmem:[#allocation10 + $0x548] sm:$0xff] }
 0x3f4   : > { %7841 = vmatpush1.bf16.msra.mxu0 %v7840_v55  ;;  %7659 = vmatprep.subr.bf16.mxu1 %v7658_v0  ;;  %v7672_v55 = vpack.c.bf16 %v2915_v48, %v2913_v10  ;;  %v7856_v0 = vpack.c.bf16 %v3390_v45, %v3388_v11  ;;  %v7858_v56 = vpack.c.bf16 %v3395_v53, %v3393_v44  ;;  %v2929_v48 = vld [vmem:[#allocation10 + $0x560] sm:$0xff]  ;;  %v2931_v11 = vld [vmem:[#allocation10 + $0x570] sm:$0xff]  ;;  %v2936_v44 = vld [vmem:[#allocation10 + $0x598] sm:$0xff] }
 0x3f5   : > { %7843 = vmatprep.subr.bf16.mxu0 %v7842_v8  ;;  %v3392_v8 = vld [vmem:[#allocation10 + $0xac0] sm:$0xff]  ;;  %v7682_v33 = vpack.c.bf16 %v2928_v26, %v2926_v36  ;;  %v7686_v10 = vpack.c.bf16 %v2932_v40, %v2930_v39  ;;  %v3409_v53 = vld [vmem:[#allocation10 + $0xb48] sm:$0xff]  ;;  %v3414_v36 = vld [vmem:[#allocation10 + $0xb70] sm:$0xff] }
 0x3f6   : > { %6702 = vmatmul.mubr.msk.f32.gmra.mrb[60].mxu0 %vm2551_vm14, %v10102_v49  ;;  %v2942_v26 = vld [vmem:[#allocation10 + $0x5c8] sm:$0xff]  ;;  %v3418_v39 = vld [vmem:[#allocation10 + $0xb90] sm:$0xff] }
 0x3f7   : > { %7661 = vmatpush1.bf16.msra.mxu1 %v7660_v1  ;;  %6703 = vmatprep.mubr.msk.f32.mxu0 %vm2554_vm15, %v10111_v61  ;;  %v3399_v1 = vld [vmem:[#allocation10 + $0xaf8] sm:$0xff]  ;;  %v2946_v40 = vld [vmem:[#allocation10 + $0x5e8] sm:$0xff] }
 0x3f8   : > { %7845 = vmatpush1.bf16.msra.mxu0 %v7844_v18  ;;  %7663 = vmatprep.subr.bf16.mxu1 %v7662_v4  ;;  %v7676_v18 = vpack.c.bf16 %v2919_v62, %v2917_v60  ;;  %v7860_v4 = vpack.c.bf16 %v3394_v12, %v3392_v8  ;;  %v7862_v25 = vpack.c.bf16 %v3399_v1, %v3397_v13  ;;  %v2933_v62 = vld [vmem:[#allocation10 + $0x580] sm:$0xff]  ;;  %v2935_v8 = vld [vmem:[#allocation10 + $0x590] sm:$0xff]  ;;  %v2940_v13 = vld [vmem:[#allocation10 + $0x5b8] sm:$0xff] }
 0x3f9   : > { %7847 = vmatprep.subr.bf16.mxu0 %v7846_v24  ;;  %v3396_v24 = vld [vmem:[#allocation10 + $0xae0] sm:$0xff]  ;;  %v7690_v60 = vpack.c.bf16 %v2936_v44, %v2934_v52  ;;  %v3413_v1 = vld [vmem:[#allocation10 + $0xb68] sm:$0xff]  ;;  %v3422_v52 = vld [vmem:[#allocation10 + $0xbb0] sm:$0xff] }
 0x3fa   : > { %6704 = vmatmul.mubr.msk.f32.gmra.mrb[62].mxu0 %vm2553_vm1, %v10120_v63  ;;  %v3208_v44 = vld [vmem:[#allocation10 + $0x808] sm:$0xff] }
 0x3fb   : > { %7665 = vmatpush1.bf16.msra.mxu1 %v7664_v31  ;;  %6713 = vmatprep.mubr.msk.f32.mxu0 %vm2548_vm9, %v10144_v42  ;;  %v3403_v31 = vld [vmem:[#allocation10 + $0xb18] sm:$0xff] }
 0x3fc   : > { %7849 = vmatpush1.bf16.msra.mxu0 %v7848_v32  ;;  %7667 = vmatprep.subr.bf16.mxu1 %v7666_v9  ;;  %v7680_v32 = vpack.c.bf16 %v2923_v23, %v2921_v22  ;;  %v7864_v9 = vpack.c.bf16 %v3398_v5, %v3396_v24  ;;  %v7866_v38 = vpack.c.bf16 %v3403_v31, %v3401_v27  ;;  %v2937_v23 = vld [vmem:[#allocation10 + $0x5a0] sm:$0xff]  ;;  %v2939_v24 = vld [vmem:[#allocation10 + $0x5b0] sm:$0xff]  ;;  %v2944_v27 = vld [vmem:[#allocation10 + $0x5d8] sm:$0xff] }
 0x3fd   : > { %7851 = vmatprep.subr.bf16.mxu0 %v7850_v37  ;;  %v3400_v37 = vld [vmem:[#allocation10 + $0xb00] sm:$0xff]  ;;  %v7694_v22 = vpack.c.bf16 %v2940_v13, %v2938_v54  ;;  %v3417_v31 = vld [vmem:[#allocation10 + $0xb88] sm:$0xff]  ;;  %v3426_v54 = vld [vmem:[#allocation10 + $0xbd0] sm:$0xff] }
 0x3fe   : > { %v3212_v13 = vld [vmem:[#allocation10 + $0x828] sm:$0xff] }
 0x3ff   : > { %7669 = vmatpush1.bf16.msra.mxu1 %v7668_v19  ;;  %v3407_v19 = vld [vmem:[#allocation10 + $0xb38] sm:$0xff] }
 0x400   : > { %7853 = vmatpush1.bf16.msra.mxu0 %v7852_v6  ;;  %7671 = vmatprep.subr.bf16.mxu1 %v7670_v46  ;;  %v7684_v6 = vpack.c.bf16 %v2927_v35, %v2925_v34  ;;  %v7868_v46 = vpack.c.bf16 %v3402_v14, %v3400_v37  ;;  %v7870_v45 = vpack.c.bf16 %v3407_v19, %v3405_v29  ;;  %v2941_v35 = vld [vmem:[#allocation10 + $0x5c0] sm:$0xff]  ;;  %v2943_v37 = vld [vmem:[#allocation10 + $0x5d0] sm:$0xff]  ;;  %v2948_v29 = vld [vmem:[#allocation10 + $0x5f8] sm:$0xff] }
 0x401   : > { %7855 = vmatprep.subr.bf16.mxu0 %v7854_v50  ;;  %v3404_v50 = vld [vmem:[#allocation10 + $0xb20] sm:$0xff]  ;;  %v7698_v34 = vpack.c.bf16 %v2944_v27, %v2942_v26  ;;  %v3421_v19 = vld [vmem:[#allocation10 + $0xba8] sm:$0xff]  ;;  %v3430_v26 = vld [vmem:[#allocation10 + $0xbf0] sm:$0xff] }
 0x402   : > { %v3216_v27 = vld [vmem:[#allocation10 + $0x848] sm:$0xff] }
 0x403   : > { %7673 = vmatpush1.bf16.msra.mxu1 %v7672_v55  ;;  %v3411_v55 = vld [vmem:[#allocation10 + $0xb58] sm:$0xff] }
 0x404   : > { %7857 = vmatpush1.bf16.msra.mxu0 %v7856_v0  ;;  %7675 = vmatprep.subr.bf16.mxu1 %v7674_v57  ;;  %v7688_v0 = vpack.c.bf16 %v2931_v11, %v2929_v48  ;;  %v7872_v57 = vpack.c.bf16 %v3406_v51, %v3404_v50  ;;  %v7874_v12 = vpack.c.bf16 %v3411_v55, %v3409_v53  ;;  %v2945_v11 = vld [vmem:[#allocation10 + $0x5e0] sm:$0xff]  ;;  %v2947_v50 = vld [vmem:[#allocation10 + $0x5f0] sm:$0xff]  ;;  %v3210_v53 = vld [vmem:[#allocation10 + $0x818] sm:$0xff] }
 0x405   : > { %7859 = vmatprep.subr.bf16.mxu0 %v7858_v56  ;;  %v3408_v56 = vld [vmem:[#allocation10 + $0xb40] sm:$0xff]  ;;  %v7702_v48 = vpack.c.bf16 %v2948_v29, %v2946_v40  ;;  %v3425_v55 = vld [vmem:[#allocation10 + $0xbc8] sm:$0xff]  ;;  %v3692_v40 = vld [vmem:[#allocation10 + $0xe10] sm:$0xff] }
 0x406   : > { %v3220_v29 = vld [vmem:[#allocation10 + $0x868] sm:$0xff] }
 0x407   : > { %7677 = vmatpush1.bf16.msra.mxu1 %v7676_v18  ;;  %v3415_v18 = vld [vmem:[#allocation10 + $0xb78] sm:$0xff] }
 0x408   : > { %7861 = vmatpush1.bf16.msra.mxu0 %v7860_v4  ;;  %7679 = vmatprep.subr.bf16.mxu1 %v7678_v47  ;;  %v7692_v4 = vpack.c.bf16 %v2935_v8, %v2933_v62  ;;  %v7876_v47 = vpack.c.bf16 %v3410_v2, %v3408_v56  ;;  %v7878_v5 = vpack.c.bf16 %v3415_v18, %v3413_v1  ;;  %v3207_v8 = vld [vmem:[#allocation10 + $0x800] sm:$0xff]  ;;  %v3209_v56 = vld [vmem:[#allocation10 + $0x810] sm:$0xff]  ;;  %v3214_v1 = vld [vmem:[#allocation10 + $0x838] sm:$0xff] }
 0x409   : > { %7863 = vmatprep.subr.bf16.mxu0 %v7862_v25  ;;  %v3412_v25 = vld [vmem:[#allocation10 + $0xb60] sm:$0xff]  ;;  %v7770_v62 = vpack.c.bf16 %v3210_v53, %v3208_v44  ;;  %v3429_v18 = vld [vmem:[#allocation10 + $0xbe8] sm:$0xff]  ;;  %v3696_v44 = vld [vmem:[#allocation10 + $0xe30] sm:$0xff] }
 0x40a   : > { %v3224_v53 = vld [vmem:[#allocation10 + $0x888] sm:$0xff] }
 0x40b   : > { %7681 = vmatpush1.bf16.msra.mxu1 %v7680_v32  ;;  %v3419_v32 = vld [vmem:[#allocation10 + $0xb98] sm:$0xff] }
 0x40c   : > { %7865 = vmatpush1.bf16.msra.mxu0 %v7864_v9  ;;  %7683 = vmatprep.subr.bf16.mxu1 %v7682_v33  ;;  %v7696_v9 = vpack.c.bf16 %v2939_v24, %v2937_v23  ;;  %v7880_v33 = vpack.c.bf16 %v3414_v36, %v3412_v25  ;;  %v7882_v14 = vpack.c.bf16 %v3419_v32, %v3417_v31  ;;  %v3211_v24 = vld [vmem:[#allocation10 + $0x820] sm:$0xff]  ;;  %v3213_v25 = vld [vmem:[#allocation10 + $0x830] sm:$0xff]  ;;  %v3218_v31 = vld [vmem:[#allocation10 + $0x858] sm:$0xff] }
 0x40d   : > { %7867 = vmatprep.subr.bf16.mxu0 %v7866_v38  ;;  %v3416_v38 = vld [vmem:[#allocation10 + $0xb80] sm:$0xff]  ;;  %v7774_v23 = vpack.c.bf16 %v3214_v1, %v3212_v13  ;;  %v3691_v32 = vld [vmem:[#allocation10 + $0xe08] sm:$0xff]  ;;  %v3230_v1 = vld [vmem:[#allocation10 + $0x8b8] sm:$0xff] }
 0x40e   : > { %v3228_v13 = vld [vmem:[#allocation10 + $0x8a8] sm:$0xff] }
 0x40f   : > { %7685 = vmatpush1.bf16.msra.mxu1 %v7684_v6  ;;  %v3423_v6 = vld [vmem:[#allocation10 + $0xbb8] sm:$0xff] }
 0x410   : > { %7869 = vmatpush1.bf16.msra.mxu0 %v7868_v46  ;;  %7687 = vmatprep.subr.bf16.mxu1 %v7686_v10  ;;  %v7700_v46 = vpack.c.bf16 %v2943_v37, %v2941_v35  ;;  %v7884_v10 = vpack.c.bf16 %v3418_v39, %v3416_v38  ;;  %v7886_v51 = vpack.c.bf16 %v3423_v6, %v3421_v19  ;;  %v3215_v38 = vld [vmem:[#allocation10 + $0x840] sm:$0xff]  ;;  %v3222_v19 = vld [vmem:[#allocation10 + $0x878] sm:$0xff]  ;;  %v3695_v6 = vld [vmem:[#allocation10 + $0xe28] sm:$0xff] }
 0x411   : > { %7871 = vmatprep.subr.bf16.mxu0 %v7870_v45  ;;  %v3420_v45 = vld [vmem:[#allocation10 + $0xba0] sm:$0xff]  ;;  %v7778_v35 = vpack.c.bf16 %v3218_v31, %v3216_v27  ;;  %v3707_v27 = vld [vmem:[#allocation10 + $0xe88] sm:$0xff]  ;;  %v3709_v31 = vld [vmem:[#allocation10 + $0xe98] sm:$0xff] }
 0x412   : > { %v3690_v39 = vld [vmem:[#allocation10 + $0xe00] sm:$0xff] }
 0x413   : > { %7689 = vmatpush1.bf16.msra.mxu1 %v7688_v0  ;;  %v3427_v0 = vld [vmem:[#allocation10 + $0xbd8] sm:$0xff] }
 0x414   : > { %7873 = vmatpush1.bf16.msra.mxu0 %v7872_v57  ;;  %7691 = vmatprep.subr.bf16.mxu1 %v7690_v60  ;;  %v7704_v57 = vpack.c.bf16 %v2947_v50, %v2945_v11  ;;  %v7888_v60 = vpack.c.bf16 %v3422_v52, %v3420_v45  ;;  %v7890_v2 = vpack.c.bf16 %v3427_v0, %v3425_v55  ;;  %v3219_v50 = vld [vmem:[#allocation10 + $0x860] sm:$0xff]  ;;  %v3221_v45 = vld [vmem:[#allocation10 + $0x870] sm:$0xff]  ;;  %v3226_v55 = vld [vmem:[#allocation10 + $0x898] sm:$0xff] }
 0x415   : > { %7875 = vmatprep.subr.bf16.mxu0 %v7874_v12  ;;  %v3424_v12 = vld [vmem:[#allocation10 + $0xbc0] sm:$0xff]  ;;  %v7782_v11 = vpack.c.bf16 %v3222_v19, %v3220_v29  ;;  %v3699_v0 = vld [vmem:[#allocation10 + $0xe48] sm:$0xff] }
 0x417   : > { %7693 = vmatpush1.bf16.msra.mxu1 %v7692_v4  ;;  %v3431_v4 = vld [vmem:[#allocation10 + $0xbf8] sm:$0xff] }
 0x418   : > { %7877 = vmatpush1.bf16.msra.mxu0 %v7876_v47  ;;  %7695 = vmatprep.subr.bf16.mxu1 %v7694_v22  ;;  %v7772_v47 = vpack.c.bf16 %v3209_v56, %v3207_v8  ;;  %v7892_v22 = vpack.c.bf16 %v3426_v54, %v3424_v12  ;;  %v7894_v36 = vpack.c.bf16 %v3431_v4, %v3429_v18  ;;  %v3223_v56 = vld [vmem:[#allocation10 + $0x880] sm:$0xff]  ;;  %v3225_v12 = vld [vmem:[#allocation10 + $0x890] sm:$0xff]  ;;  %v3705_v18 = vld [vmem:[#allocation10 + $0xe78] sm:$0xff] }
 0x419   : > { %7879 = vmatprep.subr.bf16.mxu0 %v7878_v5  ;;  %v3428_v5 = vld [vmem:[#allocation10 + $0xbe0] sm:$0xff]  ;;  %v7786_v8 = vpack.c.bf16 %v3226_v55, %v3224_v53  ;;  %v3700_v54 = vld [vmem:[#allocation10 + $0xe50] sm:$0xff]  ;;  %v7788_v4 = vpack.c.bf16 %v3225_v12, %v3223_v56  ;;  %v3244_v12 = vld [vmem:[#allocation10 + $0x928] sm:$0xff] }
 0x41a   : > { %v3716_v56 = vld [vmem:[#allocation10 + $0xed0] sm:$0xff] }
 0x41b   : > { %7697 = vmatpush1.bf16.msra.mxu1 %v7696_v9  ;;  %v3693_v9 = vld [vmem:[#allocation10 + $0xe18] sm:$0xff] }
 0x41c   : > { %7881 = vmatpush1.bf16.msra.mxu0 %v7880_v33  ;;  %7699 = vmatprep.subr.bf16.mxu1 %v7698_v34  ;;  %v7776_v33 = vpack.c.bf16 %v3213_v25, %v3211_v24  ;;  %v7896_v34 = vpack.c.bf16 %v3430_v26, %v3428_v5  ;;  %v7962_v37 = vpack.c.bf16 %v3693_v9, %v3691_v32  ;;  %v3229_v24 = vld [vmem:[#allocation10 + $0x8b0] sm:$0xff]  ;;  %v3702_v25 = vld [vmem:[#allocation10 + $0xe60] sm:$0xff]  ;;  %v3234_v26 = vld [vmem:[#allocation10 + $0x8d8] sm:$0xff] }
 0x41d   : > { %7883 = vmatprep.subr.bf16.mxu0 %v7882_v14  ;;  %v3217_v14 = vld [vmem:[#allocation10 + $0x850] sm:$0xff] }
 0x41e   : > { %v3704_v5 = vld [vmem:[#allocation10 + $0xe70] sm:$0xff] }
 0x41f   : > { %7701 = vmatpush1.bf16.msra.mxu1 %v7700_v46  ;;  %v3697_v46 = vld [vmem:[#allocation10 + $0xe38] sm:$0xff]  ;;  %v7976_v32 = vpack.c.bf16 %v3704_v5, %v3702_v25  ;;  %v3720_v25 = vld [vmem:[#allocation10 + $0xef0] sm:$0xff] }
 0x420   : > { %7885 = vmatpush1.bf16.msra.mxu0 %v7884_v10  ;;  %7703 = vmatprep.subr.bf16.mxu1 %v7702_v48  ;;  %v7780_v10 = vpack.c.bf16 %v3217_v14, %v3215_v38  ;;  %v7964_v48 = vpack.c.bf16 %v3692_v40, %v3690_v39  ;;  %v7966_v52 = vpack.c.bf16 %v3697_v46, %v3695_v6  ;;  %v3708_v38 = vld [vmem:[#allocation10 + $0xe90] sm:$0xff]  ;;  %v3236_v14 = vld [vmem:[#allocation10 + $0x8e8] sm:$0xff]  ;;  %v3713_v40 = vld [vmem:[#allocation10 + $0xeb8] sm:$0xff] }
 0x421   : > { %7887 = vmatprep.subr.bf16.mxu0 %v7886_v51  ;;  %v3694_v51 = vld [vmem:[#allocation10 + $0xe20] sm:$0xff]  ;;  %v3711_v39 = vld [vmem:[#allocation10 + $0xea8] sm:$0xff]  ;;  %v3237_v46 = vld [vmem:[#allocation10 + $0x8f0] sm:$0xff] }
 0x422   : > { %v3235_v6 = vld [vmem:[#allocation10 + $0x8e0] sm:$0xff]  ;;  %v3250_v5 = vld [vmem:[#allocation10 + $0x958] sm:$0xff] }
 0x423   : > { %7705 = vmatpush1.bf16.msra.mxu1 %v7704_v57  ;;  %v3701_v57 = vld [vmem:[#allocation10 + $0xe58] sm:$0xff] }
 0x424   : > { %7889 = vmatpush1.bf16.msra.mxu0 %v7888_v60  ;;  %7771 = vmatprep.subr.bf16.mxu1 %v7770_v62  ;;  %v7784_v60 = vpack.c.bf16 %v3221_v45, %v3219_v50  ;;  %v7968_v62 = vpack.c.bf16 %v3696_v44, %v3694_v51  ;;  %v3240_v50 = vld [vmem:[#allocation10 + $0x908] sm:$0xff]  ;;  %v3717_v51 = vld [vmem:[#allocation10 + $0xed8] sm:$0xff]  ;;  %v7800_v44 = vpack.c.bf16 %v3237_v46, %v3235_v6 }
 0x425   : > { %7891 = vmatprep.subr.bf16.mxu0 %v7890_v2  ;;  %v3698_v2 = vld [vmem:[#allocation10 + $0xe40] sm:$0xff]  ;;  %v3715_v45 = vld [vmem:[#allocation10 + $0xec8] sm:$0xff] }
 0x426   : > { %6690 = vmatmul.mubr.msk.f32.vlgmr.msra.gmra.mrb[56].mxu1 %vm2547_vm10, %v10078_v3 }
 0x427   : > { %6691 = vmatprep.mubr.msk.f32.mxu1 %vm2550_vm11, %v10084_v30  ;;  %7773 = vmatpush1.bf16.msra.mxu1 %v7772_v47  ;;  %v7972_v47 = vpack.c.bf16 %v3700_v54, %v3698_v2  ;;  %v3246_v2 = vld [vmem:[#allocation10 + $0x938] sm:$0xff] }
 0x428   : > { %7893 = vmatpush1.bf16.msra.mxu0 %v7892_v22  ;;  %7775 = vmatprep.subr.bf16.mxu1 %v7774_v23  ;;  %v7790_v22 = vpack.c.bf16 %v3230_v1, %v3228_v13  ;;  %v3227_v23 = vld [vmem:[#allocation10 + $0x8a0] sm:$0xff]  ;;  %v3721_v54 = vld [vmem:[#allocation10 + $0xef8] sm:$0xff] }
 0x429   : > { %7895 = vmatprep.subr.bf16.mxu0 %v7894_v36  ;;  %v3232_v36 = vld [vmem:[#allocation10 + $0x8c8] sm:$0xff] }
 0x42a   : > { %6692 = vmatmul.mubr.msk.f32.gmra.mrb[58].mxu1 %vm2549_vm12, %v10090_v15  ;;  %v7794_v9 = vpack.c.bf16 %v3234_v26, %v3232_v36  ;;  %v3723_v36 = vld [vmem:[#allocation10 + $0xf08] sm:$0xff]  ;;  %v3725_v26 = vld [vmem:[#allocation10 + $0xf18] sm:$0xff] }
 0x42b   : > { %6693 = vmatprep.mubr.msk.f32.mxu1 %vm2552_vm13, %v10096_v20  ;;  %7777 = vmatpush1.bf16.msra.mxu1 %v7776_v33  ;;  %v3231_v33 = vld [vmem:[#allocation10 + $0x8c0] sm:$0xff] }
 0x42c   : > { %7897 = vmatpush1.bf16.msra.mxu0 %v7896_v34  ;;  %7779 = vmatprep.subr.bf16.mxu1 %v7778_v35  ;;  %v3233_v34 = vld [vmem:[#allocation10 + $0x8d0] sm:$0xff]  ;;  %v3706_v35 = vld [vmem:[#allocation10 + $0xe80] sm:$0xff] }
 0x42d   : > { %7963 = vmatprep.subr.bf16.mxu0 %v7962_v37  ;;  %v7978_v37 = vpack.c.bf16 %v3709_v31, %v3707_v27  ;;  %v7980_v29 = vpack.c.bf16 %v3708_v38, %v3706_v35  ;;  %v3722_v35 = vld [vmem:[#allocation10 + $0xf00] sm:$0xff]  ;;  %v3724_v38 = vld [vmem:[#allocation10 + $0xf10] sm:$0xff] }
 0x42e   : > { %6694 = vmatmul.mubr.msk.f32.gmra.mrb[60].mxu1 %vm2551_vm14, %v10102_v49  ;;  %v7996_v6 = vpack.c.bf16 %v3724_v38, %v3722_v35  ;;  %v3263_v35 = vld [vmem:[#allocation10 + $0x9c0] sm:$0xff] }
 0x42f   : > { %6714 = vmatmul.mubr.msk.f32.vlgmr.msra.gmra.mrb[64].mxu0 %vm2547_vm10, %v10078_v3  ;;  %6695 = vmatprep.mubr.msk.f32.mxu1 %vm2554_vm15, %v10111_v61  ;;  %v7970_v3 = vpack.c.bf16 %v3701_v57, %v3699_v0  ;;  %v3239_v57 = vld [vmem:[#allocation10 + $0x900] sm:$0xff] }
 0x430   : > { %7781 = vmatpush1.bf16.msra.mxu1 %v7780_v10  ;;  %6715 = vmatprep.mubr.msk.f32.mxu0 %vm2550_vm11, %v10084_v30  ;;  %v3703_v30 = vld [vmem:[#allocation10 + $0xe68] sm:$0xff]  ;;  %v3710_v10 = vld [vmem:[#allocation10 + $0xea0] sm:$0xff] }
 0x431   : > { %7965 = vmatpush1.bf16.msra.mxu0 %v7964_v48  ;;  %7783 = vmatprep.subr.bf16.mxu1 %v7782_v11  ;;  %v7982_v48 = vpack.c.bf16 %v3713_v40, %v3711_v39  ;;  %v3712_v11 = vld [vmem:[#allocation10 + $0xeb0] sm:$0xff]  ;;  %v3727_v39 = vld [vmem:[#allocation10 + $0xf28] sm:$0xff]  ;;  %v3729_v40 = vld [vmem:[#allocation10 + $0xf38] sm:$0xff] }
 0x432   : > { %6696 = vmatmul.mubr.msk.f32.gmra.mrb[62].mxu1 %vm2553_vm1, %v10120_v63  ;;  %7967 = vmatprep.subr.bf16.mxu0 %v7966_v52  ;;  %v7984_v55 = vpack.c.bf16 %v3712_v11, %v3710_v10  ;;  %v3251_v10 = vld [vmem:[#allocation10 + $0x960] sm:$0xff] }
 0x433   : > { %6716 = vmatmul.mubr.msk.f32.gmra.mrb[66].mxu0 %vm2549_vm12, %v10090_v15  ;;  %6705 = vmatprep.mubr.msk.f32.mxu1 %vm2548_vm9, %v10144_v42  ;;  %v7974_v15 = vpack.c.bf16 %v3705_v18, %v3703_v30  ;;  %v3726_v11 = vld [vmem:[#allocation10 + $0xf20] sm:$0xff] }
 0x434   : > { %7785 = vmatpush1.bf16.msra.mxu1 %v7784_v60  ;;  %6717 = vmatprep.mubr.msk.f32.mxu0 %vm2552_vm13, %v10096_v20  ;;  %v7792_v20 = vpack.c.bf16 %v3229_v24, %v3227_v23  ;;  %v3241_v60 = vld [vmem:[#allocation10 + $0x910] sm:$0xff]  ;;  %v3718_v23 = vld [vmem:[#allocation10 + $0xee0] sm:$0xff] }
 0x435   : > { %7969 = vmatpush1.bf16.msra.mxu0 %v7968_v62  ;;  %7787 = vmatprep.subr.bf16.mxu1 %v7786_v8  ;;  %v3714_v62 = vld [vmem:[#allocation10 + $0xec0] sm:$0xff]  ;;  %v7986_v8 = vpack.c.bf16 %v3717_v51, %v3715_v45  ;;  %v7804_v1 = vpack.c.bf16 %v3241_v60, %v3239_v57  ;;  %v3256_v45 = vld [vmem:[#allocation10 + $0x988] sm:$0xff]  ;;  %v3258_v51 = vld [vmem:[#allocation10 + $0x998] sm:$0xff] }
 0x436   : > { %7971 = vmatprep.subr.bf16.mxu0 %v7970_v3  ;;  %v3719_v3 = vld [vmem:[#allocation10 + $0xee8] sm:$0xff]  ;;  %v7988_v18 = vpack.c.bf16 %v3716_v56, %v3714_v62  ;;  %v7818_v60 = vpack.c.bf16 %v3258_v51, %v3256_v45  ;;  %v3255_v62 = vld [vmem:[#allocation10 + $0x980] sm:$0xff]  ;;  %v3744_v51 = vld [vmem:[#allocation10 + $0xfb0] sm:$0xff] }
 0x437   : > { %6718 = vmatmul.mubr.msk.f32.gmra.mrb[68].mxu0 %vm2551_vm14, %v10102_v49  ;;  %v3238_v49 = vld [vmem:[#allocation10 + $0x8f8] sm:$0xff]  ;;  %v7990_v24 = vpack.c.bf16 %v3721_v54, %v3719_v3  ;;  %v3730_v56 = vld [vmem:[#allocation10 + $0xf40] sm:$0xff]  ;;  %v3260_v3 = vld [vmem:[#allocation10 + $0x9a8] sm:$0xff] }
 0x438   : > { %7789 = vmatpush1.bf16.msra.mxu1 %v7788_v4  ;;  %6719 = vmatprep.mubr.msk.f32.mxu0 %vm2554_vm15, %v10111_v61  ;;  %v7796_v61 = vpack.c.bf16 %v3233_v34, %v3231_v33  ;;  %v7798_v19 = vpack.c.bf16 %v3238_v49, %v3236_v14  ;;  %v7806_v4 = vpack.c.bf16 %v3246_v2, %v3244_v12  ;;  %v3247_v33 = vld [vmem:[#allocation10 + $0x940] sm:$0xff]  ;;  %v3249_v34 = vld [vmem:[#allocation10 + $0x950] sm:$0xff]  ;;  %v3252_v14 = vld [vmem:[#allocation10 + $0x968] sm:$0xff] }
 0x439   : > { %7973 = vmatpush1.bf16.msra.mxu0 %v7972_v47  ;;  %7791 = vmatprep.subr.bf16.mxu1 %v7790_v22  ;;  %v3243_v47 = vld [vmem:[#allocation10 + $0x920] sm:$0xff]  ;;  %v3245_v22 = vld [vmem:[#allocation10 + $0x930] sm:$0xff]  ;;  %v3254_v49 = vld [vmem:[#allocation10 + $0x978] sm:$0xff] }
 0x43a   : > { %7975 = vmatprep.subr.bf16.mxu0 %v7974_v15  ;;  %v3248_v15 = vld [vmem:[#allocation10 + $0x948] sm:$0xff]  ;;  %v7808_v31 = vpack.c.bf16 %v3245_v22, %v3243_v47  ;;  %v7814_v46 = vpack.c.bf16 %v3254_v49, %v3252_v14  ;;  %v3732_v2 = vld [vmem:[#allocation10 + $0xf50] sm:$0xff]  ;;  %v3262_v54 = vld [vmem:[#allocation10 + $0x9b8] sm:$0xff] }
 0x43b   : > { %6720 = vmatmul.mubr.msk.f32.gmra.mrb[70].mxu0 %vm2553_vm1, %v10120_v63  ;;  %v3242_v63 = vld [vmem:[#allocation10 + $0x918] sm:$0xff]  ;;  %v8004_v47 = vpack.c.bf16 %v3732_v2, %v3730_v56  ;;  %v7822_v22 = vpack.c.bf16 %v3262_v54, %v3260_v3  ;;  %v3738_v38 = vld [vmem:[#allocation10 + $0xf80] sm:$0xff]  ;;  %v3740_v49 = vld [vmem:[#allocation10 + $0xf90] sm:$0xff] }
 0x43c   : > { %7793 = vmatpush1.bf16.msra.mxu1 %v7792_v20  ;;  %6729 = vmatprep.mubr.msk.f32.mxu0 %vm2548_vm9, %v10144_v42  ;;  %v7802_v0 = vpack.c.bf16 %v3242_v63, %v3240_v50  ;;  %v7998_v50 = vpack.c.bf16 %v3729_v40, %v3727_v39  ;;  %v3728_v63 = vld [vmem:[#allocation10 + $0xf30] sm:$0xff]  ;;  %v3268_v39 = vld [vmem:[#allocation10 + $0x9e8] sm:$0xff]  ;;  %v3270_v40 = vld [vmem:[#allocation10 + $0x9f8] sm:$0xff] }
 0x43d   : > { %7977 = vmatpush1.bf16.msra.mxu0 %v7976_v32  ;;  %7795 = vmatprep.subr.bf16.mxu1 %v7794_v9  ;;  %v7992_v32 = vpack.c.bf16 %v3720_v25, %v3718_v23  ;;  %v7810_v9 = vpack.c.bf16 %v3250_v5, %v3248_v15  ;;  %v8000_v57 = vpack.c.bf16 %v3728_v63, %v3726_v11  ;;  %v3259_v23 = vld [vmem:[#allocation10 + $0x9a0] sm:$0xff]  ;;  %v3736_v5 = vld [vmem:[#allocation10 + $0xf70] sm:$0xff] }
 0x43e   : > { %7979 = vmatprep.subr.bf16.mxu0 %v7978_v37  ;;  %v7994_v37 = vpack.c.bf16 %v3725_v26, %v3723_v36  ;;  %v3734_v25 = vld [vmem:[#allocation10 + $0xf60] sm:$0xff]  ;;  %v3264_v36 = vld [vmem:[#allocation10 + $0x9c8] sm:$0xff]  ;;  %v3266_v26 = vld [vmem:[#allocation10 + $0x9d8] sm:$0xff] }
 0x43f   : > { %v10197_v52 = vpop.f32.mrb[40].mxu0  ;;  %v3267_v11 = vld [vmem:[#allocation10 + $0x9e0] sm:$0xff]  ;;  %v3748_v54 = vld [vmem:[#allocation10 + $0xfd0] sm:$0xff] }
 0x440   : > { %7797 = vmatpush1.bf16.msra.mxu1 %v7796_v61  ;;  %v10199_v53 = vpop.f32.mrb[41].mxu0  ;;  %v3742_v63 = vld [vmem:[#allocation10 + $0xfa0] sm:$0xff] }
 0x441   : > { %7981 = vmatpush1.bf16.msra.mxu0 %v7980_v29  ;;  %7799 = vmatprep.subr.bf16.mxu1 %v7798_v19  ;;  %v7812_v29 = vpack.c.bf16 %v3249_v34, %v3247_v33  ;;  %v8008_v33 = vpack.c.bf16 %v3736_v5, %v3734_v25  ;;  %v7826_v34 = vpack.c.bf16 %v3266_v26, %v3264_v36  ;;  %v3529_v56 = vld [vmem:[#allocation10 + $0xc00] sm:$0xff]  ;;  %v3752_v26 = vld [vmem:[#allocation10 + $0xff0] sm:$0xff] }
 0x442   : > { %7983 = vmatprep.subr.bf16.mxu0 %v7982_v48  ;;  %v3253_v48 = vld [vmem:[#allocation10 + $0x970] sm:$0xff]  ;;  %v3746_v2 = vld [vmem:[#allocation10 + $0xfc0] sm:$0xff] }
 0x443   : > { %v10201_v13 = vpop.f32.mrb[42].mxu0  ;;  %v3533_v25 = vld [vmem:[#allocation10 + $0xc20] sm:$0xff] }
 0x444   : > { %7801 = vmatpush1.bf16.msra.mxu1 %v7800_v44  ;;  %v10203_v30 = vpop.f32.mrb[43].mxu0  ;;  %v3731_v44 = vld [vmem:[#allocation10 + $0xf48] sm:$0xff]  ;;  %v3750_v5 = vld [vmem:[#allocation10 + $0xfe0] sm:$0xff] }
 0x445   : > { %7985 = vmatpush1.bf16.msra.mxu0 %v7984_v55  ;;  %7803 = vmatprep.subr.bf16.mxu1 %v7802_v0  ;;  %v3733_v55 = vld [vmem:[#allocation10 + $0xf58] sm:$0xff]  ;;  %v7816_v0 = vpack.c.bf16 %v3253_v48, %v3251_v10  ;;  %v8012_v10 = vpack.c.bf16 %v3740_v49, %v3738_v38  ;;  %v7830_v48 = vpack.c.bf16 %v3270_v40, %v3268_v39  ;;  %v3537_v38 = vld [vmem:[#allocation10 + $0xc40] sm:$0xff]  ;;  %v10226_v49 = vld [vmem:[%s9639_s24 + $0x10] sm:$0xff] }
 0x446   : > { %7987 = vmatprep.subr.bf16.mxu0 %v7986_v8  ;;  %v3257_v8 = vld [vmem:[#allocation10 + $0x990] sm:$0xff]  ;;  %v8002_v12 = vpack.c.bf16 %v3733_v55, %v3731_v44  ;;  %v3530_v44 = vld [vmem:[#allocation10 + $0xc08] sm:$0xff]  ;;  %v3532_v55 = vld [vmem:[#allocation10 + $0xc18] sm:$0xff] }
 0x447   : > { %v10205_v27 = vpop.f32.mrb[44].mxu0  ;;  %v3542_v39 = vld [vmem:[#allocation10 + $0xc68] sm:$0xff]  ;;  %v3544_v40 = vld [vmem:[#allocation10 + $0xc78] sm:$0xff] }
 0x448   : > { %7805 = vmatpush1.bf16.msra.mxu1 %v7804_v1  ;;  %v10207_v20 = vpop.f32.mrb[45].mxu0  ;;  %v3735_v1 = vld [vmem:[#allocation10 + $0xf68] sm:$0xff] }
 0x449   : > { %7989 = vmatpush1.bf16.msra.mxu0 %v7988_v18  ;;  %7807 = vmatprep.subr.bf16.mxu1 %v7806_v4  ;;  %v3737_v18 = vld [vmem:[#allocation10 + $0xf78] sm:$0xff]  ;;  %v7820_v4 = vpack.c.bf16 %v3257_v8, %v3255_v62  ;;  %v8016_v62 = vpack.c.bf16 %v3744_v51, %v3742_v63  ;;  %v7898_v8 = vpack.c.bf16 %v3532_v55, %v3530_v44  ;;  %v3545_v55 = vld [vmem:[#allocation10 + $0xc80] sm:$0xff] }
 0x44a   : > { %7991 = vmatprep.subr.bf16.mxu0 %v7990_v24  ;;  %v3261_v24 = vld [vmem:[#allocation10 + $0x9b0] sm:$0xff]  ;;  %v8006_v15 = vpack.c.bf16 %v3737_v18, %v3735_v1  ;;  %v3534_v1 = vld [vmem:[#allocation10 + $0xc28] sm:$0xff]  ;;  %v3536_v18 = vld [vmem:[#allocation10 + $0xc38] sm:$0xff] }
 0x44b   : > { %v10209_v61 = vpop.f32.mrb[46].mxu0  ;;  %v3548_v63 = vld [vmem:[#allocation10 + $0xc98] sm:$0xff] }
 0x44c   : > { %7809 = vmatpush1.bf16.msra.mxu1 %v7808_v31  ;;  %v10211_v19 = vpop.f32.mrb[47].mxu0  ;;  %v3739_v31 = vld [vmem:[#allocation10 + $0xf88] sm:$0xff] }
 0x44d   : > { %7993 = vmatpush1.bf16.msra.mxu0 %v7992_v32  ;;  %7811 = vmatprep.subr.bf16.mxu1 %v7810_v9  ;;  %v3741_v32 = vld [vmem:[#allocation10 + $0xf98] sm:$0xff]  ;;  %v7824_v9 = vpack.c.bf16 %v3261_v24, %v3259_v23  ;;  %v8020_v23 = vpack.c.bf16 %v3748_v54, %v3746_v2  ;;  %v7902_v24 = vpack.c.bf16 %v3536_v18, %v3534_v1  ;;  %v3549_v54 = vld [vmem:[#allocation10 + $0xca0] sm:$0xff]  ;;  %v3551_v1 = vld [vmem:[#allocation10 + $0xcb0] sm:$0xff] }
 0x44e   : > { %7995 = vmatprep.subr.bf16.mxu0 %v7994_v37  ;;  %v3265_v37 = vld [vmem:[#allocation10 + $0x9d0] sm:$0xff]  ;;  %v8010_v14 = vpack.c.bf16 %v3741_v32, %v3739_v31  ;;  %v3538_v31 = vld [vmem:[#allocation10 + $0xc48] sm:$0xff]  ;;  %v3540_v32 = vld [vmem:[#allocation10 + $0xc58] sm:$0xff] }
 0x450   : > { %7813 = vmatpush1.bf16.msra.mxu1 %v7812_v29  ;;  %v3743_v29 = vld [vmem:[#allocation10 + $0xfa8] sm:$0xff] }
 0x451   : > { %7997 = vmatpush1.bf16.msra.mxu0 %v7996_v6  ;;  %7815 = vmatprep.subr.bf16.mxu1 %v7814_v46  ;;  %v3745_v6 = vld [vmem:[#allocation10 + $0xfb8] sm:$0xff]  ;;  %v7828_v46 = vpack.c.bf16 %v3265_v37, %v3263_v35  ;;  %v8024_v35 = vpack.c.bf16 %v3752_v26, %v3750_v5  ;;  %v7906_v37 = vpack.c.bf16 %v3540_v32, %v3538_v31  ;;  %v3558_v26 = vld [vmem:[#allocation10 + $0xce8] sm:$0xff] }
 0x452   : > { %7999 = vmatprep.subr.bf16.mxu0 %v7998_v50  ;;  %v3269_v50 = vld [vmem:[#allocation10 + $0x9f0] sm:$0xff]  ;;  %v8014_v45 = vpack.c.bf16 %v3745_v6, %v3743_v29  ;;  %v10232_v29 = vld [vmem:[%s9639_s24 + $0x28] sm:$0xff]  ;;  %v3560_v31 = vld [vmem:[#allocation10 + $0xcf8] sm:$0xff] }
 0x454   : > { %7817 = vmatpush1.bf16.msra.mxu1 %v7816_v0  ;;  %v3747_v0 = vld [vmem:[#allocation10 + $0xfc8] sm:$0xff] }
 0x455   : > { %8001 = vmatpush1.bf16.msra.mxu0 %v8000_v57  ;;  %7819 = vmatprep.subr.bf16.mxu1 %v7818_v60  ;;  %v3749_v57 = vld [vmem:[#allocation10 + $0xfd8] sm:$0xff]  ;;  %v7832_v60 = vpack.c.bf16 %v3269_v50, %v3267_v11  ;;  %v10238_v11 = vld [vmem:[%s9639_s24 + $0x20] sm:$0xff]  ;;  %v3546_v50 = vld [vmem:[#allocation10 + $0xc88] sm:$0xff] }
 0x456   : > { %8003 = vmatprep.subr.bf16.mxu0 %v8002_v12  ;;  %v3531_v12 = vld [vmem:[#allocation10 + $0xc10] sm:$0xff]  ;;  %v8018_v3 = vpack.c.bf16 %v3749_v57, %v3747_v0  ;;  %v7914_v44 = vpack.c.bf16 %v3548_v63, %v3546_v50  ;;  %v2177_v57 = vpop.permute.xlu0 %2176 }
 0x457   : > { %v3547_v0 = vld [vmem:[#allocation10 + $0xc90] sm:$0xff]  ;;  %v2275_v2 = vadd.f32 %v10199_v53, %v2177_v57 }
 0x458   : > { %7821 = vmatpush1.bf16.msra.mxu1 %v7820_v4  ;;  %v3751_v4 = vld [vmem:[#allocation10 + $0xfe8] sm:$0xff] }
 0x459   : > { %8005 = vmatpush1.bf16.msra.mxu0 %v8004_v47  ;;  %7823 = vmatprep.subr.bf16.mxu1 %v7822_v22  ;;  %v3753_v47 = vld [vmem:[#allocation10 + $0xff8] sm:$0xff]  ;;  %v7900_v22 = vpack.c.bf16 %v3531_v12, %v3529_v56  ;;  %v7916_v56 = vpack.c.bf16 %v3547_v0, %v3545_v55  ;;  %v2273_v12 = vadd.f32 %v10197_v52, %v2177_v57 }
 0x45a   : > { %8007 = vmatprep.subr.bf16.mxu0 %v8006_v15  ;;  %v3535_v15 = vld [vmem:[#allocation10 + $0xc30] sm:$0xff]  ;;  %v8022_v36 = vpack.c.bf16 %v3753_v47, %v3751_v4  ;;  %v2182_v18 = vpop.permute.xlu0 %2181  ;;  %v3554_v4 = vld [vmem:[#allocation10 + $0xcc8] sm:$0xff]  ;;  %v3556_v47 = vld [vmem:[#allocation10 + $0xcd8] sm:$0xff] }
 0x45b   : > { %v7922_v5 = vpack.c.bf16 %v3556_v47, %v3554_v4  ;;  %v2281_v32 = vadd.f32 %v10203_v30, %v2182_v18  ;;  %v3564_v55 = vld [vmem:[#allocation10 + $0xd18] sm:$0xff] }
 0x45c   : > { %7825 = vmatpush1.bf16.msra.mxu1 %v7824_v9  ;;  %v10214_v9 = vld [vmem:[%s9639_s24] sm:$0xff] }
 0x45d   : > { %8009 = vmatpush1.bf16.msra.mxu0 %v8008_v33  ;;  %7827 = vmatprep.subr.bf16.mxu1 %v7826_v34  ;;  %v10220_v33 = vld [vmem:[%s9639_s24 + $0x18] sm:$0xff]  ;;  %v7904_v34 = vpack.c.bf16 %v3535_v15, %v3533_v25  ;;  %v2279_v25 = vadd.f32 %v10201_v13, %v2182_v18 }
 0x45e   : > { %8011 = vmatprep.subr.bf16.mxu0 %v8010_v14  ;;  %v3539_v14 = vld [vmem:[#allocation10 + $0xc50] sm:$0xff] }
 0x45f   : > { %v7908_v6 = vpack.c.bf16 %v3539_v14, %v3537_v38  ;;  %v7926_v14 = vpack.c.bf16 %v3560_v31, %v3558_v26 }
 0x460   : > { %7829 = vmatpush1.bf16.msra.mxu1 %v7828_v46  ;;  %v7910_v46 = vpack.c.bf16 %v3544_v40, %v3542_v39 }
 0x461   : > { %8013 = vmatpush1.bf16.msra.mxu0 %v8012_v10  ;;  %7831 = vmatprep.subr.bf16.mxu1 %v7830_v48  ;;  %v3541_v10 = vld [vmem:[#allocation10 + $0xc60] sm:$0xff]  ;;  %v3543_v48 = vld [vmem:[#allocation10 + $0xc70] sm:$0xff] }
 0x462   : > { %8015 = vmatprep.subr.bf16.mxu0 %v8014_v45  ;;  %v10247_v45 = vld [vmem:[%s9639_s24 + $0x38] sm:$0xff]  ;;  %v7912_v51 = vpack.c.bf16 %v3543_v48, %v3541_v10  ;;  %v3559_v10 = vld [vmem:[#allocation10 + $0xcf0] sm:$0xff] }
 0x464   : > { %7833 = vmatpush1.bf16.msra.mxu1 %v7832_v60  ;;  %v10256_v60 = vld [vmem:[%s9639_s24 + $0x30] sm:$0xff] }
 0x465   : > { %8017 = vmatpush1.bf16.msra.mxu0 %v8016_v62  ;;  %7899 = vmatprep.subr.bf16.mxu1 %v7898_v8  ;;  %v3550_v62 = vld [vmem:[#allocation10 + $0xca8] sm:$0xff]  ;;  %v3552_v8 = vld [vmem:[#allocation10 + $0xcb8] sm:$0xff] }
 0x466   : > { %8019 = vmatprep.subr.bf16.mxu0 %v8018_v3  ;;  %v7918_v3 = vpack.c.bf16 %v3552_v8, %v3550_v62 }
 0x467   : > { %6706 = vmatmul.mubr.msk.f32.vlgmr.msra.gmra.mrb[64].mxu1 %vm2547_vm10, %v10214_v9 }
 0x468   : > { %6707 = vmatprep.mubr.msk.f32.mxu1 %vm2550_vm11, %v10220_v33  ;;  %7901 = vmatpush1.bf16.msra.mxu1 %v7900_v22  ;;  %v2187_v22 = vpop.permute.xlu1 %2186 }
 0x469   : > { %8021 = vmatpush1.bf16.msra.mxu0 %v8020_v23  ;;  %7903 = vmatprep.subr.bf16.mxu1 %v7902_v24  ;;  %v7920_v23 = vpack.c.bf16 %v3551_v1, %v3549_v54  ;;  %v3553_v24 = vld [vmem:[#allocation10 + $0xcc0] sm:$0xff]  ;;  %v2285_v40 = vadd.f32 %v10205_v27, %v2187_v22  ;;  %v2287_v50 = vadd.f32 %v10207_v20, %v2187_v22  ;;  %v3563_v1 = vld [vmem:[#allocation10 + $0xd10] sm:$0xff]  ;;  %v3566_v22 = vld [vmem:[#allocation10 + $0xd28] sm:$0xff] }
 0x46a   : > { %8023 = vmatprep.subr.bf16.mxu0 %v8022_v36  ;;  %v3555_v36 = vld [vmem:[#allocation10 + $0xcd0] sm:$0xff]  ;;  %v3561_v54 = vld [vmem:[#allocation10 + $0xd00] sm:$0xff] }
 0x46b   : > { %6708 = vmatmul.mubr.msk.f32.gmra.mrb[66].mxu1 %vm2549_vm12, %v10226_v49  ;;  %v7924_v38 = vpack.c.bf16 %v3555_v36, %v3553_v24  ;;  %v7932_v26 = vpack.c.bf16 %v3563_v1, %v3561_v54 }
 0x46c   : > { %6709 = vmatprep.mubr.msk.f32.mxu1 %vm2552_vm13, %v10232_v29  ;;  %7905 = vmatpush1.bf16.msra.mxu1 %v7904_v34  ;;  %v2192_v63 = vpop.permute.xlu1 %2191 }
 0x46d   : > { %8025 = vmatpush1.bf16.msra.mxu0 %v8024_v35  ;;  %7907 = vmatprep.subr.bf16.mxu1 %v7906_v37  ;;  %v2293_v47 = vadd.f32 %v10211_v19, %v2192_v63 }
 0x46f   : > { %6710 = vmatmul.mubr.msk.f32.gmra.mrb[68].mxu1 %vm2551_vm14, %v10238_v11 }
 0x470   : > { %6730 = vmatmul.mubr.msk.f32.vlgmr.msra.gmra.mrb[72].mxu0 %vm2547_vm10, %v10214_v9  ;;  %6711 = vmatprep.mubr.msk.f32.mxu1 %vm2554_vm15, %v10247_v45 }
 0x471   : > { %7909 = vmatpush1.bf16.msra.mxu1 %v7908_v6  ;;  %6731 = vmatprep.mubr.msk.f32.mxu0 %vm2550_vm11, %v10220_v33 }
 0x472   : > { %7911 = vmatprep.subr.bf16.mxu1 %v7910_v46  ;;  %v3557_v46 = vld [vmem:[#allocation10 + $0xce0] sm:$0xff] }
 0x473   : > { %6712 = vmatmul.mubr.msk.f32.gmra.mrb[70].mxu1 %vm2553_vm1, %v10256_v60  ;;  %v7928_v20 = vpack.c.bf16 %v3559_v10, %v3557_v46 }
 0x474   : > { %6732 = vmatmul.mubr.msk.f32.gmra.mrb[74].mxu0 %vm2549_vm12, %v10226_v49  ;;  %6721 = vmatprep.mubr.msk.f32.mxu1 %vm2548_vm9, %v10144_v42 }
 0x475   : > { %7913 = vmatpush1.bf16.msra.mxu1 %v7912_v51  ;;  %6733 = vmatprep.mubr.msk.f32.mxu0 %vm2552_vm13, %v10232_v29 }
 0x476   : > { %7915 = vmatprep.subr.bf16.mxu1 %v7914_v44  ;;  %v3562_v44 = vld [vmem:[#allocation10 + $0xd08] sm:$0xff] }
 0x478   : > { %6734 = vmatmul.mubr.msk.f32.gmra.mrb[76].mxu0 %vm2551_vm14, %v10238_v11  ;;  %v2361_v42 = vpop.f32.mrb[40].mxu1 }
 0x479   : > { %7917 = vmatpush1.bf16.msra.mxu1 %v7916_v56  ;;  %6735 = vmatprep.mubr.msk.f32.mxu0 %vm2554_vm15, %v10247_v45  ;;  %v10278_v52 = vadd.f32 %v2361_v42, %v2273_v12  ;;  %v2363_v53 = vpop.f32.mrb[41].mxu1 }
 0x47a   : > { %v10281_v15 = vadd.f32 %v2363_v53, %v2275_v2  ;;  %7919 = vmatprep.subr.bf16.mxu1 %v7918_v3  ;;  %v2291_v2 = vadd.f32 %v10209_v61, %v2192_v63  ;;  %v7930_v3 = vpack.c.bf16 %v3564_v55, %v3562_v44  ;;  %v3568_v53 = vld [vmem:[#allocation10 + $0xd38] sm:$0xff]  ;;  %v3569_v55 = vld [vmem:[#allocation10 + $0xd40] sm:$0xff] }
 0x47b   : > { %11381 = vst [vmem:[#allocation22_spill] sm:$0xff] %v10278_v52  ;;  %v2401_v34 = vmul.f32 %v10278_v52, %v10278_v52 }
 0x47c   : > { %11382 = vst [vmem:[#allocation23_spill] sm:$0xff] %v10281_v15  ;;  %6736 = vmatmul.mubr.msk.f32.gmra.mrb[78].mxu0 %vm2553_vm1, %v10256_v60  ;;  %v2384_v35 = vadd.f32 %v10281_v15, %v10278_v52  ;;  %v2402_v13 = vmul.f32 %v10281_v15, %v10281_v15  ;;  %v2367_v37 = vpop.f32.mrb[42].mxu1  ;;  %v5666_v15 = vld [vmem:[#allocation10 + $0xf38] sm:$0xff] }
 0x47d   : > { %7921 = vmatpush1.bf16.msra.mxu1 %v7920_v23  ;;  %v10293_v39 = vadd.f32 %v2367_v37, %v2279_v25  ;;  %v2369_v30 = vpop.f32.mrb[43].mxu1  ;;  %v5670_v52 = vld [vmem:[#allocation10 + $0xf58] sm:$0xff] }
 0x47e   : > { %7923 = vmatprep.subr.bf16.mxu1 %v7922_v5  ;;  %2385 = vadd.xlane.f32.xlu0 %v2384_v35  ;;  %v2409_v6 = vadd.f32 %v2402_v13, %v2401_v34  ;;  %v10296_v48 = vadd.f32 %v2369_v30, %v2281_v32  ;;  %v7934_v34 = vpack.c.bf16 %v3568_v53, %v3566_v22  ;;  %v3565_v35 = vld [vmem:[#allocation10 + $0xd20] sm:$0xff]  ;;  %v3567_v13 = vld [vmem:[#allocation10 + $0xd30] sm:$0xff]  ;;  %v3570_v30 = vld [vmem:[#allocation10 + $0xd48] sm:$0xff] }
 0x47f   : > { %v10299_v51 = vpop.f32.mrb[48].mxu0  ;;  %v2403_v0 = vmul.f32 %v10293_v39, %v10293_v39  ;;  %v7936_v63 = vpack.c.bf16 %v3567_v13, %v3565_v35  ;;  %v3578_v22 = vld [vmem:[#allocation10 + $0xd88] sm:$0xff]  ;;  %v3580_v53 = vld [vmem:[#allocation10 + $0xd98] sm:$0xff]  ;;  %v3581_v13 = vld [vmem:[#allocation10 + $0xda0] sm:$0xff] }
 0x480   : > { %2410 = vadd.xlane.f32.xlu1 %v2409_v6  ;;  %v10303_v57 = vpop.f32.mrb[49].mxu0  ;;  %v2373_v27 = vpop.f32.mrb[44].mxu1  ;;  %v2404_v62 = vmul.f32 %v10296_v48, %v10296_v48  ;;  %v2387_v8 = vadd.f32 %v10296_v48, %v10293_v39 }
 0x481   : > { %7925 = vmatpush1.bf16.msra.mxu1 %v7924_v38  ;;  %v10309_v56 = vadd.f32 %v2373_v27, %v2285_v40  ;;  %v2375_v12 = vpop.f32.mrb[45].mxu1  ;;  %v3572_v40 = vld [vmem:[#allocation10 + $0xd58] sm:$0xff] }
 0x482   : > { %7927 = vmatprep.subr.bf16.mxu1 %v7926_v14  ;;  %v10312_v18 = vadd.f32 %v2375_v12, %v2287_v50  ;;  %v2412_v4 = vadd.f32 %v2404_v62, %v2403_v0  ;;  %v7938_v44 = vpack.c.bf16 %v3572_v40, %v3570_v30  ;;  %v3571_v0 = vld [vmem:[#allocation10 + $0xd50] sm:$0xff]  ;;  %v3574_v62 = vld [vmem:[#allocation10 + $0xd68] sm:$0xff]  ;;  %v3588_v40 = vld [vmem:[#allocation10 + $0xdd8] sm:$0xff] }
 0x483   : > { %11383 = vst [vmem:[#allocation24_spill] sm:$0xff] %v10309_v56  ;;  %v10315_v42 = vpop.f32.mrb[50].mxu0  ;;  %v2405_v23 = vmul.f32 %v10309_v56, %v10309_v56  ;;  %v7940_v54 = vpack.c.bf16 %v3571_v0, %v3569_v55  ;;  %v3586_v30 = vld [vmem:[#allocation10 + $0xdc8] sm:$0xff]  ;;  %v3592_v55 = vld [vmem:[#allocation10 + $0xdf8] sm:$0xff] }
 0x484   : > { %11384 = vst [vmem:[#allocation25_spill] sm:$0xff] %v10312_v18  ;;  %v8100_v24 = vpack.c.bf16 %v10315_v42, %v10299_v51  ;;  %v10321_v61 = vpop.f32.mrb[51].mxu0  ;;  %2413 = vadd.xlane.f32.xlu0 %v2412_v4  ;;  %v2379_v25 = vpop.f32.mrb[46].mxu1  ;;  %2388 = vadd.xlane.f32.xlu1 %v2387_v8  ;;  %v2390_v5 = vadd.f32 %v10312_v18, %v10309_v56  ;;  %v3576_v8 = vld [vmem:[#allocation10 + $0xd78] sm:$0xff]  ;;  %v3573_v4 = vld [vmem:[#allocation10 + $0xd60] sm:$0xff]  ;;  %v5677_v56 = vld [vmem:[#allocation10 + $0xf90] sm:$0xff] }
 0x485   : > { %v2406_v19 = vmul.f32 %v10312_v18, %v10312_v18  ;;  %7929 = vmatpush1.bf16.msra.mxu1 %v7928_v20  ;;  %v8098_v36 = vpack.c.bf16 %v10321_v61, %v10303_v57  ;;  %v10329_v31 = vadd.f32 %v2379_v25, %v2291_v2  ;;  %v2381_v32 = vpop.f32.mrb[47].mxu1  ;;  %v7942_v1 = vpack.c.bf16 %v3576_v8, %v3574_v62  ;;  %v3589_v8 = vld [vmem:[#allocation10 + $0xde0] sm:$0xff]  ;;  %v3902_v51 = vld [vmem:[#allocation10 + $0x1198] sm:$0xff] }
 0x486   : > { %7931 = vmatprep.subr.bf16.mxu1 %v7930_v3  ;;  %v10331_v37 = vadd.f32 %v2381_v32, %v2293_v47  ;;  %v3575_v47 = vld [vmem:[#allocation10 + $0xd70] sm:$0xff]  ;;  %v7946_v25 = vpack.c.bf16 %v3580_v53, %v3578_v22  ;;  %v3584_v32 = vld [vmem:[#allocation10 + $0xdb8] sm:$0xff]  ;;  %v3851_v22 = vld [vmem:[#allocation10 + $0x1000] sm:$0xff] }
 0x487   : > { %v2415_v38 = vadd.f32 %v2406_v19, %v2405_v23  ;;  %v10333_v14 = vpop.f32.mrb[52].mxu0  ;;  %v2407_v10 = vmul.f32 %v10329_v31, %v10329_v31  ;;  %v7944_v23 = vpack.c.bf16 %v3575_v47, %v3573_v4  ;;  %v3579_v19 = vld [vmem:[#allocation10 + $0xd90] sm:$0xff]  ;;  %v3895_v61 = vld [vmem:[#allocation10 + $0x1160] sm:$0xff] }
 0x488   : > { %v10335_v6 = vpop.f32.mrb[53].mxu0  ;;  %2391 = vadd.xlane.f32.xlu0 %v2390_v5  ;;  %v2393_v46 = vadd.f32 %v10331_v37, %v10329_v31  ;;  %v2408_v50 = vmul.f32 %v10331_v37, %v10331_v37  ;;  %v3577_v5 = vld [vmem:[#allocation10 + $0xd80] sm:$0xff]  ;;  %v3853_v53 = vld [vmem:[#allocation10 + $0x1010] sm:$0xff] }
 0x489   : > { %2416 = vadd.xlane.f32.xlu1 %v2415_v38  ;;  %7933 = vmatpush1.bf16.msra.mxu1 %v7932_v26  ;;  %v3582_v26 = vld [vmem:[#allocation10 + $0xda8] sm:$0xff]  ;;  %v3583_v38 = vld [vmem:[#allocation10 + $0xdb0] sm:$0xff]  ;;  %v5675_v18 = vld [vmem:[#allocation10 + $0xf80] sm:$0xff] }
 0x48a   : > { %7935 = vmatprep.subr.bf16.mxu1 %v7934_v34  ;;  %v2418_v2 = vadd.f32 %v2408_v50, %v2407_v10  ;;  %v7948_v34 = vpack.c.bf16 %v3579_v19, %v3577_v5  ;;  %v7950_v35 = vpack.c.bf16 %v3584_v32, %v3582_v26  ;;  %v7954_v10 = vpack.c.bf16 %v3588_v40, %v3586_v30  ;;  %v3585_v50 = vld [vmem:[#allocation10 + $0xdc0] sm:$0xff]  ;;  %v3857_v32 = vld [vmem:[#allocation10 + $0x1030] sm:$0xff] }
 0x48b   : > { %v10343_v27 = vpop.f32.mrb[54].mxu0  ;;  %v8028_v5 = vpack.c.bf16 %v3853_v53, %v3851_v22  ;;  %v3855_v26 = vld [vmem:[#allocation10 + $0x1020] sm:$0xff]  ;;  %v3861_v40 = vld [vmem:[#allocation10 + $0x1050] sm:$0xff]  ;;  %v10373_v22 = vld [vmem:[%s9639_s24 + $0x8] sm:$0xff] }
 0x48c   : > { %v8104_v20 = vpack.c.bf16 %v10343_v27, %v10333_v14  ;;  %v10347_v12 = vpop.f32.mrb[55].mxu0  ;;  %2394 = vadd.xlane.f32.xlu0 %v2393_v46  ;;  %v7952_v46 = vpack.c.bf16 %v3583_v38, %v3581_v13  ;;  %v8032_v13 = vpack.c.bf16 %v3857_v32, %v3855_v26  ;;  %v3859_v30 = vld [vmem:[#allocation10 + $0x1040] sm:$0xff]  ;;  %v3878_v26 = vld [vmem:[#allocation10 + $0x10d8] sm:$0xff] }
 0x48d   : > { %7937 = vmatpush1.bf16.msra.mxu1 %v7936_v63  ;;  %v8102_v3 = vpack.c.bf16 %v10347_v12, %v10335_v6  ;;  %v3587_v63 = vld [vmem:[#allocation10 + $0xdd0] sm:$0xff]  ;;  %v3904_v6 = vld [vmem:[#allocation10 + $0x11a8] sm:$0xff]  ;;  %v3906_v12 = vld [vmem:[#allocation10 + $0x11b8] sm:$0xff] }
 0x48e   : > { %7939 = vmatprep.subr.bf16.mxu1 %v7938_v44  ;;  %v3590_v44 = vld [vmem:[#allocation10 + $0xde8] sm:$0xff]  ;;  %v7956_v0 = vpack.c.bf16 %v3587_v63, %v3585_v50  ;;  %v8036_v50 = vpack.c.bf16 %v3861_v40, %v3859_v30  ;;  %v3877_v30 = vld [vmem:[#allocation10 + $0x10d0] sm:$0xff]  ;;  %v3907_v27 = vld [vmem:[#allocation10 + $0x11c0] sm:$0xff] }
 0x48f   : > { %v7958_v62 = vpack.c.bf16 %v3592_v55, %v3590_v44  ;;  %v3863_v44 = vld [vmem:[#allocation10 + $0x1060] sm:$0xff]  ;;  %v3865_v55 = vld [vmem:[#allocation10 + $0x1070] sm:$0xff]  ;;  %v3880_v40 = vld [vmem:[#allocation10 + $0x10e8] sm:$0xff] }
 0x490   : > { %2419 = vadd.xlane.f32.xlu0 %v2418_v2  ;;  %v3591_v2 = vld [vmem:[#allocation10 + $0xdf0] sm:$0xff] }
 0x491   : > { %7941 = vmatpush1.bf16.msra.mxu1 %v7940_v54  ;;  %v3852_v54 = vld [vmem:[#allocation10 + $0x1008] sm:$0xff]  ;;  %v7960_v4 = vpack.c.bf16 %v3591_v2, %v3589_v8  ;;  %v8040_v8 = vpack.c.bf16 %v3865_v55, %v3863_v44 }
 0x492   : > { %7943 = vmatprep.subr.bf16.mxu1 %v7942_v1  ;;  %v3854_v1 = vld [vmem:[#allocation10 + $0x1018] sm:$0xff] }
 0x493   : > { %v8026_v47 = vpack.c.bf16 %v3854_v1, %v3852_v54  ;;  %v3867_v54 = vld [vmem:[#allocation10 + $0x1080] sm:$0xff]  ;;  %v3869_v1 = vld [vmem:[#allocation10 + $0x1090] sm:$0xff] }
 0x494   : > { %v8044_v53 = vpack.c.bf16 %v3869_v1, %v3867_v54  ;;  %v3886_v54 = vld [vmem:[#allocation10 + $0x1118] sm:$0xff] }
 0x495   : > { %7945 = vmatpush1.bf16.msra.mxu1 %v7944_v23  ;;  %v3856_v23 = vld [vmem:[#allocation10 + $0x1028] sm:$0xff] }
 0x496   : > { %7947 = vmatprep.subr.bf16.mxu1 %v7946_v25  ;;  %v3858_v25 = vld [vmem:[#allocation10 + $0x1038] sm:$0xff] }
 0x497   : > { %v8030_v19 = vpack.c.bf16 %v3858_v25, %v3856_v23  ;;  %v3871_v25 = vld [vmem:[#allocation10 + $0x10a0] sm:$0xff] }
 0x499   : > { %7949 = vmatpush1.bf16.msra.mxu1 %v7948_v34  ;;  %v3860_v34 = vld [vmem:[#allocation10 + $0x1048] sm:$0xff] }
 0x49a   : > { %7951 = vmatprep.subr.bf16.mxu1 %v7950_v35  ;;  %v3862_v35 = vld [vmem:[#allocation10 + $0x1058] sm:$0xff] }
 0x49b   : > { %v8034_v38 = vpack.c.bf16 %v3862_v35, %v3860_v34 }
 0x49d   : > { %7953 = vmatpush1.bf16.msra.mxu1 %v7952_v46  ;;  %v3864_v46 = vld [vmem:[#allocation10 + $0x1068] sm:$0xff] }
 0x49e   : > { %7955 = vmatprep.subr.bf16.mxu1 %v7954_v10  ;;  %v3866_v10 = vld [vmem:[#allocation10 + $0x1078] sm:$0xff] }
 0x49f   : > { %v8038_v63 = vpack.c.bf16 %v3866_v10, %v3864_v46  ;;  %v3882_v46 = vld [vmem:[#allocation10 + $0x10f8] sm:$0xff] }
 0x4a1   : > { %7957 = vmatpush1.bf16.msra.mxu1 %v7956_v0  ;;  %v3868_v0 = vld [vmem:[#allocation10 + $0x1088] sm:$0xff] }
 0x4a2   : > { %7959 = vmatprep.subr.bf16.mxu1 %v7958_v62  ;;  %v3870_v62 = vld [vmem:[#allocation10 + $0x1098] sm:$0xff] }
 0x4a3   : > { %v8042_v2 = vpack.c.bf16 %v3870_v62, %v3868_v0  ;;  %v8054_v0 = vpack.c.bf16 %v3882_v46, %v3880_v40  ;;  %v3879_v62 = vld [vmem:[#allocation10 + $0x10e0] sm:$0xff] }
 0x4a5   : > { %7961 = vmatpush1.bf16.msra.mxu1 %v7960_v4  ;;  %v3872_v4 = vld [vmem:[#allocation10 + $0x10a8] sm:$0xff] }
 0x4a6   : > { %8027 = vmatprep.subr.bf16.mxu1 %v8026_v47  ;;  %v3874_v47 = vld [vmem:[#allocation10 + $0x10b8] sm:$0xff] }
 0x4a7   : > { %v8046_v23 = vpack.c.bf16 %v3874_v47, %v3872_v4 }
 0x4a8   : > { %6722 = vmatmul.mubr.msk.f32.vlgmr.msra.gmra.mrb[72].mxu1 %vm2547_vm10, %v10214_v9 }
 0x4a9   : > { %6723 = vmatprep.mubr.msk.f32.mxu1 %vm2550_vm11, %v10220_v33  ;;  %8029 = vmatpush1.bf16.msra.mxu1 %v8028_v5  ;;  %v3873_v5 = vld [vmem:[#allocation10 + $0x10b0] sm:$0xff] }
 0x4aa   : > { %8031 = vmatprep.subr.bf16.mxu1 %v8030_v19  ;;  %v3876_v19 = vld [vmem:[#allocation10 + $0x10c8] sm:$0xff]  ;;  %v8048_v35 = vpack.c.bf16 %v3873_v5, %v3871_v25  ;;  %v3883_v5 = vld [vmem:[#allocation10 + $0x1100] sm:$0xff] }
 0x4ac   : > { %6724 = vmatmul.mubr.msk.f32.gmra.mrb[74].mxu1 %vm2549_vm12, %v10226_v49 }
 0x4ad   : > { %6725 = vmatprep.mubr.msk.f32.mxu1 %vm2552_vm13, %v10232_v29  ;;  %8033 = vmatpush1.bf16.msra.mxu1 %v8032_v13  ;;  %v8050_v13 = vpack.c.bf16 %v3878_v26, %v3876_v19  ;;  %v3885_v19 = vld [vmem:[#allocation10 + $0x1110] sm:$0xff]  ;;  %v3888_v26 = vld [vmem:[#allocation10 + $0x1128] sm:$0xff] }
 0x4ae   : > { %8035 = vmatprep.subr.bf16.mxu1 %v8034_v38  ;;  %v3875_v38 = vld [vmem:[#allocation10 + $0x10c0] sm:$0xff] }
 0x4af   : > { %v8052_v44 = vpack.c.bf16 %v3877_v30, %v3875_v38  ;;  %v8060_v30 = vpack.c.bf16 %v3885_v19, %v3883_v5  ;;  %v3898_v5 = vld [vmem:[#allocation10 + $0x1178] sm:$0xff] }
 0x4b0   : > { %6726 = vmatmul.mubr.msk.f32.gmra.mrb[76].mxu1 %vm2551_vm14, %v10238_v11 }
 0x4b1   : > { %6727 = vmatprep.mubr.msk.f32.mxu1 %vm2554_vm15, %v10247_v45  ;;  %8037 = vmatpush1.bf16.msra.mxu1 %v8036_v50 }
 0x4b2   : > { %8039 = vmatprep.subr.bf16.mxu1 %v8038_v63 }
 0x4b4   : > { %6728 = vmatmul.mubr.msk.f32.gmra.mrb[78].mxu1 %vm2553_vm1, %v10256_v60 }
 0x4b5   : > { %8041 = vmatpush1.bf16.msra.mxu1 %v8040_v8  ;;  %6737 = vmatprep.mubr.msk.f32.mxu1 %vm2548_vm9, %v10373_v22  ;;  %v3881_v8 = vld [vmem:[#allocation10 + $0x10f0] sm:$0xff]  ;;  %vm4490_vm9 = vcmp.ge.f32.partialorder %v9749_v21, 0.7 }
 0x4b6   : > { %8043 = vmatprep.subr.bf16.mxu1 %v8042_v2  ;;  %v3884_v2 = vld [vmem:[#allocation10 + $0x1108] sm:$0xff] }
 0x4b7   : > { %v8058_v25 = vpack.c.bf16 %v3886_v54, %v3884_v2 }
 0x4b8   : > { %v2693_v32 = vpop.f32.mrb[48].mxu1 }
 0x4b9   : > { %8045 = vmatpush1.bf16.msra.mxu1 %v8044_v53  ;;  %v2695_v34 = vpop.f32.mrb[49].mxu1  ;;  %v8056_v53 = vpack.c.bf16 %v3881_v8, %v3879_v62  ;;  %v3894_v62 = vld [vmem:[#allocation10 + $0x1158] sm:$0xff] }
 0x4ba   : > { %8047 = vmatprep.subr.bf16.mxu1 %v8046_v23 }
 0x4bc   : > { %v2699_v10 = vpop.f32.mrb[50].mxu1 }
 0x4bd   : > { %8049 = vmatpush1.bf16.msra.mxu1 %v8048_v35  ;;  %v8092_v50 = vpack.c.bf16 %v2699_v10, %v2693_v32  ;;  %v2701_v63 = vpop.f32.mrb[51].mxu1  ;;  %v3890_v32 = vld [vmem:[#allocation10 + $0x1138] sm:$0xff] }
 0x4be   : > { %v8090_v55 = vpack.c.bf16 %v2701_v63, %v2695_v34  ;;  %8051 = vmatprep.subr.bf16.mxu1 %v8050_v13  ;;  %v3887_v63 = vld [vmem:[#allocation10 + $0x1120] sm:$0xff] }
 0x4c0   : > { %v2705_v1 = vpop.f32.mrb[52].mxu1  ;;  %8091 = vmatprep.subr.bf16.mxu0 %v8090_v55 }
 0x4c1   : > { %8053 = vmatpush1.bf16.msra.mxu1 %v8052_v44  ;;  %v10378_v4 = vpop.f32.mrb[56].mxu0  ;;  %v2707_v47 = vpop.f32.mrb[53].mxu1  ;;  %8093 = vmatpush1.bf16.msra.mxu0 %v8092_v50  ;;  %v8062_v50 = vpack.c.bf16 %v3890_v32, %v3888_v26  ;;  %v3889_v44 = vld [vmem:[#allocation10 + $0x1130] sm:$0xff] }
 0x4c2   : > { %v10380_v23 = vpop.f32.mrb[57].mxu0  ;;  %8055 = vmatprep.subr.bf16.mxu1 %v8054_v0  ;;  %v3892_v0 = vld [vmem:[#allocation10 + $0x1148] sm:$0xff]  ;;  %v8064_v2 = vpack.c.bf16 %v3889_v44, %v3887_v63  ;;  %v3903_v63 = vld [vmem:[#allocation10 + $0x11a0] sm:$0xff]  ;;  %v3905_v44 = vld [vmem:[#allocation10 + $0x11b0] sm:$0xff] }
 0x4c4   : > { %v2711_v34 = vpop.f32.mrb[54].mxu1 }
 0x4c5   : > { %8057 = vmatpush1.bf16.msra.mxu1 %v8056_v53  ;;  %v8096_v35 = vpack.c.bf16 %v2711_v34, %v2705_v1  ;;  %v10382_v13 = vpop.f32.mrb[58].mxu0  ;;  %v2713_v38 = vpop.f32.mrb[55].mxu1  ;;  %v8066_v1 = vpack.c.bf16 %v3894_v62, %v3892_v0  ;;  %v3893_v53 = vld [vmem:[#allocation10 + $0x1150] sm:$0xff]  ;;  %v3908_v0 = vld [vmem:[#allocation10 + $0x11c8] sm:$0xff]  ;;  %v3910_v62 = vld [vmem:[#allocation10 + $0x11d8] sm:$0xff] }
 0x4c6   : > { %v8116_v40 = vpack.c.bf16 %v10382_v13, %v10378_v4  ;;  %v8094_v46 = vpack.c.bf16 %v2713_v38, %v2707_v47  ;;  %v10386_v10 = vpop.f32.mrb[59].mxu0  ;;  %8059 = vmatprep.subr.bf16.mxu1 %v8058_v25  ;;  %v3891_v47 = vld [vmem:[#allocation10 + $0x1140] sm:$0xff]  ;;  %v3896_v25 = vld [vmem:[#allocation10 + $0x1168] sm:$0xff]  ;;  %v8082_v14 = vpack.c.bf16 %v3910_v62, %v3908_v0 }
 0x4c7   : > { %v8114_v55 = vpack.c.bf16 %v10386_v10, %v10380_v23  ;;  %v8068_v26 = vpack.c.bf16 %v3893_v53, %v3891_v47  ;;  %v8070_v57 = vpack.c.bf16 %v3898_v5, %v3896_v25  ;;  %v3900_v38 = vld [vmem:[#allocation10 + $0x1188] sm:$0xff]  ;;  %v3914_v47 = vld [vmem:[#allocation10 + $0x11f8] sm:$0xff]  ;;  %v3911_v5 = vld [vmem:[#allocation10 + $0x11e0] sm:$0xff] }
 0x4c8   : > { %8095 = vmatprep.subr.bf16.mxu0 %v8094_v46  ;;  %v3901_v46 = vld [vmem:[#allocation10 + $0x1190] sm:$0xff]  ;;  %v4508_v62 = vld [vmem:[#allocation10 + $0x40] sm:$0xff]  ;;  %v4549_v23 = vld [vmem:[#allocation10 + $0x188] sm:$0xff] }
 0x4c9   : > { %8061 = vmatpush1.bf16.msra.mxu1 %v8060_v30  ;;  %v10390_v8 = vpop.f32.mrb[60].mxu0  ;;  %8097 = vmatpush1.bf16.msra.mxu0 %v8096_v35  ;;  %v3899_v30 = vld [vmem:[#allocation10 + $0x1180] sm:$0xff]  ;;  %v4551_v10 = vld [vmem:[#allocation10 + $0x198] sm:$0xff] }
 0x4ca   : > { %v10392_v54 = vpop.f32.mrb[61].mxu0  ;;  %8063 = vmatprep.subr.bf16.mxu1 %v8062_v50  ;;  %8099 = vmatprep.subr.bf16.mxu0 %v8098_v36  ;;  %v3897_v36 = vld [vmem:[#allocation10 + $0x1170] sm:$0xff]  ;;  %v8078_v50 = vpack.c.bf16 %v3906_v12, %v3904_v6  ;;  %v4504_v12 = vld [vmem:[#allocation10 + $0x20] sm:$0xff]  ;;  %v8210_v13 = vpack.c.bf16 %v4551_v10, %v4549_v23 }
 0x4cb   : > { %v8072_v42 = vpack.c.bf16 %v3897_v36, %v3895_v61  ;;  %v4503_v61 = vld [vmem:[#allocation10 + $0x18] sm:$0xff]  ;;  %v4826_v23 = vld [vmem:[#allocation10 + $0x420] sm:$0xff]  ;;  %v4828_v10 = vld [vmem:[#allocation10 + $0x430] sm:$0xff] }
 0x4cd   : > { %8065 = vmatpush1.bf16.msra.mxu1 %v8064_v2  ;;  %v10397_v19 = vpop.f32.mrb[62].mxu0  ;;  %8101 = vmatpush1.bf16.msra.mxu0 %v8100_v24  ;;  %v8074_v24 = vpack.c.bf16 %v3902_v51, %v3900_v38  ;;  %v8080_v2 = vpack.c.bf16 %v3905_v44, %v3903_v63  ;;  %v4500_v51 = vld [vmem:[#allocation10] sm:$0xff]  ;;  %v4511_v63 = vld [vmem:[#allocation10 + $0x58] sm:$0xff] }
 0x4ce   : > { %v8120_v32 = vpack.c.bf16 %v10397_v19, %v10390_v8  ;;  %v10404_v34 = vpop.f32.mrb[63].mxu0  ;;  %8067 = vmatprep.subr.bf16.mxu1 %v8066_v1  ;;  %8103 = vmatprep.subr.bf16.mxu0 %v8102_v3  ;;  %v8076_v3 = vpack.c.bf16 %v3901_v46, %v3899_v30  ;;  %v3912_v1 = vld [vmem:[#allocation10 + $0x11e8] sm:$0xff]  ;;  %v4507_v30 = vld [vmem:[#allocation10 + $0x38] sm:$0xff]  ;;  %v4556_v8 = vld [vmem:[#allocation10 + $0x1c0] sm:$0xff] }
 0x4cf   : > { %v8118_v35 = vpack.c.bf16 %v10404_v34, %v10392_v54  ;;  %v8086_v25 = vpack.c.bf16 %v3914_v47, %v3912_v1  ;;  %v4514_v1 = vld [vmem:[#allocation10 + $0x70] sm:$0xff]  ;;  %v4517_v47 = vld [vmem:[#allocation10 + $0x88] sm:$0xff] }
 0x4d0   : > { %v4558_v19 = vld [vmem:[#allocation10 + $0x1d0] sm:$0xff] }
 0x4d1   : > { %8069 = vmatpush1.bf16.msra.mxu1 %v8068_v26  ;;  %8105 = vmatpush1.bf16.msra.mxu0 %v8104_v20  ;;  %v3909_v20 = vld [vmem:[#allocation10 + $0x11d0] sm:$0xff] }
 0x4d2   : > { %8071 = vmatprep.subr.bf16.mxu1 %v8070_v57  ;;  %v8084_v53 = vpack.c.bf16 %v3909_v20, %v3907_v27  ;;  %v3913_v26 = vld [vmem:[#allocation10 + $0x11f0] sm:$0xff]  ;;  %v4501_v57 = vld [vmem:[#allocation10 + $0x8] sm:$0xff]  ;;  %v4515_v27 = vld [vmem:[#allocation10 + $0x78] sm:$0xff] }
 0x4d3   : > { %v8088_v36 = vpack.c.bf16 %v3913_v26, %v3911_v5  ;;  %v8162_v38 = vpack.c.bf16 %v4503_v61, %v4501_v57  ;;  %v4512_v20 = vld [vmem:[#allocation10 + $0x60] sm:$0xff]  ;;  %v4518_v5 = vld [vmem:[#allocation10 + $0x90] sm:$0xff]  ;;  %v4521_v26 = vld [vmem:[#allocation10 + $0xa8] sm:$0xff] }
 0x4d4   : > { %v4523_v57 = vld [vmem:[#allocation10 + $0xb8] sm:$0xff]  ;;  %v4520_v61 = vld [vmem:[#allocation10 + $0xa0] sm:$0xff] }
 0x4d5   : > { %8073 = vmatpush1.bf16.msra.mxu1 %v8072_v42  ;;  %v4502_v42 = vld [vmem:[#allocation10 + $0x10] sm:$0xff] }
 0x4d6   : > { %8075 = vmatprep.subr.bf16.mxu1 %v8074_v24  ;;  %v4505_v24 = vld [vmem:[#allocation10 + $0x28] sm:$0xff]  ;;  %v8164_v46 = vpack.c.bf16 %v4502_v42, %v4500_v51  ;;  %v4527_v51 = vld [vmem:[#allocation10 + $0xd8] sm:$0xff] }
 0x4d7   : > { %v8166_v6 = vpack.c.bf16 %v4507_v30, %v4505_v24 }
 0x4d9   : > { %8077 = vmatpush1.bf16.msra.mxu1 %v8076_v3  ;;  %v4506_v3 = vld [vmem:[#allocation10 + $0x30] sm:$0xff] }
 0x4da   : > { %8079 = vmatprep.subr.bf16.mxu1 %v8078_v50  ;;  %v4509_v50 = vld [vmem:[#allocation10 + $0x48] sm:$0xff]  ;;  %v8168_v44 = vpack.c.bf16 %v4506_v3, %v4504_v12  ;;  %v4531_v3 = vld [vmem:[#allocation10 + $0xf8] sm:$0xff] }
 0x4db   : > { %v8170_v0 = vpack.c.bf16 %v4511_v63, %v4509_v50  ;;  %v4529_v12 = vld [vmem:[#allocation10 + $0xe8] sm:$0xff] }
 0x4dd   : > { %8081 = vmatpush1.bf16.msra.mxu1 %v8080_v2  ;;  %v4510_v2 = vld [vmem:[#allocation10 + $0x50] sm:$0xff] }
 0x4de   : > { %8083 = vmatprep.subr.bf16.mxu1 %v8082_v14  ;;  %v4513_v14 = vld [vmem:[#allocation10 + $0x68] sm:$0xff] }
 0x4e1   : > { %8085 = vmatpush1.bf16.msra.mxu1 %v8084_v53  ;;  %v4519_v53 = vld [vmem:[#allocation10 + $0x98] sm:$0xff] }
 0x4e2   : > { %8087 = vmatprep.subr.bf16.mxu1 %v8086_v25  ;;  %v4516_v25 = vld [vmem:[#allocation10 + $0x80] sm:$0xff] }
 0x4e5   : > { %8089 = vmatpush1.bf16.msra.mxu1 %v8088_v36  ;;  %v4522_v36 = vld [vmem:[#allocation10 + $0xb0] sm:$0xff] }
 0x4e6   : > { %8163 = vmatprep.subr.bf16.mxu1 %v8162_v38  ;;  %v4525_v38 = vld [vmem:[#allocation10 + $0xc8] sm:$0xff]  ;;  %v8184_v24 = vpack.c.bf16 %v4522_v36, %v4520_v61 }
 0x4e8   : > { %6738 = vmatmul.mubr.msk.f32.vlgmr.msra.gmra.mrb[80].mxu1 %vm2547_vm10, %v10214_v9  ;;  %v8172_v9 = vpack.c.bf16 %v4510_v2, %v4508_v62  ;;  %v8190_v62 = vpack.c.bf16 %v4531_v3, %v4529_v12  ;;  %v4528_v2 = vld [vmem:[#allocation10 + $0xe0] sm:$0xff]  ;;  %v4543_v12 = vld [vmem:[#allocation10 + $0x158] sm:$0xff] }
 0x4e9   : > { %6739 = vmatprep.mubr.msk.f32.mxu1 %vm2550_vm11, %v10220_v33  ;;  %8165 = vmatpush1.bf16.msra.mxu1 %v8164_v46  ;;  %v8174_v33 = vpack.c.bf16 %v4515_v27, %v4513_v14  ;;  %v4524_v46 = vld [vmem:[#allocation10 + $0xc0] sm:$0xff]  ;;  %v4530_v14 = vld [vmem:[#allocation10 + $0xf0] sm:$0xff] }
 0x4ea   : > { %8167 = vmatprep.subr.bf16.mxu1 %v8166_v6  ;;  %v4526_v6 = vld [vmem:[#allocation10 + $0xd0] sm:$0xff] }
 0x4eb   : > { %v8188_v63 = vpack.c.bf16 %v4526_v6, %v4524_v46  ;;  %v4541_v6 = vld [vmem:[#allocation10 + $0x148] sm:$0xff] }
 0x4ec   : > { %6740 = vmatmul.mubr.msk.f32.gmra.mrb[82].mxu1 %vm2549_vm12, %v10226_v49  ;;  %v8176_v49 = vpack.c.bf16 %v4514_v1, %v4512_v20  ;;  %v8192_v1 = vpack.c.bf16 %v4530_v14, %v4528_v2  ;;  %v4545_v14 = vld [vmem:[#allocation10 + $0x168] sm:$0xff] }
 0x4ed   : > { %6741 = vmatprep.mubr.msk.f32.mxu1 %vm2552_vm13, %v10232_v29  ;;  %8169 = vmatpush1.bf16.msra.mxu1 %v8168_v44  ;;  %v8178_v29 = vpack.c.bf16 %v4519_v53, %v4517_v47 }
 0x4ee   : > { %8171 = vmatprep.subr.bf16.mxu1 %v8170_v0 }
 0x4f0   : > { %6742 = vmatmul.mubr.msk.f32.gmra.mrb[84].mxu1 %vm2551_vm14, %v10238_v11  ;;  %v8180_v11 = vpack.c.bf16 %v4518_v5, %v4516_v25  ;;  %v4534_v25 = vld [vmem:[#allocation10 + $0x110] sm:$0xff] }
 0x4f1   : > { %6743 = vmatprep.mubr.msk.f32.mxu1 %vm2554_vm15, %v10247_v45  ;;  %8173 = vmatpush1.bf16.msra.mxu1 %v8172_v9  ;;  %v8182_v45 = vpack.c.bf16 %v4523_v57, %v4521_v26  ;;  %v4533_v9 = vld [vmem:[#allocation10 + $0x108] sm:$0xff]  ;;  %v4539_v57 = vld [vmem:[#allocation10 + $0x138] sm:$0xff] }
 0x4f2   : > { %8175 = vmatprep.subr.bf16.mxu1 %v8174_v33  ;;  %v4535_v33 = vld [vmem:[#allocation10 + $0x118] sm:$0xff]  ;;  %v4537_v26 = vld [vmem:[#allocation10 + $0x128] sm:$0xff] }
 0x4f4   : > { %6744 = vmatmul.mubr.msk.f32.gmra.mrb[86].mxu1 %vm2553_vm1, %v10256_v60  ;;  %v8186_v60 = vpack.c.bf16 %v4527_v51, %v4525_v38  ;;  %v8198_v51 = vpack.c.bf16 %v4539_v57, %v4537_v26  ;;  %v4553_v26 = vld [vmem:[#allocation10 + $0x1a8] sm:$0xff]  ;;  %v4555_v57 = vld [vmem:[#allocation10 + $0x1b8] sm:$0xff] }
 0x4f5   : > { %8177 = vmatpush1.bf16.msra.mxu1 %v8176_v49  ;;  %6762 = vmatprep.mubr.msk.f32.mxu1 %vm4485_vm2, %v10373_v22  ;;  %v8194_v49 = vpack.c.bf16 %v4535_v33, %v4533_v9  ;;  %v8214_v34 = vpack.c.bf16 %v4555_v57, %v4553_v26  ;;  %v8296_v26 = vpack.c.bf16 %v4828_v10, %v4826_v23  ;;  %v4849_v23 = vld [vmem:[#allocation10 + $0x4d8] sm:$0xff] }
 0x4f6   : > { %8179 = vmatprep.subr.bf16.mxu1 %v8178_v29  ;;  %v4532_v29 = vld [vmem:[#allocation10 + $0x100] sm:$0xff] }
 0x4f9   : > { %8181 = vmatpush1.bf16.msra.mxu1 %v8180_v11  ;;  %v3015_v42 = vpop.f32.mrb[56].mxu1 }
 0x4fa   : > { %v3017_v30 = vpop.f32.mrb[57].mxu1  ;;  %8183 = vmatprep.subr.bf16.mxu1 %v8182_v45  ;;  %v8196_v45 = vpack.c.bf16 %v4534_v25, %v4532_v29  ;;  %v4550_v25 = vld [vmem:[#allocation10 + $0x190] sm:$0xff] }
 0x4fd   : > { %8185 = vmatpush1.bf16.msra.mxu1 %v8184_v24  ;;  %v3021_v50 = vpop.f32.mrb[58].mxu1  ;;  %v4538_v24 = vld [vmem:[#allocation10 + $0x130] sm:$0xff] }
 0x4fe   : > { %v8108_v44 = vpack.c.bf16 %v3021_v50, %v3015_v42  ;;  %v3023_v0 = vpop.f32.mrb[59].mxu1  ;;  %8187 = vmatprep.subr.bf16.mxu1 %v8186_v60  ;;  %v4536_v42 = vld [vmem:[#allocation10 + $0x120] sm:$0xff] }
 0x4ff   : > { %v8106_v27 = vpack.c.bf16 %v3023_v0, %v3017_v30  ;;  %v8200_v50 = vpack.c.bf16 %v4538_v24, %v4536_v42  ;;  %v4540_v0 = vld [vmem:[#allocation10 + $0x140] sm:$0xff]  ;;  %v4563_v42 = vld [vmem:[#allocation10 + $0x1f8] sm:$0xff]  ;;  %v8220_v24 = vpack.c.bf16 %v4558_v19, %v4556_v8  ;;  %v4836_v19 = vld [vmem:[#allocation10 + $0x470] sm:$0xff] }
 0x500   : > { %v4834_v8 = vld [vmem:[#allocation10 + $0x460] sm:$0xff] }
 0x501   : > { %8189 = vmatpush1.bf16.msra.mxu1 %v8188_v63  ;;  %v3027_v20 = vpop.f32.mrb[60].mxu1  ;;  %8107 = vmatprep.subr.bf16.mxu0 %v8106_v27  ;;  %v4547_v27 = vld [vmem:[#allocation10 + $0x178] sm:$0xff] }
 0x502   : > { %v10439_v47 = vpop.f32.mrb[64].mxu0  ;;  %v3029_v53 = vpop.f32.mrb[61].mxu1  ;;  %8109 = vmatpush1.bf16.msra.mxu0 %v8108_v44  ;;  %8191 = vmatprep.subr.bf16.mxu1 %v8190_v62  ;;  %v8202_v44 = vpack.c.bf16 %v4543_v12, %v4541_v6  ;;  %v4542_v62 = vld [vmem:[#allocation10 + $0x150] sm:$0xff]  ;;  %v4560_v6 = vld [vmem:[#allocation10 + $0x1e0] sm:$0xff] }
 0x503   : > { %v10441_v5 = vpop.f32.mrb[65].mxu0  ;;  %v8204_v9 = vpack.c.bf16 %v4542_v62, %v4540_v0  ;;  %v4562_v12 = vld [vmem:[#allocation10 + $0x1f0] sm:$0xff] }
 0x504   : > { %v8224_v0 = vpack.c.bf16 %v4562_v12, %v4560_v6  ;;  %v8304_v6 = vpack.c.bf16 %v4836_v19, %v4834_v8  ;;  %v4850_v8 = vld [vmem:[#allocation10 + $0x4e0] sm:$0xff]  ;;  %v4852_v19 = vld [vmem:[#allocation10 + $0x4f0] sm:$0xff] }
 0x505   : > { %8193 = vmatpush1.bf16.msra.mxu1 %v8192_v1  ;;  %v3033_v11 = vpop.f32.mrb[62].mxu1  ;;  %v4544_v1 = vld [vmem:[#allocation10 + $0x160] sm:$0xff] }
 0x506   : > { %v8112_v61 = vpack.c.bf16 %v3033_v11, %v3027_v20  ;;  %v10443_v36 = vpop.f32.mrb[66].mxu0  ;;  %v3035_v38 = vpop.f32.mrb[63].mxu1  ;;  %8195 = vmatprep.subr.bf16.mxu1 %v8194_v49  ;;  %v8206_v20 = vpack.c.bf16 %v4547_v27, %v4545_v14  ;;  %v4554_v11 = vld [vmem:[#allocation10 + $0x1b0] sm:$0xff]  ;;  %v4822_v14 = vld [vmem:[#allocation10 + $0x400] sm:$0xff] }
 0x507   : > { %v8132_v30 = vpack.c.bf16 %v10443_v36, %v10439_v47  ;;  %v8110_v60 = vpack.c.bf16 %v3035_v38, %v3029_v53  ;;  %v10447_v46 = vpop.f32.mrb[67].mxu0  ;;  %v4546_v53 = vld [vmem:[#allocation10 + $0x170] sm:$0xff]  ;;  %v4870_v47 = vld [vmem:[#allocation10 + $0x580] sm:$0xff] }
 0x508   : > { %v8130_v3 = vpack.c.bf16 %v10447_v46, %v10441_v5  ;;  %v8208_v4 = vpack.c.bf16 %v4546_v53, %v4544_v1  ;;  %v4824_v27 = vld [vmem:[#allocation10 + $0x410] sm:$0xff] }
 0x509   : > { %8197 = vmatpush1.bf16.msra.mxu1 %v8196_v45  ;;  %8111 = vmatprep.subr.bf16.mxu0 %v8110_v60  ;;  %v4557_v45 = vld [vmem:[#allocation10 + $0x1c8] sm:$0xff]  ;;  %v8292_v1 = vpack.c.bf16 %v4824_v27, %v4822_v14  ;;  %v10519_v14 = vld [vmem:[%s9639_s24 + $0x30] sm:$0xff] }
 0x50a   : > { %v10451_v63 = vpop.f32.mrb[68].mxu0  ;;  %8113 = vmatpush1.bf16.msra.mxu0 %v8112_v61  ;;  %8199 = vmatprep.subr.bf16.mxu1 %v8198_v51  ;;  %v4559_v61 = vld [vmem:[#allocation10 + $0x1d8] sm:$0xff]  ;;  %v4872_v36 = vld [vmem:[#allocation10 + $0x590] sm:$0xff] }
 0x50b   : > { %v10453_v2 = vpop.f32.mrb[69].mxu0  ;;  %8115 = vmatprep.subr.bf16.mxu0 %v8114_v55  ;;  %v8218_v51 = vpack.c.bf16 %v4559_v61, %v4557_v45  ;;  %v10491_v45 = vld [vmem:[%s9639_s24 + $0x10] sm:$0xff]  ;;  %v10498_v61 = vld [vmem:[%s9639_s24 + $0x28] sm:$0xff] }
 0x50d   : > { %8201 = vmatpush1.bf16.msra.mxu1 %v8200_v50  ;;  %v4823_v50 = vld [vmem:[#allocation10 + $0x408] sm:$0xff] }
 0x50e   : > { %v10458_v33 = vpop.f32.mrb[70].mxu0  ;;  %8117 = vmatpush1.bf16.msra.mxu0 %v8116_v40  ;;  %8203 = vmatprep.subr.bf16.mxu1 %v8202_v44  ;;  %v4548_v40 = vld [vmem:[#allocation10 + $0x180] sm:$0xff]  ;;  %v4825_v44 = vld [vmem:[#allocation10 + $0x418] sm:$0xff] }
 0x50f   : > { %v8136_v49 = vpack.c.bf16 %v10458_v33, %v10451_v63  ;;  %v10465_v29 = vpop.f32.mrb[71].mxu0  ;;  %8119 = vmatprep.subr.bf16.mxu0 %v8118_v35  ;;  %v8212_v54 = vpack.c.bf16 %v4550_v25, %v4548_v40  ;;  %v4552_v35 = vld [vmem:[#allocation10 + $0x1a0] sm:$0xff]  ;;  %v8290_v62 = vpack.c.bf16 %v4825_v44, %v4823_v50  ;;  %v10484_v25 = vld [vmem:[%s9639_s24 + $0x18] sm:$0xff]  ;;  %v4840_v44 = vld [vmem:[#allocation10 + $0x490] sm:$0xff] }
 0x510   : > { %v8134_v55 = vpack.c.bf16 %v10465_v29, %v10453_v2  ;;  %v8216_v38 = vpack.c.bf16 %v4554_v11, %v4552_v35  ;;  %v10477_v40 = vld [vmem:[%s9639_s24] sm:$0xff]  ;;  %v4835_v35 = vld [vmem:[#allocation10 + $0x468] sm:$0xff]  ;;  %v4837_v11 = vld [vmem:[#allocation10 + $0x478] sm:$0xff] }
 0x511   : > { %8205 = vmatpush1.bf16.msra.mxu1 %v8204_v9  ;;  %v4827_v9 = vld [vmem:[#allocation10 + $0x428] sm:$0xff]  ;;  %v4838_v50 = vld [vmem:[#allocation10 + $0x480] sm:$0xff] }
 0x512   : > { %8121 = vmatpush1.bf16.msra.mxu0 %v8120_v32  ;;  %8207 = vmatprep.subr.bf16.mxu1 %v8206_v20  ;;  %v4561_v32 = vld [vmem:[#allocation10 + $0x1e8] sm:$0xff]  ;;  %v4829_v20 = vld [vmem:[#allocation10 + $0x438] sm:$0xff]  ;;  %v8308_v27 = vpack.c.bf16 %v4840_v44, %v4838_v50  ;;  %v8320_v44 = vpack.c.bf16 %v4852_v19, %v4850_v8  ;;  %v4874_v29 = vld [vmem:[#allocation10 + $0x5a0] sm:$0xff] }
 0x513   : > { %v8222_v60 = vpack.c.bf16 %v4563_v42, %v4561_v32  ;;  %v8294_v53 = vpack.c.bf16 %v4829_v20, %v4827_v9  ;;  %v4839_v32 = vld [vmem:[#allocation10 + $0x488] sm:$0xff]  ;;  %v4841_v42 = vld [vmem:[#allocation10 + $0x498] sm:$0xff]  ;;  %v4842_v20 = vld [vmem:[#allocation10 + $0x4a0] sm:$0xff] }
 0x514   : > { %v8306_v12 = vpack.c.bf16 %v4841_v42, %v4839_v32 }
 0x515   : > { %8209 = vmatpush1.bf16.msra.mxu1 %v8208_v4  ;;  %v4831_v4 = vld [vmem:[#allocation10 + $0x448] sm:$0xff] }
 0x516   : > { %8211 = vmatprep.subr.bf16.mxu1 %v8210_v13  ;;  %v4833_v13 = vld [vmem:[#allocation10 + $0x458] sm:$0xff] }
 0x517   : > { %v8298_v57 = vpack.c.bf16 %v4833_v13, %v4831_v4 }
 0x519   : > { %8213 = vmatpush1.bf16.msra.mxu1 %v8212_v54  ;;  %v4830_v54 = vld [vmem:[#allocation10 + $0x440] sm:$0xff] }
 0x51a   : > { %8215 = vmatprep.subr.bf16.mxu1 %v8214_v34  ;;  %v4832_v34 = vld [vmem:[#allocation10 + $0x450] sm:$0xff] }
 0x51d   : > { %8217 = vmatpush1.bf16.msra.mxu1 %v8216_v38  ;;  %v8300_v38 = vpack.c.bf16 %v4832_v34, %v4830_v54  ;;  %v4851_v34 = vld [vmem:[#allocation10 + $0x4e8] sm:$0xff] }
 0x51e   : > { %8219 = vmatprep.subr.bf16.mxu1 %v8218_v51  ;;  %v8302_v51 = vpack.c.bf16 %v4837_v11, %v4835_v35  ;;  %v4853_v35 = vld [vmem:[#allocation10 + $0x4f8] sm:$0xff] }
 0x521   : > { %8221 = vmatpush1.bf16.msra.mxu1 %v8220_v24  ;;  %v10505_v24 = vld [vmem:[%s9639_s24 + $0x20] sm:$0xff] }
 0x522   : > { %8223 = vmatprep.subr.bf16.mxu1 %v8222_v60  ;;  %v10512_v60 = vld [vmem:[%s9639_s24 + $0x38] sm:$0xff] }
 0x525   : > { %8225 = vmatpush1.bf16.msra.mxu1 %v8224_v0  ;;  %v4843_v0 = vld [vmem:[#allocation10 + $0x4a8] sm:$0xff] }
 0x526   : > { %8291 = vmatprep.subr.bf16.mxu1 %v8290_v62  ;;  %v4845_v62 = vld [vmem:[#allocation10 + $0x4b8] sm:$0xff] }
 0x527   : > { %v8310_v9 = vpack.c.bf16 %v4845_v62, %v4843_v0 }
 0x528   : > { %6763 = vmatmul.mubr.msk.f32.vlgmr.msra.gmra.mrb[88].mxu1 %vm4484_vm3, %v10477_v40 }
 0x529   : > { %6764 = vmatprep.mubr.msk.f32.mxu1 %vm4487_vm4, %v10484_v25  ;;  %8293 = vmatpush1.bf16.msra.mxu1 %v8292_v1  ;;  %v4844_v1 = vld [vmem:[#allocation10 + $0x4b0] sm:$0xff] }
 0x52a   : > { %8295 = vmatprep.subr.bf16.mxu1 %v8294_v53  ;;  %v4847_v53 = vld [vmem:[#allocation10 + $0x4c8] sm:$0xff]  ;;  %v8312_v10 = vpack.c.bf16 %v4844_v1, %v4842_v20 }
 0x52b   : > { %v8314_v13 = vpack.c.bf16 %v4849_v23, %v4847_v53  ;;  %v4859_v53 = vld [vmem:[#allocation10 + $0x528] sm:$0xff]  ;;  %v4861_v23 = vld [vmem:[#allocation10 + $0x538] sm:$0xff] }
 0x52c   : > { %6765 = vmatmul.mubr.msk.f32.gmra.mrb[90].mxu1 %vm4486_vm5, %v10491_v45 }
 0x52d   : > { %6766 = vmatprep.mubr.msk.f32.mxu1 %vm4489_vm6, %v10498_v61  ;;  %8297 = vmatpush1.bf16.msra.mxu1 %v8296_v26  ;;  %v4846_v26 = vld [vmem:[#allocation10 + $0x4c0] sm:$0xff] }
 0x52e   : > { %8299 = vmatprep.subr.bf16.mxu1 %v8298_v57  ;;  %v4848_v57 = vld [vmem:[#allocation10 + $0x4d0] sm:$0xff] }
 0x52f   : > { %v8316_v11 = vpack.c.bf16 %v4848_v57, %v4846_v26  ;;  %v8326_v26 = vpack.c.bf16 %v4861_v23, %v4859_v53  ;;  %v4858_v57 = vld [vmem:[#allocation10 + $0x520] sm:$0xff]  ;;  %v4868_v23 = vld [vmem:[#allocation10 + $0x570] sm:$0xff] }
 0x530   : > { %6767 = vmatmul.mubr.msk.f32.gmra.mrb[92].mxu1 %vm4488_vm7, %v10505_v24  ;;  %v4866_v53 = vld [vmem:[#allocation10 + $0x560] sm:$0xff] }
 0x531   : > { %6768 = vmatprep.mubr.msk.f32.mxu1 %vm4491_vm8, %v10512_v60  ;;  %8301 = vmatpush1.bf16.msra.mxu1 %v8300_v38  ;;  %v8336_v46 = vpack.c.bf16 %v4868_v23, %v4866_v53 }
 0x532   : > { %8303 = vmatprep.subr.bf16.mxu1 %v8302_v51  ;;  %v8318_v51 = vpack.c.bf16 %v4853_v35, %v4851_v34 }
 0x534   : > { %6769 = vmatmul.mubr.msk.f32.gmra.mrb[94].mxu1 %vm4490_vm9, %v10519_v14 }
 0x535   : > { %8305 = vmatpush1.bf16.msra.mxu1 %v8304_v6  ;;  %6778 = vmatprep.mubr.msk.f32.mxu1 %vm4485_vm2, %v10373_v22  ;;  %v4014_v22 = vld [vmem:[#allocation11 + $0x68] sm:$0xff] }
 0x536   : > { %8307 = vmatprep.subr.bf16.mxu1 %v8306_v12  ;;  %4198 = vmatprep.mubr.f32.mxu0 %v4014_v22  ;;  %v4855_v6 = vld [vmem:[#allocation10 + $0x508] sm:$0xff]  ;;  %v4857_v12 = vld [vmem:[#allocation10 + $0x518] sm:$0xff] }
 0x537   : > { %v8322_v62 = vpack.c.bf16 %v4857_v12, %v4855_v6  ;;  %v4863_v22 = vld [vmem:[#allocation10 + $0x548] sm:$0xff]  ;;  %v4862_v12 = vld [vmem:[#allocation10 + $0x540] sm:$0xff] }
 0x539   : > { %8309 = vmatpush1.bf16.msra.mxu1 %v8308_v27  ;;  %v4854_v27 = vld [vmem:[#allocation10 + $0x500] sm:$0xff] }
 0x53a   : > { %v3337_v4 = vpop.f32.mrb[64].mxu1  ;;  %8311 = vmatprep.subr.bf16.mxu1 %v8310_v9  ;;  %v4856_v9 = vld [vmem:[#allocation10 + $0x510] sm:$0xff] }
 0x53b   : > { %v3339_v54 = vpop.f32.mrb[65].mxu1 }
 0x53d   : > { %8313 = vmatpush1.bf16.msra.mxu1 %v8312_v10 }
 0x53e   : > { %v3343_v38 = vpop.f32.mrb[66].mxu1  ;;  %8315 = vmatprep.subr.bf16.mxu1 %v8314_v13 }
 0x53f   : > { %v8124_v32 = vpack.c.bf16 %v3343_v38, %v3337_v4  ;;  %v3345_v42 = vpop.f32.mrb[67].mxu1  ;;  %v8324_v4 = vpack.c.bf16 %v4856_v9, %v4854_v27  ;;  %v4865_v38 = vld [vmem:[#allocation10 + $0x558] sm:$0xff] }
 0x540   : > { %v8122_v50 = vpack.c.bf16 %v3345_v42, %v3339_v54  ;;  %v4860_v54 = vld [vmem:[#allocation10 + $0x530] sm:$0xff]  ;;  %v8330_v6 = vpack.c.bf16 %v4865_v38, %v4863_v22  ;;  %v4879_v22 = vld [vmem:[#allocation10 + $0x5c8] sm:$0xff]  ;;  %v4881_v38 = vld [vmem:[#allocation10 + $0x5d8] sm:$0xff] }
 0x541   : > { %8317 = vmatpush1.bf16.msra.mxu1 %v8316_v11  ;;  %v8328_v42 = vpack.c.bf16 %v4860_v54, %v4858_v57 }
 0x542   : > { %v3349_v0 = vpop.f32.mrb[68].mxu1  ;;  %8123 = vmatprep.subr.bf16.mxu0 %v8122_v50  ;;  %8319 = vmatprep.subr.bf16.mxu1 %v8318_v51  ;;  %v4864_v50 = vld [vmem:[#allocation10 + $0x550] sm:$0xff] }
 0x543   : > { %v10527_v20 = vpop.f32.mrb[72].mxu0  ;;  %v3351_v1 = vpop.f32.mrb[69].mxu1  ;;  %8125 = vmatpush1.bf16.msra.mxu0 %v8124_v32  ;;  %v8332_v9 = vpack.c.bf16 %v4864_v50, %v4862_v12  ;;  %v4880_v12 = vld [vmem:[#allocation10 + $0x5d0] sm:$0xff]  ;;  %v4883_v50 = vld [vmem:[#allocation10 + $0x5e8] sm:$0xff] }
 0x544   : > { %v10529_v10 = vpop.f32.mrb[73].mxu0 }
 0x545   : > { %8321 = vmatpush1.bf16.msra.mxu1 %v8320_v44 }
 0x546   : > { %v3355_v13 = vpop.f32.mrb[70].mxu1  ;;  %8323 = vmatprep.subr.bf16.mxu1 %v8322_v62  ;;  %v4869_v62 = vld [vmem:[#allocation10 + $0x578] sm:$0xff] }
 0x547   : > { %v8128_v34 = vpack.c.bf16 %v3355_v13, %v3349_v0  ;;  %v10531_v35 = vpop.f32.mrb[74].mxu0  ;;  %v3357_v11 = vpop.f32.mrb[71].mxu1  ;;  %v4867_v0 = vld [vmem:[#allocation10 + $0x568] sm:$0xff] }
 0x548   : > { %v8148_v51 = vpack.c.bf16 %v10531_v35, %v10527_v20  ;;  %v8126_v8 = vpack.c.bf16 %v3357_v11, %v3351_v1  ;;  %v10535_v19 = vpop.f32.mrb[75].mxu0  ;;  %v8334_v1 = vpack.c.bf16 %v4869_v62, %v4867_v0  ;;  %v4871_v13 = vld [vmem:[#allocation10 + $0x588] sm:$0xff]  ;;  %v8340_v11 = vpack.c.bf16 %v4872_v36, %v4870_v47  ;;  %v4885_v0 = vld [vmem:[#allocation10 + $0x5f8] sm:$0xff]  ;;  %v4884_v62 = vld [vmem:[#allocation10 + $0x5f0] sm:$0xff] }
 0x549   : > { %v8146_v32 = vpack.c.bf16 %v10535_v19, %v10529_v10  ;;  %8325 = vmatpush1.bf16.msra.mxu1 %v8324_v4  ;;  %v8350_v33 = vpack.c.bf16 %v4885_v0, %v4883_v50  ;;  %v5156_v50 = vld [vmem:[#allocation10 + $0x860] sm:$0xff]  ;;  %v5158_v0 = vld [vmem:[#allocation10 + $0x870] sm:$0xff] }
 0x54a   : > { %8127 = vmatprep.subr.bf16.mxu0 %v8126_v8  ;;  %8327 = vmatprep.subr.bf16.mxu1 %v8326_v26  ;;  %v4873_v26 = vld [vmem:[#allocation10 + $0x598] sm:$0xff]  ;;  %v5192_v19 = vld [vmem:[#allocation10 + $0x980] sm:$0xff] }
 0x54b   : > { %v10539_v44 = vpop.f32.mrb[76].mxu0  ;;  %8129 = vmatpush1.bf16.msra.mxu0 %v8128_v34  ;;  %v4877_v34 = vld [vmem:[#allocation10 + $0x5b8] sm:$0xff]  ;;  %v4017_v35 = vld [vmem:[#allocation11 + $0x80] sm:$0xff] }
 0x54c   : > { %v10541_v27 = vpop.f32.mrb[77].mxu0  ;;  %8131 = vmatprep.subr.bf16.mxu0 %v8130_v3  ;;  %v8338_v3 = vpack.c.bf16 %v4873_v26, %v4871_v13  ;;  %v5144_v13 = vld [vmem:[#allocation10 + $0x800] sm:$0xff]  ;;  %v5146_v26 = vld [vmem:[#allocation10 + $0x810] sm:$0xff] }
 0x54d   : > { %8329 = vmatpush1.bf16.msra.mxu1 %v8328_v42  ;;  %v8346_v42 = vpack.c.bf16 %v4881_v38, %v4879_v22  ;;  %v8420_v47 = vpack.c.bf16 %v5146_v26, %v5144_v13  ;;  %v5152_v22 = vld [vmem:[#allocation10 + $0x840] sm:$0xff]  ;;  %v5154_v38 = vld [vmem:[#allocation10 + $0x850] sm:$0xff]  ;;  %v10585_v13 = vld [vmem:[%s9639_s24 + $0x8] sm:$0xff] }
 0x54e   : > { %8331 = vmatprep.subr.bf16.mxu1 %v8330_v6  ;;  %v4878_v6 = vld [vmem:[#allocation10 + $0x5c0] sm:$0xff] }
 0x54f   : > { %v10546_v4 = vpop.f32.mrb[78].mxu0  ;;  %8133 = vmatpush1.bf16.msra.mxu0 %v8132_v30  ;;  %v4875_v30 = vld [vmem:[#allocation10 + $0x5a8] sm:$0xff]  ;;  %v8348_v63 = vpack.c.bf16 %v4880_v12, %v4878_v6  ;;  %v8428_v6 = vpack.c.bf16 %v5154_v38, %v5152_v22  ;;  %v5175_v38 = vld [vmem:[#allocation10 + $0x8f8] sm:$0xff] }
 0x550   : > { %v8152_v57 = vpack.c.bf16 %v10546_v4, %v10539_v44  ;;  %v10553_v54 = vpop.f32.mrb[79].mxu0  ;;  %8135 = vmatprep.subr.bf16.mxu0 %v8134_v55  ;;  %v8342_v2 = vpack.c.bf16 %v4877_v34, %v4875_v30  ;;  %v4876_v55 = vld [vmem:[#allocation10 + $0x5b0] sm:$0xff]  ;;  %v5148_v30 = vld [vmem:[#allocation10 + $0x820] sm:$0xff]  ;;  %v5173_v22 = vld [vmem:[#allocation10 + $0x8e8] sm:$0xff] }
 0x551   : > { %v8150_v5 = vpack.c.bf16 %v10553_v54, %v10541_v27  ;;  %8333 = vmatpush1.bf16.msra.mxu1 %v8332_v9  ;;  %v8344_v8 = vpack.c.bf16 %v4876_v55, %v4874_v29  ;;  %v5145_v9 = vld [vmem:[#allocation10 + $0x808] sm:$0xff]  ;;  %v5150_v34 = vld [vmem:[#allocation10 + $0x830] sm:$0xff]  ;;  %v5196_v27 = vld [vmem:[#allocation10 + $0x9a0] sm:$0xff] }
 0x552   : > { %8335 = vmatprep.subr.bf16.mxu1 %v8334_v1  ;;  %v5147_v1 = vld [vmem:[#allocation10 + $0x818] sm:$0xff]  ;;  %v8424_v29 = vpack.c.bf16 %v5150_v34, %v5148_v30  ;;  %v5198_v54 = vld [vmem:[#allocation10 + $0x9b0] sm:$0xff]  ;;  %v5200_v44 = vld [vmem:[#allocation10 + $0x9c0] sm:$0xff] }
 0x553   : > { %8137 = vmatpush1.bf16.msra.mxu0 %v8136_v49  ;;  %v4882_v49 = vld [vmem:[#allocation10 + $0x5e0] sm:$0xff]  ;;  %v8418_v23 = vpack.c.bf16 %v5147_v1, %v5145_v9  ;;  %v5162_v1 = vld [vmem:[#allocation10 + $0x890] sm:$0xff]  ;;  %v5171_v30 = vld [vmem:[#allocation10 + $0x8d8] sm:$0xff] }
 0x554   : > { %v8352_v53 = vpack.c.bf16 %v4884_v62, %v4882_v49  ;;  %v8432_v49 = vpack.c.bf16 %v5158_v0, %v5156_v50  ;;  %v5160_v9 = vld [vmem:[#allocation10 + $0x880] sm:$0xff]  ;;  %v5174_v50 = vld [vmem:[#allocation10 + $0x8f0] sm:$0xff] }
 0x555   : > { %8337 = vmatpush1.bf16.msra.mxu1 %v8336_v46  ;;  %v5149_v46 = vld [vmem:[#allocation10 + $0x828] sm:$0xff]  ;;  %v8436_v26 = vpack.c.bf16 %v5162_v1, %v5160_v9  ;;  %v5202_v4 = vld [vmem:[#allocation10 + $0x9d0] sm:$0xff] }
 0x556   : > { %8339 = vmatprep.subr.bf16.mxu1 %v8338_v3  ;;  %v5151_v3 = vld [vmem:[#allocation10 + $0x838] sm:$0xff] }
 0x557   : > { %v8422_v36 = vpack.c.bf16 %v5151_v3, %v5149_v46  ;;  %v5164_v3 = vld [vmem:[#allocation10 + $0x8a0] sm:$0xff] }
 0x559   : > { %8341 = vmatpush1.bf16.msra.mxu1 %v8340_v11  ;;  %v5153_v11 = vld [vmem:[#allocation10 + $0x848] sm:$0xff] }
 0x55a   : > { %8343 = vmatprep.subr.bf16.mxu1 %v8342_v2  ;;  %v5155_v2 = vld [vmem:[#allocation10 + $0x858] sm:$0xff] }
 0x55b   : > { %v8426_v55 = vpack.c.bf16 %v5155_v2, %v5153_v11  ;;  %v5168_v2 = vld [vmem:[#allocation10 + $0x8c0] sm:$0xff] }
 0x55d   : > { %8345 = vmatpush1.bf16.msra.mxu1 %v8344_v8  ;;  %v5157_v8 = vld [vmem:[#allocation10 + $0x868] sm:$0xff] }
 0x55e   : > { %8347 = vmatprep.subr.bf16.mxu1 %v8346_v42  ;;  %v5159_v42 = vld [vmem:[#allocation10 + $0x878] sm:$0xff] }
 0x55f   : > { %v8430_v12 = vpack.c.bf16 %v5159_v42, %v5157_v8 }
 0x561   : > { %8349 = vmatpush1.bf16.msra.mxu1 %v8348_v63  ;;  %v5161_v63 = vld [vmem:[#allocation10 + $0x888] sm:$0xff] }
 0x562   : > { %8351 = vmatprep.subr.bf16.mxu1 %v8350_v33  ;;  %v5163_v33 = vld [vmem:[#allocation10 + $0x898] sm:$0xff] }
 0x563   : > { %v8434_v62 = vpack.c.bf16 %v5163_v33, %v5161_v63  ;;  %v5177_v63 = vld [vmem:[#allocation10 + $0x908] sm:$0xff]  ;;  %v5179_v33 = vld [vmem:[#allocation10 + $0x918] sm:$0xff] }
 0x565   : > { %8353 = vmatpush1.bf16.msra.mxu1 %v8352_v53  ;;  %v5165_v53 = vld [vmem:[#allocation10 + $0x8a8] sm:$0xff] }
 0x566   : > { %8419 = vmatprep.subr.bf16.mxu1 %v8418_v23  ;;  %v5167_v23 = vld [vmem:[#allocation10 + $0x8b8] sm:$0xff] }
 0x567   : > { %v8438_v46 = vpack.c.bf16 %v5167_v23, %v5165_v53  ;;  %v8450_v53 = vpack.c.bf16 %v5179_v33, %v5177_v63  ;;  %v5176_v23 = vld [vmem:[#allocation10 + $0x900] sm:$0xff]  ;;  %v5189_v63 = vld [vmem:[#allocation10 + $0x968] sm:$0xff]  ;;  %v5191_v33 = vld [vmem:[#allocation10 + $0x978] sm:$0xff] }
 0x568   : > { %6779 = vmatmul.mubr.msk.f32.vlgmr.msra.gmra.mrb[96].mxu1 %vm4484_vm3, %v10477_v40 }
 0x569   : > { %6780 = vmatprep.mubr.msk.f32.mxu1 %vm4487_vm4, %v10484_v25  ;;  %8421 = vmatpush1.bf16.msra.mxu1 %v8420_v47  ;;  %v5166_v47 = vld [vmem:[#allocation10 + $0x8b0] sm:$0xff] }
 0x56a   : > { %8423 = vmatprep.subr.bf16.mxu1 %v8422_v36  ;;  %v5169_v36 = vld [vmem:[#allocation10 + $0x8c8] sm:$0xff]  ;;  %v8440_v34 = vpack.c.bf16 %v5166_v47, %v5164_v3  ;;  %v5183_v47 = vld [vmem:[#allocation10 + $0x938] sm:$0xff] }
 0x56b   : > { %v8442_v11 = vpack.c.bf16 %v5171_v30, %v5169_v36  ;;  %v5181_v3 = vld [vmem:[#allocation10 + $0x928] sm:$0xff] }
 0x56c   : > { %6781 = vmatmul.mubr.msk.f32.gmra.mrb[98].mxu1 %vm4486_vm5, %v10491_v45 }
 0x56d   : > { %6782 = vmatprep.mubr.msk.f32.mxu1 %vm4489_vm6, %v10498_v61  ;;  %8425 = vmatpush1.bf16.msra.mxu1 %v8424_v29  ;;  %v5170_v29 = vld [vmem:[#allocation10 + $0x8d0] sm:$0xff] }
 0x56e   : > { %8427 = vmatprep.subr.bf16.mxu1 %v8426_v55  ;;  %v8444_v42 = vpack.c.bf16 %v5170_v29, %v5168_v2  ;;  %v5182_v2 = vld [vmem:[#allocation10 + $0x930] sm:$0xff] }
 0x570   : > { %6783 = vmatmul.mubr.msk.f32.gmra.mrb[100].mxu1 %vm4488_vm7, %v10505_v24 }
 0x571   : > { %6784 = vmatprep.mubr.msk.f32.mxu1 %vm4491_vm8, %v10512_v60  ;;  %8429 = vmatpush1.bf16.msra.mxu1 %v8428_v6  ;;  %v8446_v6 = vpack.c.bf16 %v5175_v38, %v5173_v22  ;;  %v5187_v22 = vld [vmem:[#allocation10 + $0x958] sm:$0xff] }
 0x572   : > { %8431 = vmatprep.subr.bf16.mxu1 %v8430_v12  ;;  %v5172_v12 = vld [vmem:[#allocation10 + $0x8e0] sm:$0xff] }
 0x573   : > { %v8448_v1 = vpack.c.bf16 %v5174_v50, %v5172_v12  ;;  %v5184_v50 = vld [vmem:[#allocation10 + $0x940] sm:$0xff] }
 0x574   : > { %6785 = vmatmul.mubr.msk.f32.gmra.mrb[102].mxu1 %vm4490_vm9, %v10519_v14 }
 0x575   : > { %8433 = vmatpush1.bf16.msra.mxu1 %v8432_v49  ;;  %6794 = vmatprep.mubr.msk.f32.mxu1 %vm4485_vm2, %v10585_v13 }
 0x576   : > { %8435 = vmatprep.subr.bf16.mxu1 %v8434_v62 }
 0x579   : > { %8437 = vmatpush1.bf16.msra.mxu1 %v8436_v26  ;;  %v5178_v26 = vld [vmem:[#allocation10 + $0x910] sm:$0xff] }
 0x57a   : > { %8439 = vmatprep.subr.bf16.mxu1 %v8438_v46  ;;  %v8452_v30 = vpack.c.bf16 %v5178_v26, %v5176_v23  ;;  %v5195_v23 = vld [vmem:[#allocation10 + $0x998] sm:$0xff] }
 0x57b   : > { %v3659_v55 = vpop.f32.mrb[72].mxu1 }
 0x57c   : > { %v3661_v8 = vpop.f32.mrb[73].mxu1 }
 0x57d   : > { %8441 = vmatpush1.bf16.msra.mxu1 %v8440_v34  ;;  %v8454_v34 = vpack.c.bf16 %v5183_v47, %v5181_v3  ;;  %v5199_v3 = vld [vmem:[#allocation10 + $0x9b8] sm:$0xff]  ;;  %v4013_v47 = vld [vmem:[#allocation11 + $0x60] sm:$0xff] }
 0x57e   : > { %8443 = vmatprep.subr.bf16.mxu1 %v8442_v11  ;;  %v5180_v11 = vld [vmem:[#allocation10 + $0x920] sm:$0xff] }
 0x57f   : > { %v3665_v0 = vpop.f32.mrb[74].mxu1 }
 0x580   : > { %v8140_v49 = vpack.c.bf16 %v3665_v0, %v3659_v55  ;;  %v3667_v62 = vpop.f32.mrb[75].mxu1  ;;  %v5185_v55 = vld [vmem:[#allocation10 + $0x948] sm:$0xff]  ;;  %v5186_v0 = vld [vmem:[#allocation10 + $0x950] sm:$0xff] }
 0x581   : > { %v8138_v9 = vpack.c.bf16 %v3667_v62, %v3661_v8  ;;  %8445 = vmatpush1.bf16.msra.mxu1 %v8444_v42  ;;  %v8458_v12 = vpack.c.bf16 %v5187_v22, %v5185_v55  ;;  %v8462_v62 = vpack.c.bf16 %v5191_v33, %v5189_v63  ;;  %v4019_v55 = vld [vmem:[#allocation11 + $0x90] sm:$0xff]  ;;  %v8476_v22 = vpack.c.bf16 %v5202_v4, %v5200_v44  ;;  %v5486_v44 = vld [vmem:[#allocation10 + $0xca0] sm:$0xff] }
 0x582   : > { %8447 = vmatprep.subr.bf16.mxu1 %v8446_v6  ;;  %v8456_v6 = vpack.c.bf16 %v5182_v2, %v5180_v11  ;;  %v4020_v11 = vld [vmem:[#allocation11 + $0x98] sm:$0xff]  ;;  %v5488_v4 = vld [vmem:[#allocation10 + $0xcb0] sm:$0xff] }
 0x583   : > { %v3671_v46 = vpop.f32.mrb[76].mxu1  ;;  %8139 = vmatprep.subr.bf16.mxu0 %v8138_v9  ;;  %v5188_v9 = vld [vmem:[#allocation10 + $0x960] sm:$0xff] }
 0x584   : > { %v3673_v36 = vpop.f32.mrb[77].mxu1  ;;  %8141 = vmatpush1.bf16.msra.mxu0 %v8140_v49  ;;  %v8460_v49 = vpack.c.bf16 %v5186_v0, %v5184_v50  ;;  %v5469_v50 = vld [vmem:[#allocation10 + $0xc18] sm:$0xff]  ;;  %v4022_v0 = vld [vmem:[#allocation11 + $0xa8] sm:$0xff] }
 0x585   : > { %8449 = vmatpush1.bf16.msra.mxu1 %v8448_v1  ;;  %v5190_v1 = vld [vmem:[#allocation10 + $0x970] sm:$0xff] }
 0x586   : > { %8451 = vmatprep.subr.bf16.mxu1 %v8450_v53  ;;  %v5193_v53 = vld [vmem:[#allocation10 + $0x988] sm:$0xff]  ;;  %v8464_v26 = vpack.c.bf16 %v5190_v1, %v5188_v9  ;;  %v5473_v1 = vld [vmem:[#allocation10 + $0xc38] sm:$0xff] }
 0x587   : > { %v3677_v29 = vpop.f32.mrb[78].mxu1  ;;  %v8466_v10 = vpack.c.bf16 %v5195_v23, %v5193_v53  ;;  %v5471_v9 = vld [vmem:[#allocation10 + $0xc28] sm:$0xff] }
 0x588   : > { %v8144_v38 = vpack.c.bf16 %v3677_v29, %v3671_v46  ;;  %v3679_v8 = vpop.f32.mrb[79].mxu1  ;;  %v5197_v46 = vld [vmem:[#allocation10 + $0x9a8] sm:$0xff]  ;;  %v5207_v29 = vld [vmem:[#allocation10 + $0x9f8] sm:$0xff]  ;;  %v8550_v23 = vpack.c.bf16 %v5473_v1, %v5471_v9 }
 0x589   : > { %v8142_v42 = vpack.c.bf16 %v3679_v8, %v3673_v36  ;;  %8453 = vmatpush1.bf16.msra.mxu1 %v8452_v30  ;;  %v5203_v36 = vld [vmem:[#allocation10 + $0x9d8] sm:$0xff] }
 0x58a   : > { %8455 = vmatprep.subr.bf16.mxu1 %v8454_v34  ;;  %v4016_v30 = vld [vmem:[#allocation11 + $0x78] sm:$0xff]  ;;  %v8472_v34 = vpack.c.bf16 %v5198_v54, %v5196_v27  ;;  %v5478_v27 = vld [vmem:[#allocation10 + $0xc60] sm:$0xff]  ;;  %v5480_v54 = vld [vmem:[#allocation10 + $0xc70] sm:$0xff] }
 0x58b   : > { %8143 = vmatprep.subr.bf16.mxu0 %v8142_v42  ;;  %v5204_v42 = vld [vmem:[#allocation10 + $0x9e0] sm:$0xff]  ;;  %v5501_v9 = vld [vmem:[#allocation10 + $0xd18] sm:$0xff] }
 0x58c   : > { %8145 = vmatpush1.bf16.msra.mxu0 %v8144_v38  ;;  %v4023_v38 = vld [vmem:[#allocation11 + $0xb0] sm:$0xff] }
 0x58d   : > { %8147 = vmatprep.subr.bf16.mxu0 %v8146_v32  ;;  %8457 = vmatpush1.bf16.msra.mxu1 %v8456_v6  ;;  %v5194_v32 = vld [vmem:[#allocation10 + $0x990] sm:$0xff] }
 0x58e   : > { %8459 = vmatprep.subr.bf16.mxu1 %v8458_v12  ;;  %v8468_v20 = vpack.c.bf16 %v5194_v32, %v5192_v19  ;;  %v5206_v6 = vld [vmem:[#allocation10 + $0x9f0] sm:$0xff]  ;;  %v5467_v12 = vld [vmem:[#allocation10 + $0xc08] sm:$0xff]  ;;  %v5477_v32 = vld [vmem:[#allocation10 + $0xc58] sm:$0xff] }
 0x58f   : > { %v8480_v63 = vpack.c.bf16 %v5206_v6, %v5204_v42  ;;  %v8546_v33 = vpack.c.bf16 %v5469_v50, %v5467_v12  ;;  %v5475_v19 = vld [vmem:[#allocation10 + $0xc48] sm:$0xff]  ;;  %v5497_v6 = vld [vmem:[#allocation10 + $0xcf8] sm:$0xff] }
 0x590   : > { %8149 = vmatpush1.bf16.msra.mxu0 %v8148_v51  ;;  %v8470_v51 = vpack.c.bf16 %v5199_v3, %v5197_v46  ;;  %v8554_v3 = vpack.c.bf16 %v5477_v32, %v5475_v19  ;;  %v5498_v19 = vld [vmem:[#allocation10 + $0xd00] sm:$0xff]  ;;  %v5500_v32 = vld [vmem:[#allocation10 + $0xd10] sm:$0xff] }
 0x591   : > { %8151 = vmatprep.subr.bf16.mxu0 %v8150_v5  ;;  %8461 = vmatpush1.bf16.msra.mxu1 %v8460_v49  ;;  %v5201_v5 = vld [vmem:[#allocation10 + $0x9c8] sm:$0xff]  ;;  %v5466_v49 = vld [vmem:[#allocation10 + $0xc00] sm:$0xff] }
 0x592   : > { %8463 = vmatprep.subr.bf16.mxu1 %v8462_v62  ;;  %v8474_v2 = vpack.c.bf16 %v5203_v36, %v5201_v5  ;;  %v5468_v62 = vld [vmem:[#allocation10 + $0xc10] sm:$0xff]  ;;  %v5483_v5 = vld [vmem:[#allocation10 + $0xc88] sm:$0xff]  ;;  %v5485_v36 = vld [vmem:[#allocation10 + $0xc98] sm:$0xff] }
 0x593   : > { %v8548_v53 = vpack.c.bf16 %v5468_v62, %v5466_v49  ;;  %v5499_v62 = vld [vmem:[#allocation10 + $0xd08] sm:$0xff] }
 0x594   : > { %8153 = vmatpush1.bf16.msra.mxu0 %v8152_v57  ;;  %v5205_v57 = vld [vmem:[#allocation10 + $0x9e8] sm:$0xff] }
 0x595   : > { %8465 = vmatpush1.bf16.msra.mxu1 %v8464_v26  ;;  %v8478_v8 = vpack.c.bf16 %v5207_v29, %v5205_v57  ;;  %v5470_v26 = vld [vmem:[#allocation10 + $0xc20] sm:$0xff]  ;;  %v5491_v57 = vld [vmem:[#allocation10 + $0xcc8] sm:$0xff]  ;;  %v5493_v29 = vld [vmem:[#allocation10 + $0xcd8] sm:$0xff] }
 0x596   : > { %8467 = vmatprep.subr.bf16.mxu1 %v8466_v10  ;;  %v5472_v10 = vld [vmem:[#allocation10 + $0xc30] sm:$0xff] }
 0x597   : > { %4199 = vmatmul.mubr.f32.vlgmr.msra.gmra.mrb[80].mxu0 %v4013_v47  ;;  %v8552_v46 = vpack.c.bf16 %v5472_v10, %v5470_v26  ;;  %v5474_v47 = vld [vmem:[#allocation10 + $0xc40] sm:$0xff]  ;;  %v8578_v10 = vpack.c.bf16 %v5501_v9, %v5499_v62  ;;  %v4672_v62 = vld [vmem:[#allocation10 + $0x258] sm:$0xff]  ;;  %v5515_v9 = vld [vmem:[#allocation10 + $0xd88] sm:$0xff] }
 0x598   : > { %4204 = vmatprep.mubr.f32.mxu0 %v4017_v35  ;;  %v5479_v35 = vld [vmem:[#allocation10 + $0xc68] sm:$0xff] }
 0x599   : > { %8469 = vmatpush1.bf16.msra.mxu1 %v8468_v20  ;;  %v5476_v20 = vld [vmem:[#allocation10 + $0xc50] sm:$0xff] }
 0x59a   : > { %8471 = vmatprep.subr.bf16.mxu1 %v8470_v51  ;;  %v5481_v51 = vld [vmem:[#allocation10 + $0xc78] sm:$0xff] }
 0x59b   : > { %4205 = vmatmul.mubr.f32.gmra.mrb[82].mxu0 %v4016_v30  ;;  %v5482_v30 = vld [vmem:[#allocation10 + $0xc80] sm:$0xff] }
 0x59c   : > { %4210 = vmatprep.mubr.f32.mxu0 %v4020_v11  ;;  %v5487_v11 = vld [vmem:[#allocation10 + $0xca8] sm:$0xff] }
 0x59d   : > { %8473 = vmatpush1.bf16.msra.mxu1 %v8472_v34  ;;  %v5484_v34 = vld [vmem:[#allocation10 + $0xc90] sm:$0xff] }
 0x59e   : > { %8475 = vmatprep.subr.bf16.mxu1 %v8474_v2  ;;  %v5489_v2 = vld [vmem:[#allocation10 + $0xcb8] sm:$0xff] }
 0x59f   : > { %4211 = vmatmul.mubr.f32.gmra.mrb[84].mxu0 %v4019_v55  ;;  %v8568_v55 = vpack.c.bf16 %v5488_v4, %v5486_v44  ;;  %v5506_v44 = vld [vmem:[#allocation10 + $0xd40] sm:$0xff] }
 0x5a0   : > { %4216 = vmatprep.mubr.f32.mxu0 %v4023_v38  ;;  %v5490_v38 = vld [vmem:[#allocation10 + $0xcc0] sm:$0xff] }
 0x5a1   : > { %8477 = vmatpush1.bf16.msra.mxu1 %v8476_v22  ;;  %v8570_v22 = vpack.c.bf16 %v5493_v29, %v5491_v57  ;;  %v5508_v57 = vld [vmem:[#allocation10 + $0xd50] sm:$0xff]  ;;  %v4666_v29 = vld [vmem:[#allocation10 + $0x228] sm:$0xff] }
 0x5a2   : > { %8479 = vmatprep.subr.bf16.mxu1 %v8478_v8  ;;  %v5492_v8 = vld [vmem:[#allocation10 + $0xcd0] sm:$0xff] }
 0x5a3   : > { %4217 = vmatmul.mubr.f32.gmra.mrb[86].mxu0 %v4022_v0  ;;  %v8572_v50 = vpack.c.bf16 %v5492_v8, %v5490_v38  ;;  %v5513_v38 = vld [vmem:[#allocation10 + $0xd78] sm:$0xff]  ;;  %v4015_v8 = vld [vmem:[#allocation11 + $0x70] sm:$0xff] }
 0x5a4   : > { %4287 = vmatprep.mubr.f32.mxu0 %v11349_v7 }
 0x5a5   : > { %8481 = vmatpush1.bf16.msra.mxu1 %v8480_v63  ;;  %v5494_v63 = vld [vmem:[#allocation10 + $0xce0] sm:$0xff] }
 0x5a6   : > { %8547 = vmatprep.subr.bf16.mxu1 %v8546_v33  ;;  %v5496_v33 = vld [vmem:[#allocation10 + $0xcf0] sm:$0xff] }
 0x5a7   : > { %v8576_v26 = vpack.c.bf16 %v5496_v33, %v5494_v63  ;;  %v5512_v33 = vld [vmem:[#allocation10 + $0xd70] sm:$0xff] }
 0x5a8   : > { %6795 = vmatmul.mubr.msk.f32.vlgmr.msra.gmra.mrb[104].mxu1 %vm4484_vm3, %v10477_v40  ;;  %v8556_v40 = vpack.c.bf16 %v5476_v20, %v5474_v47  ;;  %v5505_v47 = vld [vmem:[#allocation10 + $0xd38] sm:$0xff] }
 0x5a9   : > { %6796 = vmatprep.mubr.msk.f32.mxu1 %vm4487_vm4, %v10484_v25  ;;  %8549 = vmatpush1.bf16.msra.mxu1 %v8548_v53  ;;  %v8558_v25 = vpack.c.bf16 %v5481_v51, %v5479_v35  ;;  %v8580_v35 = vpack.c.bf16 %v5500_v32, %v5498_v19  ;;  %v5502_v51 = vld [vmem:[#allocation10 + $0xd20] sm:$0xff]  ;;  %v4671_v32 = vld [vmem:[#allocation10 + $0x250] sm:$0xff] }
 0x5aa   : > { %8551 = vmatprep.subr.bf16.mxu1 %v8550_v23  ;;  %v4669_v19 = vld [vmem:[#allocation10 + $0x240] sm:$0xff] }
 0x5ac   : > { %6797 = vmatmul.mubr.msk.f32.gmra.mrb[106].mxu1 %vm4486_vm5, %v10491_v45  ;;  %v8560_v45 = vpack.c.bf16 %v5480_v54, %v5478_v27  ;;  %v4662_v27 = vld [vmem:[#allocation10 + $0x208] sm:$0xff]  ;;  %v4664_v54 = vld [vmem:[#allocation10 + $0x218] sm:$0xff] }
 0x5ad   : > { %6798 = vmatprep.mubr.msk.f32.mxu1 %vm4489_vm6, %v10498_v61  ;;  %8553 = vmatpush1.bf16.msra.mxu1 %v8552_v46  ;;  %v8562_v61 = vpack.c.bf16 %v5485_v36, %v5483_v5  ;;  %v5507_v36 = vld [vmem:[#allocation10 + $0xd48] sm:$0xff] }
 0x5ae   : > { %8555 = vmatprep.subr.bf16.mxu1 %v8554_v3  ;;  %v5503_v3 = vld [vmem:[#allocation10 + $0xd28] sm:$0xff] }
 0x5b0   : > { %6799 = vmatmul.mubr.msk.f32.gmra.mrb[108].mxu1 %vm4488_vm7, %v10505_v24  ;;  %v8564_v24 = vpack.c.bf16 %v5484_v34, %v5482_v30 }
 0x5b1   : > { %6800 = vmatprep.mubr.msk.f32.mxu1 %vm4491_vm8, %v10512_v60  ;;  %8557 = vmatpush1.bf16.msra.mxu1 %v8556_v40  ;;  %v8566_v60 = vpack.c.bf16 %v5489_v2, %v5487_v11  ;;  %v8582_v40 = vpack.c.bf16 %v5505_v47, %v5503_v3  ;;  %v8226_v2 = vpack.c.bf16 %v4664_v54, %v4662_v27  ;;  %v5516_v47 = vld [vmem:[#allocation10 + $0xd90] sm:$0xff] }
 0x5b2   : > { %8559 = vmatprep.subr.bf16.mxu1 %v8558_v25  ;;  %v5504_v25 = vld [vmem:[#allocation10 + $0xd30] sm:$0xff]  ;;  %v8236_v27 = vpack.c.bf16 %v4671_v32, %v4669_v19  ;;  %v5791_v19 = vld [vmem:[#allocation10 + $0x1018] sm:$0xff] }
 0x5b3   : > { %v8584_v11 = vpack.c.bf16 %v5504_v25, %v5502_v51  ;;  %v5519_v51 = vld [vmem:[#allocation10 + $0xda8] sm:$0xff]  ;;  %v4021_v25 = vld [vmem:[#allocation11 + $0xa0] sm:$0xff] }
 0x5b4   : > { %6801 = vmatmul.mubr.msk.f32.gmra.mrb[110].mxu1 %vm4490_vm9, %v10519_v14  ;;  %v5495_v14 = vld [vmem:[#allocation10 + $0xce8] sm:$0xff] }
 0x5b5   : > { %8561 = vmatpush1.bf16.msra.mxu1 %v8560_v45  ;;  %6810 = vmatprep.mubr.msk.f32.mxu1 %vm4485_vm2, %v10585_v13  ;;  %v8574_v0 = vpack.c.bf16 %v5497_v6, %v5495_v14  ;;  %v5509_v45 = vld [vmem:[#allocation10 + $0xd58] sm:$0xff]  ;;  %v8588_v14 = vpack.c.bf16 %v5508_v57, %v5506_v44 }
 0x5b6   : > { %8563 = vmatprep.subr.bf16.mxu1 %v8562_v61  ;;  %v8586_v4 = vpack.c.bf16 %v5509_v45, %v5507_v36  ;;  %v4673_v36 = vld [vmem:[#allocation10 + $0x260] sm:$0xff]  ;;  %v4675_v45 = vld [vmem:[#allocation10 + $0x270] sm:$0xff]  ;;  %v4024_v44 = vld [vmem:[#allocation11 + $0xb8] sm:$0xff] }
 0x5b9   : > { %8565 = vmatpush1.bf16.msra.mxu1 %v8564_v24  ;;  %v4661_v24 = vld [vmem:[#allocation10 + $0x200] sm:$0xff] }
 0x5ba   : > { %8567 = vmatprep.subr.bf16.mxu1 %v8566_v60  ;;  %v4663_v60 = vld [vmem:[#allocation10 + $0x210] sm:$0xff] }
 0x5bb   : > { %v3981_v42 = vpop.f32.mrb[80].mxu1 }
 0x5bc   : > { %v3983_v12 = vpop.f32.mrb[81].mxu1 }
 0x5bd   : > { %8569 = vmatpush1.bf16.msra.mxu1 %v8568_v55  ;;  %v4668_v55 = vld [vmem:[#allocation10 + $0x238] sm:$0xff] }
 0x5be   : > { %8571 = vmatprep.subr.bf16.mxu1 %v8570_v22  ;;  %v5511_v22 = vld [vmem:[#allocation10 + $0xd68] sm:$0xff]  ;;  %v8230_v6 = vpack.c.bf16 %v4668_v55, %v4666_v29  ;;  %v4677_v55 = vld [vmem:[#allocation10 + $0x280] sm:$0xff] }
 0x5bf   : > { %v3987_v49 = vpop.f32.mrb[82].mxu1  ;;  %v8590_v63 = vpack.c.bf16 %v5513_v38, %v5511_v22  ;;  %v4679_v22 = vld [vmem:[#allocation10 + $0x290] sm:$0xff]  ;;  %v5522_v38 = vld [vmem:[#allocation10 + $0xdc0] sm:$0xff] }
 0x5c0   : > { %v8156_v1 = vpack.c.bf16 %v3987_v49, %v3981_v42  ;;  %v3989_v53 = vpop.f32.mrb[83].mxu1  ;;  %v8228_v42 = vpack.c.bf16 %v4663_v60, %v4661_v24  ;;  %v4670_v49 = vld [vmem:[#allocation10 + $0x248] sm:$0xff]  ;;  %v5525_v60 = vld [vmem:[#allocation10 + $0xdd8] sm:$0xff] }
 0x5c1   : > { %v8154_v23 = vpack.c.bf16 %v3989_v53, %v3983_v12  ;;  %8573 = vmatpush1.bf16.msra.mxu1 %v8572_v50  ;;  %v4665_v12 = vld [vmem:[#allocation10 + $0x220] sm:$0xff]  ;;  %v4667_v50 = vld [vmem:[#allocation10 + $0x230] sm:$0xff]  ;;  %v4018_v53 = vld [vmem:[#allocation11 + $0x88] sm:$0xff] }
 0x5c2   : > { %8575 = vmatprep.subr.bf16.mxu1 %v8574_v0  ;;  %v5510_v0 = vld [vmem:[#allocation10 + $0xd60] sm:$0xff]  ;;  %v5523_v24 = vld [vmem:[#allocation10 + $0xdc8] sm:$0xff] }
 0x5c3   : > { %v3993_v46 = vpop.f32.mrb[84].mxu1  ;;  %8155 = vmatprep.subr.bf16.mxu0 %v8154_v23  ;;  %v8232_v23 = vpack.c.bf16 %v4667_v50, %v4665_v12  ;;  %v5527_v12 = vld [vmem:[#allocation10 + $0xde8] sm:$0xff]  ;;  %v5529_v50 = vld [vmem:[#allocation10 + $0xdf8] sm:$0xff] }
 0x5c4   : > { %v3995_v20 = vpop.f32.mrb[85].mxu1  ;;  %8157 = vmatpush1.bf16.msra.mxu0 %v8156_v1  ;;  %v5517_v1 = vld [vmem:[#allocation10 + $0xd98] sm:$0xff] }
 0x5c5   : > { %8577 = vmatpush1.bf16.msra.mxu1 %v8576_v26  ;;  %v8592_v26 = vpack.c.bf16 %v5512_v33, %v5510_v0  ;;  %v8594_v3 = vpack.c.bf16 %v5517_v1, %v5515_v9  ;;  %v8244_v0 = vpack.c.bf16 %v4679_v22, %v4677_v55  ;;  %v5526_v9 = vld [vmem:[#allocation10 + $0xde0] sm:$0xff]  ;;  %v8606_v1 = vpack.c.bf16 %v5529_v50, %v5527_v12  ;;  %v10644_v22 = vld [vmem:[%s9639_s24 + $0x18] sm:$0xff]  ;;  %v5798_v50 = vld [vmem:[#allocation10 + $0x1050] sm:$0xff] }
 0x5c6   : > { %8579 = vmatprep.subr.bf16.mxu1 %v8578_v10  ;;  %v8234_v10 = vpack.c.bf16 %v4672_v62, %v4670_v49  ;;  %v4681_v49 = vld [vmem:[#allocation10 + $0x2a0] sm:$0xff]  ;;  %v4683_v62 = vld [vmem:[#allocation10 + $0x2b0] sm:$0xff] }
 0x5c7   : > { %v3999_v5 = vpop.f32.mrb[86].mxu1  ;;  %v8248_v32 = vpack.c.bf16 %v4683_v62, %v4681_v49  ;;  %v5796_v12 = vld [vmem:[#allocation10 + $0x1040] sm:$0xff]  ;;  %v5803_v49 = vld [vmem:[#allocation10 + $0x1078] sm:$0xff]  ;;  %v10650_v62 = vld [vmem:[%s9639_s24 + $0x10] sm:$0xff] }
 0x5c8   : > { %v8160_v61 = vpack.c.bf16 %v3999_v5, %v3993_v46  ;;  %v4001_v30 = vpop.f32.mrb[87].mxu1  ;;  %v5514_v46 = vld [vmem:[#allocation10 + $0xd80] sm:$0xff] }
 0x5c9   : > { %v8158_v34 = vpack.c.bf16 %v4001_v30, %v3995_v20  ;;  %8581 = vmatpush1.bf16.msra.mxu1 %v8580_v35  ;;  %v4674_v20 = vld [vmem:[#allocation10 + $0x268] sm:$0xff]  ;;  %v4676_v35 = vld [vmem:[#allocation10 + $0x278] sm:$0xff]  ;;  %v8596_v54 = vpack.c.bf16 %v5516_v47, %v5514_v46  ;;  %v4685_v47 = vld [vmem:[#allocation10 + $0x2c0] sm:$0xff] }
 0x5ca   : > { %8583 = vmatprep.subr.bf16.mxu1 %v8582_v40  ;;  %v5521_v40 = vld [vmem:[#allocation10 + $0xdb8] sm:$0xff]  ;;  %v8238_v5 = vpack.c.bf16 %v4676_v35, %v4674_v20  ;;  %v4687_v20 = vld [vmem:[#allocation10 + $0x2d0] sm:$0xff] }
 0x5cb   : > { %8159 = vmatprep.subr.bf16.mxu0 %v8158_v34  ;;  %v8598_v30 = vpack.c.bf16 %v5521_v40, %v5519_v51  ;;  %v5520_v34 = vld [vmem:[#allocation10 + $0xdb0] sm:$0xff]  ;;  %v5788_v51 = vld [vmem:[#allocation10 + $0x1000] sm:$0xff] }
 0x5cc   : > { %8161 = vmatpush1.bf16.msra.mxu0 %v8160_v61  ;;  %v5518_v61 = vld [vmem:[#allocation10 + $0xda0] sm:$0xff]  ;;  %v5790_v40 = vld [vmem:[#allocation10 + $0x1010] sm:$0xff] }
 0x5cd   : > { %8585 = vmatpush1.bf16.msra.mxu1 %v8584_v11  ;;  %8227 = vmatprep.subr.bf16.mxu0 %v8226_v2  ;;  %v4678_v11 = vld [vmem:[#allocation10 + $0x288] sm:$0xff]  ;;  %v4680_v2 = vld [vmem:[#allocation10 + $0x298] sm:$0xff]  ;;  %v8600_v57 = vpack.c.bf16 %v5520_v34, %v5518_v61  ;;  %v4689_v61 = vld [vmem:[#allocation10 + $0x2e0] sm:$0xff] }
 0x5ce   : > { %8587 = vmatprep.subr.bf16.mxu1 %v8586_v4  ;;  %v8240_v4 = vpack.c.bf16 %v4675_v45, %v4673_v36  ;;  %v8242_v29 = vpack.c.bf16 %v4680_v2, %v4678_v11  ;;  %v8252_v36 = vpack.c.bf16 %v4687_v20, %v4685_v47  ;;  %v8676_v45 = vpack.c.bf16 %v5790_v40, %v5788_v51  ;;  %v5792_v2 = vld [vmem:[#allocation10 + $0x1020] sm:$0xff]  ;;  %v4704_v47 = vld [vmem:[#allocation10 + $0x358] sm:$0xff]  ;;  %v5805_v20 = vld [vmem:[#allocation10 + $0x1088] sm:$0xff] }
 0x5cf   : > { %6749 = vmatmul.mubr.msk.f32.vlgmr.msra.gmra.mrb[80].mxu0 %vm463_vm0, %v4015_v8  ;;  %v8602_v8 = vpack.c.bf16 %v5525_v60, %v5523_v24  ;;  %v5794_v24 = vld [vmem:[#allocation10 + $0x1030] sm:$0xff]  ;;  %v4694_v60 = vld [vmem:[#allocation10 + $0x308] sm:$0xff]  ;;  %v10662_v51 = vld [vmem:[%s9639_s24 + $0x20] sm:$0xff] }
 0x5d0   : > { %8229 = vmatpush1.bf16.msra.mxu0 %v8228_v42  ;;  %4293 = vmatprep.mubr.f32.mxu0 %v11349_v7  ;;  %v5524_v42 = vld [vmem:[#allocation10 + $0xdd0] sm:$0xff] }
 0x5d1   : > { %8589 = vmatpush1.bf16.msra.mxu1 %v8588_v14  ;;  %8231 = vmatprep.subr.bf16.mxu0 %v8230_v6  ;;  %v4682_v14 = vld [vmem:[#allocation10 + $0x2a8] sm:$0xff]  ;;  %v4684_v6 = vld [vmem:[#allocation10 + $0x2b8] sm:$0xff] }
 0x5d2   : > { %8591 = vmatprep.subr.bf16.mxu1 %v8590_v63  ;;  %v8604_v63 = vpack.c.bf16 %v5524_v42, %v5522_v38  ;;  %v8246_v33 = vpack.c.bf16 %v4684_v6, %v4682_v14  ;;  %v8680_v38 = vpack.c.bf16 %v5794_v24, %v5792_v2  ;;  %v4695_v42 = vld [vmem:[#allocation10 + $0x310] sm:$0xff]  ;;  %v5809_v2 = vld [vmem:[#allocation10 + $0x10a8] sm:$0xff]  ;;  %v5811_v24 = vld [vmem:[#allocation10 + $0x10b8] sm:$0xff] }
 0x5d3   : > { %6750 = vmatmul.mubr.msk.f32.gmra.mrb[82].mxu0 %vm463_vm0, %v4018_v53  ;;  %v5528_v53 = vld [vmem:[#allocation10 + $0xdf0] sm:$0xff] }
 0x5d4   : > { %8233 = vmatpush1.bf16.msra.mxu0 %v8232_v23  ;;  %4299 = vmatprep.mubr.f32.mxu0 %v11349_v7  ;;  %v4686_v23 = vld [vmem:[#allocation10 + $0x2c8] sm:$0xff]  ;;  %v8608_v46 = vpack.c.bf16 %v5528_v53, %v5526_v9  ;;  %v8684_v53 = vpack.c.bf16 %v5798_v50, %v5796_v12  ;;  %v4712_v12 = vld [vmem:[#allocation10 + $0x398] sm:$0xff] }
 0x5d5   : > { %8593 = vmatpush1.bf16.msra.mxu1 %v8592_v26  ;;  %8235 = vmatprep.subr.bf16.mxu0 %v8234_v10  ;;  %v4688_v26 = vld [vmem:[#allocation10 + $0x2d8] sm:$0xff]  ;;  %v5789_v10 = vld [vmem:[#allocation10 + $0x1008] sm:$0xff] }
 0x5d6   : > { %8595 = vmatprep.subr.bf16.mxu1 %v8594_v3  ;;  %v8250_v3 = vpack.c.bf16 %v4688_v26, %v4686_v23  ;;  %v8674_v35 = vpack.c.bf16 %v5791_v19, %v5789_v10  ;;  %v4697_v23 = vld [vmem:[#allocation10 + $0x320] sm:$0xff]  ;;  %v4699_v26 = vld [vmem:[#allocation10 + $0x330] sm:$0xff]  ;;  %v5813_v50 = vld [vmem:[#allocation10 + $0x10c8] sm:$0xff] }
 0x5d7   : > { %6751 = vmatmul.mubr.msk.f32.gmra.mrb[84].mxu0 %vm463_vm0, %v4021_v25  ;;  %v4690_v25 = vld [vmem:[#allocation10 + $0x2e8] sm:$0xff]  ;;  %v8264_v40 = vpack.c.bf16 %v4699_v26, %v4697_v23  ;;  %v5814_v26 = vld [vmem:[#allocation10 + $0x10d0] sm:$0xff] }
 0x5d8   : > { %8237 = vmatpush1.bf16.msra.mxu0 %v8236_v27  ;;  %4305 = vmatprep.mubr.f32.mxu0 %v11349_v7  ;;  %v4692_v27 = vld [vmem:[#allocation10 + $0x2f8] sm:$0xff] }
 0x5d9   : > { %8597 = vmatpush1.bf16.msra.mxu1 %v8596_v54  ;;  %8239 = vmatprep.subr.bf16.mxu0 %v8238_v5  ;;  %v5793_v54 = vld [vmem:[#allocation10 + $0x1028] sm:$0xff]  ;;  %v5795_v5 = vld [vmem:[#allocation10 + $0x1038] sm:$0xff]  ;;  %v8254_v34 = vpack.c.bf16 %v4692_v27, %v4690_v25 }
 0x5da   : > { %8599 = vmatprep.subr.bf16.mxu1 %v8598_v30  ;;  %v4691_v30 = vld [vmem:[#allocation10 + $0x2f0] sm:$0xff]  ;;  %v8678_v11 = vpack.c.bf16 %v5795_v5, %v5793_v54  ;;  %v10668_v25 = vld [vmem:[%s9639_s24 + $0x38] sm:$0xff]  ;;  %v4701_v54 = vld [vmem:[#allocation10 + $0x340] sm:$0xff] }
 0x5db   : > { %6752 = vmatmul.mubr.msk.f32.gmra.mrb[86].mxu0 %vm463_vm0, %v4024_v44  ;;  %v4696_v44 = vld [vmem:[#allocation10 + $0x318] sm:$0xff]  ;;  %v8256_v55 = vpack.c.bf16 %v4691_v30, %v4689_v61  ;;  %v4703_v5 = vld [vmem:[#allocation10 + $0x350] sm:$0xff] }
 0x5dc   : > { %8241 = vmatpush1.bf16.msra.mxu0 %v8240_v4  ;;  %6770 = vmatprep.mubr.msk.f32.mxu0 %vm4485_vm2, %v10585_v13  ;;  %v5797_v4 = vld [vmem:[#allocation10 + $0x1048] sm:$0xff]  ;;  %v8258_v14 = vpack.c.bf16 %v4696_v44, %v4694_v60  ;;  %v5806_v30 = vld [vmem:[#allocation10 + $0x1090] sm:$0xff]  ;;  %v8268_v44 = vpack.c.bf16 %v4703_v5, %v4701_v54  ;;  %v5816_v5 = vld [vmem:[#allocation10 + $0x10e0] sm:$0xff] }
 0x5dd   : > { %8601 = vmatpush1.bf16.msra.mxu1 %v8600_v57  ;;  %8243 = vmatprep.subr.bf16.mxu0 %v8242_v29  ;;  %v5799_v57 = vld [vmem:[#allocation10 + $0x1058] sm:$0xff]  ;;  %v10638_v29 = vld [vmem:[%s9639_s24] sm:$0xff]  ;;  %v10674_v60 = vld [vmem:[%s9639_s24 + $0x30] sm:$0xff] }
 0x5de   : > { %8603 = vmatprep.subr.bf16.mxu1 %v8602_v8  ;;  %v4693_v8 = vld [vmem:[#allocation10 + $0x300] sm:$0xff]  ;;  %v8682_v6 = vpack.c.bf16 %v5799_v57, %v5797_v4  ;;  %v4715_v54 = vld [vmem:[#allocation10 + $0x3b0] sm:$0xff] }
 0x5df   : > { %v8260_v9 = vpack.c.bf16 %v4695_v42, %v4693_v8  ;;  %v5808_v8 = vld [vmem:[#allocation10 + $0x10a0] sm:$0xff]  ;;  %v8694_v42 = vpack.c.bf16 %v5811_v24, %v5809_v2  ;;  %v5823_v2 = vld [vmem:[#allocation10 + $0x1118] sm:$0xff]  ;;  %v5633_v24 = vld [vmem:[#allocation10 + $0xe30] sm:$0xff] }
 0x5e0   : > { %8245 = vmatpush1.bf16.msra.mxu0 %v8244_v0  ;;  %v4698_v0 = vld [vmem:[#allocation10 + $0x328] sm:$0xff] }
 0x5e1   : > { %8605 = vmatpush1.bf16.msra.mxu1 %v8604_v63  ;;  %8247 = vmatprep.subr.bf16.mxu0 %v8246_v33  ;;  %v4700_v63 = vld [vmem:[#allocation10 + $0x338] sm:$0xff]  ;;  %v5801_v33 = vld [vmem:[#allocation10 + $0x1068] sm:$0xff] }
 0x5e2   : > { %8607 = vmatprep.subr.bf16.mxu1 %v8606_v1  ;;  %v10656_v1 = vld [vmem:[%s9639_s24 + $0x28] sm:$0xff]  ;;  %v8262_v10 = vpack.c.bf16 %v4700_v63, %v4698_v0  ;;  %v8686_v19 = vpack.c.bf16 %v5803_v49, %v5801_v33  ;;  %v5815_v0 = vld [vmem:[#allocation10 + $0x10d8] sm:$0xff] }
 0x5e3   : > { %v8698_v23 = vpack.c.bf16 %v5815_v0, %v5813_v50  ;;  %v4722_v50 = vld [vmem:[#allocation10 + $0x3e8] sm:$0xff]  ;;  %v4724_v0 = vld [vmem:[#allocation10 + $0x3f8] sm:$0xff] }
 0x5e4   : > { %8249 = vmatpush1.bf16.msra.mxu0 %v8248_v32  ;;  %v5800_v32 = vld [vmem:[#allocation10 + $0x1060] sm:$0xff] }
 0x5e5   : > { %8609 = vmatpush1.bf16.msra.mxu1 %v8608_v46  ;;  %8251 = vmatprep.subr.bf16.mxu0 %v8250_v3  ;;  %v5802_v46 = vld [vmem:[#allocation10 + $0x1070] sm:$0xff]  ;;  %v4702_v3 = vld [vmem:[#allocation10 + $0x348] sm:$0xff] }
 0x5e6   : > { %8675 = vmatprep.subr.bf16.mxu1 %v8674_v35  ;;  %v5807_v35 = vld [vmem:[#allocation10 + $0x1098] sm:$0xff]  ;;  %v8688_v27 = vpack.c.bf16 %v5802_v46, %v5800_v32  ;;  %v5817_v46 = vld [vmem:[#allocation10 + $0x10e8] sm:$0xff] }
 0x5e7   : > { %v8690_v61 = vpack.c.bf16 %v5807_v35, %v5805_v20 }
 0x5e8   : > { %8253 = vmatpush1.bf16.msra.mxu0 %v8252_v36  ;;  %6811 = vmatmul.mubr.msk.f32.vlgmr.msra.gmra.mrb[112].mxu1 %vm4484_vm3, %v10638_v29  ;;  %v5804_v36 = vld [vmem:[#allocation10 + $0x1080] sm:$0xff] }
 0x5e9   : > { %6812 = vmatprep.mubr.msk.f32.mxu1 %vm4487_vm4, %v10644_v22  ;;  %8677 = vmatpush1.bf16.msra.mxu1 %v8676_v45  ;;  %v8266_v45 = vpack.c.bf16 %v4704_v47, %v4702_v3  ;;  %v8692_v4 = vpack.c.bf16 %v5806_v30, %v5804_v36  ;;  %v5819_v3 = vld [vmem:[#allocation10 + $0x10f8] sm:$0xff] }
 0x5ea   : > { %8255 = vmatprep.subr.bf16.mxu0 %v8254_v34  ;;  %8679 = vmatprep.subr.bf16.mxu1 %v8678_v11  ;;  %v4706_v34 = vld [vmem:[#allocation10 + $0x368] sm:$0xff]  ;;  %v4708_v11 = vld [vmem:[#allocation10 + $0x378] sm:$0xff]  ;;  %v8702_v36 = vpack.c.bf16 %v5819_v3, %v5817_v46  ;;  %v5826_v3 = vld [vmem:[#allocation10 + $0x1130] sm:$0xff] }
 0x5eb   : > { %v8270_v57 = vpack.c.bf16 %v4708_v11, %v4706_v34  ;;  %v4720_v30 = vld [vmem:[#allocation10 + $0x3d8] sm:$0xff]  ;;  %v5821_v11 = vld [vmem:[#allocation10 + $0x1108] sm:$0xff] }
 0x5ec   : > { %8257 = vmatpush1.bf16.msra.mxu0 %v8256_v55  ;;  %6813 = vmatmul.mubr.msk.f32.gmra.mrb[114].mxu1 %vm4486_vm5, %v10650_v62  ;;  %v4705_v55 = vld [vmem:[#allocation10 + $0x360] sm:$0xff] }
 0x5ed   : > { %6814 = vmatprep.mubr.msk.f32.mxu1 %vm4489_vm6, %v10656_v1  ;;  %8681 = vmatpush1.bf16.msra.mxu1 %v8680_v38  ;;  %v4707_v38 = vld [vmem:[#allocation10 + $0x370] sm:$0xff] }
 0x5ee   : > { %8259 = vmatprep.subr.bf16.mxu0 %v8258_v14  ;;  %8683 = vmatprep.subr.bf16.mxu1 %v8682_v6  ;;  %v5810_v14 = vld [vmem:[#allocation10 + $0x10b0] sm:$0xff]  ;;  %v4710_v6 = vld [vmem:[#allocation10 + $0x388] sm:$0xff]  ;;  %v8272_v63 = vpack.c.bf16 %v4707_v38, %v4705_v55 }
 0x5ef   : > { %v8696_v33 = vpack.c.bf16 %v5810_v14, %v5808_v8  ;;  %v8274_v49 = vpack.c.bf16 %v4712_v12, %v4710_v6  ;;  %v4717_v8 = vld [vmem:[#allocation10 + $0x3c0] sm:$0xff]  ;;  %v8706_v6 = vpack.c.bf16 %v5823_v2, %v5821_v11  ;;  %v5822_v12 = vld [vmem:[#allocation10 + $0x1110] sm:$0xff] }
 0x5f0   : > { %8261 = vmatpush1.bf16.msra.mxu0 %v8260_v9  ;;  %6815 = vmatmul.mubr.msk.f32.gmra.mrb[116].mxu1 %vm4488_vm7, %v10662_v51  ;;  %v4711_v9 = vld [vmem:[#allocation10 + $0x390] sm:$0xff]  ;;  %v5820_v14 = vld [vmem:[#allocation10 + $0x1100] sm:$0xff] }
 0x5f1   : > { %6816 = vmatprep.mubr.msk.f32.mxu1 %vm4491_vm8, %v10668_v25  ;;  %8685 = vmatpush1.bf16.msra.mxu1 %v8684_v53  ;;  %v5812_v53 = vld [vmem:[#allocation10 + $0x10c0] sm:$0xff] }
 0x5f2   : > { %8263 = vmatprep.subr.bf16.mxu0 %v8262_v10  ;;  %8687 = vmatprep.subr.bf16.mxu1 %v8686_v19  ;;  %v4714_v10 = vld [vmem:[#allocation10 + $0x3a8] sm:$0xff]  ;;  %v4716_v19 = vld [vmem:[#allocation10 + $0x3b8] sm:$0xff]  ;;  %v8700_v35 = vpack.c.bf16 %v5814_v26, %v5812_v53  ;;  %v8708_v53 = vpack.c.bf16 %v5822_v12, %v5820_v14  ;;  %v4721_v26 = vld [vmem:[#allocation10 + $0x3e0] sm:$0xff] }
 0x5f3   : > { %v4983_v2 = vld [vmem:[#allocation10 + $0x600] sm:$0xff]  ;;  %v4990_v14 = vld [vmem:[#allocation10 + $0x638] sm:$0xff] }
 0x5f4   : > { %8265 = vmatpush1.bf16.msra.mxu0 %v8264_v40  ;;  %6817 = vmatmul.mubr.msk.f32.gmra.mrb[118].mxu1 %vm4490_vm9, %v10674_v60  ;;  %v8278_v40 = vpack.c.bf16 %v4716_v19, %v4714_v10  ;;  %v4723_v10 = vld [vmem:[#allocation10 + $0x3f0] sm:$0xff]  ;;  %v5824_v19 = vld [vmem:[#allocation10 + $0x1120] sm:$0xff]  ;;  %v5835_v12 = vld [vmem:[#allocation10 + $0x1178] sm:$0xff] }
 0x5f5   : > { %8689 = vmatpush1.bf16.msra.mxu1 %v8688_v27  ;;  %6826 = vmatprep.mubr.msk.f32.mxu1 %vm4485_vm2, %v10585_v13  ;;  %v4709_v13 = vld [vmem:[#allocation10 + $0x380] sm:$0xff] }
 0x5f6   : > { %8267 = vmatprep.subr.bf16.mxu0 %v8266_v45  ;;  %8691 = vmatprep.subr.bf16.mxu1 %v8690_v61  ;;  %v8276_v20 = vpack.c.bf16 %v4711_v9, %v4709_v13  ;;  %v4713_v27 = vld [vmem:[#allocation10 + $0x3a0] sm:$0xff]  ;;  %v5818_v45 = vld [vmem:[#allocation10 + $0x10f0] sm:$0xff]  ;;  %v4718_v61 = vld [vmem:[#allocation10 + $0x3c8] sm:$0xff] }
 0x5f7   : > { %v8704_v55 = vpack.c.bf16 %v5818_v45, %v5816_v5  ;;  %v8282_v38 = vpack.c.bf16 %v4720_v30, %v4718_v61  ;;  %v8288_v45 = vpack.c.bf16 %v4723_v10, %v4721_v26  ;;  %v8712_v30 = vpack.c.bf16 %v5826_v3, %v5824_v19  ;;  %v5834_v26 = vld [vmem:[#allocation10 + $0x1170] sm:$0xff]  ;;  %v4992_v10 = vld [vmem:[#allocation10 + $0x648] sm:$0xff]  ;;  %v4994_v19 = vld [vmem:[#allocation10 + $0x658] sm:$0xff] }
 0x5f8   : > { %8269 = vmatpush1.bf16.msra.mxu0 %v8268_v44  ;;  %v5839_v3 = vld [vmem:[#allocation10 + $0x1198] sm:$0xff] }
 0x5f9   : > { %8693 = vmatpush1.bf16.msra.mxu1 %v8692_v4  ;;  %8271 = vmatprep.subr.bf16.mxu0 %v8270_v57  ;;  %v8280_v4 = vpack.c.bf16 %v4715_v54, %v4713_v27  ;;  %v5829_v27 = vld [vmem:[#allocation10 + $0x1148] sm:$0xff]  ;;  %v5831_v54 = vld [vmem:[#allocation10 + $0x1158] sm:$0xff] }
 0x5fa   : > { %8695 = vmatprep.subr.bf16.mxu1 %v8694_v42  ;;  %v4719_v42 = vld [vmem:[#allocation10 + $0x3d0] sm:$0xff]  ;;  %v5636_v57 = vld [vmem:[#allocation10 + $0xe48] sm:$0xff] }
 0x5fb   : > { %v10682_v32 = vpop.f32.mrb[88].mxu1  ;;  %v8284_v9 = vpack.c.bf16 %v4719_v42, %v4717_v8  ;;  %v5830_v8 = vld [vmem:[#allocation10 + $0x1150] sm:$0xff]  ;;  %v4988_v42 = vld [vmem:[#allocation10 + $0x628] sm:$0xff] }
 0x5fc   : > { %v10684_v47 = vpop.f32.mrb[89].mxu1  ;;  %8273 = vmatpush1.bf16.msra.mxu0 %v8272_v63 }
 0x5fd   : > { %8697 = vmatpush1.bf16.msra.mxu1 %v8696_v33  ;;  %8275 = vmatprep.subr.bf16.mxu0 %v8274_v49  ;;  %v5825_v33 = vld [vmem:[#allocation10 + $0x1128] sm:$0xff]  ;;  %v5827_v49 = vld [vmem:[#allocation10 + $0x1138] sm:$0xff] }
 0x5fe   : > { %8699 = vmatprep.subr.bf16.mxu1 %v8698_v23  ;;  %v8286_v23 = vpack.c.bf16 %v4724_v0, %v4722_v50  ;;  %v8710_v46 = vpack.c.bf16 %v5827_v49, %v5825_v33  ;;  %v8358_v33 = vpack.c.bf16 %v4990_v14, %v4988_v42  ;;  %v4987_v49 = vld [vmem:[#allocation10 + $0x620] sm:$0xff] }
 0x5ff   : > { %v10686_v34 = vpop.f32.mrb[90].mxu1 }
 0x600   : > { %v10690_v44 = vpop.f32.mrb[91].mxu1  ;;  %8277 = vmatpush1.bf16.msra.mxu0 %v8276_v20  ;;  %v4984_v20 = vld [vmem:[#allocation10 + $0x608] sm:$0xff] }
 0x601   : > { %8701 = vmatpush1.bf16.msra.mxu1 %v8700_v35  ;;  %8279 = vmatprep.subr.bf16.mxu0 %v8278_v40  ;;  %v4986_v35 = vld [vmem:[#allocation10 + $0x618] sm:$0xff] }
 0x602   : > { %8703 = vmatprep.subr.bf16.mxu1 %v8702_v36  ;;  %v8354_v11 = vpack.c.bf16 %v4986_v35, %v4984_v20 }
 0x603   : > { %v10694_v63 = vpop.f32.mrb[92].mxu1 }
 0x604   : > { %v10696_v13 = vpop.f32.mrb[93].mxu1  ;;  %8281 = vmatpush1.bf16.msra.mxu0 %v8280_v4  ;;  %v4985_v4 = vld [vmem:[#allocation10 + $0x610] sm:$0xff] }
 0x605   : > { %8705 = vmatpush1.bf16.msra.mxu1 %v8704_v55  ;;  %8283 = vmatprep.subr.bf16.mxu0 %v8282_v38  ;;  %v5828_v55 = vld [vmem:[#allocation10 + $0x1140] sm:$0xff]  ;;  %v8714_v38 = vpack.c.bf16 %v5831_v54, %v5829_v27  ;;  %v8356_v50 = vpack.c.bf16 %v4985_v4, %v4983_v2  ;;  %v8362_v27 = vpack.c.bf16 %v4994_v19, %v4992_v10  ;;  %v5838_v2 = vld [vmem:[#allocation10 + $0x1190] sm:$0xff]  ;;  %v4996_v4 = vld [vmem:[#allocation10 + $0x668] sm:$0xff] }
 0x606   : > { %8707 = vmatprep.subr.bf16.mxu1 %v8706_v6  ;;  %v5833_v6 = vld [vmem:[#allocation10 + $0x1168] sm:$0xff]  ;;  %v8716_v0 = vpack.c.bf16 %v5830_v8, %v5828_v55  ;;  %v4991_v54 = vld [vmem:[#allocation10 + $0x640] sm:$0xff]  ;;  %v4998_v55 = vld [vmem:[#allocation10 + $0x678] sm:$0xff] }
 0x607   : > { %v10698_v40 = vpop.f32.mrb[94].mxu1  ;;  %v5843_v8 = vld [vmem:[#allocation10 + $0x11b8] sm:$0xff] }
 0x608   : > { %v10702_v36 = vpop.f32.mrb[95].mxu1  ;;  %8285 = vmatpush1.bf16.msra.mxu0 %v8284_v9  ;;  %v4989_v9 = vld [vmem:[#allocation10 + $0x630] sm:$0xff]  ;;  %v11393_v41 = vpack.c.bf16 %v10698_v40, %v10694_v63 }
 0x609   : > { %8709 = vmatpush1.bf16.msra.mxu1 %v8708_v53  ;;  %8287 = vmatprep.subr.bf16.mxu0 %v8286_v23  ;;  %v5832_v53 = vld [vmem:[#allocation10 + $0x1160] sm:$0xff]  ;;  %v8718_v23 = vpack.c.bf16 %v5835_v12, %v5833_v6  ;;  %v8360_v20 = vpack.c.bf16 %v4989_v9, %v4987_v49  ;;  %v8366_v6 = vpack.c.bf16 %v4998_v55, %v4996_v4  ;;  %v5842_v49 = vld [vmem:[#allocation10 + $0x11b0] sm:$0xff]  ;;  %v5000_v9 = vld [vmem:[#allocation10 + $0x688] sm:$0xff] }
 0x60a   : > { %8711 = vmatprep.subr.bf16.mxu1 %v8710_v46  ;;  %v5837_v46 = vld [vmem:[#allocation10 + $0x1188] sm:$0xff]  ;;  %v8720_v35 = vpack.c.bf16 %v5834_v26, %v5832_v53  ;;  %v4995_v12 = vld [vmem:[#allocation10 + $0x660] sm:$0xff]  ;;  %v5002_v53 = vld [vmem:[#allocation10 + $0x698] sm:$0xff] }
 0x60b   : > { %v5847_v26 = vld [vmem:[#allocation10 + $0x11d8] sm:$0xff]  ;;  %v10728_v4 = vld [vmem:[%s9639_s24 + $0x8] sm:$0xff] }
 0x60c   : > { %8289 = vmatpush1.bf16.msra.mxu0 %v8288_v45  ;;  %v4993_v45 = vld [vmem:[#allocation10 + $0x650] sm:$0xff] }
 0x60d   : > { %8713 = vmatpush1.bf16.msra.mxu1 %v8712_v30  ;;  %8355 = vmatprep.subr.bf16.mxu0 %v8354_v11  ;;  %v5836_v30 = vld [vmem:[#allocation10 + $0x1180] sm:$0xff]  ;;  %v8722_v11 = vpack.c.bf16 %v5839_v3, %v5837_v46  ;;  %v8364_v42 = vpack.c.bf16 %v4993_v45, %v4991_v54  ;;  %v8370_v46 = vpack.c.bf16 %v5002_v53, %v5000_v9  ;;  %v5846_v54 = vld [vmem:[#allocation10 + $0x11d0] sm:$0xff]  ;;  %v5004_v45 = vld [vmem:[#allocation10 + $0x6a8] sm:$0xff] }
 0x60e   : > { %8715 = vmatprep.subr.bf16.mxu1 %v8714_v38  ;;  %v5841_v38 = vld [vmem:[#allocation10 + $0x11a8] sm:$0xff]  ;;  %v8724_v14 = vpack.c.bf16 %v5838_v2, %v5836_v30  ;;  %v4999_v3 = vld [vmem:[#allocation10 + $0x680] sm:$0xff]  ;;  %v5006_v30 = vld [vmem:[#allocation10 + $0x6b8] sm:$0xff] }
 0x60f   : > { %6771 = vmatmul.mubr.msk.f32.vlgmr.msra.gmra.mrb[88].mxu0 %vm4484_vm3, %v10638_v29  ;;  %v5851_v2 = vld [vmem:[#allocation10 + $0x11f8] sm:$0xff] }
 0x610   : > { %6772 = vmatprep.mubr.msk.f32.mxu0 %vm4487_vm4, %v10644_v22  ;;  %8357 = vmatpush1.bf16.msra.mxu0 %v8356_v50  ;;  %v4997_v50 = vld [vmem:[#allocation10 + $0x670] sm:$0xff] }
 0x611   : > { %8717 = vmatpush1.bf16.msra.mxu1 %v8716_v0  ;;  %8359 = vmatprep.subr.bf16.mxu0 %v8358_v33  ;;  %v5840_v0 = vld [vmem:[#allocation10 + $0x11a0] sm:$0xff]  ;;  %v8726_v33 = vpack.c.bf16 %v5843_v8, %v5841_v38  ;;  %v8368_v10 = vpack.c.bf16 %v4997_v50, %v4995_v12  ;;  %v8374_v8 = vpack.c.bf16 %v5006_v30, %v5004_v45  ;;  %v5850_v50 = vld [vmem:[#allocation10 + $0x11f0] sm:$0xff] }
 0x612   : > { %8719 = vmatprep.subr.bf16.mxu1 %v8718_v23  ;;  %v5845_v23 = vld [vmem:[#allocation10 + $0x11c8] sm:$0xff]  ;;  %v8728_v19 = vpack.c.bf16 %v5842_v49, %v5840_v0 }
 0x613   : > { %6773 = vmatmul.mubr.msk.f32.gmra.mrb[90].mxu0 %vm4486_vm5, %v10650_v62  ;;  %v5008_v0 = vld [vmem:[#allocation10 + $0x6c8] sm:$0xff] }
 0x614   : > { %6774 = vmatprep.mubr.msk.f32.mxu0 %vm4489_vm6, %v10656_v1  ;;  %8361 = vmatpush1.bf16.msra.mxu0 %v8360_v20  ;;  %v5001_v20 = vld [vmem:[#allocation10 + $0x690] sm:$0xff] }
 0x615   : > { %8721 = vmatpush1.bf16.msra.mxu1 %v8720_v35  ;;  %8363 = vmatprep.subr.bf16.mxu0 %v8362_v27  ;;  %v5844_v35 = vld [vmem:[#allocation10 + $0x11c0] sm:$0xff]  ;;  %v8730_v27 = vpack.c.bf16 %v5847_v26, %v5845_v23  ;;  %v8372_v55 = vpack.c.bf16 %v5001_v20, %v4999_v3  ;;  %v5009_v26 = vld [vmem:[#allocation10 + $0x6d0] sm:$0xff] }
 0x616   : > { %8723 = vmatprep.subr.bf16.mxu1 %v8722_v11  ;;  %v5849_v11 = vld [vmem:[#allocation10 + $0x11e8] sm:$0xff]  ;;  %v8732_v38 = vpack.c.bf16 %v5846_v54, %v5844_v35  ;;  %v5007_v23 = vld [vmem:[#allocation10 + $0x6c0] sm:$0xff]  ;;  %v5013_v35 = vld [vmem:[#allocation10 + $0x6f0] sm:$0xff] }
 0x617   : > { %6775 = vmatmul.mubr.msk.f32.gmra.mrb[92].mxu0 %vm4488_vm7, %v10662_v51  ;;  %v8734_v12 = vpack.c.bf16 %v5851_v2, %v5849_v11  ;;  %v5011_v20 = vld [vmem:[#allocation10 + $0x6e0] sm:$0xff]  ;;  %v5018_v54 = vld [vmem:[#allocation10 + $0x718] sm:$0xff]  ;;  %v5017_v2 = vld [vmem:[#allocation10 + $0x710] sm:$0xff] }
 0x618   : > { %6776 = vmatprep.mubr.msk.f32.mxu0 %vm4491_vm8, %v10668_v25  ;;  %8365 = vmatpush1.bf16.msra.mxu0 %v8364_v42  ;;  %v5003_v42 = vld [vmem:[#allocation10 + $0x6a0] sm:$0xff]  ;;  %v8384_v45 = vpack.c.bf16 %v5013_v35, %v5011_v20  ;;  %v5034_v20 = vld [vmem:[#allocation10 + $0x798] sm:$0xff] }
 0x619   : > { %8725 = vmatpush1.bf16.msra.mxu1 %v8724_v14  ;;  %8367 = vmatprep.subr.bf16.mxu0 %v8366_v6  ;;  %v5005_v14 = vld [vmem:[#allocation10 + $0x6b0] sm:$0xff]  ;;  %v5848_v6 = vld [vmem:[#allocation10 + $0x11e0] sm:$0xff] }
 0x61a   : > { %8727 = vmatprep.subr.bf16.mxu1 %v8726_v33  ;;  %v5010_v33 = vld [vmem:[#allocation10 + $0x6d8] sm:$0xff]  ;;  %v8376_v49 = vpack.c.bf16 %v5005_v14, %v5003_v42  ;;  %v8736_v9 = vpack.c.bf16 %v5850_v50, %v5848_v6  ;;  %v5015_v11 = vld [vmem:[#allocation10 + $0x700] sm:$0xff]  ;;  %v5021_v6 = vld [vmem:[#allocation10 + $0x730] sm:$0xff] }
 0x61b   : > { %6777 = vmatmul.mubr.msk.f32.gmra.mrb[94].mxu0 %vm4490_vm9, %v10674_v60  ;;  %v8378_v53 = vpack.c.bf16 %v5010_v33, %v5008_v0  ;;  %v5019_v14 = vld [vmem:[#allocation10 + $0x720] sm:$0xff]  ;;  %v5026_v50 = vld [vmem:[#allocation10 + $0x758] sm:$0xff] }
 0x61c   : > { %8369 = vmatpush1.bf16.msra.mxu0 %v8368_v10  ;;  %6786 = vmatprep.mubr.msk.f32.mxu0 %vm4485_vm2, %v10728_v4  ;;  %v5012_v10 = vld [vmem:[#allocation10 + $0x6e8] sm:$0xff]  ;;  %v8392_v0 = vpack.c.bf16 %v5021_v6, %v5019_v14  ;;  %v5037_v14 = vld [vmem:[#allocation10 + $0x7b0] sm:$0xff] }
 0x61d   : > { %8729 = vmatpush1.bf16.msra.mxu1 %v8728_v19  ;;  %8371 = vmatprep.subr.bf16.mxu0 %v8370_v46  ;;  %v5014_v19 = vld [vmem:[#allocation10 + $0x6f8] sm:$0xff]  ;;  %v8380_v46 = vpack.c.bf16 %v5009_v26, %v5007_v23  ;;  %v5040_v6 = vld [vmem:[#allocation10 + $0x7c8] sm:$0xff] }
 0x61e   : > { %8731 = vmatprep.subr.bf16.mxu1 %v8730_v27  ;;  %v8382_v3 = vpack.c.bf16 %v5014_v19, %v5012_v10  ;;  %v5016_v27 = vld [vmem:[#allocation10 + $0x708] sm:$0xff]  ;;  %v5030_v23 = vld [vmem:[#allocation10 + $0x778] sm:$0xff]  ;;  %v5027_v19 = vld [vmem:[#allocation10 + $0x760] sm:$0xff] }
 0x61f   : > { %v8386_v30 = vpack.c.bf16 %v5018_v54, %v5016_v27  ;;  %v5031_v54 = vld [vmem:[#allocation10 + $0x780] sm:$0xff] }
 0x620   : > { %8373 = vmatpush1.bf16.msra.mxu0 %v8372_v55  ;;  %v5020_v55 = vld [vmem:[#allocation10 + $0x728] sm:$0xff] }
 0x621   : > { %8733 = vmatpush1.bf16.msra.mxu1 %v8732_v38  ;;  %8375 = vmatprep.subr.bf16.mxu0 %v8374_v8  ;;  %v5022_v38 = vld [vmem:[#allocation10 + $0x738] sm:$0xff]  ;;  %v8388_v8 = vpack.c.bf16 %v5017_v2, %v5015_v11 }
 0x622   : > { %8735 = vmatprep.subr.bf16.mxu1 %v8734_v12  ;;  %v8390_v42 = vpack.c.bf16 %v5022_v38, %v5020_v55  ;;  %v5024_v12 = vld [vmem:[#allocation10 + $0x748] sm:$0xff]  ;;  %v5038_v11 = vld [vmem:[#allocation10 + $0x7b8] sm:$0xff] }
 0x623   : > { %v8394_v33 = vpack.c.bf16 %v5026_v50, %v5024_v12  ;;  %v5042_v12 = vld [vmem:[#allocation10 + $0x7d8] sm:$0xff] }
 0x624   : > { %8377 = vmatpush1.bf16.msra.mxu0 %v8376_v49  ;;  %v5023_v49 = vld [vmem:[#allocation10 + $0x740] sm:$0xff] }
 0x625   : > { %8737 = vmatpush1.bf16.msra.mxu1 %v8736_v9  ;;  %8379 = vmatprep.subr.bf16.mxu0 %v8378_v53  ;;  %v5025_v9 = vld [vmem:[#allocation10 + $0x750] sm:$0xff]  ;;  %v5028_v53 = vld [vmem:[#allocation10 + $0x768] sm:$0xff] }
 0x626   : > { %v8396_v26 = vpack.c.bf16 %v5025_v9, %v5023_v49  ;;  %v8398_v10 = vpack.c.bf16 %v5030_v23, %v5028_v53  ;;  %v8410_v53 = vpack.c.bf16 %v5042_v12, %v5040_v6  ;;  %v5039_v23 = vld [vmem:[#allocation10 + $0x7c0] sm:$0xff] }
 0x627   : > { %v5305_v12 = vld [vmem:[#allocation10 + $0xa00] sm:$0xff] }
 0x628   : > { %8381 = vmatpush1.bf16.msra.mxu0 %v8380_v46  ;;  %6827 = vmatmul.mubr.msk.f32.vlgmr.msra.gmra.mrb[120].mxu1 %vm4484_vm3, %v10638_v29  ;;  %v5029_v46 = vld [vmem:[#allocation10 + $0x770] sm:$0xff]  ;;  %v5365_v9 = vld [vmem:[#allocation10 + $0xbe0] sm:$0xff] }
 0x629   : > { %6828 = vmatprep.mubr.msk.f32.mxu1 %vm4487_vm4, %v10644_v22  ;;  %8383 = vmatprep.subr.bf16.mxu0 %v8382_v3  ;;  %v5032_v3 = vld [vmem:[#allocation10 + $0x788] sm:$0xff]  ;;  %v8400_v35 = vpack.c.bf16 %v5029_v46, %v5027_v19  ;;  %v5046_v19 = vld [vmem:[#allocation10 + $0x7f8] sm:$0xff] }
 0x62a   : > { %v8402_v27 = vpack.c.bf16 %v5034_v20, %v5032_v3 }
 0x62c   : > { %8385 = vmatpush1.bf16.msra.mxu0 %v8384_v45  ;;  %6829 = vmatmul.mubr.msk.f32.gmra.mrb[122].mxu1 %vm4486_vm5, %v10650_v62  ;;  %v5033_v45 = vld [vmem:[#allocation10 + $0x790] sm:$0xff] }
 0x62d   : > { %6830 = vmatprep.mubr.msk.f32.mxu1 %vm4489_vm6, %v10656_v1  ;;  %8387 = vmatprep.subr.bf16.mxu0 %v8386_v30  ;;  %v5036_v30 = vld [vmem:[#allocation10 + $0x7a8] sm:$0xff]  ;;  %v8404_v38 = vpack.c.bf16 %v5033_v45, %v5031_v54  ;;  %v5045_v54 = vld [vmem:[#allocation10 + $0x7f0] sm:$0xff] }
 0x62e   : > { %v5306_v45 = vld [vmem:[#allocation10 + $0xa08] sm:$0xff] }
 0x630   : > { %8389 = vmatpush1.bf16.msra.mxu0 %v8388_v8  ;;  %6831 = vmatmul.mubr.msk.f32.gmra.mrb[124].mxu1 %vm4488_vm7, %v10662_v51  ;;  %v8406_v8 = vpack.c.bf16 %v5038_v11, %v5036_v30  ;;  %v5308_v30 = vld [vmem:[#allocation10 + $0xa18] sm:$0xff] }
 0x631   : > { %6832 = vmatprep.mubr.msk.f32.mxu1 %vm4491_vm8, %v10668_v25  ;;  %8391 = vmatprep.subr.bf16.mxu0 %v8390_v42  ;;  %v5035_v42 = vld [vmem:[#allocation10 + $0x7a0] sm:$0xff]  ;;  %v8482_v6 = vpack.c.bf16 %v5308_v30, %v5306_v45  ;;  %v5318_v45 = vld [vmem:[#allocation10 + $0xa68] sm:$0xff]  ;;  %v5320_v30 = vld [vmem:[#allocation10 + $0xa78] sm:$0xff] }
 0x632   : > { %v8408_v49 = vpack.c.bf16 %v5037_v14, %v5035_v42 }
 0x634   : > { %8393 = vmatpush1.bf16.msra.mxu0 %v8392_v0  ;;  %6833 = vmatmul.mubr.msk.f32.gmra.mrb[126].mxu1 %vm4490_vm9, %v10674_v60  ;;  %v5316_v0 = vld [vmem:[#allocation10 + $0xa58] sm:$0xff] }
 0x635   : > { %8395 = vmatprep.subr.bf16.mxu0 %v8394_v33  ;;  %6230 = vmatprep.mubr.f32.mxu1 %v11349_v7  ;;  %v5311_v7 = vld [vmem:[#allocation10 + $0xa30] sm:$0xff] }
 0x638   : > { %8397 = vmatpush1.bf16.msra.mxu0 %v8396_v26  ;;  %v5041_v26 = vld [vmem:[#allocation10 + $0x7d0] sm:$0xff] }
 0x639   : > { %8399 = vmatprep.subr.bf16.mxu0 %v8398_v10  ;;  %v5044_v10 = vld [vmem:[#allocation10 + $0x7e8] sm:$0xff]  ;;  %v8412_v20 = vpack.c.bf16 %v5041_v26, %v5039_v23  ;;  %v5312_v23 = vld [vmem:[#allocation10 + $0xa38] sm:$0xff] }
 0x63b   : > { %v10755_v2 = vpop.f32.mrb[96].mxu1 }
 0x63c   : > { %v10757_v55 = vpop.f32.mrb[97].mxu1  ;;  %8401 = vmatpush1.bf16.msra.mxu0 %v8400_v35  ;;  %v8414_v35 = vpack.c.bf16 %v5046_v19, %v5044_v10  ;;  %v5309_v19 = vld [vmem:[#allocation10 + $0xa20] sm:$0xff] }
 0x63d   : > { %8403 = vmatprep.subr.bf16.mxu0 %v8402_v27  ;;  %v5043_v27 = vld [vmem:[#allocation10 + $0x7e0] sm:$0xff] }
 0x63e   : > { %v8416_v42 = vpack.c.bf16 %v5045_v54, %v5043_v27  ;;  %v5313_v27 = vld [vmem:[#allocation10 + $0xa40] sm:$0xff]  ;;  %v5315_v54 = vld [vmem:[#allocation10 + $0xa50] sm:$0xff] }
 0x63f   : > { %v10759_v50 = vpop.f32.mrb[98].mxu1 }
 0x640   : > { %v10763_v33 = vpop.f32.mrb[99].mxu1  ;;  %8405 = vmatpush1.bf16.msra.mxu0 %v8404_v38  ;;  %v5314_v38 = vld [vmem:[#allocation10 + $0xa48] sm:$0xff]  ;;  %v11395_v28 = vpack.c.bf16 %v10759_v50, %v10755_v2 }
 0x641   : > { %8407 = vmatprep.subr.bf16.mxu0 %v8406_v8  ;;  %v11394_v21 = vpack.c.bf16 %v10763_v33, %v10757_v55 }
 0x643   : > { %v10767_v46 = vpop.f32.mrb[100].mxu1 }
 0x644   : > { %v10769_v3 = vpop.f32.mrb[101].mxu1  ;;  %8409 = vmatpush1.bf16.msra.mxu0 %v8408_v49  ;;  %v5307_v49 = vld [vmem:[#allocation10 + $0xa10] sm:$0xff] }
 0x645   : > { %8411 = vmatprep.subr.bf16.mxu0 %v8410_v53  ;;  %v5310_v53 = vld [vmem:[#allocation10 + $0xa28] sm:$0xff]  ;;  %v8484_v26 = vpack.c.bf16 %v5307_v49, %v5305_v12  ;;  %v5321_v49 = vld [vmem:[#allocation10 + $0xa80] sm:$0xff] }
 0x646   : > { %v8486_v10 = vpack.c.bf16 %v5312_v23, %v5310_v53  ;;  %v5323_v53 = vld [vmem:[#allocation10 + $0xa90] sm:$0xff]  ;;  %v5326_v23 = vld [vmem:[#allocation10 + $0xaa8] sm:$0xff] }
 0x647   : > { %v10771_v11 = vpop.f32.mrb[102].mxu1 }
 0x648   : > { %v10775_v8 = vpop.f32.mrb[103].mxu1  ;;  %8413 = vmatpush1.bf16.msra.mxu0 %v8412_v20  ;;  %v8488_v20 = vpack.c.bf16 %v5311_v7, %v5309_v19  ;;  %v5319_v7 = vld [vmem:[#allocation10 + $0xa70] sm:$0xff] }
 0x649   : > { %8415 = vmatprep.subr.bf16.mxu0 %v8414_v35  ;;  %v8490_v35 = vpack.c.bf16 %v5316_v0, %v5314_v38  ;;  %v5324_v0 = vld [vmem:[#allocation10 + $0xa98] sm:$0xff] }
 0x64c   : > { %8417 = vmatpush1.bf16.msra.mxu0 %v8416_v42  ;;  %v5317_v42 = vld [vmem:[#allocation10 + $0xa60] sm:$0xff] }
 0x64d   : > { %8483 = vmatprep.subr.bf16.mxu0 %v8482_v6  ;;  %v5322_v6 = vld [vmem:[#allocation10 + $0xa88] sm:$0xff]  ;;  %v8496_v38 = vpack.c.bf16 %v5319_v7, %v5317_v42  ;;  %v5336_v7 = vld [vmem:[#allocation10 + $0xaf8] sm:$0xff] }
 0x64e   : > { %v8498_v12 = vpack.c.bf16 %v5324_v0, %v5322_v6  ;;  %v5334_v42 = vld [vmem:[#allocation10 + $0xae8] sm:$0xff] }
 0x64f   : > { %6787 = vmatmul.mubr.msk.f32.vlgmr.msra.gmra.mrb[96].mxu0 %vm4484_vm3, %v10638_v29  ;;  %v8492_v29 = vpack.c.bf16 %v5315_v54, %v5313_v27  ;;  %v5330_v27 = vld [vmem:[#allocation10 + $0xac8] sm:$0xff]  ;;  %v5332_v54 = vld [vmem:[#allocation10 + $0xad8] sm:$0xff]  ;;  %v8510_v0 = vpack.c.bf16 %v5336_v7, %v5334_v42 }
 0x650   : > { %6788 = vmatprep.mubr.msk.f32.mxu0 %vm4487_vm4, %v10644_v22  ;;  %8485 = vmatpush1.bf16.msra.mxu0 %v8484_v26  ;;  %v8494_v22 = vpack.c.bf16 %v5320_v30, %v5318_v45  ;;  %v5328_v26 = vld [vmem:[#allocation10 + $0xab8] sm:$0xff]  ;;  %v8506_v30 = vpack.c.bf16 %v5332_v54, %v5330_v27 }
 0x651   : > { %8487 = vmatprep.subr.bf16.mxu0 %v8486_v10  ;;  %v8500_v10 = vpack.c.bf16 %v5323_v53, %v5321_v49  ;;  %v8502_v19 = vpack.c.bf16 %v5328_v26, %v5326_v23  ;;  %v5335_v49 = vld [vmem:[#allocation10 + $0xaf0] sm:$0xff]  ;;  %v5340_v53 = vld [vmem:[#allocation10 + $0xb18] sm:$0xff] }
 0x653   : > { %6789 = vmatmul.mubr.msk.f32.gmra.mrb[98].mxu0 %vm4486_vm5, %v10650_v62 }
 0x654   : > { %6790 = vmatprep.mubr.msk.f32.mxu0 %vm4489_vm6, %v10656_v1  ;;  %8489 = vmatpush1.bf16.msra.mxu0 %v8488_v20  ;;  %v5325_v20 = vld [vmem:[#allocation10 + $0xaa0] sm:$0xff] }
 0x655   : > { %8491 = vmatprep.subr.bf16.mxu0 %v8490_v35  ;;  %v5327_v35 = vld [vmem:[#allocation10 + $0xab0] sm:$0xff] }
 0x656   : > { %v8504_v45 = vpack.c.bf16 %v5327_v35, %v5325_v20  ;;  %v5339_v20 = vld [vmem:[#allocation10 + $0xb10] sm:$0xff]  ;;  %v5344_v35 = vld [vmem:[#allocation10 + $0xb38] sm:$0xff] }
 0x657   : > { %6791 = vmatmul.mubr.msk.f32.gmra.mrb[100].mxu0 %vm4488_vm7, %v10662_v51 }
 0x658   : > { %6792 = vmatprep.mubr.msk.f32.mxu0 %vm4491_vm8, %v10668_v25  ;;  %8493 = vmatpush1.bf16.msra.mxu0 %v8492_v29  ;;  %v5329_v29 = vld [vmem:[#allocation10 + $0xac0] sm:$0xff] }
 0x659   : > { %8495 = vmatprep.subr.bf16.mxu0 %v8494_v22  ;;  %v5331_v22 = vld [vmem:[#allocation10 + $0xad0] sm:$0xff] }
 0x65a   : > { %v8508_v6 = vpack.c.bf16 %v5331_v22, %v5329_v29  ;;  %v5343_v29 = vld [vmem:[#allocation10 + $0xb30] sm:$0xff]  ;;  %v5348_v22 = vld [vmem:[#allocation10 + $0xb58] sm:$0xff] }
 0x65b   : > { %6793 = vmatmul.mubr.msk.f32.gmra.mrb[102].mxu0 %vm4490_vm9, %v10674_v60 }
 0x65c   : > { %8497 = vmatpush1.bf16.msra.mxu0 %v8496_v38  ;;  %6802 = vmatprep.mubr.msk.f32.mxu0 %vm4485_vm2, %v10728_v4  ;;  %v5333_v38 = vld [vmem:[#allocation10 + $0xae0] sm:$0xff] }
 0x65d   : > { %8499 = vmatprep.subr.bf16.mxu0 %v8498_v12  ;;  %v5338_v12 = vld [vmem:[#allocation10 + $0xb08] sm:$0xff]  ;;  %v8512_v23 = vpack.c.bf16 %v5335_v49, %v5333_v38  ;;  %v5347_v38 = vld [vmem:[#allocation10 + $0xb50] sm:$0xff]  ;;  %v5352_v49 = vld [vmem:[#allocation10 + $0xb78] sm:$0xff] }
 0x65e   : > { %v8514_v26 = vpack.c.bf16 %v5340_v53, %v5338_v12 }
 0x660   : > { %8501 = vmatpush1.bf16.msra.mxu0 %v8500_v10  ;;  %v5337_v10 = vld [vmem:[#allocation10 + $0xb00] sm:$0xff] }
 0x661   : > { %8503 = vmatprep.subr.bf16.mxu0 %v8502_v19  ;;  %v5342_v19 = vld [vmem:[#allocation10 + $0xb28] sm:$0xff]  ;;  %v8516_v27 = vpack.c.bf16 %v5339_v20, %v5337_v10  ;;  %v5351_v10 = vld [vmem:[#allocation10 + $0xb70] sm:$0xff]  ;;  %v5356_v20 = vld [vmem:[#allocation10 + $0xb98] sm:$0xff] }
 0x662   : > { %v8518_v54 = vpack.c.bf16 %v5344_v35, %v5342_v19 }
 0x664   : > { %8505 = vmatpush1.bf16.msra.mxu0 %v8504_v45  ;;  %v5341_v45 = vld [vmem:[#allocation10 + $0xb20] sm:$0xff] }
 0x665   : > { %8507 = vmatprep.subr.bf16.mxu0 %v8506_v30  ;;  %v5346_v30 = vld [vmem:[#allocation10 + $0xb48] sm:$0xff]  ;;  %v8520_v42 = vpack.c.bf16 %v5343_v29, %v5341_v45  ;;  %v5355_v45 = vld [vmem:[#allocation10 + $0xb90] sm:$0xff]  ;;  %v5360_v29 = vld [vmem:[#allocation10 + $0xbb8] sm:$0xff] }
 0x666   : > { %v8522_v7 = vpack.c.bf16 %v5348_v22, %v5346_v30 }
 0x668   : > { %8509 = vmatpush1.bf16.msra.mxu0 %v8508_v6  ;;  %v5345_v6 = vld [vmem:[#allocation10 + $0xb40] sm:$0xff] }
 0x669   : > { %8511 = vmatprep.subr.bf16.mxu0 %v8510_v0  ;;  %v5350_v0 = vld [vmem:[#allocation10 + $0xb68] sm:$0xff]  ;;  %v8524_v12 = vpack.c.bf16 %v5347_v38, %v5345_v6  ;;  %v5357_v6 = vld [vmem:[#allocation10 + $0xba0] sm:$0xff]  ;;  %v5359_v38 = vld [vmem:[#allocation10 + $0xbb0] sm:$0xff] }
 0x66a   : > { %v8526_v53 = vpack.c.bf16 %v5352_v49, %v5350_v0  ;;  %v5362_v0 = vld [vmem:[#allocation10 + $0xbc8] sm:$0xff]  ;;  %v5364_v49 = vld [vmem:[#allocation10 + $0xbd8] sm:$0xff] }
 0x66c   : > { %8513 = vmatpush1.bf16.msra.mxu0 %v8512_v23  ;;  %v5349_v23 = vld [vmem:[#allocation10 + $0xb60] sm:$0xff] }
 0x66d   : > { %8515 = vmatprep.subr.bf16.mxu0 %v8514_v26  ;;  %v5354_v26 = vld [vmem:[#allocation10 + $0xb88] sm:$0xff]  ;;  %v8528_v19 = vpack.c.bf16 %v5351_v10, %v5349_v23  ;;  %v8536_v10 = vpack.c.bf16 %v5359_v38, %v5357_v6  ;;  %v5630_v38 = vld [vmem:[#allocation10 + $0xe18] sm:$0xff] }
 0x66e   : > { %v8530_v35 = vpack.c.bf16 %v5356_v20, %v5354_v26  ;;  %v8538_v20 = vpack.c.bf16 %v5364_v49, %v5362_v0  ;;  %v5628_v6 = vld [vmem:[#allocation10 + $0xe08] sm:$0xff] }
 0x670   : > { %8517 = vmatpush1.bf16.msra.mxu0 %v8516_v27  ;;  %v5353_v27 = vld [vmem:[#allocation10 + $0xb80] sm:$0xff] }
 0x671   : > { %8519 = vmatprep.subr.bf16.mxu0 %v8518_v54  ;;  %v5358_v54 = vld [vmem:[#allocation10 + $0xba8] sm:$0xff] }
 0x674   : > { %8521 = vmatpush1.bf16.msra.mxu0 %v8520_v42  ;;  %v8532_v42 = vpack.c.bf16 %v5355_v45, %v5353_v27  ;;  %v5366_v27 = vld [vmem:[#allocation10 + $0xbe8] sm:$0xff]  ;;  %v5368_v45 = vld [vmem:[#allocation10 + $0xbf8] sm:$0xff] }
 0x675   : > { %8523 = vmatprep.subr.bf16.mxu0 %v8522_v7  ;;  %v8534_v7 = vpack.c.bf16 %v5360_v29, %v5358_v54 }
 0x678   : > { %8525 = vmatpush1.bf16.msra.mxu0 %v8524_v12 }
 0x679   : > { %8527 = vmatprep.subr.bf16.mxu0 %v8526_v53  ;;  %v8542_v53 = vpack.c.bf16 %v5368_v45, %v5366_v27  ;;  %v5632_v27 = vld [vmem:[#allocation10 + $0xe28] sm:$0xff]  ;;  %v5634_v45 = vld [vmem:[#allocation10 + $0xe38] sm:$0xff] }
 0x67a   : > { %v8614_v61 = vpack.c.bf16 %v5634_v45, %v5632_v27  ;;  %v5645_v45 = vld [vmem:[#allocation10 + $0xe90] sm:$0xff] }
 0x67b   : > { %v10803_v30 = vpop.f32.mrb[104].mxu1 }
 0x67c   : > { %v10805_v22 = vpop.f32.mrb[105].mxu1  ;;  %8529 = vmatpush1.bf16.msra.mxu0 %v8528_v19  ;;  %v5361_v19 = vld [vmem:[#allocation10 + $0xbc0] sm:$0xff] }
 0x67d   : > { %8531 = vmatprep.subr.bf16.mxu0 %v8530_v35  ;;  %v5363_v35 = vld [vmem:[#allocation10 + $0xbd0] sm:$0xff] }
 0x67e   : > { %v8540_v14 = vpack.c.bf16 %v5363_v35, %v5361_v19  ;;  %v5627_v19 = vld [vmem:[#allocation10 + $0xe00] sm:$0xff]  ;;  %v5629_v35 = vld [vmem:[#allocation10 + $0xe10] sm:$0xff] }
 0x67f   : > { %v10807_v12 = vpop.f32.mrb[106].mxu1  ;;  %v8612_v26 = vpack.c.bf16 %v5629_v35, %v5627_v19  ;;  %v5642_v19 = vld [vmem:[#allocation10 + $0xe78] sm:$0xff] }
 0x680   : > { %v10811_v23 = vpop.f32.mrb[107].mxu1  ;;  %8533 = vmatpush1.bf16.msra.mxu0 %v8532_v42  ;;  %v5367_v42 = vld [vmem:[#allocation10 + $0xbf0] sm:$0xff] }
 0x681   : > { %8535 = vmatprep.subr.bf16.mxu0 %v8534_v7  ;;  %v8544_v49 = vpack.c.bf16 %v5367_v42, %v5365_v9  ;;  %v5631_v7 = vld [vmem:[#allocation10 + $0xe20] sm:$0xff] }
 0x682   : > { %v10828_v9 = vld [vmem:[%s9639_s24] sm:$0xff]  ;;  %v8616_v42 = vpack.c.bf16 %v5633_v24, %v5631_v7  ;;  %v5641_v24 = vld [vmem:[#allocation10 + $0xe70] sm:$0xff] }
 0x683   : > { %v10815_v54 = vpop.f32.mrb[108].mxu1  ;;  %v5643_v7 = vld [vmem:[#allocation10 + $0xe80] sm:$0xff] }
 0x684   : > { %v10817_v29 = vpop.f32.mrb[109].mxu1  ;;  %8537 = vmatpush1.bf16.msra.mxu0 %v8536_v10 }
 0x685   : > { %8539 = vmatprep.subr.bf16.mxu0 %v8538_v20  ;;  %v8610_v20 = vpack.c.bf16 %v5630_v38, %v5628_v6  ;;  %v5635_v38 = vld [vmem:[#allocation10 + $0xe40] sm:$0xff] }
 0x687   : > { %v10819_v5 = vpop.f32.mrb[110].mxu1 }
 0x688   : > { %v10823_v0 = vpop.f32.mrb[111].mxu1  ;;  %8541 = vmatpush1.bf16.msra.mxu0 %v8540_v14  ;;  %v5638_v14 = vld [vmem:[#allocation10 + $0xe58] sm:$0xff] }
 0x689   : > { %8543 = vmatprep.subr.bf16.mxu0 %v8542_v53  ;;  %v10834_v53 = vld [vmem:[%s9639_s24 + $0x18] sm:$0xff]  ;;  %v8618_v6 = vpack.c.bf16 %v5638_v14, %v5636_v57  ;;  %v5648_v14 = vld [vmem:[#allocation10 + $0xea8] sm:$0xff] }
 0x68a   : > { %v5646_v57 = vld [vmem:[#allocation10 + $0xe98] sm:$0xff] }
 0x68c   : > { %8545 = vmatpush1.bf16.msra.mxu0 %v8544_v49  ;;  %v5637_v49 = vld [vmem:[#allocation10 + $0xe50] sm:$0xff] }
 0x68d   : > { %8611 = vmatprep.subr.bf16.mxu0 %v8610_v20  ;;  %v5640_v20 = vld [vmem:[#allocation10 + $0xe68] sm:$0xff]  ;;  %v8620_v35 = vpack.c.bf16 %v5637_v49, %v5635_v38  ;;  %v5649_v38 = vld [vmem:[#allocation10 + $0xeb0] sm:$0xff] }
 0x68e   : > { %v8622_v27 = vpack.c.bf16 %v5642_v19, %v5640_v20  ;;  %v5652_v49 = vld [vmem:[#allocation10 + $0xec8] sm:$0xff]  ;;  %v5654_v20 = vld [vmem:[#allocation10 + $0xed8] sm:$0xff] }
 0x68f   : > { %6803 = vmatmul.mubr.msk.f32.vlgmr.msra.gmra.mrb[104].mxu0 %vm4484_vm3, %v10828_v9 }
 0x690   : > { %6804 = vmatprep.mubr.msk.f32.mxu0 %vm4487_vm4, %v10834_v53  ;;  %8613 = vmatpush1.bf16.msra.mxu0 %v8612_v26  ;;  %v5639_v26 = vld [vmem:[#allocation10 + $0xe60] sm:$0xff] }
 0x691   : > { %8615 = vmatprep.subr.bf16.mxu0 %v8614_v61  ;;  %v5644_v61 = vld [vmem:[#allocation10 + $0xe88] sm:$0xff] }
 0x693   : > { %6805 = vmatmul.mubr.msk.f32.gmra.mrb[106].mxu0 %vm4486_vm5, %v10650_v62  ;;  %v8624_v62 = vpack.c.bf16 %v5641_v24, %v5639_v26  ;;  %v5653_v26 = vld [vmem:[#allocation10 + $0xed0] sm:$0xff]  ;;  %v4105_v24 = vpop.permute.xlu1 %4104 }
 0x694   : > { %6806 = vmatprep.mubr.msk.f32.mxu0 %vm4489_vm6, %v10656_v1  ;;  %8617 = vmatpush1.bf16.msra.mxu0 %v8616_v42  ;;  %v8626_v1 = vpack.c.bf16 %v5646_v57, %v5644_v61  ;;  %v5650_v42 = vld [vmem:[#allocation10 + $0xeb8] sm:$0xff]  ;;  %v5656_v61 = vld [vmem:[#allocation10 + $0xee8] sm:$0xff] }
 0x695   : > { %8619 = vmatprep.subr.bf16.mxu0 %v8618_v6  ;;  %v5647_v6 = vld [vmem:[#allocation10 + $0xea0] sm:$0xff]  ;;  %v5658_v57 = vld [vmem:[#allocation10 + $0xef8] sm:$0xff] }
 0x696   : > { %v8632_v19 = vpack.c.bf16 %v5649_v38, %v5647_v6 }
 0x697   : > { %6807 = vmatmul.mubr.msk.f32.gmra.mrb[108].mxu0 %vm4488_vm7, %v10662_v51  ;;  %v8628_v51 = vpack.c.bf16 %v5645_v45, %v5643_v7  ;;  %v8638_v45 = vpack.c.bf16 %v5658_v57, %v5656_v61  ;;  %v5659_v61 = vld [vmem:[#allocation10 + $0xf00] sm:$0xff]  ;;  %v5661_v57 = vld [vmem:[#allocation10 + $0xf10] sm:$0xff] }
 0x698   : > { %6808 = vmatprep.mubr.msk.f32.mxu0 %vm4491_vm8, %v10668_v25  ;;  %8621 = vmatpush1.bf16.msra.mxu0 %v8620_v35  ;;  %v8630_v25 = vpack.c.bf16 %v5650_v42, %v5648_v14  ;;  %v8634_v35 = vpack.c.bf16 %v5654_v20, %v5652_v49  ;;  %v5655_v14 = vld [vmem:[#allocation10 + $0xee0] sm:$0xff]  ;;  %v5657_v42 = vld [vmem:[#allocation10 + $0xef0] sm:$0xff]  ;;  %v5660_v49 = vld [vmem:[#allocation10 + $0xf08] sm:$0xff] }
 0x699   : > { %8623 = vmatprep.subr.bf16.mxu0 %v8622_v27  ;;  %v5651_v27 = vld [vmem:[#allocation10 + $0xec0] sm:$0xff]  ;;  %v5662_v20 = vld [vmem:[#allocation10 + $0xf18] sm:$0xff] }
 0x69a   : > { %v8642_v10 = vpack.c.bf16 %v5662_v20, %v5660_v49 }
 0x69b   : > { %6809 = vmatmul.mubr.msk.f32.gmra.mrb[110].mxu0 %vm4490_vm9, %v10674_v60 }
 0x69c   : > { %8625 = vmatpush1.bf16.msra.mxu0 %v8624_v62  ;;  %6818 = vmatprep.mubr.msk.f32.mxu0 %vm4485_vm2, %v10728_v4 }
 0x69d   : > { %8627 = vmatprep.subr.bf16.mxu0 %v8626_v1  ;;  %v8636_v1 = vpack.c.bf16 %v5653_v26, %v5651_v27 }
 0x6a0   : > { %8629 = vmatpush1.bf16.msra.mxu0 %v8628_v51  ;;  %v4110_v51 = vpop.permute.xlu0 %4109 }
 0x6a1   : > { %8631 = vmatprep.subr.bf16.mxu0 %v8630_v25 }
 0x6a2   : > { %v4289_v60 = vpop.f32.mrb[80].mxu0 }
 0x6a3   : > { %v10857_v62 = vadd.f32 %v4289_v60, %v4105_v24  ;;  %v4291_v43 = vpop.f32.mrb[81].mxu0  ;;  %v8640_v60 = vpack.c.bf16 %v5657_v42, %v5655_v14  ;;  %v5663_v42 = vld [vmem:[#allocation10 + $0xf20] sm:$0xff] }
 0x6a4   : > { %v10859_v4 = vadd.f32 %v4291_v43, %v4105_v24  ;;  %8633 = vmatpush1.bf16.msra.mxu0 %v8632_v19 }
 0x6a5   : > { %11385 = vst [vmem:[#allocation26_spill] sm:$0xff] %v10857_v62  ;;  %8635 = vmatprep.subr.bf16.mxu0 %v8634_v35  ;;  %v4328_v7 = vmul.f32 %v10857_v62, %v10857_v62  ;;  %v4115_v35 = vpop.permute.xlu1 %4114 }
 0x6a6   : > { %11386 = vst [vmem:[#allocation27_spill] sm:$0xff] %v10859_v4  ;;  %v4295_v25 = vpop.f32.mrb[82].mxu0  ;;  %v4312_v6 = vadd.f32 %v10859_v4, %v10857_v62  ;;  %v4329_v38 = vmul.f32 %v10859_v4, %v10859_v4  ;;  %v5664_v62 = vld [vmem:[#allocation10 + $0xf28] sm:$0xff] }
 0x6a7   : > { %v10867_v24 = vadd.f32 %v4295_v25, %v4110_v51  ;;  %v4297_v19 = vpop.f32.mrb[83].mxu0 }
 0x6a8   : > { %v10869_v27 = vadd.f32 %v4297_v19, %v4110_v51  ;;  %8637 = vmatpush1.bf16.msra.mxu0 %v8636_v1  ;;  %4313 = vadd.xlane.f32.xlu1 %v4312_v6  ;;  %v4336_v26 = vadd.f32 %v4329_v38, %v4328_v7  ;;  %v8644_v19 = vpack.c.bf16 %v5661_v57, %v5659_v61  ;;  %v5665_v6 = vld [vmem:[#allocation10 + $0xf30] sm:$0xff] }
 0x6a9   : > { %8639 = vmatprep.subr.bf16.mxu0 %v8638_v45  ;;  %v4330_v43 = vmul.f32 %v10867_v24, %v10867_v24  ;;  %v8646_v38 = vpack.c.bf16 %v5666_v15, %v5664_v62  ;;  %v4120_v49 = vpop.permute.xlu1 %4119 }
 0x6aa   : > { %v4301_v4 = vpop.f32.mrb[84].mxu0  ;;  %4337 = vadd.xlane.f32.xlu0 %v4336_v26  ;;  %v4331_v25 = vmul.f32 %v10869_v27, %v10869_v27  ;;  %v4315_v45 = vadd.f32 %v10869_v27, %v10867_v24  ;;  %v5668_v26 = vld [vmem:[#allocation10 + $0xf48] sm:$0xff] }
 0x6ab   : > { %v4303_v51 = vpop.f32.mrb[85].mxu0  ;;  %v10875_v1 = vadd.f32 %v4301_v4, %v4115_v35  ;;  %v8650_v62 = vpack.c.bf16 %v5670_v52, %v5668_v26 }
 0x6ac   : > { %v10877_v7 = vadd.f32 %v4303_v51, %v4115_v35  ;;  %8641 = vmatpush1.bf16.msra.mxu0 %v8640_v60  ;;  %v4339_v14 = vadd.f32 %v4331_v25, %v4330_v43  ;;  %v8648_v35 = vpack.c.bf16 %v5665_v6, %v5663_v42  ;;  %v5667_v43 = vld [vmem:[#allocation10 + $0xf40] sm:$0xff]  ;;  %v5669_v25 = vld [vmem:[#allocation10 + $0xf50] sm:$0xff]  ;;  %v5674_v42 = vld [vmem:[#allocation10 + $0xf78] sm:$0xff] }
 0x6ad   : > { %11387 = vst [vmem:[#allocation28_spill] sm:$0xff] %v10875_v1  ;;  %8643 = vmatprep.subr.bf16.mxu0 %v8642_v10  ;;  %v4332_v10 = vmul.f32 %v10875_v1, %v10875_v1 }
 0x6ae   : > { %11388 = vst [vmem:[#allocation29_spill] sm:$0xff] %v10877_v7  ;;  %v4307_v20 = vpop.f32.mrb[86].mxu0  ;;  %4340 = vadd.xlane.f32.xlu1 %v4339_v14  ;;  %4316 = vadd.xlane.f32.xlu0 %v4315_v45  ;;  %v4318_v60 = vadd.f32 %v10877_v7, %v10875_v1  ;;  %v4333_v15 = vmul.f32 %v10877_v7, %v10877_v7  ;;  %v5672_v45 = vld [vmem:[#allocation10 + $0xf68] sm:$0xff] }
 0x6af   : > { %v10881_v61 = vadd.f32 %v4307_v20, %v4120_v49  ;;  %v4309_v4 = vpop.f32.mrb[87].mxu0  ;;  %v8654_v52 = vpack.c.bf16 %v5674_v42, %v5672_v45  ;;  %v5673_v20 = vld [vmem:[#allocation10 + $0xf70] sm:$0xff] }
 0x6b0   : > { %v10883_v57 = vadd.f32 %v4309_v4, %v4120_v49  ;;  %8645 = vmatpush1.bf16.msra.mxu0 %v8644_v19  ;;  %v4342_v6 = vadd.f32 %v4333_v15, %v4332_v10  ;;  %v8652_v49 = vpack.c.bf16 %v5669_v25, %v5667_v43  ;;  %v5676_v4 = vld [vmem:[#allocation10 + $0xf88] sm:$0xff]  ;;  %v8660_v15 = vpack.c.bf16 %v5677_v56, %v5675_v18  ;;  %v5679_v43 = vld [vmem:[#allocation10 + $0xfa0] sm:$0xff]  ;;  %v5681_v25 = vld [vmem:[#allocation10 + $0xfb0] sm:$0xff] }
 0x6b1   : > { %8647 = vmatprep.subr.bf16.mxu0 %v8646_v38  ;;  %v4334_v19 = vmul.f32 %v10881_v61, %v10881_v61  ;;  %v5671_v38 = vld [vmem:[#allocation10 + $0xf60] sm:$0xff] }
 0x6b2   : > { %11389 = vst [vmem:[#allocation30_spill] sm:$0xff] %v10883_v57  ;;  %4319 = vadd.xlane.f32.xlu0 %v4318_v60  ;;  %v4321_v51 = vadd.f32 %v10883_v57, %v10881_v61  ;;  %v4335_v14 = vmul.f32 %v10883_v57, %v10883_v57  ;;  %v5678_v60 = vld [vmem:[#allocation10 + $0xf98] sm:$0xff]  ;;  %v8656_v7 = vpack.c.bf16 %v5673_v20, %v5671_v38  ;;  %v5680_v57 = vld [vmem:[#allocation10 + $0xfa8] sm:$0xff]  ;;  %v5683_v18 = vld [vmem:[#allocation10 + $0xfc0] sm:$0xff] }
 0x6b3   : > { %v8658_v1 = vpack.c.bf16 %v5678_v60, %v5676_v4  ;;  %v5687_v60 = vld [vmem:[#allocation10 + $0xfe0] sm:$0xff] }
 0x6b4   : > { %8649 = vmatpush1.bf16.msra.mxu0 %v8648_v35  ;;  %4322 = vadd.xlane.f32.xlu1 %v4321_v51  ;;  %v4345_v26 = vadd.f32 %v4335_v14, %v4334_v19  ;;  %v5682_v35 = vld [vmem:[#allocation10 + $0xfb8] sm:$0xff]  ;;  %v5684_v19 = vld [vmem:[#allocation10 + $0xfc8] sm:$0xff] }
 0x6b5   : > { %8651 = vmatprep.subr.bf16.mxu0 %v8650_v62  ;;  %v8662_v62 = vpack.c.bf16 %v5682_v35, %v5680_v57  ;;  %v5686_v14 = vld [vmem:[#allocation10 + $0xfd8] sm:$0xff]  ;;  %v5689_v35 = vld [vmem:[#allocation10 + $0xff0] sm:$0xff] }
 0x6b6   : > { %4343 = vadd.xlane.f32.xlu0 %v4342_v6  ;;  %v8666_v56 = vpack.c.bf16 %v5686_v14, %v5684_v19  ;;  %v5690_v57 = vld [vmem:[#allocation10 + $0xff8] sm:$0xff]  ;;  %v11390_v14 = vpack.c.bf16 %v10690_v44, %v10684_v47  ;;  %v9078_v47 = vld [vmem:[%s9639_s24 + $0x28] sm:$0xff] }
 0x6b8   : > { %8653 = vmatpush1.bf16.msra.mxu0 %v8652_v49  ;;  %4346 = vadd.xlane.f32.xlu1 %v4345_v26  ;;  %v8664_v49 = vpack.c.bf16 %v5681_v25, %v5679_v43  ;;  %v8672_v25 = vpack.c.bf16 %v5689_v35, %v5687_v60 }
 0x6b9   : > { %8655 = vmatprep.subr.bf16.mxu0 %v8654_v52 }
 0x6bb   : > { %v10897_v51 = vpop.f32.mrb[112].mxu1 }
 0x6bc   : > { %v10899_v10 = vpop.f32.mrb[113].mxu1  ;;  %8657 = vmatpush1.bf16.msra.mxu0 %v8656_v7  ;;  %v5688_v7 = vld [vmem:[#allocation10 + $0xfe8] sm:$0xff] }
 0x6bd   : > { %8659 = vmatprep.subr.bf16.mxu0 %v8658_v1  ;;  %v5685_v1 = vld [vmem:[#allocation10 + $0xfd0] sm:$0xff]  ;;  %v8670_v4 = vpack.c.bf16 %v5690_v57, %v5688_v7  ;;  %v11396_v57 = vpack.c.bf16 %v10775_v8, %v10769_v3 }
 0x6be   : > { %v8668_v26 = vpack.c.bf16 %v5685_v1, %v5683_v18  ;;  %v9077_v18 = vld [vmem:[%s9639_s24 + $0x10] sm:$0xff] }
 0x6bf   : > { %v10901_v45 = vpop.f32.mrb[114].mxu1 }
 0x6c0   : > { %v8788_v42 = vpack.c.bf16 %v10901_v45, %v10897_v51  ;;  %v10905_v6 = vpop.f32.mrb[115].mxu1  ;;  %8661 = vmatpush1.bf16.msra.mxu0 %v8660_v15 }
 0x6c1   : > { %v8786_v52 = vpack.c.bf16 %v10905_v6, %v10899_v10  ;;  %8663 = vmatprep.subr.bf16.mxu0 %v8662_v62 }
 0x6c3   : > { %v10909_v38 = vpop.f32.mrb[116].mxu1 }
 0x6c4   : > { %v10911_v20 = vpop.f32.mrb[117].mxu1  ;;  %8665 = vmatpush1.bf16.msra.mxu0 %v8664_v49  ;;  %v11391_v49 = vpack.c.bf16 %v10686_v34, %v10682_v32  ;;  %v9080_v32 = vld [vmem:[%s9639_s24 + $0x38] sm:$0xff]  ;;  %v9081_v34 = vld [vmem:[%s9639_s24 + $0x30] sm:$0xff]  ;;  %s11283_s24 = scalar_lea.hbm %s11412_s20, %s6857_s29 }
 0x6c5   : > { %8667 = vmatprep.subr.bf16.mxu0 %v8666_v56  ;;  %v11392_v56 = vpack.c.bf16 %v10702_v36, %v10696_v13 }
 0x6c7   : > { %v10913_v15 = vpop.f32.mrb[118].mxu1 }
 0x6c8   : > { %v8792_v62 = vpack.c.bf16 %v10913_v15, %v10909_v38  ;;  %v10917_v43 = vpop.f32.mrb[119].mxu1  ;;  %8669 = vmatpush1.bf16.msra.mxu0 %v8668_v26  ;;  %v5954_v38 = vld [vmem:[#allocation11 + $0xe0] sm:$0xff]  ;;  %v5953_v15 = vld [vmem:[#allocation11 + $0xd8] sm:$0xff] }
 0x6c9   : > { %v8790_v19 = vpack.c.bf16 %v10917_v43, %v10911_v20  ;;  %8671 = vmatprep.subr.bf16.mxu0 %v8670_v4  ;;  %v11397_v4 = vpack.c.bf16 %v10771_v11, %v10767_v46  ;;  %v5950_v20 = vld [vmem:[#allocation11 + $0xc0] sm:$0xff]  ;;  %v5956_v43 = vld [vmem:[#allocation11 + $0xf0] sm:$0xff] }
 0x6cc   : > { %8673 = vmatpush1.bf16.msra.mxu0 %v8672_v25 }
 0x6cd   : > { %8739 = vmatprep.subr.bf16.mxu0 %v11390_v14 }
 0x6cf   : > { %6819 = vmatmul.mubr.msk.f32.vlgmr.msra.gmra.mrb[112].mxu0 %vm4484_vm3, %v10828_v9 }
 0x6d0   : > { %6820 = vmatprep.mubr.msk.f32.mxu0 %vm4487_vm4, %v10834_v53  ;;  %8741 = vmatpush1.bf16.msra.mxu0 %v11391_v49 }
 0x6d1   : > { %8743 = vmatprep.subr.bf16.mxu0 %v11392_v56 }
 0x6d3   : > { %6821 = vmatmul.mubr.msk.f32.gmra.mrb[114].mxu0 %vm4486_vm5, %v9077_v18 }
 0x6d4   : > { %6822 = vmatprep.mubr.msk.f32.mxu0 %vm4489_vm6, %v9078_v47  ;;  %8745 = vmatpush1.bf16.msra.mxu0 %v11393_v41 }
 0x6d7   : > { %6823 = vmatmul.mubr.msk.f32.gmra.mrb[116].mxu0 %vm4488_vm7, %v9079_v59 }
 0x6d8   : > { %6824 = vmatprep.mubr.msk.f32.mxu0 %vm4491_vm8, %v9080_v32 }
 0x6db   : > { %6825 = vmatmul.mubr.msk.f32.gmra.mrb[118].mxu0 %vm4490_vm9, %v9081_v34 }
 0x6e2   : > { %v4791_v58 = vpop.f32.mrb[88].mxu0 }
 0x6e3   : > { %v4793_v44 = vpop.f32.mrb[89].mxu0 }
 0x6e6   : > { %v4797_v17 = vpop.f32.mrb[90].mxu0 }
 0x6e7   : > { %v8748_v13 = vpack.c.bf16 %v4797_v17, %v4791_v58  ;;  %v4799_v36 = vpop.f32.mrb[91].mxu0 }
 0x6e8   : > { %v8746_v9 = vpack.c.bf16 %v4799_v36, %v4793_v44  ;;  %v5951_v36 = vld [vmem:[#allocation11 + $0xc8] sm:$0xff] }
 0x6e9   : > { %6135 = vmatprep.mubr.f32.mxu0 %v5951_v36 }
 0x6ea   : > { %v4803_v63 = vpop.f32.mrb[92].mxu0  ;;  %8747 = vmatprep.subr.bf16.mxu0 %v8746_v9  ;;  %v11399_v9 = vpack.c.bf16 %v10807_v12, %v10803_v30  ;;  %v5961_v30 = vld [vmem:[#allocation11 + $0x118] sm:$0xff] }
 0x6eb   : > { %v4805_v40 = vpop.f32.mrb[93].mxu0  ;;  %8749 = vmatpush1.bf16.msra.mxu0 %v8748_v13  ;;  %v11398_v13 = vpack.c.bf16 %v10811_v23, %v10805_v22  ;;  %v5958_v22 = vld [vmem:[#allocation11 + $0x100] sm:$0xff] }
 0x6ee   : > { %v4809_v16 = vpop.f32.mrb[94].mxu0 }
 0x6ef   : > { %v8752_v53 = vpack.c.bf16 %v4809_v16, %v4803_v63  ;;  %v4811_v1 = vpop.f32.mrb[95].mxu0  ;;  %v11400_v63 = vpack.c.bf16 %v10823_v0, %v10817_v29  ;;  %v5955_v16 = vld [vmem:[#allocation11 + $0xe8] sm:$0xff] }
 0x6f0   : > { %v8750_v7 = vpack.c.bf16 %v4811_v1, %v4805_v40  ;;  %v11401_v40 = vpack.c.bf16 %v10819_v5, %v10815_v54 }
 0x6f2   : > { %8751 = vmatprep.subr.bf16.mxu0 %v8750_v7 }
 0x6f3   : > { %8753 = vmatpush1.bf16.msra.mxu0 %v8752_v53  ;;  %v11402_v53 = vmov 0.0  }
 0x6f4   : > { %8755 = vmatprep.subr.bf16.mxu0 %v11394_v21 }
 0x6f7   : > { %8757 = vmatpush1.bf16.msra.mxu0 %v11395_v28 }
 0x6f8   : > { %8759 = vmatprep.subr.bf16.mxu0 %v11396_v57 }
 0x6fb   : > { %v5918_v26 = vpop.f32.mrb[120].mxu1  ;;  %8761 = vmatpush1.bf16.msra.mxu0 %v11397_v4 }
 0x6fc   : > { %v5920_v60 = vpop.f32.mrb[121].mxu1 }
 0x6ff   : > { %v5924_v35 = vpop.f32.mrb[122].mxu1 }
 0x700   : > { %v10966_v25 = vpack.c.bf16 %v5924_v35, %v5918_v26  ;;  %v5926_v14 = vpop.f32.mrb[123].mxu1 }
 0x701   : > { %v10968_v55 = vpack.c.bf16 %v5926_v14, %v5920_v60 }
 0x703   : > { %v5930_v33 = vpop.f32.mrb[124].mxu1  ;;  %8810 = vmatprep.subr.bf16.mxu1 %v10968_v55 }
 0x704   : > { %v5932_v2 = vpop.f32.mrb[125].mxu1  ;;  %8812 = vmatpush1.bf16.msra.mxu1 %v10966_v25 }
 0x707   : > { %v5936_v50 = vpop.f32.mrb[126].mxu1 }
 0x708   : > { %v10972_v3 = vpack.c.bf16 %v5936_v50, %v5930_v33  ;;  %v5938_v8 = vpop.f32.mrb[127].mxu1  ;;  %v5959_v50 = vld [vmem:[#allocation11 + $0x108] sm:$0xff] }
 0x709   : > { %v10974_v49 = vpack.c.bf16 %v5938_v8, %v5932_v2 }
 0x70b   : > { %8811 = vmatprep.subr.bf16.mxu1 %v10974_v49 }
 0x70c   : > { %8813 = vmatpush1.bf16.msra.mxu1 %v10972_v3 }
 0x70f   : > { %6839 = vmatmul.mubr.msk.f32.vlgmr.msra.gmra.mrb[128].mxu1 %vm463_vm0, %v5955_v16 }
 0x710   : > { %6236 = vmatprep.mubr.f32.mxu1 %v11402_v53 }
 0x713   : > { %6840 = vmatmul.mubr.msk.f32.gmra.mrb[130].mxu1 %vm463_vm0, %v5958_v22 }
 0x714   : > { %6242 = vmatprep.mubr.f32.mxu1 %v11402_v53 }
 0x717   : > { %6841 = vmatmul.mubr.msk.f32.gmra.mrb[132].mxu1 %vm463_vm0, %v5961_v30 }
 0x722   : > { %v5113_v46 = vpop.f32.mrb[96].mxu0 }
 0x723   : > { %v5115_v11 = vpop.f32.mrb[97].mxu0 }
 0x726   : > { %v5119_v56 = vpop.f32.mrb[98].mxu0 }
 0x727   : > { %v8764_v18 = vpack.c.bf16 %v5119_v56, %v5113_v46  ;;  %v5121_v47 = vpop.f32.mrb[99].mxu0 }
 0x728   : > { %v8762_v41 = vpack.c.bf16 %v5121_v47, %v5115_v11  ;;  %v6052_v47 = vpop.permute.xlu1 %6051 }
 0x72a   : > { %v5125_v59 = vpop.f32.mrb[100].mxu0  ;;  %8763 = vmatprep.subr.bf16.mxu0 %v8762_v41 }
 0x72b   : > { %v5127_v32 = vpop.f32.mrb[101].mxu0  ;;  %8765 = vmatpush1.bf16.msra.mxu0 %v8764_v18  ;;  %v6047_v18 = vpop.permute.xlu0 %6046 }
 0x72e   : > { %v5131_v34 = vpop.f32.mrb[102].mxu0 }
 0x72f   : > { %v8768_v58 = vpack.c.bf16 %v5131_v34, %v5125_v59  ;;  %v5133_v44 = vpop.f32.mrb[103].mxu0  ;;  %v6042_v59 = vpop.permute.xlu1 %6041 }
 0x730   : > { %v8766_v17 = vpack.c.bf16 %v5133_v44, %v5127_v32 }
 0x732   : > { %8767 = vmatprep.subr.bf16.mxu0 %v8766_v17 }
 0x733   : > { %8769 = vmatpush1.bf16.msra.mxu0 %v8768_v58  ;;  %v11013_v34 = vpop.xlane.xlu1 %2410 }
 0x734   : > { %8771 = vmatprep.subr.bf16.mxu0 %v11398_v13 }
 0x737   : > { %8773 = vmatpush1.bf16.msra.mxu0 %v11399_v9  ;;  %v2389_v44 = vpop.xlane.xlu1 %2388 }
 0x738   : > { %8775 = vmatprep.subr.bf16.mxu0 %v11400_v63  ;;  %v11015_v13 = vmul.f32 0.00390625, %v2389_v44 }
 0x73b   : > { %8777 = vmatpush1.bf16.msra.mxu0 %v11401_v40  ;;  %v2417_v16 = vpop.xlane.xlu1 %2416 }
 0x762   : > { %v5435_v12 = vpop.f32.mrb[104].mxu0 }
 0x763   : > { %v5437_v23 = vpop.f32.mrb[105].mxu0 }
 0x766   : > { %v5441_v29 = vpop.f32.mrb[106].mxu0 }
 0x767   : > { %v8780_v0 = vpack.c.bf16 %v5441_v29, %v5435_v12  ;;  %v5443_v1 = vpop.f32.mrb[107].mxu0  ;;  %v2426_v12 = vmul.f32 %v11015_v13, %v11015_v13 }
 0x768   : > { %v8778_v5 = vpack.c.bf16 %v5443_v1, %v5437_v23  ;;  %v2423_v1 = vmul.f32 0.00390625, %v2417_v16 }
 0x76a   : > { %v5447_v54 = vpop.f32.mrb[108].mxu0  ;;  %8779 = vmatprep.subr.bf16.mxu0 %v8778_v5 }
 0x76b   : > { %v5449_v7 = vpop.f32.mrb[109].mxu0  ;;  %8781 = vmatpush1.bf16.msra.mxu0 %v8780_v0 }
 0x76e   : > { %v5453_v21 = vpop.f32.mrb[110].mxu0 }
 0x76f   : > { %v8784_v28 = vpack.c.bf16 %v5453_v21, %v5447_v54  ;;  %v5455_v57 = vpop.f32.mrb[111].mxu0 }
 0x770   : > { %v8782_v26 = vpack.c.bf16 %v5455_v57, %v5449_v7 }
 0x772   : > { %8783 = vmatprep.subr.bf16.mxu0 %v8782_v26 }
 0x773   : > { %8785 = vmatpush1.bf16.msra.mxu0 %v8784_v28 }
 0x774   : > { %8787 = vmatprep.subr.bf16.mxu0 %v8786_v52 }
 0x777   : > { %8789 = vmatpush1.bf16.msra.mxu0 %v8788_v42 }
 0x778   : > { %8791 = vmatprep.subr.bf16.mxu0 %v8790_v19  ;;  %v5960_v19 = vld [vmem:[#allocation11 + $0x110] sm:$0xff] }
 0x77b   : > { %8793 = vmatpush1.bf16.msra.mxu0 %v8792_v62  ;;  %v5957_v62 = vld [vmem:[#allocation11 + $0xf8] sm:$0xff] }
 0x7a2   : > { %v5757_v4 = vpop.f32.mrb[112].mxu0 }
 0x7a3   : > { %v5759_v60 = vpop.f32.mrb[113].mxu0 }
 0x7a6   : > { %v5763_v35 = vpop.f32.mrb[114].mxu0 }
 0x7a7   : > { %v8796_v14 = vpack.c.bf16 %v5763_v35, %v5757_v4  ;;  %v5765_v33 = vpop.f32.mrb[115].mxu0 }
 0x7a8   : > { %v8794_v2 = vpack.c.bf16 %v5765_v33, %v5759_v60 }
 0x7aa   : > { %v5769_v10 = vpop.f32.mrb[116].mxu0  ;;  %8795 = vmatprep.subr.bf16.mxu0 %v8794_v2 }
 0x7ab   : > { %v5771_v6 = vpop.f32.mrb[117].mxu0  ;;  %8797 = vmatpush1.bf16.msra.mxu0 %v8796_v14  ;;  %v11037_v14 = vpop.xlane.xlu1 %4313 }
 0x7ae   : > { %v5775_v51 = vpop.f32.mrb[118].mxu0 }
 0x7af   : > { %v8800_v45 = vpack.c.bf16 %v5775_v51, %v5769_v10  ;;  %v5777_v42 = vpop.f32.mrb[119].mxu0 }
 0x7b0   : > { %v8798_v52 = vpack.c.bf16 %v5777_v42, %v5771_v6 }
 0x7b2   : > { %8799 = vmatprep.subr.bf16.mxu0 %v8798_v52 }
 0x7b3   : > { %8801 = vmatpush1.bf16.msra.mxu0 %v8800_v45 }
 0x7b4   : > { %8803 = vmatprep.subr.bf16.mxu0 %v10968_v55  ;;  %v5952_v55 = vld [vmem:[#allocation11 + $0xd0] sm:$0xff] }
 0x7b6   : > { %6136 = vmatmul.mubr.f32.vlgmr.msra.gmra.mrb[120].mxu0 %v5950_v20 }
 0x7b7   : > { %8805 = vmatpush1.bf16.msra.mxu0 %v10966_v25  ;;  %6141 = vmatprep.mubr.f32.mxu0 %v5954_v38 }
 0x7b8   : > { %8807 = vmatprep.subr.bf16.mxu0 %v10974_v49 }
 0x7ba   : > { %6142 = vmatmul.mubr.f32.gmra.mrb[122].mxu0 %v5953_v15 }
 0x7bb   : > { %8809 = vmatpush1.bf16.msra.mxu0 %v10972_v3  ;;  %6147 = vmatprep.mubr.f32.mxu0 %v5957_v62  ;;  %v6057_v3 = vpop.permute.xlu0 %6056 }
 0x7be   : > { %6148 = vmatmul.mubr.f32.gmra.mrb[124].mxu0 %v5956_v43 }
 0x7bf   : > { %6153 = vmatprep.mubr.f32.mxu0 %v5960_v19  ;;  %v2386_v41 = vpop.xlane.xlu0 %2385 }
 0x7c0   : > { %v11049_v43 = vmul.f32 0.00390625, %v2386_v41 }
 0x7c2   : > { %6154 = vmatmul.mubr.f32.gmra.mrb[126].mxu0 %v5959_v50  ;;  %v2425_v44 = vmul.f32 %v11049_v43, %v11049_v43 }
 0x7c3   : > { %6224 = vmatprep.mubr.f32.mxu0 %v11402_v53  ;;  %v2414_v32 = vpop.xlane.xlu0 %2413 }
 0x7c4   : > { %v2422_v30 = vmul.f32 0.00390625, %v2414_v32 }
 0x7c6   : > { %6838 = vmatmul.mubr.msk.f32.vlgmr.msra.gmra.mrb[120].mxu0 %vm463_vm0, %v5952_v55  ;;  %v2430_v35 = vsub.f32 %v2422_v30, %v2426_v12 }
 0x7c7   : > { %v2392_v58 = vpop.xlane.xlu0 %2391 }
 0x7c8   : > { %v11017_v9 = vmul.f32 0.00390625, %v2392_v58  ;;  %v2434_v55 = vmax.f32 %v2430_v35, 0.0 }
 0x7ca   : > { %v2427_v0 = vmul.f32 %v11017_v9, %v11017_v9 }
 0x7cb   : > { %v2395_v17 = vpop.xlane.xlu0 %2394 }
 0x7cc   : > { %v11027_v5 = vmul.f32 0.00390625, %v2395_v17  ;;  %v2431_v10 = vsub.f32 %v2423_v1, %v2427_v0  ;;  %v2421_v17 = vmul.f32 0.00390625, %v11013_v34 }
 0x7ce   : > { %v2428_v6 = vmul.f32 %v11027_v5, %v11027_v5  ;;  %v2429_v1 = vsub.f32 %v2421_v17, %v2425_v44 }
 0x7cf   : > { %v2420_v54 = vpop.xlane.xlu0 %2419 }
 0x7d0   : > { %v2424_v51 = vmul.f32 0.00390625, %v2420_v54 }
 0x7d3   : > { %v11043_v45 = vpop.xlane.xlu0 %4337 }
 0x7d7   : > { %v4317_v41 = vpop.xlane.xlu0 %4316 }
 0x7e2   : > { %v6232_v25 = vpop.f32.mrb[128].mxu1 }
 0x7e3   : > { %v6234_v8 = vpop.f32.mrb[129].mxu1 }
 0x7e6   : > { %v6238_v46 = vpop.f32.mrb[130].mxu1 }
 0x7e7   : > { %v6240_v49 = vpop.f32.mrb[131].mxu1 }
 0x7ea   : > { %v6244_v11 = vpop.f32.mrb[132].mxu1 }
 0x7eb   : > { %v6246_v56 = vpop.f32.mrb[133].mxu1 }
 0x88d   : > { %v6143_v36 = vpop.f32.mrb[122].mxu0 }
 0x88e   : > { %v6144_v63 = vadd.f32 %v6143_v36, %v6047_v18  ;;  %v6145_v40 = vpop.f32.mrb[123].mxu0  ;;  %v2442_v36 = vadd.f32 1e-05, %v2434_v55 }
 0x88f   : > { %v6146_v53 = vadd.f32 %v6145_v40, %v6047_v18 }
 0x890   : > { %v11019_v22 = vadd.f32 %v6232_v25, %v6144_v63  ;;  %v2435_v25 = vmax.f32 %v2431_v10, 0.0  ;;  %9003 = vrsqrt.f32 %v2442_v36  ;;  %v2455_v36 = vld [vmem:[%s11338_s7 + $0x10] sm:$0xff] }
 0x891   : > { %v11023_v23 = vadd.f32 %v6234_v8, %v6146_v53  ;;  %v6149_v29 = vpop.f32.mrb[124].mxu0  ;;  %v2432_v8 = vsub.f32 %v2424_v51, %v2428_v6  ;;  %v11072_v53 = vmul.f32 0.00390625, %v4317_v41  ;;  %v11085_v51 = vmul.f32 0.00390625, %v11037_v14  ;;  %v2440_v41 = vld [vmem:[%s11337_s6 + $0x18] sm:$0xff] }
 0x892   : > { %v6150_v7 = vadd.f32 %v6149_v29, %v6052_v47  ;;  %v6151_v21 = vpop.f32.mrb[125].mxu0  ;;  %v6267_v26 = vmul.f32 %v11019_v22, %v11019_v22  ;;  %v2443_v40 = vadd.f32 1e-05, %v2435_v25  ;;  %v4348_v25 = vmul.f32 0.00390625, %v11043_v45 }
 0x893   : > { %v6152_v28 = vadd.f32 %v6151_v21, %v6052_v47  ;;  %v6252_v57 = vadd.f32 %v11023_v23, %v11019_v22  ;;  %v6268_v4 = vmul.f32 %v11023_v23, %v11023_v23  ;;  %v2436_v16 = vmax.f32 %v2432_v8, 0.0 }
 0x894   : > { %v11035_v60 = vadd.f32 %v6238_v46, %v6150_v7  ;;  %v4341_v46 = vpop.xlane.xlu1 %4340  ;;  %9005 = vrsqrt.f32 %v2443_v40  ;;  %v4353_v54 = vmul.f32 %v11072_v53, %v11072_v53  ;;  %v4352_v55 = vmul.f32 %v11085_v51, %v11085_v51 }
 0x895   : > { %v11039_v33 = vadd.f32 %v6240_v49, %v6152_v28  ;;  %v6155_v2 = vpop.f32.mrb[126].mxu0  ;;  %6253 = vadd.xlane.f32.xlu1 %v6252_v57  ;;  %v6276_v38 = vadd.f32 %v6268_v4, %v6267_v26  ;;  %v2444_v34 = vadd.f32 1e-05, %v2436_v16  ;;  %v4349_v21 = vmul.f32 0.00390625, %v4341_v46 }
 0x896   : > { %v6156_v42 = vadd.f32 %v6155_v2, %v6057_v3  ;;  %v6157_v52 = vpop.f32.mrb[127].mxu0  ;;  %v6269_v29 = vmul.f32 %v11035_v60, %v11035_v60  ;;  %v2433_v26 = vmax.f32 %v2429_v1, 0.0  ;;  %v4320_v2 = vpop.xlane.xlu0 %4319 }
 0x897   : > { %v6158_v20 = vadd.f32 %v6157_v52, %v6057_v3  ;;  %v6255_v15 = vadd.f32 %v11039_v33, %v11035_v60  ;;  %v6270_v0 = vmul.f32 %v11039_v33, %v11039_v33  ;;  %9007 = vrsqrt.f32 %v2444_v34 }
 0x898   : > { %v11047_v62 = vadd.f32 %v6244_v11, %v6156_v42  ;;  %v4323_v63 = vpop.xlane.xlu1 %4322  ;;  %v4357_v4 = vsub.f32 %v4349_v21, %v4353_v54  ;;  %v2441_v6 = vadd.f32 1e-05, %v2433_v26  ;;  %v6754_v21 = vld [vmem:[%s11337_s6 + $0x28] sm:$0xff] }
 0x899   : > { %v11051_v19 = vadd.f32 %v6246_v56, %v6158_v20  ;;  %v6226_v50 = vpop.f32.mrb[120].mxu0  ;;  %6277 = vadd.xlane.f32.xlu1 %v6276_v38  ;;  %6256 = vadd.xlane.f32.xlu0 %v6255_v15  ;;  %v11080_v28 = vmul.f32 0.00390625, %v4323_v63  ;;  %v6279_v57 = vadd.f32 %v6270_v0, %v6269_v29  ;;  %v2438_v15 = vld [vmem:[%s11337_s6 + $0x8] sm:$0xff] }
 0x89a   : > { %v11053_v49 = vadd.f32 %v6226_v50, %v6042_v59  ;;  %v6228_v18 = vpop.f32.mrb[121].mxu0  ;;  %v6271_v47 = vmul.f32 %v11047_v62, %v11047_v62  ;;  %v4361_v42 = vmax.f32 %v4357_v4, 0.0  ;;  %v9004_v20 = vpop.eup %9003  ;;  %v2439_v50 = vld [vmem:[%s11337_s6 + $0x10] sm:$0xff]  ;;  %9009 = vrsqrt.f32 %v2441_v6  ;;  %v2453_v4 = vld [vmem:[%s11338_s7] sm:$0xff] }
 0x89b   : > { %v11055_v3 = vadd.f32 %v6228_v18, %v6042_v59  ;;  %v6258_v11 = vadd.f32 %v11051_v19, %v11047_v62  ;;  %v6272_v56 = vmul.f32 %v11051_v19, %v11051_v19  ;;  %v4355_v10 = vmul.f32 %v11080_v28, %v11080_v28  ;;  %v4344_v8 = vpop.xlane.xlu0 %4343 }
 0x89c   : > { %v6265_v58 = vmul.f32 %v11053_v49, %v11053_v49  ;;  %v4347_v7 = vpop.xlane.xlu1 %4346  ;;  %v4370_v14 = vadd.f32 1e-05, %v4361_v42  ;;  %v2450_v18 = vmul.f32 %v9004_v20, %v2438_v15  ;;  %v6758_v20 = vld [vmem:[%s11338_s7 + $0x28] sm:$0xff] }
 0x89d   : > { %6259 = vadd.xlane.f32.xlu1 %v6258_v11  ;;  %v6249_v32 = vadd.f32 %v11055_v3, %v11053_v49  ;;  %v6266_v59 = vmul.f32 %v11055_v3, %v11055_v3  ;;  %v6282_v30 = vadd.f32 %v6272_v56, %v6271_v47  ;;  %v4351_v35 = vmul.f32 0.00390625, %v4347_v7 }
 0x89e   : > { %v9006_v38 = vpop.eup %9005  ;;  %v11096_v11 = vmul.f32 0.00390625, %v4320_v2  ;;  %9011 = vrsqrt.f32 %v4370_v14  ;;  %v6756_v2 = vld [vmem:[%s11337_s6 + $0x38] sm:$0xff] }
 0x89f   : > { %6250 = vadd.xlane.f32.xlu0 %v6249_v32  ;;  %v6273_v12 = vadd.f32 %v6266_v59, %v6265_v58  ;;  %v4359_v52 = vsub.f32 %v4351_v35, %v4355_v10  ;;  %v2451_v47 = vmul.f32 %v9006_v38, %v2439_v50  ;;  %v4356_v32 = vsub.f32 %v4348_v25, %v4352_v55  ;;  %v6760_v55 = vld [vmem:[%s11338_s7 + $0x38] sm:$0xff] }
 0x8a0   : > { %v4350_v58 = vmul.f32 0.00390625, %v4344_v8  ;;  %v4354_v45 = vmul.f32 %v11096_v11, %v11096_v11  ;;  %v2458_v10 = vmul.f32 %v2450_v18, %v11015_v13  ;;  %v6753_v13 = vld [vmem:[%s11337_s6 + $0x20] sm:$0xff] }
 0x8a1   : > { %6283 = vadd.xlane.f32.xlu1 %v6282_v30  ;;  %v4363_v46 = vmax.f32 %v4359_v52, 0.0  ;;  %v9008_v56 = vpop.eup %9007  ;;  %v2459_v17 = vmul.f32 %v2451_v47, %v11017_v9  ;;  %v4360_v63 = vmax.f32 %v4356_v32, 0.0  ;;  %v2456_v9 = vld [vmem:[%s11338_s7 + $0x18] sm:$0xff]  ;;  %v6759_v32 = vld [vmem:[%s11338_s7 + $0x30] sm:$0xff] }
 0x8a2   : > { %v2452_v44 = vmul.f32 %v9008_v56, %v2440_v41  ;;  %v4358_v40 = vsub.f32 %v4350_v58, %v4354_v45 }
 0x8a3   : > { %6274 = vadd.xlane.f32.xlu0 %v6273_v12  ;;  %v4372_v59 = vadd.f32 1e-05, %v4363_v46  ;;  %v2463_v30 = vsub.f32 %v2455_v36, %v2459_v17  ;;  %v2437_v12 = vld [vmem:[%s11337_s6] sm:$0xff]  ;;  %v4369_v0 = vadd.f32 1e-05, %v4360_v63  ;;  %v6755_v46 = vld [vmem:[%s11337_s6 + $0x30] sm:$0xff] }
 0x8a4   : > { %v9010_v16 = vpop.eup %9009  ;;  %v2460_v29 = vmul.f32 %v2452_v44, %v11027_v5  ;;  %v4362_v1 = vmax.f32 %v4358_v40, 0.0 }
 0x8a5   : > { %9013 = vrsqrt.f32 %v4372_v59  ;;  %v2449_v34 = vmul.f32 %v9010_v16, %v2437_v12 }
 0x8a6   : > { %v2464_v54 = vsub.f32 %v2456_v9, %v2460_v29  ;;  %9015 = vrsqrt.f32 %v4369_v0 }
 0x8a7   : > { %6280 = vadd.xlane.f32.xlu0 %v6279_v57  ;;  %v4371_v57 = vadd.f32 1e-05, %v4362_v1  ;;  %v2457_v5 = vmul.f32 %v2449_v34, %v11049_v43  ;;  %v2454_v43 = vld [vmem:[%s11338_s7 + $0x8] sm:$0xff] }
 0x8a8   : > { %v9012_v7 = vpop.eup %9011  ;;  %v2462_v38 = vsub.f32 %v2454_v43, %v2458_v10  ;;  %v6843_v43 = vld [vmem:[%s11337_s6 + $0x48] sm:$0xff] }
 0x8a9   : > { %v4378_v26 = vmul.f32 %v9012_v7, %v6754_v21  ;;  %9017 = vrsqrt.f32 %v4371_v57  ;;  %v2461_v6 = vsub.f32 %v2453_v4, %v2457_v5 }
 0x8ab   : > { %v4387_v42 = vmul.f32 %v4378_v26, %v11072_v53 }
 0x8ad   : > { %v4391_v50 = vsub.f32 %v6758_v20, %v4387_v42 }
 0x8af   : > { %v9014_v35 = vpop.eup %9013 }
 0x8b0   : > { %v4380_v52 = vmul.f32 %v9014_v35, %v6756_v2  ;;  %v9016_v15 = vpop.eup %9015 }
 0x8b1   : > { %v4377_v25 = vmul.f32 %v9016_v15, %v6753_v13  ;;  %v6847_v13 = vld [vmem:[%s11338_s7 + $0x48] sm:$0xff] }
 0x8b2   : > { %2472 = vperm.xlu1 %8970, %v2450_v18   ;;  %v4389_v53 = vmul.f32 %v4380_v52, %v11080_v28  ;;  %v6757_v28 = vld [vmem:[%s11338_s7 + $0x20] sm:$0xff] }
 0x8b3   : > { %v9018_v14 = vpop.eup %9017 }
 0x8b4   : > { %v4393_v8 = vsub.f32 %v6760_v55, %v4389_v53  ;;  %v4379_v18 = vmul.f32 %v9018_v14, %v6755_v46 }
 0x8b6   : > { %2482 = vperm.xlu1 %8970, %v2452_v44   ;;  %v4388_v41 = vmul.f32 %v4379_v18, %v11096_v11 }
 0x8b8   : > { %v4392_v58 = vsub.f32 %v6759_v32, %v4388_v41 }
 0x8ba   : > { %2505 = vperm.xlu1 %8970, %v2463_v30  }
 0x8bd   : > { %2467 = vperm.xlu0 %8969, %v2449_v34  }
 0x8be   : > { %2510 = vperm.xlu1 %8970, %v2464_v54  }
 0x8c1   : > { %2477 = vperm.xlu0 %8969, %v2451_v47   ;;  %v4386_v47 = vmul.f32 %v4377_v25, %v11085_v51 }
 0x8c2   : > { %4401 = vperm.xlu1 %8970, %v4378_v26  }
 0x8c3   : > { %v4390_v56 = vsub.f32 %v6757_v28, %v4386_v47  ;;  %v6849_v47 = vld [vmem:[%s11338_s7 + $0x58] sm:$0xff]  ;;  %v6844_v28 = vld [vmem:[%s11337_s6 + $0x50] sm:$0xff] }
 0x8c5   : > { %2495 = vperm.xlu0 %8969, %v2461_v6  }
 0x8c6   : > { %4411 = vperm.xlu1 %8970, %v4380_v52  }
 0x8c9   : > { %2500 = vperm.xlu0 %8969, %v2462_v38  }
 0x8ca   : > { %4429 = vperm.xlu1 %8970, %v4391_v50  }
 0x8cd   : > { %4396 = vperm.xlu0 %8969, %v4377_v25   ;;  %v6845_v25 = vld [vmem:[%s11337_s6 + $0x58] sm:$0xff] }
 0x8ce   : > { %4439 = vperm.xlu1 %8970, %v4393_v8  }
 0x8d1   : > { %4406 = vperm.xlu0 %8969, %v4379_v18  }
 0x8d5   : > { %4424 = vperm.xlu0 %8969, %v4390_v56   ;;  %v6842_v56 = vld [vmem:[%s11337_s6 + $0x40] sm:$0xff] }
 0x8d9   : > { %4434 = vperm.xlu0 %8969, %v4392_v58  }
 0x922   : > { %v6254_v59 = vpop.xlane.xlu1 %6253 }
 0x923   : > { %v6262_v45 = vmul.f32 0.00390625, %v6254_v59 }
 0x925   : > { %v6290_v17 = vmul.f32 %v6262_v45, %v6262_v45 }
 0x926   : > { %v6278_v44 = vpop.xlane.xlu1 %6277  ;;  %v6257_v36 = vpop.xlane.xlu0 %6256 }
 0x927   : > { %v6286_v51 = vmul.f32 0.00390625, %v6278_v44  ;;  %v6263_v54 = vmul.f32 0.00390625, %v6257_v36  ;;  %v6846_v44 = vld [vmem:[%s11338_s7 + $0x40] sm:$0xff]  ;;  %v6848_v36 = vld [vmem:[%s11338_s7 + $0x50] sm:$0xff] }
 0x929   : > { %v6294_v63 = vsub.f32 %v6286_v51, %v6290_v17  ;;  %v6291_v35 = vmul.f32 %v6263_v54, %v6263_v54 }
 0x92a   : > { %v6260_v40 = vpop.xlane.xlu1 %6259 }
 0x92b   : > { %v6298_v16 = vmax.f32 %v6294_v63, 0.0  ;;  %v6264_v30 = vmul.f32 0.00390625, %v6260_v40 }
 0x92c   : > { %v6251_v12 = vpop.xlane.xlu0 %6250 }
 0x92d   : > { %v6307_v29 = vadd.f32 1e-05, %v6298_v16  ;;  %v6261_v11 = vmul.f32 0.00390625, %v6251_v12  ;;  %v6292_v0 = vmul.f32 %v6264_v30, %v6264_v30 }
 0x92e   : > { %v6284_v9 = vpop.xlane.xlu1 %6283 }
 0x92f   : > { %9019 = vrsqrt.f32 %v6307_v29  ;;  %v6288_v1 = vmul.f32 0.00390625, %v6284_v9  ;;  %v6289_v7 = vmul.f32 %v6261_v11, %v6261_v11 }
 0x930   : > { %v6275_v34 = vpop.xlane.xlu0 %6274 }
 0x931   : > { %v6296_v21 = vsub.f32 %v6288_v1, %v6292_v0  ;;  %v6285_v57 = vmul.f32 0.00390625, %v6275_v34 }
 0x932   : > { %v2473_v40 = vpop.permute.xlu1 %2472 }
 0x933   : > { %v6300_v5 = vmax.f32 %v6296_v21, 0.0  ;;  %v6293_v26 = vsub.f32 %v6285_v57, %v6289_v7 }
 0x934   : > { %v6281_v4 = vpop.xlane.xlu0 %6280 }
 0x935   : > { %v6309_v2 = vadd.f32 1e-05, %v6300_v5  ;;  %v6297_v10 = vmax.f32 %v6293_v26, 0.0  ;;  %v6287_v6 = vmul.f32 0.00390625, %v6281_v4  ;;  %v2487_v26 = vmul.f32 %v2473_v40, %v10293_v39 }
 0x936   : > { %v2483_v16 = vpop.permute.xlu1 %2482  ;;  %v2488_v4 = vmul.f32 %v2473_v40, %v10296_v48  ;;  %v11403_v48 = vld [vmem:[#allocation30_spill] sm:$0xff] }
 0x937   : > { %9021 = vrsqrt.f32 %v6309_v2  ;;  %v6306_v42 = vadd.f32 1e-05, %v6297_v10  ;;  %v6295_v52 = vsub.f32 %v6287_v6, %v6291_v35  ;;  %v2491_v21 = vmul.f32 %v2483_v16, %v10329_v31 }
 0x939   : > { %v9020_v20 = vpop.eup %9019  ;;  %v6299_v38 = vmax.f32 %v6295_v52, 0.0  ;;  %9023 = vrsqrt.f32 %v6306_v42  ;;  %v2492_v42 = vmul.f32 %v2483_v16, %v10331_v37 }
 0x93a   : > { %v6315_v15 = vmul.f32 %v9020_v20, %v6843_v43  ;;  %v11188_v20 = vstv %s6761_s28  ;;  %s9241_s28 = sshll.u32 %s9335_s27, 4  ;;  %s9242_s28 = int_to_ptr.vmem [resolvable:$false] %s9241_s28 }
 0x93b   : > { %v6308_v50 = vadd.f32 1e-05, %v6299_v38  ;;  %p9244_p9 = scmp.lt.s32.totalorder %s11285_s26, %s9242_s28 }
 0x93c   : > { %6338 = vperm.xlu1 %8970, %v6315_v15   ;;  %v6324_v53 = vmul.f32 %v6315_v15, %v6262_v45  ;;  %v11176_v12 = vpop.permute.xlu0 %2467 }
 0x93d   : > { %9025 = vrsqrt.f32 %v6308_v50 }
 0x93e   : > { %v6328_v55 = vsub.f32 %v6847_v13, %v6324_v53 }
 0x940   : > { %6366 = vperm.xlu1 %8970, %v6328_v55  }
 0x941   : > { %v9022_v14 = vpop.eup %9021 }
 0x942   : > { %v6317_v8 = vmul.f32 %v9022_v14, %v6845_v25 }
 0x943   : > { %v9024_v18 = vpop.eup %9023 }
 0x944   : > { %6348 = vperm.xlu1 %8970, %v6317_v8   ;;  %v6326_v46 = vmul.f32 %v6317_v8, %v6264_v30  ;;  %v6314_v59 = vmul.f32 %v9024_v18, %v6842_v56  ;;  %v11174_v30 = vpop.permute.xlu1 %2505 }
 0x946   : > { %v6330_v32 = vsub.f32 %v6849_v47, %v6326_v46  ;;  %v6323_v45 = vmul.f32 %v6314_v59, %v6261_v11  ;;  %v2478_v11 = vpop.permute.xlu0 %2477  ;;  %v11202_v46 = vstv %s6850_s21 }
 0x947   : > { %v9026_v41 = vpop.eup %9025 }
 0x948   : > { %v6316_v58 = vmul.f32 %v9026_v41, %v6844_v28  ;;  %6376 = vperm.xlu1 %8970, %v6330_v32   ;;  %v6327_v17 = vsub.f32 %v6846_v44, %v6323_v45  ;;  %v2511_v29 = vpop.permute.xlu1 %2510  ;;  %v11404_v32 = vld [vmem:[#allocation24_spill] sm:$0xff] }
 0x949   : > { %v2519_v2 = vadd.f32 %v2511_v29, %v2491_v21 }
 0x94a   : > { %6343 = vperm.xlu0 %8969, %v6316_v58   ;;  %v6325_v51 = vmul.f32 %v6316_v58, %v6263_v54  ;;  %v11178_v0 = vpop.permute.xlu0 %2495  ;;  %v2489_v58 = vmul.f32 %v2478_v11, %v11404_v32 }
 0x94b   : > { %vm2528_vm0 = vcmp.ge.f32.partialorder %v2519_v2, 0.0 }
 0x94c   : > { %v6329_v63 = vsub.f32 %v6848_v36, %v6325_v51  ;;  %v4402_v9 = vpop.permute.xlu1 %4401 }
 0x94d   : > { %v4416_v57 = vmul.f32 %v10867_v24, %v4402_v9  ;;  %v4417_v5 = vmul.f32 %v10869_v27, %v4402_v9  ;;  %v11192_v24 = vstv %s2521_s11  ;;  %v2520_v27 = vadd.f32 %v2511_v29, %v2492_v42  ;;  %s9243_s11 = scalar_lea.vmem %s9242_s28, 2048 }
 0x94e   : > { %6333 = vperm.xlu0 %8969, %v6314_v59   ;;  %v2501_v34 = vpop.permute.xlu0 %2500  ;;  %v11405_v59 = vld [vmem:[#allocation25_spill] sm:$0xff]  ;;  %v2537_v51 = vmul.f32 %v11192_v24, %v2519_v2  ;;  %p9245_p8 = scmp.lt.s32.totalorder %s9243_s11, %s9237_s23 }
 0x94f   : > { %v2515_v52 = vadd.f32 %v2501_v34, %v2487_v26  ;;  %v2516_v43 = vadd.f32 %v2501_v34, %v2488_v4  ;;  %vm2529_vm14 = vcmp.ge.f32.partialorder %v2520_v27, 0.0  ;;  %v2490_v45 = vmul.f32 %v2478_v11, %v11405_v59  ;;  %v11407_v26 = vld [vmem:[#allocation23_spill] sm:$0xff] }
 0x950   : > { %v4412_v1 = vpop.permute.xlu1 %4411  ;;  %v2538_v36 = vmul.f32 %v11192_v24, %v2520_v27  ;;  %v2486_v4 = vmul.f32 %v11176_v12, %v11407_v26  ;;  %p9246_p6 = por %p9245_p8, %p9244_p9 }
 0x951   : > { %v4420_v39 = vmul.f32 %v10881_v61, %v4412_v1  ;;  %v4421_v15 = vmul.f32 %v11403_v48, %v4412_v1  ;;  %v2533_v37 = vmul.f32 %v11192_v24, %v2515_v52  ;;  %v2534_v53 = vmul.f32 %v11192_v24, %v2516_v43 }
 0x952   : > { %6361 = vperm.xlu0 %8969, %v6327_v17   ;;  %v11180_v7 = vpop.permute.xlu0 %4396  ;;  %vm2524_vm12 = vcmp.ge.f32.partialorder %v2515_v52, 0.0  ;;  %vm2525_vm13 = vcmp.ge.f32.partialorder %v2516_v43, 0.0  ;;  %v2546_v42 = vsel %vm2529_vm14, %v2520_v27, %v2538_v36  ;;  %p9247_p11 = pnand %p9246_p6, %p9240_p7 }
 0x953   : > { %v2541_v44 = vsel %vm2524_vm12, %v2515_v52, %v2533_v37  ;;  %v11408_v52 = vld [vmem:[#allocation26_spill] sm:$0xff] }
 0x954   : > { %v4430_v54 = vpop.permute.xlu1 %4429 }
 0x955   : > { %v4444_v10 = vadd.f32 %v4430_v54, %v4416_v57  ;;  %v4445_v6 = vadd.f32 %v4430_v54, %v4417_v5  ;;  %v11406_v57 = vld [vmem:[#allocation22_spill] sm:$0xff] }
 0x956   : > { %6371 = vperm.xlu0 %8969, %v6329_v63   ;;  %v11190_v31 = vpop.permute.xlu0 %4406  ;;  %v2485_v5 = vmul.f32 %v11176_v12, %v11406_v57 }
 0x957   : > { %v4462_v50 = vmul.f32 %v11188_v20, %v4444_v10  ;;  %v4463_v13 = vmul.f32 %v11188_v20, %v4445_v6  ;;  %vm4453_vm10 = vcmp.ge.f32.partialorder %v4444_v10, 0.0  ;;  %vm4454_vm11 = vcmp.ge.f32.partialorder %v4445_v6, 0.0 }
 0x958   : > { %v4440_v35 = vpop.permute.xlu1 %4439  ;;  %v2513_v48 = vadd.f32 %v11178_v0, %v2485_v5 }
 0x959   : > { %v4448_v61 = vadd.f32 %v4440_v35, %v4420_v39  ;;  %v4449_v14 = vadd.f32 %v4440_v35, %v4421_v15  ;;  %v4470_v47 = vsel %vm4453_vm10, %v4444_v10, %v4462_v50  ;;  %v4471_v28 = vsel %vm4454_vm11, %v4445_v6, %v4463_v13 }
 0x95a   : > { %v4425_v8 = vpop.permute.xlu0 %4424  ;;  %v4478_v63 = vmul.f32 %v4470_v47, %v2541_v44  ;;  %v11219_v35 = vadd.f32 %v11174_v30, %v2489_v58  ;;  %v11222_v10 = vadd.f32 %v11174_v30, %v2490_v45  ;;  %v2545_v6 = vsel %vm2528_vm0, %v2519_v2, %v2537_v51  ;;  %v11411_v47 = vld [vmem:[#allocation29_spill] sm:$0xff] }
 0x95b   : > { %v4466_v29 = vmul.f32 %v11188_v20, %v4448_v61  ;;  %v4467_v11 = vmul.f32 %v11188_v20, %v4449_v14  ;;  %vm4457_vm2 = vcmp.ge.f32.partialorder %v4448_v61, 0.0  ;;  %vm4458_vm3 = vcmp.ge.f32.partialorder %v4449_v14, 0.0 }
 0x95c   : > { %v2514_v15 = vadd.f32 %v11178_v0, %v2486_v4  ;;  %v4419_v0 = vmul.f32 %v11411_v47, %v11190_v31  ;;  %vm2526_vm4 = vcmp.ge.f32.partialorder %v11219_v35, 0.0  ;;  %vm2527_vm5 = vcmp.ge.f32.partialorder %v11222_v10, 0.0 }
 0x95d   : > { %v4474_v30 = vsel %vm4457_vm2, %v4448_v61, %v4466_v29  ;;  %v4475_v12 = vsel %vm4458_vm3, %v4449_v14, %v4467_v11  ;;  %v2531_v44 = vmul.f32 %v11192_v24, %v2513_v48  ;;  %vm2522_vm0 = vcmp.ge.f32.partialorder %v2513_v48, 0.0 }
 0x95e   : > { %v4435_v34 = vpop.permute.xlu0 %4434  ;;  %v4482_v14 = vmul.f32 %v4474_v30, %v2545_v6  ;;  %vm2523_vm10 = vcmp.ge.f32.partialorder %v2514_v15, 0.0 }
 0x95f   : > { %v4447_v58 = vadd.f32 %v4435_v34, %v4419_v0 }
 0x961   : > { %v4465_v29 = vmul.f32 %v11188_v20, %v4447_v58  ;;  %vm4456_vm12 = vcmp.ge.f32.partialorder %v4447_v58, 0.0 }
 0x963   : > { %v4473_v26 = vsel %vm4456_vm12, %v4447_v58, %v4465_v29 }
 0x9bb   : > { %v6339_v38 = vpop.permute.xlu1 %6338 }
 0x9bc   : > { %v6353_v55 = vmul.f32 %v6339_v38, %v11019_v22  ;;  %v6354_v25 = vmul.f32 %v6339_v38, %v11023_v23  ;;  %v2542_v22 = vsel %vm2525_vm13, %v2516_v43, %v2534_v53  ;;  %v4414_v43 = vmul.f32 %v11408_v52, %v11180_v7  ;;  %v11409_v38 = vld [vmem:[#allocation27_spill] sm:$0xff] }
 0x9bd   : > { %v4479_v40 = vmul.f32 %v4471_v28, %v2542_v22  ;;  %v4415_v39 = vmul.f32 %v11409_v38, %v11180_v7  ;;  %v2535_v53 = vmul.f32 %v11192_v24, %v11219_v35  ;;  %v2532_v22 = vmul.f32 %v11192_v24, %v2514_v15 }
 0x9be   : > { %v4442_v7 = vadd.f32 %v4425_v8, %v4414_v43 }
 0x9bf   : > { %v6367_v18 = vpop.permute.xlu1 %6366  ;;  %v4443_v50 = vadd.f32 %v4425_v8, %v4415_v39 }
 0x9c0   : > { %v6381_v56 = vadd.f32 %v6367_v18, %v6353_v55  ;;  %v6382_v41 = vadd.f32 %v6367_v18, %v6354_v25  ;;  %v2536_v55 = vmul.f32 %v11192_v24, %v11222_v10  ;;  %vm4451_vm8 = vcmp.ge.f32.partialorder %v4442_v7, 0.0 }
 0x9c1   : > { %vm4452_vm9 = vcmp.ge.f32.partialorder %v4443_v50, 0.0 }
 0x9c2   : > { %vm6390_vm15 = vcmp.ge.f32.partialorder %v6381_v56, 0.0  ;;  %vm6391_vm1 = vcmp.ge.f32.partialorder %v6382_v41, 0.0  ;;  %v6399_v23 = vmul.f32 %v11202_v46, %v6381_v56  ;;  %v6400_v17 = vmul.f32 %v11202_v46, %v6382_v41 }
 0x9c3   : > { %v6349_v16 = vpop.permute.xlu1 %6348  ;;  %v2544_v43 = vsel %vm2527_vm5, %v11222_v10, %v2536_v55 }
 0x9c4   : > { %v6407_v9 = vsel %vm6390_vm15, %v6381_v56, %v6399_v23  ;;  %v6408_v1 = vsel %vm6391_vm1, %v6382_v41, %v6400_v17  ;;  %v6357_v2 = vmul.f32 %v6349_v16, %v11047_v62  ;;  %v6358_v27 = vmul.f32 %v6349_v16, %v11051_v19  ;;  %v11410_v19 = vld [vmem:[#allocation28_spill] sm:$0xff] }
 0x9c5   : > { %v6415_v54 = vmul.f32 %v6407_v9, %v4478_v63  ;;  %v6416_v21 = vmul.f32 %v6408_v1, %v4479_v40  ;;  %v4483_v62 = vmul.f32 %v4475_v12, %v2546_v42  ;;  %v4418_v18 = vmul.f32 %v11410_v19, %v11190_v31 }
 0x9c6   : > { %v4460_v56 = vmul.f32 %v11188_v20, %v4442_v7  ;;  %v4461_v41 = vmul.f32 %v11188_v20, %v4443_v50  ;;  %v2539_v1 = vsel %vm2522_vm0, %v2513_v48, %v2531_v44 }
 0x9c7   : > { %6423 = vst [vmem:[%s11232_s14 + $0x10] sm:$0xff] %v6415_v54  ;;  %6424 = vst [vmem:[%s11232_s14 + $0x18] sm:$0xff] %v6416_v21  ;;  %v6377_v13 = vpop.permute.xlu1 %6376  ;;  %v4446_v32 = vadd.f32 %v4435_v34, %v4418_v18  ;;  %v2540_v34 = vsel %vm2523_vm10, %v2514_v15, %v2532_v22 }
 0x9c8   : > { %v6385_v25 = vadd.f32 %v6377_v13, %v6357_v2  ;;  %v6386_v61 = vadd.f32 %v6377_v13, %v6358_v27  ;;  %v4468_v63 = vsel %vm4451_vm8, %v4442_v7, %v4460_v56  ;;  %v4469_v40 = vsel %vm4452_vm9, %v4443_v50, %v4461_v41 }
 0x9c9   : > { %v6344_v37 = vpop.permute.xlu0 %6343  ;;  %v4464_v16 = vmul.f32 %v11188_v20, %v4446_v32  ;;  %vm4455_vm11 = vcmp.ge.f32.partialorder %v4446_v32, 0.0  ;;  %v4476_v21 = vmul.f32 %v4468_v63, %v2539_v1  ;;  %v4477_v57 = vmul.f32 %v4469_v40, %v2540_v34 }
 0x9ca   : > { %vm6394_vm6 = vcmp.ge.f32.partialorder %v6385_v25, 0.0  ;;  %vm6395_vm7 = vcmp.ge.f32.partialorder %v6386_v61, 0.0  ;;  %v6403_v8 = vmul.f32 %v11202_v46, %v6385_v25  ;;  %v6404_v28 = vmul.f32 %v11202_v46, %v6386_v61 }
 0x9cb   : > { %v6355_v54 = vmul.f32 %v6344_v37, %v11035_v60  ;;  %v4472_v5 = vsel %vm4455_vm11, %v4446_v32, %v4464_v16 }
 0x9cc   : > { %v6411_v31 = vsel %vm6394_vm6, %v6385_v25, %v6403_v8  ;;  %v6412_v45 = vsel %vm6395_vm7, %v6386_v61, %v6404_v28 }
 0x9cd   : > { %v6334_v59 = vpop.permute.xlu0 %6333  ;;  %v6419_v23 = vmul.f32 %v6411_v31, %v4482_v14  ;;  %v6420_v17 = vmul.f32 %v6412_v45, %v4483_v62 }
 0x9ce   : > { %v6351_v51 = vmul.f32 %v11053_v49, %v6334_v59  ;;  %v6352_v36 = vmul.f32 %v11055_v3, %v6334_v59  ;;  %v6356_v49 = vmul.f32 %v6344_v37, %v11039_v33  ;;  %v2543_v33 = vsel %vm2526_vm4, %v11219_v35, %v2535_v53 }
 0x9cf   : > { %6427 = vst [vmem:[%s11232_s14 + $0x30] sm:$0xff] %v6419_v23  ;;  %6428 = vst [vmem:[%s11232_s14 + $0x38] sm:$0xff] %v6420_v17  ;;  %v4480_v2 = vmul.f32 %v4472_v5, %v2543_v33  ;;  %v4481_v35 = vmul.f32 %v4473_v26, %v2544_v43 }
 0x9d1   : > { %v6362_v11 = vpop.permute.xlu0 %6361 }
 0x9d2   : > { %v6379_v24 = vadd.f32 %v6362_v11, %v6351_v51  ;;  %v6380_v9 = vadd.f32 %v6362_v11, %v6352_v36 }
 0x9d4   : > { %vm6388_vm13 = vcmp.ge.f32.partialorder %v6379_v24, 0.0  ;;  %vm6389_vm14 = vcmp.ge.f32.partialorder %v6380_v9, 0.0  ;;  %v6397_v3 = vmul.f32 %v11202_v46, %v6379_v24  ;;  %v6398_v20 = vmul.f32 %v11202_v46, %v6380_v9 }
 0x9d5   : > { %v6372_v4 = vpop.permute.xlu0 %6371 }
 0x9d6   : > { %v6405_v6 = vsel %vm6388_vm13, %v6379_v24, %v6397_v3  ;;  %v6406_v42 = vsel %vm6389_vm14, %v6380_v9, %v6398_v20  ;;  %v6383_v60 = vadd.f32 %v6372_v4, %v6355_v54  ;;  %v6384_v52 = vadd.f32 %v6372_v4, %v6356_v49 }
 0x9d7   : > { %v6413_v38 = vmul.f32 %v6405_v6, %v4476_v21  ;;  %v6414_v39 = vmul.f32 %v6406_v42, %v4477_v57 }
 0x9d8   : > { %vm6392_vm15 = vcmp.ge.f32.partialorder %v6383_v60, 0.0  ;;  %vm6393_vm1 = vcmp.ge.f32.partialorder %v6384_v52, 0.0  ;;  %v6401_v30 = vmul.f32 %v11202_v46, %v6383_v60  ;;  %v6402_v12 = vmul.f32 %v11202_v46, %v6384_v52 }
 0x9d9   : > { %6421 = vst [vmem:[%s11232_s14] sm:$0xff] %v6413_v38  ;;  %6422 = vst [vmem:[%s11232_s14 + $0x8] sm:$0xff] %v6414_v39 }
 0x9da   : > { %v6409_v27 = vsel %vm6392_vm15, %v6383_v60, %v6401_v30  ;;  %v6410_v10 = vsel %vm6393_vm1, %v6384_v52, %v6402_v12 }
 0x9db   : > { %v6417_v48 = vmul.f32 %v6409_v27, %v4480_v2  ;;  %v6418_v15 = vmul.f32 %v6410_v10, %v4481_v35 }
 0x9dd   : > { %6425 = vst [vmem:[%s11232_s14 + $0x20] sm:$0xff] %v6417_v48  ;;  %6426 = vst [vmem:[%s11232_s14 + $0x28] sm:$0xff] %v6418_v15 }
 0x9de   : > { %9250 = shalt.err (!%p9247_p11)
}
 0x9df   : > { %s9251_s21 = scalar_lea.hbm %s11283_s24, 1024  ;;  %s9255_s10 = scalar_lea.hbm %s11412_s20, 2048 }
 0x9e0   : > { %p9252_p12 = scmp.ne.s32.totalorder %s11283_s24, %s9251_s21  ;;  %p9256_p1 = scmp.lt.u32.totalorder %s11283_s24, %s11412_s20 }
 0x9e1   : > { %p9257_p10 = scmp.lt.u32.totalorder %s9255_s10, %s9251_s21  ;;  %p9259_p13 = scmp.lt.u32.totalorder %s9251_s21, %s11283_s24 }
 0x9e2   : > { %p9253_p2 = pnand %p9252_p12, %p11413_p0 }
 0x9e3   : > { %p9258_p3 = por %p9257_p10, %p9256_p1 }
 0x9e4   : > { %p9254_p4 = pneg %p9253_p2 }
 0x9e5   : > { %p9260_p5 = por %p9259_p13, %p9258_p3 }
 0x9e7   : > { %p9261_p7 = pnand %p9260_p5, %p9254_p4 }
 0x9e9   : > { %9264 = shalt.err (!%p9261_p7)
}
 0x9ea   : > { %s9336_s23 = smov 256   ;;  %s9337_s28 = smov 16  }
 0x9eb   : > { %8884 = dma.vmem_to_hbm [thread:$0]  (%p11413_p0), %s11285_s26, 1024, %s11283_s24, %s6430_s19, %s9336_s23, %s9336_s23, %s9337_s28  }
 0x9ec PF: > { %s6458_s11 = sand.u32 1, %s9307_s15   ;;  %p11414_p9 = scmp.ne.s32.totalorder %s11368_s2, 0 }
 0x9ed   : > { %p11415_p8 = scmp.ge.s32.totalorder %s9319_s18, 2  ;;  %s6459_s21 = scalar_lea.sflag [#allocation6], %s6458_s11 }
 0x9ef   : > { %p8907_p6 = pnand %p11415_p8, %p11414_p9 }
 0x9f1   : > { %9302 = dma.done.wait (!%p8907_p6), %s6459_s21, 1024  }
 0x9f2   : > { %9304 = vsyncadd (!%p8907_p6), %s6459_s21, 4294966272  ;;  %p27_p11 = scmp.ge.s32.totalorder %s9557_s12, 4   ;;  %s11416_s15 = smov %s9311_s16 }
 0x9f3   : > { %s11417_s16 = smov %s9315_s17  ;;  %s11418_s17 = smov %s9569_s13 }
 0x9f4   : > { %s11419_s18 = smov %s9557_s12  ;;  %29 = sbr.rel (!%p27_p11) target bundleno = 11 (0xb), region = 142 }
 0x9fb   :  { %6464 = vsyncpa [#allocation5], 1 }
 0x9fc   :  { %6466 = vsyncpa [#allocation5 + $0x1], 1 }
 0x9fd   :  { %6467 = vsyncpa [#allocation9], 1 }
 0x9fe   :  { %6468 = vsyncpa [#allocation12], 1 }
 0x9ff   :  { %6469 = vsyncpa [#allocation6], 1 }
 0xa00   :  { %6471 = vsyncpa [#allocation6 + $0x1], 1 }
 0xa01   :  { %6472 = vsyncpa [#allocation7], 1 }
 0xa02   :  { %6474 = vsyncpa [#allocation7 + $0x1], 1 }

</bundles_post_ra>
